<compile_context>
chip_gen: v5e
topology: v5e:2x2
jax: 0.10.0
libtpu: 0.0.40
codegen_flags: <defaults>
</compile_context>

<pallas_src>
import math

import jax
import jax.numpy as jnp
import numpy as np
from jax import lax
from jax.experimental import pallas as pl
from jax.experimental.pallas import tpu as pltpu

INV_SQRT2 = 1.0 / math.sqrt(2.0)
NEG_SLOPE = 0.2
COL0 = 16  # first interior column of the padded scratch (bf16 sublane tile = 16)


def _conv3x3_lrelu(xp_ref, col_ref, w_ref, b_ref, H, W, C):
    """3x3 'SAME' conv over the zero-padded bf16 scratch xp_ref.

    xp_ref : (H+2, COL0+W+16, C) bf16; image interior at rows [1, H+1),
             cols [COL0, COL0+W); zero halo ring at rows 0 / H+1 and
             cols COL0-1 / COL0+W.
    col_ref: (H*W, 9*C) bf16 im2col scratch.
    w_ref  : (9*C, C) bf16, row index = (ky*3+kx)*C + ci.
    b_ref  : (1, C) f32.
    Returns (H*W, C) f32 with bias + LeakyReLU(0.2) applied.
    """
    # Gather the 9 taps into the im2col scratch, then ONE deep-K MXU matmul
    # with f32 accumulation (no per-tap dot + VPU-add chain).
    for ky in range(3):
        for kx in range(3):
            tap = ky * 3 + kx
            c0 = COL0 - 1 + kx
            col_ref[:, tap * C:(tap + 1) * C] = (
                xp_ref[ky:ky + H, c0:c0 + W, :].reshape(H * W, C))
    acc = jnp.dot(col_ref[...], w_ref[...],
                  preferred_element_type=jnp.float32)        # (H*W, C) f32
    acc = acc + b_ref[...]                                   # (1, C) broadcast
    return jnp.where(acc >= 0, acc, NEG_SLOPE * acc)         # LeakyReLU(0.2)


def resblock_kernel(x_ref, w1_ref, b1_ref, w2_ref, b2_ref, o_ref,
                    xp_ref, col_ref):
    # x_ref  : (1, H, W, C)  input block (stays resident; exact f32 residual)
    # w*_ref : (9*C, C) bf16 im2col weight matrices
    # b*_ref : (1, C)  f32
    # o_ref  : (1, H, W, C)
    # xp_ref : (H+2, COL0+W+16, C) bf16 padded-activation scratch (both convs)
    # col_ref: (H*W, 9*C) bf16 im2col scratch
    _, H, W, C = o_ref.shape
    dt = xp_ref.dtype

    # ---- zero ONLY the 1-px halo ring (interior is overwritten below) -------
    zrow = jnp.zeros((1, W + 2, C), dt)
    zcol = jnp.zeros((H, 1, C), dt)
    xp_ref[0:1, COL0 - 1:COL0 + W + 1, :] = zrow
    xp_ref[H + 1:H + 2, COL0 - 1:COL0 + W + 1, :] = zrow
    xp_ref[1:H + 1, COL0 - 1:COL0, :] = zcol
    xp_ref[1:H + 1, COL0 + W:COL0 + W + 1, :] = zcol

    # ---- stage input interior (bf16, sublane-aligned store at COL0) ---------
    xp_ref[1:H + 1, COL0:COL0 + W, :] = x_ref[0].astype(dt)

    # ---- conv1 + lrelu -------------------------------------------------------
    out1 = _conv3x3_lrelu(xp_ref, col_ref, w1_ref, b1_ref, H, W, C)

    # ---- conv2 + lrelu (intermediate never leaves VMEM) ----------------------
    xp_ref[1:H + 1, COL0:COL0 + W, :] = out1.reshape(H, W, C).astype(dt)
    out2 = _conv3x3_lrelu(xp_ref, col_ref, w2_ref, b2_ref, H, W, C)

    # ---- residual (exact f32, from the resident input block) + 1/sqrt(2) -----
    res = x_ref[0].astype(jnp.float32)                        # (H, W, C)
    out = (out2.reshape(H, W, C) + res) * INV_SQRT2
    o_ref[0, :, :, :] = out.astype(o_ref.dtype)


def vtoonify_resblock(x_nchw, w1_hwio, b1, w2_hwio, b2):
    """x_nchw: (N, C, H, W); weights HWIO (3, 3, C, C); biases (C,)."""
    N, C, H, W = x_nchw.shape
    x = jnp.transpose(x_nchw, (0, 2, 3, 1))                   # -> NHWC
    # (ky, kx, ci, co) -> ((ky*3+kx)*C + ci, co); bf16 MXU operands.
    w1_m = w1_hwio.reshape(9 * C, C).astype(jnp.bfloat16)
    w2_m = w2_hwio.reshape(9 * C, C).astype(jnp.bfloat16)
    b1_2d = b1.reshape(1, C).astype(jnp.float32)
    b2_2d = b2.reshape(1, C).astype(jnp.float32)

    wp = COL0 + W + 16                                        # padded scratch width
    itemsize = x.dtype.itemsize
    cost = pl.CostEstimate(
        flops=4 * N * H * W * 9 * C * C,                      # 2 convs * 2*M*K*N
        transcendentals=0,
        bytes_accessed=2 * N * H * W * C * itemsize           # x in + out
        + 2 * 9 * C * C * 2 + 2 * C * 4)                      # weights + biases

    out = pl.pallas_call(
        resblock_kernel,
        out_shape=jax.ShapeDtypeStruct((N, H, W, C), x.dtype),
        grid=(N,),
        in_specs=[
            pl.BlockSpec((1, H, W, C), lambda n: (n, 0, 0, 0)),
            pl.BlockSpec((9 * C, C), lambda n: (0, 0)),
            pl.BlockSpec((1, C), lambda n: (0, 0)),
            pl.BlockSpec((9 * C, C), lambda n: (0, 0)),
            pl.BlockSpec((1, C), lambda n: (0, 0)),
        ],
        out_specs=pl.BlockSpec((1, H, W, C), lambda n: (n, 0, 0, 0)),
        scratch_shapes=[
            pltpu.VMEM((H + 2, wp, C), jnp.bfloat16),          # padded activations
            pltpu.VMEM((H * W, 9 * C), jnp.bfloat16),          # im2col
        ],
        compiler_params=pltpu.CompilerParams(
            dimension_semantics=("parallel",)),
        cost_estimate=cost,
    )(x, w1_m, b1_2d, w2_m, b2_2d)
    return jnp.transpose(out, (0, 3, 1, 2))                   # -> NCHW


def _reference(x_nchw, w1_hwio, b1, w2_hwio, b2):
    """Pure-JAX f32 reference using lax.conv_general_dilated (NCHW semantics)."""
    def conv(x, w_hwio, b):
        y = lax.conv_general_dilated(
            x, w_hwio, window_strides=(1, 1), padding="SAME",
            dimension_numbers=("NCHW", "HWIO", "NCHW"))
        return y + b[None, :, None, None]

    def lrelu(x):
        return jnp.where(x >= 0, x, NEG_SLOPE * x)

    out = lrelu(conv(x_nchw, w1_hwio, b1))
    out = lrelu(conv(out, w2_hwio, b2))
    return (out + x_nchw) * INV_SQRT2


if __name__ == "__main__":
    # Small shapes consistent with the module: fin=4 channels, 16x16 spatial.
    N, C, H, W = 2, 4, 16, 16

    key = jax.random.PRNGKey(0)
    kx_, kw1, kb1, kw2, kb2 = jax.random.split(key, 5)

    x = jax.random.normal(kx_, (N, C, H, W), dtype=jnp.float32)
    w1 = jax.random.normal(kw1, (3, 3, C, C), dtype=jnp.float32) * 0.1
    b1 = jax.random.normal(kb1, (C,), dtype=jnp.float32) * 0.1
    w2 = jax.random.normal(kw2, (3, 3, C, C), dtype=jnp.float32) * 0.1
    b2 = jax.random.normal(kb2, (C,), dtype=jnp.float32) * 0.1

    out = jax.block_until_ready(jax.jit(vtoonify_resblock)(x, w1, b1, w2, b2))
    ref = jax.block_until_ready(_reference(x, w1, b1, w2, b2))

    # bf16 matmul operands + bf16 intermediate activation vs f32 reference:
    # expect small drift, so tolerances are widened (still catches structural
    # bugs, which would be O(0.1..1)).
    np.testing.assert_allclose(np.asarray(out), np.asarray(ref),
                               rtol=5e-2, atol=5e-2)

    print("KERNEL_OK")
</pallas_src>

<mosaic_0001>
module attributes {stable_mosaic.version = 11 : i64} {
  func.func @resblock_kernel(%arg0: i32, %arg1: memref<1x16x16x4xf32, #tpu.memory_space<vmem>>, %arg2: memref<36x4xbf16, #tpu.memory_space<vmem>>, %arg3: memref<1x4xf32, #tpu.memory_space<vmem>>, %arg4: memref<36x4xbf16, #tpu.memory_space<vmem>>, %arg5: memref<1x4xf32, #tpu.memory_space<vmem>>, %arg6: memref<1x16x16x4xf32, #tpu.memory_space<vmem>>, %arg7: memref<18x48x4xbf16, #tpu.memory_space<vmem>>, %arg8: memref<256x36xbf16, #tpu.memory_space<vmem>>) attributes {dimension_semantics = [#tpu.dimension_semantics<parallel>], iteration_bounds = array<i64: 2>, scalar_prefetch = 0 : i64, scratch_operands = 2 : i64, tpu.core_type = #tpu.core_type<tc>, window_params = [{transform_indices = @transform_0, window_bounds = array<i64: 1, 16, 16, 4>}, {pipeline_mode = #tpu.pipeline_mode<synchronous>, transform_indices = @transform_1, window_bounds = array<i64: 36, 4>}, {pipeline_mode = #tpu.pipeline_mode<synchronous>, transform_indices = @transform_2, window_bounds = array<i64: 1, 4>}, {pipeline_mode = #tpu.pipeline_mode<synchronous>, transform_indices = @transform_3, window_bounds = array<i64: 36, 4>}, {pipeline_mode = #tpu.pipeline_mode<synchronous>, transform_indices = @transform_4, window_bounds = array<i64: 1, 4>}, {transform_indices = @transform_5, window_bounds = array<i64: 1, 16, 16, 4>}]} {
    %cst = arith.constant 0.000000e+00 : bf16
    %0 = vector.broadcast %cst : bf16 to vector<1x18x4xbf16>
    %cst_0 = arith.constant 0.000000e+00 : bf16
    %1 = vector.broadcast %cst_0 : bf16 to vector<16x1x4xbf16>
    %c0 = arith.constant 0 : index
    %c15 = arith.constant 15 : index
    %c0_1 = arith.constant 0 : index
    %2 = vector.load %arg7[%c0, %c15, %c0_1] : memref<18x48x4xbf16, #tpu.memory_space<vmem>>, vector<1x18x4xbf16>
    tpu.vector_store %arg7[%c0, %c15, %c0_1], %0 {strides = array<i32>} : memref<18x48x4xbf16, #tpu.memory_space<vmem>>, vector<1x18x4xbf16>,
    %c17 = arith.constant 17 : index
    %c15_2 = arith.constant 15 : index
    %c0_3 = arith.constant 0 : index
    %3 = vector.load %arg7[%c17, %c15_2, %c0_3] : memref<18x48x4xbf16, #tpu.memory_space<vmem>>, vector<1x18x4xbf16>
    tpu.vector_store %arg7[%c17, %c15_2, %c0_3], %0 {strides = array<i32>} : memref<18x48x4xbf16, #tpu.memory_space<vmem>>, vector<1x18x4xbf16>,
    %c1 = arith.constant 1 : index
    %c15_4 = arith.constant 15 : index
    %c0_5 = arith.constant 0 : index
    %4 = vector.load %arg7[%c1, %c15_4, %c0_5] : memref<18x48x4xbf16, #tpu.memory_space<vmem>>, vector<16x1x4xbf16>
    tpu.vector_store %arg7[%c1, %c15_4, %c0_5], %1 {strides = array<i32>} : memref<18x48x4xbf16, #tpu.memory_space<vmem>>, vector<16x1x4xbf16>,
    %c1_6 = arith.constant 1 : index
    %c32 = arith.constant 32 : index
    %c0_7 = arith.constant 0 : index
    %5 = vector.load %arg7[%c1_6, %c32, %c0_7] : memref<18x48x4xbf16, #tpu.memory_space<vmem>>, vector<16x1x4xbf16>
    tpu.vector_store %arg7[%c1_6, %c32, %c0_7], %1 {strides = array<i32>} : memref<18x48x4xbf16, #tpu.memory_space<vmem>>, vector<16x1x4xbf16>,
    %c0_8 = arith.constant 0 : index
    %c0_9 = arith.constant 0 : index
    %c0_10 = arith.constant 0 : index
    %c0_11 = arith.constant 0 : index
    %6 = vector.load %arg1[%c0_8, %c0_9, %c0_10, %c0_11] : memref<1x16x16x4xf32, #tpu.memory_space<vmem>>, vector<1x16x16x4xf32>
    %7 = vector.shape_cast %6 : vector<1x16x16x4xf32> to vector<16x16x4xf32>
    %8 = arith.truncf %7 : vector<16x16x4xf32> to vector<16x16x4xbf16>
    %c1_12 = arith.constant 1 : index
    %c16 = arith.constant 16 : index
    %c0_13 = arith.constant 0 : index
    %9 = vector.load %arg7[%c1_12, %c16, %c0_13] : memref<18x48x4xbf16, #tpu.memory_space<vmem>>, vector<16x16x4xbf16>
    tpu.vector_store %arg7[%c1_12, %c16, %c0_13], %8 {strides = array<i32>} : memref<18x48x4xbf16, #tpu.memory_space<vmem>>, vector<16x16x4xbf16>,
    %c0_14 = arith.constant 0 : index
    %c15_15 = arith.constant 15 : index
    %c0_16 = arith.constant 0 : index
    %10 = vector.load %arg7[%c0_14, %c15_15, %c0_16] : memref<18x48x4xbf16, #tpu.memory_space<vmem>>, vector<16x16x4xbf16>
    %11 = vector.shape_cast %10 : vector<16x16x4xbf16> to vector<256x4xbf16>
    %c0_17 = arith.constant 0 : index
    %c0_18 = arith.constant 0 : index
    %12 = vector.load %arg8[%c0_17, %c0_18] : memref<256x36xbf16, #tpu.memory_space<vmem>>, vector<256x4xbf16>
    tpu.vector_store %arg8[%c0_17, %c0_18], %11 {strides = array<i32>} : memref<256x36xbf16, #tpu.memory_space<vmem>>, vector<256x4xbf16>,
    %c0_19 = arith.constant 0 : index
    %c16_20 = arith.constant 16 : index
    %c0_21 = arith.constant 0 : index
    %13 = vector.load %arg7[%c0_19, %c16_20, %c0_21] : memref<18x48x4xbf16, #tpu.memory_space<vmem>>, vector<16x16x4xbf16>
    %14 = vector.shape_cast %13 : vector<16x16x4xbf16> to vector<256x4xbf16>
    %c0_22 = arith.constant 0 : index
    %c4 = arith.constant 4 : index
    %15 = vector.load %arg8[%c0_22, %c4] : memref<256x36xbf16, #tpu.memory_space<vmem>>, vector<256x4xbf16>
    tpu.vector_store %arg8[%c0_22, %c4], %14 {strides = array<i32>} : memref<256x36xbf16, #tpu.memory_space<vmem>>, vector<256x4xbf16>,
    %c0_23 = arith.constant 0 : index
    %c17_24 = arith.constant 17 : index
    %c0_25 = arith.constant 0 : index
    %16 = vector.load %arg7[%c0_23, %c17_24, %c0_25] : memref<18x48x4xbf16, #tpu.memory_space<vmem>>, vector<16x16x4xbf16>
    %17 = vector.shape_cast %16 : vector<16x16x4xbf16> to vector<256x4xbf16>
    %c0_26 = arith.constant 0 : index
    %c8 = arith.constant 8 : index
    %18 = vector.load %arg8[%c0_26, %c8] : memref<256x36xbf16, #tpu.memory_space<vmem>>, vector<256x4xbf16>
    tpu.vector_store %arg8[%c0_26, %c8], %17 {strides = array<i32>} : memref<256x36xbf16, #tpu.memory_space<vmem>>, vector<256x4xbf16>,
    %c1_27 = arith.constant 1 : index
    %c15_28 = arith.constant 15 : index
    %c0_29 = arith.constant 0 : index
    %19 = vector.load %arg7[%c1_27, %c15_28, %c0_29] : memref<18x48x4xbf16, #tpu.memory_space<vmem>>, vector<16x16x4xbf16>
    %20 = vector.shape_cast %19 : vector<16x16x4xbf16> to vector<256x4xbf16>
    %c0_30 = arith.constant 0 : index
    %c12 = arith.constant 12 : index
    %21 = vector.load %arg8[%c0_30, %c12] : memref<256x36xbf16, #tpu.memory_space<vmem>>, vector<256x4xbf16>
    tpu.vector_store %arg8[%c0_30, %c12], %20 {strides = array<i32>} : memref<256x36xbf16, #tpu.memory_space<vmem>>, vector<256x4xbf16>,
    %c1_31 = arith.constant 1 : index
    %c16_32 = arith.constant 16 : index
    %c0_33 = arith.constant 0 : index
    %22 = vector.load %arg7[%c1_31, %c16_32, %c0_33] : memref<18x48x4xbf16, #tpu.memory_space<vmem>>, vector<16x16x4xbf16>
    %23 = vector.shape_cast %22 : vector<16x16x4xbf16> to vector<256x4xbf16>
    %c0_34 = arith.constant 0 : index
    %c16_35 = arith.constant 16 : index
    %24 = vector.load %arg8[%c0_34, %c16_35] : memref<256x36xbf16, #tpu.memory_space<vmem>>, vector<256x4xbf16>
    tpu.vector_store %arg8[%c0_34, %c16_35], %23 {strides = array<i32>} : memref<256x36xbf16, #tpu.memory_space<vmem>>, vector<256x4xbf16>,
    %c1_36 = arith.constant 1 : index
    %c17_37 = arith.constant 17 : index
    %c0_38 = arith.constant 0 : index
    %25 = vector.load %arg7[%c1_36, %c17_37, %c0_38] : memref<18x48x4xbf16, #tpu.memory_space<vmem>>, vector<16x16x4xbf16>
    %26 = vector.shape_cast %25 : vector<16x16x4xbf16> to vector<256x4xbf16>
    %c0_39 = arith.constant 0 : index
    %c20 = arith.constant 20 : index
    %27 = vector.load %arg8[%c0_39, %c20] : memref<256x36xbf16, #tpu.memory_space<vmem>>, vector<256x4xbf16>
    tpu.vector_store %arg8[%c0_39, %c20], %26 {strides = array<i32>} : memref<256x36xbf16, #tpu.memory_space<vmem>>, vector<256x4xbf16>,
    %c2 = arith.constant 2 : index
    %c15_40 = arith.constant 15 : index
    %c0_41 = arith.constant 0 : index
    %28 = vector.load %arg7[%c2, %c15_40, %c0_41] : memref<18x48x4xbf16, #tpu.memory_space<vmem>>, vector<16x16x4xbf16>
    %29 = vector.shape_cast %28 : vector<16x16x4xbf16> to vector<256x4xbf16>
    %c0_42 = arith.constant 0 : index
    %c24 = arith.constant 24 : index
    %30 = vector.load %arg8[%c0_42, %c24] : memref<256x36xbf16, #tpu.memory_space<vmem>>, vector<256x4xbf16>
    tpu.vector_store %arg8[%c0_42, %c24], %29 {strides = array<i32>} : memref<256x36xbf16, #tpu.memory_space<vmem>>, vector<256x4xbf16>,
    %c2_43 = arith.constant 2 : index
    %c16_44 = arith.constant 16 : index
    %c0_45 = arith.constant 0 : index
    %31 = vector.load %arg7[%c2_43, %c16_44, %c0_45] : memref<18x48x4xbf16, #tpu.memory_space<vmem>>, vector<16x16x4xbf16>
    %32 = vector.shape_cast %31 : vector<16x16x4xbf16> to vector<256x4xbf16>
    %c0_46 = arith.constant 0 : index
    %c28 = arith.constant 28 : index
    %33 = vector.load %arg8[%c0_46, %c28] : memref<256x36xbf16, #tpu.memory_space<vmem>>, vector<256x4xbf16>
    tpu.vector_store %arg8[%c0_46, %c28], %32 {strides = array<i32>} : memref<256x36xbf16, #tpu.memory_space<vmem>>, vector<256x4xbf16>,
    %c2_47 = arith.constant 2 : index
    %c17_48 = arith.constant 17 : index
    %c0_49 = arith.constant 0 : index
    %34 = vector.load %arg7[%c2_47, %c17_48, %c0_49] : memref<18x48x4xbf16, #tpu.memory_space<vmem>>, vector<16x16x4xbf16>
    %35 = vector.shape_cast %34 : vector<16x16x4xbf16> to vector<256x4xbf16>
    %c0_50 = arith.constant 0 : index
    %c32_51 = arith.constant 32 : index
    %36 = vector.load %arg8[%c0_50, %c32_51] : memref<256x36xbf16, #tpu.memory_space<vmem>>, vector<256x4xbf16>
    tpu.vector_store %arg8[%c0_50, %c32_51], %35 {strides = array<i32>} : memref<256x36xbf16, #tpu.memory_space<vmem>>, vector<256x4xbf16>,
    %c0_52 = arith.constant 0 : index
    %c0_53 = arith.constant 0 : index
    %37 = vector.load %arg8[%c0_52, %c0_53] : memref<256x36xbf16, #tpu.memory_space<vmem>>, vector<256x36xbf16>
    %c0_54 = arith.constant 0 : index
    %c0_55 = arith.constant 0 : index
    %38 = vector.load %arg2[%c0_54, %c0_55] : memref<36x4xbf16, #tpu.memory_space<vmem>>, vector<36x4xbf16>
    %cst_56 = arith.constant dense<0.000000e+00> : vector<256x4xf32>
    %39 = tpu.matmul %37, %38, %cst_56 {dimension_numbers = #tpu.dot_dimension_numbers<[1], [0], [0], [1], [0, 0, 1, 1], [], []>} : vector<256x36xbf16>, vector<36x4xbf16>, vector<256x4xf32> -> vector<256x4xf32>
    %c0_57 = arith.constant 0 : index
    %c0_58 = arith.constant 0 : index
    %40 = vector.load %arg3[%c0_57, %c0_58] : memref<1x4xf32, #tpu.memory_space<vmem>>, vector<1x4xf32>
    %41 = vector.broadcast %40 : vector<1x4xf32> to vector<256x4xf32>
    %42 = arith.addf %39, %41 : vector<256x4xf32>
    %cst_59 = arith.constant 0.000000e+00 : f32
    %43 = vector.broadcast %cst_59 : f32 to vector<256x4xf32>
    %44 = arith.cmpf oge, %42, %43 : vector<256x4xf32>
    %cst_60 = arith.constant 2.000000e-01 : f32
    %45 = vector.broadcast %cst_60 : f32 to vector<256x4xf32>
    %46 = arith.mulf %45, %42 : vector<256x4xf32>
    %47 = arith.select %44, %42, %46 : vector<256x4xi1>, vector<256x4xf32>
    %48 = vector.shape_cast %47 : vector<256x4xf32> to vector<16x16x4xf32>
    %49 = arith.truncf %48 : vector<16x16x4xf32> to vector<16x16x4xbf16>
    %c1_61 = arith.constant 1 : index
    %c16_62 = arith.constant 16 : index
    %c0_63 = arith.constant 0 : index
    %50 = vector.load %arg7[%c1_61, %c16_62, %c0_63] : memref<18x48x4xbf16, #tpu.memory_space<vmem>>, vector<16x16x4xbf16>
    tpu.vector_store %arg7[%c1_61, %c16_62, %c0_63], %49 {strides = array<i32>} : memref<18x48x4xbf16, #tpu.memory_space<vmem>>, vector<16x16x4xbf16>,
    %c0_64 = arith.constant 0 : index
    %c15_65 = arith.constant 15 : index
    %c0_66 = arith.constant 0 : index
    %51 = vector.load %arg7[%c0_64, %c15_65, %c0_66] : memref<18x48x4xbf16, #tpu.memory_space<vmem>>, vector<16x16x4xbf16>
    %52 = vector.shape_cast %51 : vector<16x16x4xbf16> to vector<256x4xbf16>
    %c0_67 = arith.constant 0 : index
    %c0_68 = arith.constant 0 : index
    %53 = vector.load %arg8[%c0_67, %c0_68] : memref<256x36xbf16, #tpu.memory_space<vmem>>, vector<256x4xbf16>
    tpu.vector_store %arg8[%c0_67, %c0_68], %52 {strides = array<i32>} : memref<256x36xbf16, #tpu.memory_space<vmem>>, vector<256x4xbf16>,
    %c0_69 = arith.constant 0 : index
    %c16_70 = arith.constant 16 : index
    %c0_71 = arith.constant 0 : index
    %54 = vector.load %arg7[%c0_69, %c16_70, %c0_71] : memref<18x48x4xbf16, #tpu.memory_space<vmem>>, vector<16x16x4xbf16>
    %55 = vector.shape_cast %54 : vector<16x16x4xbf16> to vector<256x4xbf16>
    %c0_72 = arith.constant 0 : index
    %c4_73 = arith.constant 4 : index
    %56 = vector.load %arg8[%c0_72, %c4_73] : memref<256x36xbf16, #tpu.memory_space<vmem>>, vector<256x4xbf16>
    tpu.vector_store %arg8[%c0_72, %c4_73], %55 {strides = array<i32>} : memref<256x36xbf16, #tpu.memory_space<vmem>>, vector<256x4xbf16>,
    %c0_74 = arith.constant 0 : index
    %c17_75 = arith.constant 17 : index
    %c0_76 = arith.constant 0 : index
    %57 = vector.load %arg7[%c0_74, %c17_75, %c0_76] : memref<18x48x4xbf16, #tpu.memory_space<vmem>>, vector<16x16x4xbf16>
    %58 = vector.shape_cast %57 : vector<16x16x4xbf16> to vector<256x4xbf16>
    %c0_77 = arith.constant 0 : index
    %c8_78 = arith.constant 8 : index
    %59 = vector.load %arg8[%c0_77, %c8_78] : memref<256x36xbf16, #tpu.memory_space<vmem>>, vector<256x4xbf16>
    tpu.vector_store %arg8[%c0_77, %c8_78], %58 {strides = array<i32>} : memref<256x36xbf16, #tpu.memory_space<vmem>>, vector<256x4xbf16>,
    %c1_79 = arith.constant 1 : index
    %c15_80 = arith.constant 15 : index
    %c0_81 = arith.constant 0 : index
    %60 = vector.load %arg7[%c1_79, %c15_80, %c0_81] : memref<18x48x4xbf16, #tpu.memory_space<vmem>>, vector<16x16x4xbf16>
    %61 = vector.shape_cast %60 : vector<16x16x4xbf16> to vector<256x4xbf16>
    %c0_82 = arith.constant 0 : index
    %c12_83 = arith.constant 12 : index
    %62 = vector.load %arg8[%c0_82, %c12_83] : memref<256x36xbf16, #tpu.memory_space<vmem>>, vector<256x4xbf16>
    tpu.vector_store %arg8[%c0_82, %c12_83], %61 {strides = array<i32>} : memref<256x36xbf16, #tpu.memory_space<vmem>>, vector<256x4xbf16>,
    %c1_84 = arith.constant 1 : index
    %c16_85 = arith.constant 16 : index
    %c0_86 = arith.constant 0 : index
    %63 = vector.load %arg7[%c1_84, %c16_85, %c0_86] : memref<18x48x4xbf16, #tpu.memory_space<vmem>>, vector<16x16x4xbf16>
    %64 = vector.shape_cast %63 : vector<16x16x4xbf16> to vector<256x4xbf16>
    %c0_87 = arith.constant 0 : index
    %c16_88 = arith.constant 16 : index
    %65 = vector.load %arg8[%c0_87, %c16_88] : memref<256x36xbf16, #tpu.memory_space<vmem>>, vector<256x4xbf16>
    tpu.vector_store %arg8[%c0_87, %c16_88], %64 {strides = array<i32>} : memref<256x36xbf16, #tpu.memory_space<vmem>>, vector<256x4xbf16>,
    %c1_89 = arith.constant 1 : index
    %c17_90 = arith.constant 17 : index
    %c0_91 = arith.constant 0 : index
    %66 = vector.load %arg7[%c1_89, %c17_90, %c0_91] : memref<18x48x4xbf16, #tpu.memory_space<vmem>>, vector<16x16x4xbf16>
    %67 = vector.shape_cast %66 : vector<16x16x4xbf16> to vector<256x4xbf16>
    %c0_92 = arith.constant 0 : index
    %c20_93 = arith.constant 20 : index
    %68 = vector.load %arg8[%c0_92, %c20_93] : memref<256x36xbf16, #tpu.memory_space<vmem>>, vector<256x4xbf16>
    tpu.vector_store %arg8[%c0_92, %c20_93], %67 {strides = array<i32>} : memref<256x36xbf16, #tpu.memory_space<vmem>>, vector<256x4xbf16>,
    %c2_94 = arith.constant 2 : index
    %c15_95 = arith.constant 15 : index
    %c0_96 = arith.constant 0 : index
    %69 = vector.load %arg7[%c2_94, %c15_95, %c0_96] : memref<18x48x4xbf16, #tpu.memory_space<vmem>>, vector<16x16x4xbf16>
    %70 = vector.shape_cast %69 : vector<16x16x4xbf16> to vector<256x4xbf16>
    %c0_97 = arith.constant 0 : index
    %c24_98 = arith.constant 24 : index
    %71 = vector.load %arg8[%c0_97, %c24_98] : memref<256x36xbf16, #tpu.memory_space<vmem>>, vector<256x4xbf16>
    tpu.vector_store %arg8[%c0_97, %c24_98], %70 {strides = array<i32>} : memref<256x36xbf16, #tpu.memory_space<vmem>>, vector<256x4xbf16>,
    %c2_99 = arith.constant 2 : index
    %c16_100 = arith.constant 16 : index
    %c0_101 = arith.constant 0 : index
    %72 = vector.load %arg7[%c2_99, %c16_100, %c0_101] : memref<18x48x4xbf16, #tpu.memory_space<vmem>>, vector<16x16x4xbf16>
    %73 = vector.shape_cast %72 : vector<16x16x4xbf16> to vector<256x4xbf16>
    %c0_102 = arith.constant 0 : index
    %c28_103 = arith.constant 28 : index
    %74 = vector.load %arg8[%c0_102, %c28_103] : memref<256x36xbf16, #tpu.memory_space<vmem>>, vector<256x4xbf16>
    tpu.vector_store %arg8[%c0_102, %c28_103], %73 {strides = array<i32>} : memref<256x36xbf16, #tpu.memory_space<vmem>>, vector<256x4xbf16>,
    %c2_104 = arith.constant 2 : index
    %c17_105 = arith.constant 17 : index
    %c0_106 = arith.constant 0 : index
    %75 = vector.load %arg7[%c2_104, %c17_105, %c0_106] : memref<18x48x4xbf16, #tpu.memory_space<vmem>>, vector<16x16x4xbf16>
    %76 = vector.shape_cast %75 : vector<16x16x4xbf16> to vector<256x4xbf16>
    %c0_107 = arith.constant 0 : index
    %c32_108 = arith.constant 32 : index
    %77 = vector.load %arg8[%c0_107, %c32_108] : memref<256x36xbf16, #tpu.memory_space<vmem>>, vector<256x4xbf16>
    tpu.vector_store %arg8[%c0_107, %c32_108], %76 {strides = array<i32>} : memref<256x36xbf16, #tpu.memory_space<vmem>>, vector<256x4xbf16>,
    %c0_109 = arith.constant 0 : index
    %c0_110 = arith.constant 0 : index
    %78 = vector.load %arg8[%c0_109, %c0_110] : memref<256x36xbf16, #tpu.memory_space<vmem>>, vector<256x36xbf16>
    %c0_111 = arith.constant 0 : index
    %c0_112 = arith.constant 0 : index
    %79 = vector.load %arg4[%c0_111, %c0_112] : memref<36x4xbf16, #tpu.memory_space<vmem>>, vector<36x4xbf16>
    %cst_113 = arith.constant dense<0.000000e+00> : vector<256x4xf32>
    %80 = tpu.matmul %78, %79, %cst_113 {dimension_numbers = #tpu.dot_dimension_numbers<[1], [0], [0], [1], [0, 0, 1, 1], [], []>} : vector<256x36xbf16>, vector<36x4xbf16>, vector<256x4xf32> -> vector<256x4xf32>
    %c0_114 = arith.constant 0 : index
    %c0_115 = arith.constant 0 : index
    %81 = vector.load %arg5[%c0_114, %c0_115] : memref<1x4xf32, #tpu.memory_space<vmem>>, vector<1x4xf32>
    %82 = vector.broadcast %81 : vector<1x4xf32> to vector<256x4xf32>
    %83 = arith.addf %80, %82 : vector<256x4xf32>
    %cst_116 = arith.constant 0.000000e+00 : f32
    %84 = vector.broadcast %cst_116 : f32 to vector<256x4xf32>
    %85 = arith.cmpf oge, %83, %84 : vector<256x4xf32>
    %cst_117 = arith.constant 2.000000e-01 : f32
    %86 = vector.broadcast %cst_117 : f32 to vector<256x4xf32>
    %87 = arith.mulf %86, %83 : vector<256x4xf32>
    %88 = arith.select %85, %83, %87 : vector<256x4xi1>, vector<256x4xf32>
    %c0_118 = arith.constant 0 : index
    %c0_119 = arith.constant 0 : index
    %c0_120 = arith.constant 0 : index
    %c0_121 = arith.constant 0 : index
    %89 = vector.load %arg1[%c0_118, %c0_119, %c0_120, %c0_121] : memref<1x16x16x4xf32, #tpu.memory_space<vmem>>, vector<1x16x16x4xf32>
    %90 = vector.shape_cast %89 : vector<1x16x16x4xf32> to vector<16x16x4xf32>
    %91 = vector.shape_cast %88 : vector<256x4xf32> to vector<16x16x4xf32>
    %92 = arith.addf %91, %90 : vector<16x16x4xf32>
    %cst_122 = arith.constant 0.707106769 : f32
    %93 = vector.broadcast %cst_122 : f32 to vector<16x16x4xf32>
    %94 = arith.mulf %92, %93 : vector<16x16x4xf32>
    %c0_123 = arith.constant 0 : index
    %c0_124 = arith.constant 0 : index
    %c0_125 = arith.constant 0 : index
    %c0_126 = arith.constant 0 : index
    %95 = vector.load %arg6[%c0_123, %c0_124, %c0_125, %c0_126] : memref<1x16x16x4xf32, #tpu.memory_space<vmem>>, vector<1x16x16x4xf32>
    %96 = vector.shape_cast %95 : vector<1x16x16x4xf32> to vector<16x16x4xf32>
    %97 = vector.shape_cast %94 : vector<16x16x4xf32> to vector<1x16x16x4xf32>
    tpu.vector_store %arg6[%c0_123, %c0_124, %c0_125, %c0_126], %97 {strides = array<i32>} : memref<1x16x16x4xf32, #tpu.memory_space<vmem>>, vector<1x16x16x4xf32>,
    return
  }
  func.func @transform_0(%arg0: i32) -> (i32, i32, i32, i32) {
    %c0_i32 = arith.constant 0 : i32
    %c0_i32_0 = arith.constant 0 : i32
    %c0_i32_1 = arith.constant 0 : i32
    %c0_i32_2 = arith.constant 0 : i32
    return %arg0, %c0_i32, %c0_i32_0, %c0_i32_1 : i32, i32, i32, i32
  }
  func.func @transform_1(%arg0: i32) -> (i32, i32) {
    %c0_i32 = arith.constant 0 : i32
    %c0_i32_0 = arith.constant 0 : i32
    %c0_i32_1 = arith.constant 0 : i32
    return %c0_i32, %c0_i32_0 : i32, i32
  }
  func.func @transform_2(%arg0: i32) -> (i32, i32) {
    %c0_i32 = arith.constant 0 : i32
    %c0_i32_0 = arith.constant 0 : i32
    %c0_i32_1 = arith.constant 0 : i32
    return %c0_i32, %c0_i32_0 : i32, i32
  }
  func.func @transform_3(%arg0: i32) -> (i32, i32) {
    %c0_i32 = arith.constant 0 : i32
    %c0_i32_0 = arith.constant 0 : i32
    %c0_i32_1 = arith.constant 0 : i32
    return %c0_i32, %c0_i32_0 : i32, i32
  }
  func.func @transform_4(%arg0: i32) -> (i32, i32) {
    %c0_i32 = arith.constant 0 : i32
    %c0_i32_0 = arith.constant 0 : i32
    %c0_i32_1 = arith.constant 0 : i32
    return %c0_i32, %c0_i32_0 : i32, i32
  }
  func.func @transform_5(%arg0: i32) -> (i32, i32, i32, i32) {
    %c0_i32 = arith.constant 0 : i32
    %c0_i32_0 = arith.constant 0 : i32
    %c0_i32_1 = arith.constant 0 : i32
    %c0_i32_2 = arith.constant 0 : i32
    return %arg0, %c0_i32, %c0_i32_0, %c0_i32_1 : i32, i32, i32, i32
  }
}

</mosaic_0001>

<bundles_post_ra>
// kernel: vtoonify_resblock.1
= control target key start
LH: loop header
LB: loop body
LE: loop exit
PB: predicated region body
PF: predicated region fallthrough
CT: control target
= control target key end

     0   :  { %s9397_s18 = smov 0   ;;  %s12475_s0 = inlined_call_operand.vmem [shape: f32[2,16,16,4], index: 0, kind: input, shape index: {}]   ;;  %s12476_s1 = inlined_call_operand.vmem [shape: bf16[36,4], index: 1, kind: input, shape index: {}]   ;;  %s12477_s2 = inlined_call_operand.vmem [shape: f32[1,4], index: 2, kind: input, shape index: {}]   ;;  %s12478_s3 = inlined_call_operand.vmem [shape: bf16[36,4], index: 3, kind: input, shape index: {}]   ;;  %s12479_s4 = inlined_call_operand.vmem [shape: f32[1,4], index: 4, kind: input, shape index: {}]   ;;  %s12480_s5 = inlined_call_operand.vmem [shape: f32[2,16,16,4], index: 5, kind: output, shape index: {}]  }
   0x1 LB: > { %s9003_s19 = sadd.s32 4294967295, %s9356_s18   ;;  %p9007_p0 = scmp.ge.s32.totalorder %s9356_s18, 1  ;;  %s9356_s18 = sphi %s9397_s18, %s15_s18  }
   0x2   : > { %p187_p1 = scmp.lt.s32.totalorder %s9356_s18, 3 }
   0x4   : > { %p188_p2 = pnand %p9007_p0, %p187_p1 }
   0x5   : > { %p215_p3 = scmp.lt.s32.totalorder (!%p188_p2), %s9003_s19, 1  ;;  %s9359_s24 = smov (!%p188_p2), 4  }
   0x6   : > { %191 = sbr.rel (%p188_p2) target bundleno = 1909 (0x775), region = 40  ;;  %s9360_s25 = smov (!%p188_p2), 8  }
   0x7   : > { %s9361_s26 = smov (!%p188_p2), 12   ;;  %s9362_s27 = smov (!%p188_p2), 16  }
   0x8   : > { %s9363_s28 = smov (!%p188_p2), 20   ;;  %s9364_s29 = smov (!%p188_p2), 24  }
   0x9   : > { %s9365_s30 = smov (!%p188_p2), 28   ;;  %s9366_s6 = smov (!%p188_p2), 32  }
   0xb   : > { %vm232_vm0 = vcmask 27648   ;;  %v9358_v0 = vmov 0   ;;  %s12490_s19 = smov (!%p215_p3, %s9003_s19), 1  ;;  %vm235_vm1 = vcmask 24576   ;;  %vm236_vm2 = vsmask.f32 256 }
   0xc   : > { %233 = vst.msk [vmem:[#allocation2 + $0x8] sm:$0xf] %vm232_vm0, %v9358_v0  ;;  %s9286_s20 = sshll.u32 %s12490_s19, 8  ;;  %vm9487_vm3 = vmand %vm235_vm1, %vm236_vm2  ;;  %vm1150_vm4 = vsmask.f32 3328  ;;  %vm226_vm6 = vcmask 27651  }
   0xd   : > { %245 = vst.msk [vmem:[#allocation2 + $0x1a0] sm:$0xf] %vm232_vm0, %v9358_v0  ;;  %s9417_s23 = scalar_lea.vmem %s12475_s0, %s9286_s20  ;;  %vm1151_vm5 = vsmask.f32 7440  ;;  %vm227_vm7 = vsmask.f32 7950  ;;  %s12288_s8 = scalar_lea.vmem %s12480_s5, %s9286_s20 }
   0xe   : > { %246 = vst.msk [vmem:[#allocation2 + $0x1a4] sm:$0xf] %vm232_vm0, %v9358_v0  ;;  %v347_v1 = vld [vmem:[%s9417_s23] sm:$0xff]  ;;  %v348_v3 = vld [vmem:[%s9417_s23 + $0x8] sm:$0xff]  ;;  %v354_v7 = vld [vmem:[%s9417_s23 + $0x38] sm:$0xff]  ;;  %vm1069_vm12 = vcmask 60448  }
   0xf   : > { %234 = vst.msk [vmem:[#allocation2 + $0xc] sm:$0xf] %vm232_vm0, %v9358_v0  ;;  %v351_v2 = vld [vmem:[%s9417_s23 + $0x20] sm:$0xff]  ;;  %v379_v4 = vpack.c.bf16 %v347_v1, %v347_v1  ;;  %v380_v6 = vpack.c.bf16 %v348_v3, %v348_v3  ;;  %v352_v8 = vld [vmem:[%s9417_s23 + $0x28] sm:$0xff]  ;;  %v357_v9 = vld [vmem:[%s9417_s23 + $0x50] sm:$0xff]  ;;  %v386_v11 = vpack.c.bf16 %v354_v7, %v354_v7  ;;  %vm1633_vm13 = vcmask 93248  }
  0x10   : > { %v383_v5 = vpack.c.bf16 %v351_v2, %v351_v2  ;;  %v349_v12 = vld [vmem:[%s9417_s23 + $0x10] sm:$0xff]  ;;  %v384_v13 = vpack.c.bf16 %v352_v8, %v352_v8  ;;  %v355_v14 = vld [vmem:[%s9417_s23 + $0x40] sm:$0xff]  ;;  %v389_v15 = vpack.c.bf16 %v357_v9, %v357_v9  ;;  %v360_v16 = vld [vmem:[%s9417_s23 + $0x68] sm:$0xff]  ;;  %vm491_vm9 = vsmask.f32 4368 }
  0x11   : > { %411 = vst.msk [vmem:[#allocation2 + $0x20] sm:$0xf] %vm232_vm0, %v379_v4  ;;  %v381_v17 = vpack.c.bf16 %v349_v12, %v349_v12  ;;  %v350_v18 = vld [vmem:[%s9417_s23 + $0x18] sm:$0xff]  ;;  %v387_v19 = vpack.c.bf16 %v355_v14, %v355_v14  ;;  %v392_v21 = vpack.c.bf16 %v360_v16, %v360_v16  ;;  %v363_v24 = vld [vmem:[%s9417_s23 + $0x80] sm:$0xff]  ;;  %v353_v25 = vld [vmem:[%s9417_s23 + $0x30] sm:$0xff]  ;;  %vm2162_vm14 = vcmask 126048  }
  0x12   : > { %415 = vst.msk [vmem:[#allocation2 + $0x50] sm:$0xf] %vm232_vm0, %v383_v5  ;;  %v358_v20 = vld [vmem:[%s9417_s23 + $0x58] sm:$0xff]  ;;  %v382_v23 = vpack.c.bf16 %v350_v18, %v350_v18  ;;  %v361_v27 = vld [vmem:[%s9417_s23 + $0x70] sm:$0xff]  ;;  %v395_v29 = vpack.c.bf16 %v363_v24, %v363_v24  ;;  %v385_v30 = vpack.c.bf16 %v353_v25, %v353_v25  ;;  %v356_v36 = vld [vmem:[%s9417_s23 + $0x48] sm:$0xff]  ;;  %vm2355_vm15 = vcmask 158848  }
  0x13   : > { %v909_v10 = vld [vmem:[#allocation2 + $0x8] sm:$0xf]  ;;  %412 = vst.msk [vmem:[#allocation2 + $0x24] sm:$0xf] %vm232_vm0, %v380_v6  ;;  %v390_v26 = vpack.c.bf16 %v358_v20, %v358_v20  ;;  %v393_v31 = vpack.c.bf16 %v361_v27, %v361_v27  ;;  %v366_v35 = vld [vmem:[%s9417_s23 + $0x98] sm:$0xff]  ;;  %v388_v38 = vpack.c.bf16 %v356_v36, %v356_v36  ;;  %v369_v44 = vld [vmem:[%s9417_s23 + $0xb0] sm:$0xff] }
  0x14   : > { %973 = vrot.lane.b32.xlu0 %v909_v10, %s9359_s24  ;;  %418 = vst.msk [vmem:[#allocation2 + $0x6c] sm:$0xf] %vm232_vm0, %v386_v11  ;;  %v398_v37 = vpack.c.bf16 %v366_v35, %v366_v35  ;;  %v364_v39 = vld [vmem:[%s9417_s23 + $0x88] sm:$0xff]  ;;  %v359_v45 = vld [vmem:[%s9417_s23 + $0x60] sm:$0xff]  ;;  %v401_v47 = vpack.c.bf16 %v369_v44, %v369_v44  ;;  %v362_v54 = vld [vmem:[%s9417_s23 + $0x78] sm:$0xff]  ;;  %vm2916_vm1 = vcmask 191648  }
  0x15   : > { %416 = vst.msk [vmem:[#allocation2 + $0x54] sm:$0xf] %vm232_vm0, %v384_v13  ;;  %v396_v40 = vpack.c.bf16 %v364_v39, %v364_v39  ;;  %v367_v46 = vld [vmem:[%s9417_s23 + $0xa0] sm:$0xff]  ;;  %v391_v48 = vpack.c.bf16 %v359_v45, %v359_v45  ;;  %v372_v53 = vld [vmem:[%s9417_s23 + $0xc8] sm:$0xff]  ;;  %v370_v55 = vld [vmem:[%s9417_s23 + $0xb8] sm:$0xff]  ;;  %v394_v57 = vpack.c.bf16 %v362_v54, %v362_v54 }
  0x16   : > { %v910_v22 = vld [vmem:[#allocation2 + $0xc] sm:$0xf]  ;;  %421 = vst.msk [vmem:[#allocation2 + $0x98] sm:$0xf] %vm232_vm0, %v389_v15  ;;  %v399_v49 = vpack.c.bf16 %v367_v46, %v367_v46  ;;  %v404_v56 = vpack.c.bf16 %v372_v53, %v372_v53  ;;  %v402_v58 = vpack.c.bf16 %v370_v55, %v370_v55  ;;  %v375_v62 = vld [vmem:[%s9417_s23 + $0xe0] sm:$0xff]  ;;  %v365_v63 = vld [vmem:[%s9417_s23 + $0x90] sm:$0xff] }
  0x17   : > { %413 = vst.msk [vmem:[#allocation2 + $0x38] sm:$0xf] %vm232_vm0, %v381_v17  ;;  %v373_v0 = vld [vmem:[%s9417_s23 + $0xd0] sm:$0xff]  ;;  %v407_v1 = vpack.c.bf16 %v375_v62, %v375_v62  ;;  %v397_v2 = vpack.c.bf16 %v365_v63, %v365_v63  ;;  %v368_v10 = vld [vmem:[%s9417_s23 + $0xa8] sm:$0xff]  ;;  %v371_v18 = vld [vmem:[%s9417_s23 + $0xc0] sm:$0xff] }
  0x18   : > { %v911_v28 = vld [vmem:[#allocation2 + $0x20] sm:$0xf]  ;;  %419 = vst.msk [vmem:[#allocation2 + $0x80] sm:$0xf] %vm232_vm0, %v387_v19  ;;  %v405_v3 = vpack.c.bf16 %v373_v0, %v373_v0  ;;  %v238_v5 = vld [vmem:[#allocation2 + $0x10] sm:$0x1]  ;;  %v400_v12 = vpack.c.bf16 %v368_v10, %v368_v10  ;;  %vm9524_vm8 = vmand %vm226_vm6, %vm227_vm7 }
  0x19   : > { %977 = vrot.lane.b32.xlu1 %v911_v28, %s9359_s24  ;;  %424 = vst.msk [vmem:[#allocation2 + $0xb4] sm:$0xf] %vm232_vm0, %v392_v21  ;;  %v915_v32 = vld [vmem:[#allocation2 + $0x50] sm:$0xf]  ;;  %v239_v7 = vsel %vm9487_vm3, 0, %v238_v5  ;;  %v376_v11 = vld [vmem:[%s9417_s23 + $0xe8] sm:$0xff]  ;;  %vm9560_vm10 = vmor %vm1150_vm4, %vm1151_vm5 }
  0x1a   : > { %414 = vst.msk [vmem:[#allocation2 + $0x3c] sm:$0xf] %vm232_vm0, %v382_v23  ;;  %v912_v33 = vld [vmem:[#allocation2 + $0x24] sm:$0xf]  ;;  %v408_v13 = vpack.c.bf16 %v376_v11, %v376_v11  ;;  %v1103_v15 = vld [vmem:[#allocation2 + $0xc] sm:$0xf]  ;;  %vm9589_vm11 = vmor %vm236_vm2, %vm491_vm9 }
  0x1b   : > { %422 = vst.msk [vmem:[#allocation2 + $0x9c] sm:$0xf] %vm232_vm0, %v390_v26  ;;  %v918_v42 = vld [vmem:[#allocation2 + $0x6c] sm:$0xf]  ;;  %v1163_v19 = vshll.u32 %v1103_v15, 16  ;;  %v1167_v20 = vshrl.u32 %v1103_v15, 16 }
  0x1c   : > { %975 = vrot.lane.b32.xlu0 %v910_v22, %s9359_s24  ;;  %427 = vst.msk [vmem:[#allocation2 + $0xe0] sm:$0xf] %vm232_vm0, %v395_v29  ;;  %v916_v43 = vld [vmem:[#allocation2 + $0x54] sm:$0xf]  ;;  %v403_v22 = vpack.c.bf16 %v371_v18, %v371_v18  ;;  %v1105_v25 = vld [vmem:[#allocation2 + $0x20] sm:$0xf] }
  0x1d   : > { %417 = vst.msk [vmem:[#allocation2 + $0x68] sm:$0xf] %vm232_vm0, %v385_v30  ;;  %v921_v51 = vld [vmem:[#allocation2 + $0x98] sm:$0xf]  ;;  %v9505_v28 = vrot.slane %v1163_v19, 5  ;;  %v1169_v29 = vrot.slane %v1167_v20, 4 }
  0x1e   : > { %v913_v34 = vld [vmem:[#allocation2 + $0x38] sm:$0xf]  ;;  %425 = vst.msk [vmem:[#allocation2 + $0xc8] sm:$0xf] %vm232_vm0, %v393_v31  ;;  %v1178_v31 = vshrl.u32 %v1105_v25, 16  ;;  %vm3446_vm2 = vcmask 224448  }
  0x1f   : > { %981 = vrot.lane.b32.xlu2 %v913_v34, %s9359_s24  ;;  %430 = vst.msk [vmem:[#allocation2 + $0xfc] sm:$0xf] %vm232_vm0, %v398_v37  ;;  %v919_v52 = vld [vmem:[#allocation2 + $0x80] sm:$0xf]  ;;  %v1108_v21 = vld [vmem:[#allocation2 + $0x38] sm:$0xf] }
  0x20   : > { %420 = vst.msk [vmem:[#allocation2 + $0x84] sm:$0xf] %vm232_vm0, %v388_v38  ;;  %v924_v60 = vld [vmem:[#allocation2 + $0xb4] sm:$0xf]  ;;  %v1202_v23 = vshrl.u32 %v1108_v21, 16  ;;  %v1205_v24 = vshll.u32 %v1108_v21, 16 }
  0x21   : > { %979 = vrot.lane.b32.xlu1 %v912_v33, %s9359_s24  ;;  %428 = vst.msk [vmem:[#allocation2 + $0xe4] sm:$0xf] %vm232_vm0, %v396_v40  ;;  %v914_v41 = vld [vmem:[#allocation2 + $0x3c] sm:$0xf]  ;;  %v305_v33 = vld [vmem:[#allocation2 + $0x58] sm:$0x1] }
  0x22   : > { %433 = vst.msk [vmem:[#allocation2 + $0x128] sm:$0xf] %vm232_vm0, %v401_v47  ;;  %v922_v61 = vld [vmem:[#allocation2 + $0x9c] sm:$0xf]  ;;  %v302_v34 = vld [vmem:[#allocation2 + $0x40] sm:$0x1] }
  0x23   : > { %423 = vst.msk [vmem:[#allocation2 + $0xb0] sm:$0xf] %vm232_vm0, %v391_v48  ;;  %v927_v8 = vld [vmem:[#allocation2 + $0xe0] sm:$0xf]  ;;  %v1109_v35 = vld [vmem:[#allocation2 + $0x3c] sm:$0xf] }
  0x24   : > { %985 = vrot.lane.b32.xlu0 %v915_v32, %s9359_s24  ;;  %431 = vst.msk [vmem:[#allocation2 + $0x110] sm:$0xf] %vm232_vm0, %v399_v49  ;;  %v917_v50 = vld [vmem:[#allocation2 + $0x68] sm:$0xf]  ;;  %v1181_v32 = vshll.u32 %v1105_v25, 16  ;;  %v1204_v36 = vrot.slane %v1202_v23, 4  ;;  %v1170_v49 = vor.u32 %v1169_v29, %v9505_v28 }
  0x25   : > { %436 = vst.msk [vmem:[#allocation2 + $0x144] sm:$0xf] %vm232_vm0, %v404_v56  ;;  %v925_v9 = vld [vmem:[#allocation2 + $0xc8] sm:$0xf]  ;;  %v1207_v37 = vrot.slane %v1205_v24, 5  ;;  %v306_v38 = vsel %vm9487_vm3, 0, %v305_v33 }
  0x26   : > { %426 = vst.msk [vmem:[#allocation2 + $0xcc] sm:$0xf] %vm232_vm0, %v394_v57  ;;  %v930_v16 = vld [vmem:[#allocation2 + $0xfc] sm:$0xf]  ;;  %v303_v39 = vsel %vm9487_vm3, 0, %v302_v34  ;;  %v1211_v45 = vshll.u32 %v1109_v35, 16 }
  0x27   : > { %983 = vrot.lane.b32.xlu2 %v914_v41, %s9359_s24  ;;  %434 = vst.msk [vmem:[#allocation2 + $0x12c] sm:$0xf] %vm232_vm0, %v402_v58  ;;  %v920_v59 = vld [vmem:[#allocation2 + $0x84] sm:$0xf]  ;;  %v374_v41 = vld [vmem:[%s9417_s23 + $0xd8] sm:$0xff]  ;;  %v1215_v48 = vshrl.u32 %v1109_v35, 16 }
  0x28   : > { %439 = vst.msk [vmem:[#allocation2 + $0x170] sm:$0xf] %vm232_vm0, %v407_v1  ;;  %v928_v17 = vld [vmem:[#allocation2 + $0xe4] sm:$0xf]  ;;  %v406_v44 = vpack.c.bf16 %v374_v41, %v374_v41  ;;  %v1183_v53 = vrot.slane %v1181_v32, 5  ;;  %v9521_v58 = vrot.slane %v1211_v45, 5 }
  0x29   : > { %987 = vrot.lane.b32.xlu1 %v916_v43, %s9359_s24  ;;  %429 = vst.msk [vmem:[#allocation2 + $0xf8] sm:$0xf] %vm232_vm0, %v397_v2  ;;  %v933_v30 = vld [vmem:[#allocation2 + $0x128] sm:$0xf]  ;;  %v1112_v43 = vld [vmem:[#allocation2 + $0x54] sm:$0xf] }
  0x2a   : > { %437 = vst.msk [vmem:[#allocation2 + $0x158] sm:$0xf] %vm232_vm0, %v405_v3  ;;  %v923_v6 = vld [vmem:[#allocation2 + $0xb0] sm:$0xf]  ;;  %v1235_v46 = vshll.u32 %v1112_v43, 16  ;;  %v1239_v47 = vshrl.u32 %v1112_v43, 16 }
  0x2b   : > { %240 = vst [vmem:[#allocation2 + $0x10] sm:$0x1] %v239_v7  ;;  %v931_v40 = vld [vmem:[#allocation2 + $0x110] sm:$0xf]  ;;  %v1217_v56 = vrot.slane %v1215_v48, 4  ;;  %v9528_v62 = vrot.slane %v1170_v49, 4 }
  0x2c   : > { %991 = vrot.lane.b32.xlu0 %v918_v42, %s9359_s24  ;;  %432 = vst.msk [vmem:[#allocation2 + $0x114] sm:$0xf] %vm232_vm0, %v400_v12  ;;  %v9519_v54 = vrot.slane %v1235_v46, 5  ;;  %v1241_v55 = vrot.slane %v1239_v47, 4  ;;  %v936_v3 = vld [vmem:[#allocation2 + $0x144] sm:$0xf] }
  0x2d   : > { %v926_v14 = vld [vmem:[#allocation2 + $0xcc] sm:$0xf]  ;;  %440 = vst.msk [vmem:[#allocation2 + $0x174] sm:$0xf] %vm232_vm0, %v408_v13  ;;  %v1117_v11 = vld [vmem:[#allocation2 + $0x80] sm:$0xf] }
  0x2e   : > { %435 = vst.msk [vmem:[#allocation2 + $0x140] sm:$0xf] %vm232_vm0, %v403_v22  ;;  %v934_v5 = vld [vmem:[#allocation2 + $0x12c] sm:$0xf]  ;;  %v1102_v12 = vld [vmem:[#allocation2 + $0x8] sm:$0xf] }
  0x2f   : > { %989 = vrot.lane.b32.xlu2 %v917_v50, %s9359_s24  ;;  %307 = vst [vmem:[#allocation2 + $0x58] sm:$0x1] %v306_v38  ;;  %v1208_v50 = vor.u32 %v1207_v37, %v1204_v36  ;;  %v1277_v15 = vshll.u32 %v1117_v11, 16  ;;  %v9545_v18 = vld [vmem:[#allocation2 + $0x84] sm:$0xf]  ;;  %v1157_v19 = vshll.u32 %v1102_v12, 16 }
  0x30   : > { %v929_v26 = vld [vmem:[#allocation2 + $0xf8] sm:$0xf]  ;;  %304 = vst [vmem:[#allocation2 + $0x40] sm:$0x1] %v303_v39  ;;  %v1114_v20 = vld [vmem:[#allocation2 + $0x68] sm:$0xf] }
  0x31   : > { %993 = vrot.lane.b32.xlu1 %v919_v52, %s9359_s24  ;;  %v1180_v52 = vrot.slane %v1178_v31, 4  ;;  %438 = vst.msk [vmem:[#allocation2 + $0x15c] sm:$0xf] %vm232_vm0, %v406_v44  ;;  %v9532_v0 = vrot.slane %v1208_v50, 4  ;;  %v1283_v24 = vshll.u32 %v9545_v18, 16  ;;  %v1279_v29 = vrot.slane %v1277_v15, 5 }
  0x32   : > { %v1104_v27 = vld [vmem:[#allocation2 + $0x10] sm:$0x1]  ;;  %v937_v32 = vld [vmem:[#allocation2 + $0x158] sm:$0xf]  ;;  %v9556_v34 = vld [vmem:[#allocation2 + $0x6c] sm:$0xf] }
  0x33   : > { %v1173_v42 = vshll.u32 %v1104_v27, 16  ;;  %v932_v57 = vld [vmem:[#allocation2 + $0x114] sm:$0xf]  ;;  %v1184_v1 = vor.u32 %v1183_v53, %v1180_v52  ;;  %v939_v31 = vld [vmem:[#allocation2 + $0x170] sm:$0xf]  ;;  %v1253_v35 = vshll.u32 %v1114_v20, 16 }
  0x34   : > { %997 = vrot.lane.b32.xlu0 %v921_v51, %s9359_s24  ;;  %v9516_v51 = vld [vmem:[#allocation2 + $0x24] sm:$0xf]  ;;  %v444_v36 = vld [vmem:[#allocation2 + $0x8] sm:$0xf]  ;;  %v1159_v38 = vrot.slane %v1157_v19, 5  ;;  %v9566_v43 = vrot.slane %v1283_v24, 5 }
  0x35   : > { %v9530_v63 = vrot.slane %v1173_v42, 5  ;;  %v935_v25 = vld [vmem:[#allocation2 + $0x140] sm:$0xf]  ;;  %v499_v39 = vshrl.u32 %v444_v36, 16  ;;  %v299_v41 = vld [vmem:[#allocation2 + $0x28] sm:$0x1] }
  0x36   : > { %v1113_v2 = vld [vmem:[#allocation2 + $0x58] sm:$0x1]  ;;  %v502_v45 = vshll.u32 %v444_v36, 16  ;;  %v311_v46 = vld [vmem:[#allocation2 + $0x88] sm:$0x1]  ;;  %v1255_v47 = vrot.slane %v1253_v35, 5 }
  0x37   : > { %995 = vrot.lane.b32.xlu2 %v920_v59, %s9359_s24  ;;  %v1187_v59 = vshll.u32 %v9516_v51, 16  ;;  %v1245_v7 = vshll.u32 %v1113_v2, 16  ;;  %v1110_v10 = vld [vmem:[#allocation2 + $0x40] sm:$0x1]  ;;  %v9569_v48 = vrot.slane %v499_v39, 7  ;;  %v300_v52 = vsel %vm9487_vm3, 0, %v299_v41 }
  0x38   : > { %v1221_v23 = vshll.u32 %v1110_v10, 16  ;;  %v1121_v50 = vld [vmem:[#allocation2 + $0x9c] sm:$0xf]  ;;  %v1176_v53 = vsel %vm9560_vm10, %v9528_v62, %v9530_v63  ;;  %301 = vst [vmem:[#allocation2 + $0x28] sm:$0x1] %v300_v52  ;;  %vm3639_vm4 = vcmask 257248  }
  0x39   : > { %999 = vrot.lane.b32.xlu1 %v922_v61, %s9359_s24  ;;  %v229_v61 = vld [vmem:[#allocation2 + $0x4] sm:$0x8]  ;;  %v9539_v13 = vrot.slane %v1187_v59, 5  ;;  %v504_v62 = vor.u32 %v502_v45, %v9569_v48  ;;  %v940_v15 = vld [vmem:[#allocation2 + $0x174] sm:$0xf]  ;;  %vm4418_vm5 = vcmask 1041408  }
  0x3a   : > { %v9564_v42 = vrot.slane %v1221_v23, 5  ;;  %v450_v24 = vld [vmem:[#allocation2 + $0x38] sm:$0xf]  ;;  %vm4200_vm6 = vcmask 290048   ;;  %vm4369_vm7 = vcmask 293888   ;;  %v8836_v37 = vld [vmem:[%s9417_s23 + $0x88] sm:$0xff] }
  0x3b   : > { %v546_v52 = vshll.u32 %v450_v24, 16 }
  0x3c   : > { %1003 = vrot.lane.b32.xlu0 %v924_v60, %s9359_s24 }
  0x3f   : > { %1001 = vrot.lane.b32.xlu2 %v923_v6, %s9359_s24  ;;  %v1242_v6 = vor.u32 %v1241_v55, %v9519_v54  ;;  %v1307_v55 = vshll.u32 %v1121_v50, 16 }
  0x41   : > { %1005 = vrot.lane.b32.xlu1 %v925_v9, %s9359_s24  ;;  %v230_v9 = vsel %vm9524_vm8, 0, %v229_v61  ;;  %v9547_v21 = vrot.slane %v1242_v6, 4  ;;  %v9585_v63 = vrot.slane %v1307_v55, 5  ;;  %v447_v55 = vld [vmem:[#allocation2 + $0x20] sm:$0xf] }
  0x42   : > { %231 = vst [vmem:[#allocation2 + $0x4] sm:$0x8] %v230_v9 }
  0x44   : > { %1009 = vrot.lane.b32.xlu0 %v927_v8, %s9359_s24  ;;  %v1218_v8 = vor.u32 %v1217_v56, %v9521_v58  ;;  %v1311_v56 = vshrl.u32 %v1121_v50, 16 }
  0x46   : > { %v9549_v22 = vrot.slane %v1218_v8, 4  ;;  %v251_v8 = vld [vmem:[#allocation2 + $0x1c] sm:$0x8] }
  0x47   : > { %1007 = vrot.lane.b32.xlu2 %v926_v14, %s9359_s24  ;;  %v1274_v14 = vshrl.u32 %v1117_v11, 16  ;;  %v312_v11 = vsel %vm9487_vm3, 0, %v311_v46  ;;  %v506_v46 = vrot.slane %v9569_v48, 4  ;;  %v1111_v48 = vld [vmem:[#allocation2 + $0x50] sm:$0xf] }
  0x48   : > { %313 = vst [vmem:[#allocation2 + $0x88] sm:$0x1] %v312_v11 }
  0x49   : > { %1011 = vrot.lane.b32.xlu1 %v928_v17, %s9359_s24  ;;  %v9543_v17 = vrot.slane %v1184_v1, 4  ;;  %v1276_v27 = vrot.slane %v1274_v14, 4  ;;  %v1259_v1 = vshll.u32 %v9556_v34, 16  ;;  %v443_v2 = vld [vmem:[#allocation2 + $0x4] sm:$0x8] }
  0x4a   : > { %v494_v6 = vshrl.u32 %v443_v2, 16 }
  0x4b   : > { %v1280_v59 = vor.u32 %v1279_v29, %v1276_v27  ;;  %v543_v29 = vshrl.u32 %v450_v24, 16  ;;  %v9607_v36 = vrot.slane %v1259_v1, 5 }
  0x4c   : > { %1015 = vrot.lane.b32.xlu0 %v930_v16, %s9359_s24  ;;  %v1154_v16 = vshrl.u32 %v1102_v12, 16  ;;  %v445_v12 = vld [vmem:[#allocation2 + $0xc] sm:$0xf]  ;;  %v9012_v19 = vrot.slane %v494_v6, 11 }
  0x4d   : > { %v508_v23 = vshrl.u32 %v445_v12, 16  ;;  %v9620_v50 = vrot.slane %v543_v29, 7  ;;  %v257_v29 = vld [vmem:[#allocation2 + $0x4c] sm:$0x8] }
  0x4e   : > { %v9554_v33 = vrot.slane %v1154_v16, 4 }
  0x4f   : > { %1013 = vrot.lane.b32.xlu2 %v929_v26, %s9359_s24  ;;  %v9552_v26 = vrot.slane %v1245_v7, 5  ;;  %v1313_v7 = vrot.slane %v1311_v56, 4  ;;  %v1119_v1 = vld [vmem:[#allocation2 + $0x88] sm:$0x1] }
  0x50   : > { %v1160_v61 = vor.u32 %v1159_v38, %v9554_v33  ;;  %v511_v33 = vshll.u32 %v445_v12, 16 }
  0x51   : > { %1017 = vrot.lane.b32.xlu1 %v931_v40, %s9359_s24  ;;  %v314_v40 = vld [vmem:[#allocation2 + $0xa0] sm:$0x1]  ;;  %v1248_v24 = vsel %vm9560_vm10, %v9547_v21, %v9552_v26  ;;  %v1224_v21 = vsel %vm9560_vm10, %v9549_v22, %v9564_v42  ;;  %v258_v22 = vsel %vm9524_vm8, 0, %v257_v29  ;;  %v1263_v29 = vshrl.u32 %v9556_v34, 16 }
  0x52   : > { %v315_v49 = vsel %vm9487_vm3, 0, %v314_v40  ;;  %v1161_v35 = vrot.slane %v1160_v61, 4  ;;  %v1126_v61 = vld [vmem:[#allocation2 + $0xc8] sm:$0xf]  ;;  %259 = vst [vmem:[#allocation2 + $0x4c] sm:$0x8] %v258_v22 }
  0x53   : > { %316 = vst [vmem:[#allocation2 + $0xa0] sm:$0x1] %v315_v49  ;;  %v1349_v12 = vshll.u32 %v1126_v61, 16  ;;  %v457_v22 = vld [vmem:[#allocation2 + $0x6c] sm:$0xf] }
  0x54   : > { %1021 = vrot.lane.b32.xlu0 %v933_v30, %s9359_s24  ;;  %v1250_v30 = vshrl.u32 %v1114_v20, 16  ;;  %v1314_v20 = vor.u32 %v1313_v7, %v9585_v63  ;;  %v1166_v6 = vsel %vm9560_vm10, %v1161_v35, %v9505_v28  ;;  %v9660_v35 = vld [vmem:[#allocation2 + $0xb4] sm:$0xf] }
  0x56   : > { %v1252_v44 = vrot.slane %v1250_v30, 4  ;;  %v9602_v30 = vrot.slane %v1280_v59, 4  ;;  %v521_v59 = vshrl.u32 %v447_v55, 16 }
  0x57   : > { %1019 = vrot.lane.b32.xlu2 %v932_v57, %s9359_s24  ;;  %v254_v57 = vld [vmem:[#allocation2 + $0x34] sm:$0x8] }
  0x58   : > { %v255_v14 = vsel %vm9524_vm8, 0, %v254_v57  ;;  %v1256_v16 = vor.u32 %v1255_v47, %v1252_v44  ;;  %v1107_v44 = vld [vmem:[#allocation2 + $0x28] sm:$0x1]  ;;  %v9616_v47 = vrot.slane %v1314_v20, 4 }
  0x59   : > { %1023 = vrot.lane.b32.xlu1 %v934_v5, %s9359_s24  ;;  %v938_v5 = vld [vmem:[#allocation2 + $0x15c] sm:$0xf]  ;;  %256 = vst [vmem:[#allocation2 + $0x34] sm:$0x8] %v255_v14  ;;  %v1197_v56 = vshll.u32 %v1107_v44, 16 }
  0x5a   : > { %v1122_v38 = vld [vmem:[#allocation2 + $0xa0] sm:$0x1]  ;;  %v9611_v40 = vrot.slane %v1256_v16, 4  ;;  %v1123_v16 = vld [vmem:[#allocation2 + $0xb0] sm:$0xf] }
  0x5b   : > { %v1317_v41 = vshll.u32 %v1122_v38, 16  ;;  %v1199_v14 = vrot.slane %v1197_v56, 5  ;;  %v1322_v38 = vshrl.u32 %v1123_v16, 16  ;;  %v451_v44 = vld [vmem:[#allocation2 + $0x3c] sm:$0xf] }
  0x5c   : > { %1027 = vrot.lane.b32.xlu0 %v936_v3, %s9359_s24  ;;  %v1191_v3 = vshrl.u32 %v9516_v51, 16  ;;  %v1287_v51 = vshrl.u32 %v9545_v18, 16  ;;  %v252_v18 = vsel %vm9524_vm8, 0, %v251_v8  ;;  %v9640_v8 = vrot.slane %v521_v59, 7 }
  0x5d   : > { %253 = vst [vmem:[#allocation2 + $0x1c] sm:$0x8] %v252_v18  ;;  %v453_v18 = vld [vmem:[#allocation2 + $0x50] sm:$0xf] }
  0x5e   : > { %v1193_v10 = vrot.slane %v1191_v3, 4  ;;  %v1289_v27 = vrot.slane %v1287_v51, 4  ;;  %v524_v3 = vshll.u32 %v447_v55, 16  ;;  %v1346_v51 = vshrl.u32 %v1126_v61, 16 }
  0x5f   : > { %1025 = vrot.lane.b32.xlu2 %v935_v25, %s9359_s24  ;;  %v565_v42 = vshrl.u32 %v453_v18, 16 }
  0x60   : > { %v1194_v25 = vor.u32 %v1193_v10, %v9539_v13  ;;  %v1290_v39 = vor.u32 %v1289_v27, %v9566_v43  ;;  %v449_v7 = vld [vmem:[#allocation2 + $0x34] sm:$0x8]  ;;  %v548_v10 = vor.u32 %v546_v52, %v9620_v50  ;;  %v1229_v27 = vshll.u32 %v1111_v48, 16  ;;  %v448_v52 = vld [vmem:[#allocation2 + $0x24] sm:$0xf] }
  0x61   : > { %1029 = vrot.lane.b32.xlu1 %v937_v32, %s9359_s24  ;;  %v510_v32 = vrot.slane %v508_v23, 7  ;;  %v1226_v23 = vshrl.u32 %v1111_v48, 16 }
  0x62   : > { %v9618_v49 = vrot.slane %v1194_v25, 4  ;;  %v9628_v2 = vrot.slane %v1290_v39, 4  ;;  %v1231_v39 = vrot.slane %v1229_v27, 5 }
  0x63   : > { %v513_v45 = vor.u32 %v511_v33, %v510_v32  ;;  %v9658_v32 = vrot.slane %v1349_v12, 5  ;;  %v1228_v33 = vrot.slane %v1226_v23, 4  ;;  %v533_v12 = vshll.u32 %v448_v52, 16 }
  0x64   : > { %1033 = vrot.lane.b32.xlu0 %v939_v31, %s9359_s24  ;;  %v505_v31 = vsel %vm9589_vm11, %v9012_v19, %v504_v62  ;;  %v9638_v62 = vrot.slane %v1317_v41, 5  ;;  %v446_v11 = vld [vmem:[#allocation2 + $0x1c] sm:$0x8]  ;;  %v9647_v19 = vrot.slane %v1346_v51, 4  ;;  %v1325_v41 = vshll.u32 %v1123_v16, 16 }
  0x65   : > { %877 = vst.msk [vmem:[#allocation3] sm:$0xf] %vm232_vm0, %v505_v31  ;;  %v514_v57 = vsel %vm9589_vm11, %v506_v46, %v513_v45  ;;  %v1286_v45 = vsel %vm9560_vm10, %v9602_v30, %v9566_v43  ;;  %v1200_v46 = vsel %vm9560_vm10, %v9618_v49, %v1199_v14  ;;  %v1232_v56 = vor.u32 %v1231_v39, %v1228_v33  ;;  %v308_v14 = vld [vmem:[#allocation2 + $0x70] sm:$0x1] }
  0x66   : > { %878 = vst.msk [vmem:[#allocation3 + $0x4] sm:$0xf] %vm232_vm0, %v514_v57  ;;  %v1324_v57 = vrot.slane %v1322_v38, 4  ;;  %v1327_v59 = vrot.slane %v1325_v41, 5  ;;  %v1352_v61 = vor.u32 %v9658_v32, %v9647_v19  ;;  %v555_v49 = vshll.u32 %v451_v44, 16 }
  0x67   : > { %1031 = vrot.lane.b32.xlu2 %v938_v5, %s9359_s24  ;;  %v1190_v5 = vsel %vm9560_vm10, %v9543_v17, %v9539_v13  ;;  %v516_v13 = vshrl.u32 %v446_v11, 16  ;;  %v526_v17 = vor.u32 %v524_v3, %v9640_v8  ;;  %v1331_v3 = vshll.u32 %v9660_v35, 16  ;;  %v452_v32 = vld [vmem:[#allocation2 + $0x4c] sm:$0x8] }
  0x68   : > { %v550_v51 = vrot.slane %v9620_v50, 4  ;;  %v309_v50 = vsel %vm9487_vm3, 0, %v308_v14  ;;  %v1265_v39 = vrot.slane %v1263_v29, 4 }
  0x69   : > { %1035 = vrot.lane.b32.xlu1 %v940_v15, %s9359_s24  ;;  %v1293_v15 = vshll.u32 %v1119_v1, 16  ;;  %v9013_v25 = vrot.slane %v516_v13, 11  ;;  %v323_v1 = vld [vmem:[#allocation2 + $0xe8] sm:$0x1]  ;;  %310 = vst [vmem:[#allocation2 + $0x70] sm:$0x1] %v309_v50 }
  0x6a   : > { %v324_v16 = vsel %vm9487_vm3, 0, %v323_v1  ;;  %v1135_v50 = vld [vmem:[#allocation2 + $0x110] sm:$0xf] }
  0x6b   : > { %v527_v26 = vsel %vm9589_vm11, %v9013_v25, %v526_v17  ;;  %v9679_v55 = vrot.slane %v1293_v15, 5  ;;  %v1328_v15 = vor.u32 %v1327_v59, %v1324_v57  ;;  %v528_v17 = vrot.slane %v9640_v8, 4  ;;  %325 = vst [vmem:[#allocation2 + $0xe8] sm:$0x1] %v324_v16 }
  0x6c   : > { %1539 = vrot.lane.b32.xlu0 %v1176_v53, %s9360_s25  ;;  %v1214_v53 = vsel %vm9560_vm10, %v9532_v0, %v9521_v58  ;;  %v9642_v58 = vld [vmem:[#allocation2 + $0xcc] sm:$0xf]  ;;  %v538_v0 = vshrl.u32 %v449_v7, 16  ;;  %879 = vst.msk [vmem:[#allocation3 + $0x8] sm:$0xf] %vm232_vm0, %v527_v26  ;;  %v530_v7 = vshrl.u32 %v448_v52, 16 }
  0x6d   : > { %v1355_v20 = vshll.u32 %v9642_v58, 16  ;;  %v560_v26 = vshrl.u32 %v452_v32, 16  ;;  %v1359_v41 = vshrl.u32 %v9642_v58, 16  ;;  %v9724_v52 = vrot.slane %v1331_v3, 5  ;;  %v9767_v32 = vld [vmem:[#allocation2 + $0x114] sm:$0xf] }
  0x6e   : > { %v9014_v28 = vrot.slane %v538_v0, 11  ;;  %v1130_v0 = vld [vmem:[#allocation2 + $0xe4] sm:$0xf]  ;;  %v532_v13 = vrot.slane %v530_v7, 7  ;;  %v596_v58 = vshrl.u32 %v457_v22, 16  ;;  %v9727_v59 = vrot.slane %v1328_v15, 4 }
  0x6f   : > { %1537 = vrot.lane.b32.xlu2 %v1166_v6, %s9360_s25  ;;  %v9683_v48 = vrot.slane %v1355_v20, 5  ;;  %v568_v6 = vshll.u32 %v453_v18, 16  ;;  %v1379_v23 = vshll.u32 %v1130_v0, 16  ;;  %v1383_v25 = vshrl.u32 %v1130_v0, 16  ;;  %v9702_v18 = vld [vmem:[#allocation2 + $0x68] sm:$0xf] }
  0x70   : > { %v549_v31 = vsel %vm9589_vm11, %v9014_v28, %v548_v10  ;;  %v1233_v10 = vrot.slane %v1232_v56, 4  ;;  %v320_v28 = vld [vmem:[#allocation2 + $0xd0] sm:$0x1]  ;;  %v535_v27 = vor.u32 %v533_v12, %v532_v13  ;;  %v9015_v56 = vrot.slane %v560_v26, 11 }
  0x71   : > { %1541 = vrot.lane.b32.xlu1 %v1190_v5, %s9360_s25  ;;  %881 = vst.msk [vmem:[#allocation3 + $0x10] sm:$0xf] %vm232_vm0, %v549_v31  ;;  %v9686_v5 = vrot.slane %v565_v42, 7  ;;  %v9709_v38 = vrot.slane %v1379_v23, 5  ;;  %v587_v42 = vshrl.u32 %v9702_v18, 16  ;;  %v1361_v57 = vrot.slane %v1359_v41, 4 }
  0x72   : > { %v1238_v31 = vsel %vm9560_vm10, %v1233_v10, %v9519_v54  ;;  %v536_v34 = vsel %vm9589_vm11, %v528_v17, %v535_v27  ;;  %v1262_v54 = vsel %vm9560_vm10, %v9611_v40, %v9607_v36  ;;  %v1266_v40 = vor.u32 %v1265_v39, %v9607_v36  ;;  %v454_v10 = vld [vmem:[#allocation2 + $0x54] sm:$0xf]  ;;  %v1116_v15 = vld [vmem:[#allocation2 + $0x70] sm:$0x1] }
  0x73   : > { %v570_v8 = vor.u32 %v568_v6, %v9686_v5  ;;  %880 = vst.msk [vmem:[#allocation3 + $0xc] sm:$0xf] %vm232_vm0, %v536_v34  ;;  %v1131_v6 = vld [vmem:[#allocation2 + $0xe8] sm:$0x1]  ;;  %v1362_v3 = vor.u32 %v1361_v57, %v9683_v48  ;;  %v598_v7 = vrot.slane %v596_v58, 7  ;;  %v590_v0 = vshll.u32 %v9702_v18, 16 }
  0x74   : > { %1545 = vrot.lane.b32.xlu0 %v1214_v53, %s9360_s25  ;;  %v552_v53 = vshrl.u32 %v451_v44, 16  ;;  %v9719_v44 = vrot.slane %v1352_v61, 4  ;;  %v9730_v61 = vrot.slane %v587_v42, 7  ;;  %v572_v43 = vrot.slane %v9686_v5, 4  ;;  %v1132_v34 = vld [vmem:[#allocation2 + $0xf8] sm:$0xf] }
  0x75   : > { %v571_v1 = vsel %vm9589_vm11, %v9015_v56, %v570_v8  ;;  %v574_v30 = vshrl.u32 %v454_v10, 16  ;;  %v1267_v17 = vrot.slane %v1266_v40, 4  ;;  %v1269_v16 = vshll.u32 %v1116_v15, 16  ;;  %v462_v15 = vld [vmem:[#allocation2 + $0x98] sm:$0xf] }
  0x76   : > { %v554_v11 = vrot.slane %v552_v53, 7  ;;  %v599_v53 = vshll.u32 %v457_v22, 16  ;;  %883 = vst.msk [vmem:[#allocation3 + $0x18] sm:$0xf] %vm232_vm0, %v571_v1  ;;  %v594_v12 = vrot.slane %v9730_v61, 4  ;;  %v1320_v5 = vsel %vm9560_vm10, %v9616_v47, %v9638_v62 }
  0x77   : > { %1543 = vrot.lane.b32.xlu2 %v1200_v46, %s9360_s25  ;;  %v1271_v8 = vrot.slane %v1269_v16, 5  ;;  %v1418_v29 = vshrl.u32 %v1135_v50, 16  ;;  %v1335_v39 = vshrl.u32 %v9660_v35, 16  ;;  %v1394_v57 = vshrl.u32 %v1132_v34, 16  ;;  %v9795_v16 = vld [vmem:[#allocation2 + $0x80] sm:$0xf] }
  0x78   : > { %v557_v20 = vor.u32 %v555_v49, %v554_v11  ;;  %v260_v49 = vld [vmem:[#allocation2 + $0x64] sm:$0x8]  ;;  %v601_v13 = vor.u32 %v599_v53, %v598_v7  ;;  %v1397_v58 = vshll.u32 %v1132_v34, 16  ;;  %v592_v53 = vor.u32 %v590_v0, %v9730_v61  ;;  %v1139_v34 = vld [vmem:[#allocation2 + $0x12c] sm:$0xf] }
  0x79   : > { %1547 = vrot.lane.b32.xlu1 %v1224_v21, %s9360_s25  ;;  %v982_v19 = vpop.permute.xlu2 %981  ;;  %v1385_v21 = vrot.slane %v1383_v25, 4  ;;  %v261_v14 = vsel %vm9524_vm8, 0, %v260_v49  ;;  %v576_v25 = vrot.slane %v574_v30, 7  ;;  %v1272_v26 = vsel %vm9560_vm10, %v1267_v17, %v1271_v8 }
  0x7a   : > { %1074 = vst.msk [vmem:[#allocation3 + $0x10] sm:$0xf] %vm1069_vm12, %v982_v19  ;;  %v558_v33 = vsel %vm9589_vm11, %v550_v51, %v557_v20  ;;  %v1389_v51 = vshll.u32 %v1131_v6, 16  ;;  %v577_v19 = vshll.u32 %v454_v10, 16  ;;  %v602_v23 = vsel %vm9589_vm11, %v594_v12, %v601_v13 }
  0x7b   : > { %882 = vst.msk [vmem:[#allocation3 + $0x14] sm:$0xf] %vm232_vm0, %v558_v33  ;;  %v1386_v46 = vor.u32 %v1385_v21, %v9709_v38  ;;  %v1421_v33 = vshll.u32 %v1135_v50, 16  ;;  %v1120_v21 = vld [vmem:[#allocation2 + $0x98] sm:$0xf]  ;;  %v1420_v47 = vrot.slane %v1418_v29, 4 }
  0x7c   : > { %1551 = vrot.lane.b32.xlu0 %v1248_v24, %s9360_s25  ;;  %v321_v24 = vsel %vm9487_vm3, 0, %v320_v28  ;;  %v9751_v28 = vrot.slane %v1362_v3, 4  ;;  %262 = vst [vmem:[#allocation2 + $0x64] sm:$0x8] %v261_v14  ;;  %v9754_v20 = vrot.slane %v1389_v51, 5  ;;  %v1298_v62 = vshrl.u32 %v1120_v21, 16 }
  0x7d   : > { %322 = vst [vmem:[#allocation2 + $0xd0] sm:$0x1] %v321_v24  ;;  %v9744_v11 = vrot.slane %v1386_v46, 4  ;;  %v1296_v24 = vsel %vm9560_vm10, %v9628_v2, %v9679_v55  ;;  %v1423_v2 = vrot.slane %v1421_v33, 5  ;;  %v1427_v55 = vshll.u32 %v9767_v32, 16 }
  0x7e   : > { %886 = vst.msk [vmem:[#allocation3 + $0x24] sm:$0xf] %vm232_vm0, %v602_v23  ;;  %v9776_v46 = vld [vmem:[#allocation2 + $0xfc] sm:$0xf]  ;;  %v1300_v56 = vrot.slane %v1298_v62, 4  ;;  %v1396_v51 = vrot.slane %v1394_v57, 4  ;;  %v1334_v23 = vsel %vm9560_vm10, %v9727_v59, %v9724_v52 }
  0x7f   : > { %1549 = vrot.lane.b32.xlu2 %v1238_v31, %s9360_s25  ;;  %v579_v31 = vor.u32 %v577_v19, %v576_v25  ;;  %v1424_v49 = vor.u32 %v1423_v2, %v1420_v47  ;;  %v1403_v6 = vshll.u32 %v9776_v46, 16  ;;  %v266_v3 = vld [vmem:[#allocation2 + $0x94] sm:$0x8]  ;;  %v1399_v12 = vrot.slane %v1397_v58, 5  ;;  %v317_v58 = vld [vmem:[#allocation2 + $0xb8] sm:$0x1] }
  0x80   : > { %v267_v14 = vsel %vm9524_vm8, 0, %v266_v3  ;;  %v631_v0 = vshrl.u32 %v462_v15, 16  ;;  %v1358_v19 = vsel %vm9560_vm10, %v9719_v44, %v9683_v48  ;;  %v634_v50 = vshll.u32 %v462_v15, 16 }
  0x81   : > { %1553 = vrot.lane.b32.xlu1 %v1262_v54, %s9360_s25  ;;  %v984_v36 = vpop.permute.xlu2 %983  ;;  %v580_v41 = vsel %vm9589_vm11, %v572_v43, %v579_v31  ;;  %v1301_v54 = vshll.u32 %v1120_v21, 16  ;;  %v9788_v13 = vrot.slane %v1424_v49, 4  ;;  %v9790_v43 = vrot.slane %v1427_v55, 5  ;;  %268 = vst [vmem:[#allocation2 + $0x94] sm:$0x8] %v267_v14 }
  0x82   : > { %1075 = vst.msk [vmem:[#allocation3 + $0x14] sm:$0xf] %vm1069_vm12, %v984_v36  ;;  %v9793_v17 = vrot.slane %v1403_v6, 5  ;;  %v609_v29 = vshrl.u32 %v9795_v16, 16  ;;  %v332_v31 = vld [vmem:[#allocation2 + $0x130] sm:$0x1] }
  0x83   : > { %884 = vst.msk [vmem:[#allocation3 + $0x1c] sm:$0xf] %vm232_vm0, %v580_v41  ;;  %v455_v40 = vld [vmem:[#allocation2 + $0x64] sm:$0x8]  ;;  %v1303_v1 = vrot.slane %v1301_v54, 5  ;;  %v612_v62 = vshll.u32 %v9795_v16, 16  ;;  %v1392_v54 = vsel %vm9560_vm10, %v9744_v11, %v9754_v20 }
  0x84   : > { %1557 = vrot.lane.b32.xlu0 %v1286_v45, %s9360_s25  ;;  %v1128_v27 = vld [vmem:[#allocation2 + $0xd0] sm:$0x1]  ;;  %v582_v36 = vshrl.u32 %v455_v40, 16  ;;  %v611_v21 = vrot.slane %v609_v29, 7  ;;  %v1337_v41 = vrot.slane %v1335_v39, 4  ;;  %v1451_v57 = vshll.u32 %v1139_v34, 16 }
  0x85   : > { %v1365_v18 = vshll.u32 %v1128_v27, 16  ;;  %v1304_v61 = vor.u32 %v1303_v1, %v1300_v56  ;;  %v9807_v27 = vrot.slane %v631_v0, 7  ;;  %v1455_v39 = vshrl.u32 %v1139_v34, 16  ;;  %v329_v49 = vld [vmem:[#allocation2 + $0x118] sm:$0x1] }
  0x86   : > { %v974_v45 = vpop.permute.xlu0 %973  ;;  %v9016_v30 = vrot.slane %v582_v36, 11  ;;  %v318_v40 = vsel %vm9487_vm3, 0, %v317_v58  ;;  %v9843_v6 = vrot.slane %v1451_v57, 5  ;;  %v466_v36 = vld [vmem:[#allocation2 + $0xb4] sm:$0xf]  ;;  %v614_v0 = vor.u32 %v612_v62, %v611_v21 }
  0x87   : > { %1070 = vst.msk [vmem:[#allocation3] sm:$0xf] %vm1069_vm12, %v974_v45  ;;  %1555 = vrot.lane.b32.xlu2 %v1272_v26, %s9360_s25  ;;  %v9780_v22 = vrot.slane %v1365_v18, 5  ;;  %v1400_v45 = vor.u32 %v1399_v12, %v1396_v51  ;;  %v1305_v25 = vrot.slane %v1304_v61, 4  ;;  %v263_v18 = vld [vmem:[#allocation2 + $0x7c] sm:$0x8]  ;;  %v636_v20 = vor.u32 %v634_v50, %v9807_v27 }
  0x88   : > { %v593_v8 = vsel %vm9589_vm11, %v9016_v30, %v592_v53  ;;  %v264_v59 = vsel %vm9524_vm8, 0, %v263_v18  ;;  %v1338_v53 = vor.u32 %v1337_v41, %v9724_v52  ;;  %v461_v11 = vld [vmem:[#allocation2 + $0x94] sm:$0x8]  ;;  %v1457_v3 = vrot.slane %v1455_v39, 4  ;;  %319 = vst [vmem:[#allocation2 + $0xb8] sm:$0x1] %v318_v40 }
  0x89   : > { %1559 = vrot.lane.b32.xlu1 %v1296_v24, %s9360_s25  ;;  %v990_v42 = vpop.permute.xlu2 %989  ;;  %885 = vst.msk [vmem:[#allocation3 + $0x20] sm:$0xf] %vm232_vm0, %v593_v8  ;;  %v1310_v48 = vsel %vm9560_vm10, %v1305_v25, %v9585_v63  ;;  %v9819_v33 = vrot.slane %v1400_v45, 4  ;;  %v333_v63 = vsel %vm9487_vm3, 0, %v332_v31  ;;  %v1368_v35 = vsel %vm9560_vm10, %v9751_v28, %v9780_v22  ;;  %v463_v41 = vld [vmem:[#allocation2 + $0x9c] sm:$0xf] }
  0x8a   : > { %1078 = vst.msk [vmem:[#allocation3 + $0x20] sm:$0xf] %vm1069_vm12, %v990_v42  ;;  %v616_v42 = vrot.slane %v611_v21, 4  ;;  %v330_v28 = vsel %vm9487_vm3, 0, %v329_v49  ;;  %v626_v22 = vshrl.u32 %v461_v11, 16  ;;  %v1431_v52 = vshrl.u32 %v9767_v32, 16 }
  0x8b   : > { %v978_v10 = vpop.permute.xlu1 %977  ;;  %265 = vst [vmem:[#allocation2 + $0x7c] sm:$0x8] %v264_v59  ;;  %v1458_v12 = vor.u32 %v1457_v3, %v9843_v6  ;;  %v662_v30 = vshrl.u32 %v466_v36, 16  ;;  %v665_v45 = vshll.u32 %v466_v36, 16  ;;  %v1129_v11 = vld [vmem:[#allocation2 + $0xe0] sm:$0xf] }
  0x8c   : > { %1563 = vrot.lane.b32.xlu0 %v1320_v5, %s9360_s25  ;;  %1072 = vst.msk [vmem:[#allocation3 + $0x8] sm:$0xf] %vm1069_vm12, %v978_v10  ;;  %v460_v5 = vld [vmem:[#allocation2 + $0x84] sm:$0xf]  ;;  %v465_v10 = vld [vmem:[#allocation2 + $0xb0] sm:$0xf] }
  0x8d   : > { %v618_v24 = vshrl.u32 %v460_v5, 16  ;;  %v621_v44 = vshll.u32 %v460_v5, 16  ;;  %334 = vst [vmem:[#allocation2 + $0x130] sm:$0x1] %v333_v63  ;;  %v9018_v51 = vrot.slane %v626_v22, 11  ;;  %v1433_v14 = vrot.slane %v1431_v52, 4 }
  0x8e   : > { %v976_v7 = vpop.permute.xlu0 %975  ;;  %v653_v15 = vshrl.u32 %v465_v10, 16  ;;  %331 = vst [vmem:[#allocation2 + $0x118] sm:$0x1] %v330_v28  ;;  %v9859_v25 = vrot.slane %v1458_v12, 4  ;;  %v269_v5 = vld [vmem:[#allocation2 + $0xac] sm:$0x8] }
  0x8f   : > { %1071 = vst.msk [vmem:[#allocation3 + $0x4] sm:$0xf] %vm1069_vm12, %v976_v7  ;;  %v620_v26 = vrot.slane %v618_v24, 7  ;;  %1561 = vrot.lane.b32.xlu2 %v1310_v48, %s9360_s25  ;;  %v9848_v7 = vrot.slane %v1338_v53, 4  ;;  %v637_v16 = vsel %vm9589_vm11, %v9018_v51, %v636_v20  ;;  %v1434_v50 = vor.u32 %v1433_v14, %v9790_v43  ;;  %v1141_v52 = vld [vmem:[#allocation2 + $0x140] sm:$0xf] }
  0x90   : > { %889 = vst.msk [vmem:[#allocation3 + $0x30] sm:$0xf] %vm232_vm0, %v637_v16  ;;  %v655_v18 = vrot.slane %v653_v15, 7  ;;  %v664_v48 = vrot.slane %v662_v30, 7  ;;  %v656_v21 = vshll.u32 %v465_v10, 16  ;;  %v1370_v22 = vshrl.u32 %v1129_v11, 16 }
  0x91   : > { %1565 = vrot.lane.b32.xlu1 %v1334_v23, %s9360_s25  ;;  %v996_v47 = vpop.permute.xlu2 %995  ;;  %v623_v56 = vor.u32 %v621_v44, %v620_v26  ;;  %v270_v44 = vsel %vm9524_vm8, 0, %v269_v5  ;;  %v9866_v31 = vrot.slane %v1434_v50, 4  ;;  %v638_v26 = vrot.slane %v9807_v27, 4 }
  0x92   : > { %v458_v61 = vld [vmem:[#allocation2 + $0x7c] sm:$0x8]  ;;  %v660_v63 = vrot.slane %v655_v18, 4  ;;  %v667_v34 = vor.u32 %v665_v45, %v664_v48  ;;  %271 = vst [vmem:[#allocation2 + $0xac] sm:$0x8] %v270_v44  ;;  %v1373_v3 = vshll.u32 %v1129_v11, 16 }
  0x93   : > { %v980_v55 = vpop.permute.xlu1 %979  ;;  %v624_v1 = vsel %vm9589_vm11, %v616_v42, %v623_v56  ;;  %v1144_v42 = vld [vmem:[#allocation2 + $0x158] sm:$0xf]  ;;  %v9885_v56 = vld [vmem:[#allocation2 + $0x15c] sm:$0xf]  ;;  %v1372_v45 = vrot.slane %v1370_v22, 4  ;;  %v1466_v5 = vshrl.u32 %v1141_v52, 16 }
  0x94   : > { %1569 = vrot.lane.b32.xlu0 %v1358_v19, %s9360_s25  ;;  %1073 = vst.msk [vmem:[#allocation3 + $0xc] sm:$0xf] %vm1069_vm12, %v980_v55  ;;  %v604_v19 = vshrl.u32 %v458_v61, 16  ;;  %v1140_v23 = vld [vmem:[#allocation2 + $0x130] sm:$0x1]  ;;  %v640_v55 = vshrl.u32 %v463_v41, 16 }
  0x95   : > { %888 = vst.msk [vmem:[#allocation3 + $0x2c] sm:$0xf] %vm232_vm0, %v624_v1  ;;  %v1461_v24 = vshll.u32 %v1140_v23, 16  ;;  %v1137_v58 = vld [vmem:[#allocation2 + $0x118] sm:$0x1]  ;;  %v1490_v53 = vshrl.u32 %v1144_v42, 16 }
  0x96   : > { %v986_v2 = vpop.permute.xlu0 %985  ;;  %1081 = vst.msk [vmem:[#allocation3 + $0x2c] sm:$0xf] %vm1069_vm12, %v996_v47  ;;  %v9017_v59 = vrot.slane %v604_v19, 11  ;;  %v1430_v47 = vsel %vm9560_vm10, %v9788_v13, %v9790_v43  ;;  %v1125_v13 = vld [vmem:[#allocation2 + $0xb8] sm:$0x1]  ;;  %v668_v43 = vsel %vm9589_vm11, %v660_v63, %v667_v34  ;;  %v1437_v40 = vshll.u32 %v1137_v58, 16 }
  0x97   : > { %1076 = vst.msk [vmem:[#allocation3 + $0x18] sm:$0xf] %vm1069_vm12, %v986_v2  ;;  %v9874_v62 = vrot.slane %v1461_v24, 5  ;;  %v1406_v2 = vsel %vm9560_vm10, %v9819_v33, %v9793_v17  ;;  %v1341_v57 = vshll.u32 %v1125_v13, 16  ;;  %v9888_v33 = vor.u32 %v656_v21, %v655_v18  ;;  %v9899_v61 = vld [vmem:[#allocation2 + $0x144] sm:$0xf] }
  0x98   : > { %v615_v27 = vsel %vm9589_vm11, %v9017_v59, %v614_v0  ;;  %892 = vst.msk [vmem:[#allocation3 + $0x3c] sm:$0xf] %vm232_vm0, %v668_v43  ;;  %v1493_v49 = vshll.u32 %v1144_v42, 16  ;;  %v1439_v51 = vrot.slane %v1437_v40, 5  ;;  %v1492_v12 = vrot.slane %v1490_v53, 4 }
  0x99   : > { %1571 = vrot.lane.b32.xlu1 %v1368_v35, %s9360_s25  ;;  %v9855_v32 = vpop.permute.xlu2 %1001  ;;  %887 = vst.msk [vmem:[#allocation3 + $0x28] sm:$0xf] %vm232_vm0, %v615_v27  ;;  %v642_v35 = vrot.slane %v640_v55, 7  ;;  %v1464_v39 = vsel %vm9560_vm10, %v9859_v25, %v9874_v62  ;;  %v1343_v1 = vrot.slane %v1341_v57, 5  ;;  %v1499_v15 = vshll.u32 %v9885_v56, 16 }
  0x9a   : > { %v1495_v14 = vrot.slane %v1493_v49, 5  ;;  %v1375_v16 = vrot.slane %v1373_v3, 5  ;;  %v275_v19 = vld [vmem:[#allocation2 + $0xdc] sm:$0x8]  ;;  %v1440_v23 = vsel %vm9560_vm10, %v9866_v31, %v1439_v51  ;;  %v464_v25 = vld [vmem:[#allocation2 + $0xac] sm:$0x8] }
  0x9b   : > { %v988_v29 = vpop.permute.xlu1 %987  ;;  %v1344_v0 = vsel %vm9560_vm10, %v9848_v7, %v1343_v1  ;;  %v1475_v24 = vshll.u32 %v9899_v61, 16  ;;  %v276_v18 = vsel %vm9524_vm8, 0, %v275_v19  ;;  %v9916_v44 = vrot.slane %v1499_v15, 5  ;;  %v471_v62 = vld [vmem:[#allocation2 + $0xe0] sm:$0xf] }
  0x9c   : > { %1575 = vrot.lane.b32.xlu0 %v1392_v54, %s9360_s25  ;;  %1077 = vst.msk [vmem:[#allocation3 + $0x1c] sm:$0xf] %vm1069_vm12, %v988_v29  ;;  %v643_v54 = vshll.u32 %v463_v41, 16  ;;  %1567 = vrot.lane.b32.xlu2 %v1344_v0, %s9360_s25  ;;  %v1496_v50 = vor.u32 %v1495_v14, %v1492_v12  ;;  %v648_v29 = vshrl.u32 %v464_v25, 16  ;;  %v1376_v7 = vor.u32 %v1375_v16, %v1372_v45  ;;  %v9923_v27 = vld [vmem:[#allocation2 + $0xc8] sm:$0xf] }
  0x9d   : > { %v1468_v59 = vrot.slane %v1466_v5, 4  ;;  %277 = vst [vmem:[#allocation2 + $0xdc] sm:$0x8] %v276_v18  ;;  %v1407_v63 = vshrl.u32 %v9776_v46, 16  ;;  %v697_v41 = vshrl.u32 %v471_v62, 16  ;;  %v675_v46 = vshrl.u32 %v9923_v27, 16 }
  0x9e   : > { %v992_v8 = vpop.permute.xlu0 %991  ;;  %v645_v28 = vor.u32 %v643_v54, %v642_v35  ;;  %v1497_v48 = vrot.slane %v1496_v50, 4  ;;  %v9019_v31 = vrot.slane %v648_v29, 11  ;;  %v469_v55 = vld [vmem:[#allocation2 + $0xcc] sm:$0xf]  ;;  %v272_v43 = vld [vmem:[#allocation2 + $0xc4] sm:$0x8] }
  0x9f   : > { %1079 = vst.msk [vmem:[#allocation3 + $0x24] sm:$0xf] %vm1069_vm12, %v992_v8  ;;  %v1469_v8 = vshll.u32 %v1141_v52, 16  ;;  %v684_v13 = vshrl.u32 %v469_v55, 16  ;;  %v341_v57 = vld [vmem:[#allocation2 + $0x178] sm:$0x1] }
  0xa0   : > { %v646_v30 = vsel %vm9589_vm11, %v638_v26, %v645_v28  ;;  %v1377_v26 = vrot.slane %v1376_v7, 4  ;;  %v659_v54 = vsel %vm9589_vm11, %v9019_v31, %v9888_v33  ;;  %v9935_v53 = vrot.slane %v697_v41, 7  ;;  %v1148_v3 = vld [vmem:[#allocation2 + $0x174] sm:$0xf]  ;;  %v326_v52 = vld [vmem:[#allocation2 + $0x100] sm:$0x1] }
  0xa1   : > { %1577 = vrot.lane.b32.xlu1 %v1406_v2, %s9360_s25  ;;  %v9896_v20 = vpop.permute.xlu2 %1007  ;;  %890 = vst.msk [vmem:[#allocation3 + $0x34] sm:$0xf] %vm232_vm0, %v646_v30  ;;  %v1471_v21 = vrot.slane %v1469_v8, 5  ;;  %v700_v2 = vshll.u32 %v471_v62, 16  ;;  %v687_v49 = vshll.u32 %v469_v55, 16  ;;  %v1503_v33 = vshrl.u32 %v9885_v56, 16 }
  0xa2   : > { %v1382_v42 = vsel %vm9560_vm10, %v1377_v26, %v9709_v38  ;;  %891 = vst.msk [vmem:[#allocation3 + $0x38] sm:$0xf] %vm232_vm0, %v659_v54  ;;  %v677_v38 = vrot.slane %v675_v46, 7  ;;  %v686_v11 = vrot.slane %v684_v13, 7  ;;  %v273_v1 = vsel %vm9524_vm8, 0, %v272_v43 }
  0xa3   : > { %v994_v36 = vpop.permute.xlu1 %993  ;;  %v1472_v34 = vor.u32 %v1471_v21, %v1468_v59  ;;  %v342_v28 = vsel %vm9487_vm3, 0, %v341_v57  ;;  %1084 = vst.msk [vmem:[#allocation3 + $0x38] sm:$0xf] %vm1069_vm12, %v9855_v32  ;;  %v1502_v22 = vsel %vm9560_vm10, %v1497_v48, %v9916_v44  ;;  %v1523_v32 = vshll.u32 %v1148_v3, 16  ;;  %v338_v19 = vld [vmem:[#allocation2 + $0x160] sm:$0x1] }
  0xa4   : > { %1581 = vrot.lane.b32.xlu0 %v1430_v47, %s9360_s25  ;;  %1080 = vst.msk [vmem:[#allocation3 + $0x28] sm:$0xf] %vm1069_vm12, %v994_v36  ;;  %v9918_v47 = vrot.slane %v1475_v24, 5  ;;  %1573 = vrot.lane.b32.xlu2 %v1382_v42, %s9360_s25  ;;  %v702_v36 = vor.u32 %v700_v2, %v9935_v53  ;;  %v682_v51 = vrot.slane %v677_v38, 4  ;;  %v689_v12 = vor.u32 %v687_v49, %v686_v11  ;;  %v9968_v7 = vld [vmem:[#allocation2 + $0xf8] sm:$0xf] }
  0xa5   : > { %v1473_v40 = vrot.slane %v1472_v34, 4  ;;  %274 = vst [vmem:[#allocation2 + $0xc4] sm:$0x8] %v273_v1  ;;  %v1527_v15 = vshrl.u32 %v1148_v3, 16  ;;  %v327_v0 = vsel %vm9487_vm3, 0, %v326_v52  ;;  %v1409_v30 = vrot.slane %v1407_v63, 4 }
  0xa6   : > { %v998_v10 = vpop.permute.xlu0 %997  ;;  %v690_v45 = vsel %vm9589_vm11, %v682_v51, %v689_v12  ;;  %343 = vst [vmem:[#allocation2 + $0x178] sm:$0x1] %v342_v28  ;;  %v9958_v16 = vrot.slane %v1523_v32, 5  ;;  %v678_v50 = vshll.u32 %v9923_v27, 16  ;;  %v475_v24 = vld [vmem:[#allocation2 + $0xfc] sm:$0xf] }
  0xa7   : > { %1082 = vst.msk [vmem:[#allocation3 + $0x30] sm:$0xf] %vm1069_vm12, %v998_v10  ;;  %v1478_v56 = vsel %vm9560_vm10, %v1473_v40, %v9918_v47  ;;  %v470_v10 = vld [vmem:[#allocation2 + $0xdc] sm:$0x8]  ;;  %v1529_v5 = vrot.slane %v1527_v15, 4  ;;  %v1410_v8 = vor.u32 %v1409_v30, %v9793_v17  ;;  %v339_v31 = vsel %vm9487_vm3, 0, %v338_v19 }
  0xa8   : > { %v692_v14 = vshrl.u32 %v470_v10, 16  ;;  %894 = vst.msk [vmem:[#allocation3 + $0x44] sm:$0xf] %vm232_vm0, %v690_v45  ;;  %v719_v17 = vshrl.u32 %v9968_v7, 16  ;;  %v278_v26 = vld [vmem:[#allocation2 + $0xf4] sm:$0x8]  ;;  %v680_v43 = vor.u32 %v678_v50, %v677_v38 }
  0xa9   : > { %1583 = vrot.lane.b32.xlu1 %v1440_v23, %s9360_s25  ;;  %v9932_v58 = vpop.permute.xlu2 %1013  ;;  %v1505_v23 = vrot.slane %v1503_v33, 4  ;;  %1087 = vst.msk [vmem:[#allocation3 + $0x44] sm:$0xf] %vm1069_vm12, %v9896_v20  ;;  %v1530_v21 = vor.u32 %v1529_v5, %v9958_v16  ;;  %v9977_v20 = vrot.slane %v1410_v8, 4  ;;  %v731_v62 = vshll.u32 %v475_v24, 16 }
  0xaa   : > { %v9021_v25 = vrot.slane %v692_v14, 11  ;;  %328 = vst [vmem:[#allocation2 + $0x100] sm:$0x1] %v327_v0  ;;  %v279_v63 = vsel %vm9524_vm8, 0, %v278_v26  ;;  %v721_v27 = vrot.slane %v719_v17, 7  ;;  %v722_v55 = vshll.u32 %v9968_v7, 16 }
  0xab   : > { %v1506_v29 = vor.u32 %v1505_v23, %v9916_v44  ;;  %v728_v44 = vshrl.u32 %v475_v24, 16  ;;  %v1531_v41 = vrot.slane %v1530_v21, 4  ;;  %340 = vst [vmem:[#allocation2 + $0x160] sm:$0x1] %v339_v31  ;;  %v1479_v46 = vshrl.u32 %v9899_v61, 16 }
  0xac   : > { %1587 = vrot.lane.b32.xlu0 %v1464_v39, %s9360_s25  ;;  %v1000_v39 = vpop.permute.xlu1 %999  ;;  %v703_v18 = vsel %vm9589_vm11, %v9021_v25, %v702_v36  ;;  %v467_v54 = vld [vmem:[#allocation2 + $0xc4] sm:$0x8]  ;;  %280 = vst [vmem:[#allocation2 + $0xf4] sm:$0x8] %v279_v63  ;;  %v1669_v33 = vld [vmem:[#allocation2 + $0x34] sm:$0x8]  ;;  %v724_v24 = vor.u32 %v722_v55, %v721_v27 }
  0xad   : > { %1083 = vst.msk [vmem:[#allocation3 + $0x34] sm:$0xf] %vm1069_vm12, %v1000_v39  ;;  %v9984_v2 = vrot.slane %v1506_v29, 4  ;;  %v730_v42 = vrot.slane %v728_v44, 7  ;;  %v670_v13 = vshrl.u32 %v467_v54, 16  ;;  %v1481_v11 = vrot.slane %v1479_v46, 4 }
  0xae   : > { %v1004_v35 = vpop.permute.xlu0 %1003  ;;  %895 = vst.msk [vmem:[#allocation3 + $0x48] sm:$0xf] %vm232_vm0, %v703_v18  ;;  %v1149_v57 = vld [vmem:[#allocation2 + $0x178] sm:$0x1]  ;;  %v472_v49 = vld [vmem:[#allocation2 + $0xe4] sm:$0xf] }
  0xaf   : > { %1085 = vst.msk [vmem:[#allocation3 + $0x3c] sm:$0xf] %vm1069_vm12, %v1004_v35  ;;  %v726_v35 = vrot.slane %v721_v27, 4  ;;  %v1533_v39 = vshll.u32 %v1149_v57, 16  ;;  %v733_v40 = vor.u32 %v731_v62, %v730_v42  ;;  %v9020_v1 = vrot.slane %v670_v13, 11 }
  0xb0   : > { %v706_v28 = vshrl.u32 %v472_v49, 16  ;;  %v1737_v3 = vshrl.u32 %v1669_v33, 16  ;;  %v704_v14 = vrot.slane %v9935_v53, 4  ;;  %v1138_v23 = vld [vmem:[#allocation2 + $0x128] sm:$0xf]  ;;  %v1482_v53 = vor.u32 %v1481_v11, %v9918_v47 }
  0xb1   : > { %1589 = vrot.lane.b32.xlu1 %v1478_v56, %s9360_s25  ;;  %v9981_v34 = vpop.permute.xlu2 %1019  ;;  %v1670_v56 = vld [vmem:[#allocation2 + $0x38] sm:$0xf]  ;;  %v1535_v52 = vrot.slane %v1533_v39, 5  ;;  %v1134_v10 = vld [vmem:[#allocation2 + $0x100] sm:$0x1]  ;;  %v734_v61 = vsel %vm9589_vm11, %v726_v35, %v733_v40  ;;  %v681_v51 = vsel %vm9589_vm11, %v9020_v1, %v680_v43  ;;  %v1442_v8 = vshrl.u32 %v1138_v23, 16 }
  0xb2   : > { %v1742_v36 = vshrl.u32 %v1670_v56, 16  ;;  %v1745_v38 = vshll.u32 %v1670_v56, 16  ;;  %v1413_v12 = vshll.u32 %v1134_v10, 16  ;;  %898 = vst.msk [vmem:[#allocation3 + $0x54] sm:$0xf] %vm232_vm0, %v734_v61  ;;  %v708_v15 = vrot.slane %v706_v28, 7 }
  0xb3   : > { %893 = vst.msk [vmem:[#allocation3 + $0x40] sm:$0xf] %vm232_vm0, %v681_v51  ;;  %v1536_v30 = vsel %vm9560_vm10, %v1531_v41, %v1535_v52  ;;  %v9029_v45 = vrot.slane %v1737_v3, 11  ;;  %v1146_v50 = vld [vmem:[#allocation2 + $0x160] sm:$0x1]  ;;  %v1444_v26 = vrot.slane %v1442_v8, 4 }
  0xb4   : > { %1593 = vrot.lane.b32.xlu0 %v1502_v22, %s9360_s25  ;;  %v1006_v59 = vpop.permute.xlu1 %1005  ;;  %v709_v22 = vshll.u32 %v472_v49, 16  ;;  %v9997_v19 = vrot.slane %v1742_v36, 7  ;;  %v1415_v25 = vrot.slane %v1413_v12, 5  ;;  %v1509_v29 = vshll.u32 %v1146_v50, 16  ;;  %v473_v7 = vld [vmem:[#allocation2 + $0xf4] sm:$0x8] }
  0xb5   : > { %1086 = vst.msk [vmem:[#allocation3 + $0x40] sm:$0xf] %vm1069_vm12, %v1006_v59  ;;  %v714_v31 = vshrl.u32 %v473_v7, 16  ;;  %v1666_v47 = vld [vmem:[#allocation2 + $0x1c] sm:$0x8]  ;;  %v10016_v42 = vrot.slane %v1482_v53, 4 }
  0xb6   : > { %v1010_v48 = vpop.permute.xlu0 %1009  ;;  %v711_v5 = vor.u32 %v709_v22, %v708_v15  ;;  %v1747_v18 = vor.u32 %v1745_v38, %v9997_v19  ;;  %v1416_v59 = vsel %vm9560_vm10, %v9977_v20, %v1415_v25  ;;  %v1667_v44 = vld [vmem:[#allocation2 + $0x20] sm:$0xf]  ;;  %v1511_v62 = vrot.slane %v1509_v29, 5  ;;  %v284_v57 = vld [vmem:[#allocation2 + $0x124] sm:$0x8] }
  0xb7   : > { %1088 = vst.msk [vmem:[#allocation3 + $0x48] sm:$0xf] %vm1069_vm12, %v1010_v48  ;;  %v1445_v48 = vshll.u32 %v1138_v23, 16  ;;  %1579 = vrot.lane.b32.xlu2 %v1416_v59, %s9360_s25  ;;  %v1715_v27 = vshrl.u32 %v1666_v47, 16  ;;  %v9022_v55 = vrot.slane %v714_v31, 11  ;;  %v1720_v20 = vshrl.u32 %v1667_v44, 16 }
  0xb8   : > { %v712_v17 = vsel %vm9589_vm11, %v704_v14, %v711_v5  ;;  %v1748_v63 = vsel %vm9589_vm11, %v9029_v45, %v1747_v18  ;;  %v1723_v54 = vshll.u32 %v1667_v44, 16  ;;  %v1512_v46 = vsel %vm9560_vm10, %v9984_v2, %v1511_v62  ;;  %v480_v35 = vld [vmem:[#allocation2 + $0x128] sm:$0xf]  ;;  %v10031_v2 = vld [vmem:[#allocation2 + $0x110] sm:$0xf] }
  0xb9   : > { %v10004_v21 = vpop.permute.xlu2 %1025  ;;  %896 = vst.msk [vmem:[#allocation3 + $0x4c] sm:$0xf] %vm232_vm0, %v712_v17  ;;  %v1447_v41 = vrot.slane %v1445_v48, 5  ;;  %v9028_v43 = vrot.slane %v1715_v27, 11  ;;  %v1749_v39 = vrot.slane %v9997_v19, 4  ;;  %1595 = vrot.lane.b32.xlu1 %v1512_v46, %s9360_s25  ;;  %v725_v40 = vsel %vm9589_vm11, %v9022_v55, %v724_v24 }
  0xba   : > { %v10025_v49 = vrot.slane %v1720_v20, 7  ;;  %v285_v33 = vsel %vm9524_vm8, 0, %v284_v57  ;;  %v763_v11 = vshrl.u32 %v480_v35, 16  ;;  %897 = vst.msk [vmem:[#allocation3 + $0x50] sm:$0xf] %vm232_vm0, %v725_v40  ;;  %v766_v56 = vshll.u32 %v480_v35, 16 }
  0xbb   : > { %v1448_v13 = vor.u32 %v1447_v41, %v1444_v26  ;;  %v478_v3 = vld [vmem:[#allocation2 + $0x114] sm:$0xf]  ;;  %1090 = vst.msk [vmem:[#allocation3 + $0x50] sm:$0xf] %vm1069_vm12, %v9932_v58  ;;  %v741_v61 = vshrl.u32 %v10031_v2, 16 }
  0xbc   : > { %v1012_v0 = vpop.permute.xlu1 %1011  ;;  %1599 = vrot.lane.b32.xlu0 %v1536_v30, %s9360_s25  ;;  %v1725_v52 = vor.u32 %v1723_v54, %v10025_v49  ;;  %v10040_v10 = vrot.slane %v763_v11, 7  ;;  %v750_v36 = vshrl.u32 %v478_v3, 16  ;;  %286 = vst [vmem:[#allocation2 + $0x124] sm:$0x8] %v285_v33  ;;  %v753_v51 = vshll.u32 %v478_v3, 16 }
  0xbd   : > { %1089 = vst.msk [vmem:[#allocation3 + $0x4c] sm:$0xf] %vm1069_vm12, %v1012_v0  ;;  %v1449_v22 = vrot.slane %v1448_v13, 4  ;;  %v281_v12 = vld [vmem:[#allocation2 + $0x10c] sm:$0x8]  ;;  %v743_v14 = vrot.slane %v741_v61, 7 }
  0xbe   : > { %v1016_v32 = vpop.permute.xlu0 %1015  ;;  %v1726_v58 = vsel %vm9589_vm11, %v9028_v43, %v1725_v52  ;;  %v752_v15 = vrot.slane %v750_v36, 7  ;;  %v10049_v0 = vld [vmem:[#allocation2 + $0x50] sm:$0xf]  ;;  %v1674_v30 = vld [vmem:[#allocation2 + $0x54] sm:$0xf]  ;;  %v282_v45 = vsel %vm9524_vm8, 0, %v281_v12  ;;  %v768_v54 = vor.u32 %v766_v56, %v10040_v10 }
  0xbf   : > { %1091 = vst.msk [vmem:[#allocation3 + $0x54] sm:$0xf] %vm1069_vm12, %v1016_v32  ;;  %v1454_v38 = vsel %vm9560_vm10, %v1449_v22, %v9843_v6  ;;  %v744_v32 = vshll.u32 %v10031_v2, 16  ;;  %v1764_v6 = vshrl.u32 %v10049_v0, 16  ;;  %v1773_v23 = vshrl.u32 %v1674_v30, 16 }
  0xc0   : > { %1585 = vrot.lane.b32.xlu2 %v1454_v38, %s9360_s25  ;;  %v1776_v25 = vshll.u32 %v1674_v30, 16  ;;  %v335_v50 = vld [vmem:[#allocation2 + $0x148] sm:$0x1]  ;;  %v748_v8 = vrot.slane %v743_v14, 4  ;;  %v755_v53 = vor.u32 %v753_v51, %v752_v15  ;;  %283 = vst [vmem:[#allocation2 + $0x10c] sm:$0x8] %v282_v45 }
  0xc1   : > { %v10055_v5 = vpop.permute.xlu2 %1031  ;;  %v336_v29 = vsel %vm9487_vm3, 0, %v335_v50  ;;  %v1671_v7 = vld [vmem:[#allocation2 + $0x3c] sm:$0xf]  ;;  %v10059_v24 = vrot.slane %v1764_v6, 7  ;;  %v1775_v18 = vrot.slane %v1773_v23, 7  ;;  %2066 = vrot.lane.b32.xlu1 %v1726_v58, %s9361_s26  ;;  %v746_v58 = vor.u32 %v744_v32, %v743_v14 }
  0xc2   : > { %337 = vst [vmem:[#allocation2 + $0x148] sm:$0x1] %v336_v29  ;;  %v1751_v48 = vshrl.u32 %v1671_v7, 16  ;;  %v1754_v59 = vshll.u32 %v1671_v7, 16  ;;  %v756_v31 = vsel %vm9589_vm11, %v748_v8, %v755_v53  ;;  %v10064_v17 = vld [vmem:[#allocation2 + $0x140] sm:$0xf] }
  0xc3   : > { %v484_v26 = vld [vmem:[#allocation2 + $0x144] sm:$0xf]  ;;  %v287_v44 = vld [vmem:[#allocation2 + $0x13c] sm:$0x8]  ;;  %900 = vst.msk [vmem:[#allocation3 + $0x5c] sm:$0xf] %vm232_vm0, %v756_v31  ;;  %v1778_v41 = vor.u32 %v1776_v25, %v1775_v18 }
  0xc4   : > { %v10033_v28 = vpop.permute.xlu1 %1017  ;;  %2070 = vrot.lane.b32.xlu0 %v1748_v63, %s9361_s26  ;;  %v1771_v63 = vrot.slane %v10059_v24, 4  ;;  %v1753_v27 = vrot.slane %v1751_v48, 7  ;;  %v785_v55 = vshrl.u32 %v10064_v17, 16  ;;  %v479_v20 = vld [vmem:[#allocation2 + $0x124] sm:$0x8]  ;;  %v794_v46 = vshrl.u32 %v484_v26, 16 }
  0xc5   : > { %1093 = vst.msk [vmem:[#allocation3 + $0x5c] sm:$0xf] %vm1069_vm12, %v9981_v34  ;;  %v797_v13 = vshll.u32 %v484_v26, 16  ;;  %v758_v43 = vshrl.u32 %v479_v20, 16  ;;  %v481_v33 = vld [vmem:[#allocation2 + $0x12c] sm:$0xf] }
  0xc6   : > { %v10029_v1 = vpop.permute.xlu0 %1021  ;;  %v1779_v57 = vsel %vm9589_vm11, %v1771_v63, %v1778_v41  ;;  %v1756_v35 = vor.u32 %v1754_v59, %v1753_v27  ;;  %v787_v40 = vrot.slane %v785_v55, 7  ;;  %v1678_v11 = vld [vmem:[#allocation2 + $0x7c] sm:$0x8]  ;;  %v796_v2 = vrot.slane %v794_v46, 7  ;;  %v1679_v3 = vld [vmem:[#allocation2 + $0x80] sm:$0xf] }
  0xc7   : > { %v288_v22 = vsel %vm9524_vm8, 0, %v287_v44  ;;  %v788_v56 = vshll.u32 %v10064_v17, 16  ;;  %v770_v34 = vrot.slane %v10040_v10, 4  ;;  %v9024_v52 = vrot.slane %v758_v43, 11  ;;  %v476_v61 = vld [vmem:[#allocation2 + $0x10c] sm:$0x8] }
  0xc8   : > { %v1757_v36 = vsel %vm9589_vm11, %v1749_v39, %v1756_v35  ;;  %v792_v38 = vrot.slane %v787_v40, 4  ;;  %289 = vst [vmem:[#allocation2 + $0x13c] sm:$0x8] %v288_v22  ;;  %v736_v12 = vshrl.u32 %v476_v61, 16  ;;  %v799_v30 = vor.u32 %v797_v13, %v796_v2  ;;  %v1147_v6 = vld [vmem:[#allocation2 + $0x170] sm:$0xf] }
  0xc9   : > { %v10087_v51 = vpop.permute.xlu2 %1537  ;;  %v1143_v15 = vld [vmem:[#allocation2 + $0x148] sm:$0x1]  ;;  %v772_v45 = vshrl.u32 %v481_v33, 16  ;;  %v769_v10 = vsel %vm9589_vm11, %v9024_v52, %v768_v54  ;;  %v775_v25 = vshll.u32 %v481_v33, 16  ;;  %v1803_v50 = vshrl.u32 %v1678_v11, 16  ;;  %2072 = vrot.lane.b32.xlu1 %v1757_v36, %s9361_s26 }
  0xca   : > { %v1485_v23 = vshll.u32 %v1143_v15, 16  ;;  %v1675_v19 = vld [vmem:[#allocation2 + $0x64] sm:$0x8]  ;;  %901 = vst.msk [vmem:[#allocation3 + $0x60] sm:$0xf] %vm232_vm0, %v769_v10  ;;  %v9023_v39 = vrot.slane %v736_v12, 11  ;;  %v800_v8 = vsel %vm9589_vm11, %v792_v38, %v799_v30 }
  0xcb   : > { %v774_v32 = vrot.slane %v772_v45, 7  ;;  %v1808_v14 = vshrl.u32 %v1679_v3, 16  ;;  %1094 = vst.msk [vmem:[#allocation3 + $0x60] sm:$0xf] %vm1069_vm12, %v10029_v1  ;;  %v9032_v18 = vrot.slane %v1803_v50, 11  ;;  %v1811_v48 = vshll.u32 %v1679_v3, 16 }
  0xcc   : > { %v10068_v62 = vpop.permute.xlu1 %1023  ;;  %2076 = vrot.lane.b32.xlu0 %v1779_v57, %s9361_s26  ;;  %v1487_v7 = vrot.slane %v1485_v23, 5  ;;  %v1514_v59 = vshrl.u32 %v1147_v6, 16  ;;  %v747_v31 = vsel %vm9589_vm11, %v9023_v39, %v746_v58  ;;  %904 = vst.msk [vmem:[#allocation3 + $0x6c] sm:$0xf] %vm232_vm0, %v800_v8  ;;  %v1517_v44 = vshll.u32 %v1147_v6, 16 }
  0xcd   : > { %v777_v17 = vor.u32 %v775_v25, %v774_v32  ;;  %v10104_v26 = vrot.slane %v1808_v14, 7  ;;  %v1676_v63 = vld [vmem:[#allocation2 + $0x68] sm:$0xf]  ;;  %899 = vst.msk [vmem:[#allocation3 + $0x58] sm:$0xf] %vm232_vm0, %v747_v31  ;;  %v1781_v27 = vshrl.u32 %v1675_v19, 16  ;;  %v790_v57 = vor.u32 %v788_v56, %v787_v40 }
  0xce   : > { %v10066_v47 = vpop.permute.xlu0 %1027  ;;  %v1488_v1 = vsel %vm9560_vm10, %v10016_v42, %v1487_v7  ;;  %v1516_v41 = vrot.slane %v1514_v59, 4  ;;  %v1786_v55 = vshrl.u32 %v1676_v63, 16  ;;  %1092 = vst.msk [vmem:[#allocation3 + $0x58] sm:$0xf] %vm1069_vm12, %v10033_v28  ;;  %v1519_v13 = vrot.slane %v1517_v44, 5 }
  0xcf   : > { %1591 = vrot.lane.b32.xlu2 %v1488_v1, %s9360_s25  ;;  %v482_v20 = vld [vmem:[#allocation2 + $0x13c] sm:$0x8]  ;;  %v778_v54 = vsel %vm9589_vm11, %v770_v34, %v777_v17  ;;  %v1813_v46 = vor.u32 %v1811_v48, %v10104_v26  ;;  %v1789_v43 = vshll.u32 %v1676_v63, 16  ;;  %1097 = vst.msk [vmem:[#allocation3 + $0x6c] sm:$0xf] %vm1069_vm12, %v10066_v47  ;;  %v9031_v35 = vrot.slane %v1781_v27, 11 }
  0xd0   : > { %v780_v42 = vshrl.u32 %v482_v20, 16  ;;  %v10118_v33 = vrot.slane %v1786_v55, 7  ;;  %902 = vst.msk [vmem:[#allocation3 + $0x64] sm:$0xf] %vm232_vm0, %v778_v54  ;;  %v1520_v2 = vor.u32 %v1519_v13, %v1516_v41  ;;  %v293_v22 = vld [vmem:[#allocation2 + $0x16c] sm:$0x8] }
  0xd1   : > { %v10120_v11 = vpop.permute.xlu2 %1543  ;;  %v1814_v28 = vsel %vm9589_vm11, %v9032_v18, %v1813_v46  ;;  %v489_v34 = vld [vmem:[#allocation2 + $0x170] sm:$0xf]  ;;  %1095 = vst.msk [vmem:[#allocation3 + $0x64] sm:$0xf] %vm1069_vm12, %v10068_v62  ;;  %v294_v40 = vsel %vm9524_vm8, 0, %v293_v22  ;;  %v1727_v8 = vrot.slane %v10025_v49, 4 }
  0xd2   : > { %v9025_v3 = vrot.slane %v780_v42, 11  ;;  %v1791_v47 = vor.u32 %v1789_v43, %v10118_v33  ;;  %v829_v56 = vshrl.u32 %v489_v34, 16  ;;  %v1521_v52 = vrot.slane %v1520_v2, 4  ;;  %295 = vst [vmem:[#allocation2 + $0x16c] sm:$0x8] %v294_v40 }
  0xd3   : > { %v832_v61 = vshll.u32 %v489_v34, 16  ;;  %v486_v36 = vld [vmem:[#allocation2 + $0x158] sm:$0xf]  ;;  %v487_v30 = vld [vmem:[#allocation2 + $0x15c] sm:$0xf]  ;;  %v1815_v20 = vrot.slane %v10104_v26, 4 }
  0xd4   : > { %v10097_v29 = vpop.permute.xlu1 %1029  ;;  %2082 = vrot.lane.b32.xlu0 %v1814_v28, %s9361_s26  ;;  %v791_v58 = vsel %vm9589_vm11, %v9025_v3, %v790_v57  ;;  %v1792_v62 = vsel %vm9589_vm11, %v9031_v35, %v1791_v47  ;;  %v10137_v15 = vrot.slane %v829_v56, 7  ;;  %v807_v45 = vshrl.u32 %v486_v36, 16  ;;  %v290_v6 = vld [vmem:[#allocation2 + $0x154] sm:$0x8]  ;;  %v10148_v39 = vld [vmem:[#allocation2 + $0x98] sm:$0xf] }
  0xd5   : > { %903 = vst.msk [vmem:[#allocation3 + $0x68] sm:$0xf] %vm232_vm0, %v791_v58  ;;  %v1526_v10 = vsel %vm9560_vm10, %v1521_v52, %v9958_v16  ;;  %2078 = vrot.lane.b32.xlu1 %v1792_v62, %s9361_s26  ;;  %v816_v23 = vshrl.u32 %v487_v30, 16  ;;  %v819_v25 = vshll.u32 %v487_v30, 16  ;;  %v291_v50 = vsel %vm9524_vm8, 0, %v290_v6 }
  0xd6   : > { %v10095_v53 = vpop.permute.xlu0 %1033  ;;  %1096 = vst.msk [vmem:[#allocation3 + $0x68] sm:$0xf] %vm1069_vm12, %v10004_v21  ;;  %v809_v19 = vrot.slane %v807_v45, 7  ;;  %v834_v32 = vor.u32 %v832_v61, %v10137_v15  ;;  %v1683_v14 = vld [vmem:[#allocation2 + $0x9c] sm:$0xf]  ;;  %v1830_v7 = vshrl.u32 %v10148_v39, 16 }
  0xd7   : > { %1597 = vrot.lane.b32.xlu2 %v1526_v10, %s9360_s25  ;;  %v818_v16 = vrot.slane %v816_v23, 7  ;;  %292 = vst [vmem:[#allocation2 + $0x154] sm:$0x8] %v291_v50  ;;  %v810_v48 = vshll.u32 %v486_v36, 16  ;;  %v1839_v59 = vshrl.u32 %v1683_v14, 16  ;;  %v1842_v31 = vshll.u32 %v1683_v14, 16 }
  0xd8   : > { %v814_v18 = vrot.slane %v809_v19, 4  ;;  %v1668_v17 = vld [vmem:[#allocation2 + $0x24] sm:$0xf]  ;;  %v10156_v63 = vrot.slane %v1830_v7, 7  ;;  %v490_v35 = vld [vmem:[#allocation2 + $0x174] sm:$0xf] }
  0xd9   : > { %v10154_v21 = vpop.permute.xlu2 %1549  ;;  %v821_v44 = vor.u32 %v819_v25, %v818_v16  ;;  %v1729_v49 = vshrl.u32 %v1668_v17, 16  ;;  %v1732_v1 = vshll.u32 %v1668_v17, 16  ;;  %v1680_v41 = vld [vmem:[#allocation2 + $0x84] sm:$0xf]  ;;  %v488_v27 = vld [vmem:[#allocation2 + $0x16c] sm:$0x8]  ;;  %v812_v61 = vor.u32 %v810_v48, %v809_v19 }
  0xda   : > { %v1841_v55 = vrot.slane %v1839_v59, 7  ;;  %v1817_v54 = vshrl.u32 %v1680_v41, 16  ;;  %v1820_v46 = vshll.u32 %v1680_v41, 16  ;;  %v824_v13 = vshrl.u32 %v488_v27, 16  ;;  %v1687_v62 = vld [vmem:[#allocation2 + $0xc4] sm:$0x8] }
  0xdb   : > { %v822_v43 = vsel %vm9589_vm11, %v814_v18, %v821_v44  ;;  %v1837_v42 = vrot.slane %v10156_v63, 4  ;;  %v1731_v57 = vrot.slane %v1729_v49, 7  ;;  %v836_v26 = vrot.slane %v10137_v15, 4  ;;  %1634 = vst.msk [vmem:[#allocation3] sm:$0xf] %vm1633_vm13, %v10087_v51 }
  0xdc   : > { %v10131_v12 = vpop.permute.xlu1 %1035  ;;  %906 = vst.msk [vmem:[#allocation3 + $0x74] sm:$0xf] %vm232_vm0, %v822_v43  ;;  %v1844_v22 = vor.u32 %v1842_v31, %v1841_v55  ;;  %v1819_v34 = vrot.slane %v1817_v54, 7  ;;  %v9027_v3 = vrot.slane %v824_v13, 11  ;;  %v838_v40 = vshrl.u32 %v490_v35, 16 }
  0xdd   : > { %1099 = vst.msk [vmem:[#allocation3 + $0x74] sm:$0xf] %vm1069_vm12, %v10055_v5  ;;  %v1734_v47 = vor.u32 %v1732_v1, %v1731_v57  ;;  %v841_v56 = vshll.u32 %v490_v35, 16  ;;  %v1688_v6 = vld [vmem:[#allocation2 + $0xc8] sm:$0xf]  ;;  %v1869_v10 = vshrl.u32 %v1687_v62, 16 }
  0xde   : > { %v1540_v38 = vpop.permute.xlu0 %1539  ;;  %v485_v52 = vld [vmem:[#allocation2 + $0x154] sm:$0x8]  ;;  %v1845_v36 = vsel %vm9589_vm11, %v1837_v42, %v1844_v22  ;;  %v1822_v58 = vor.u32 %v1820_v46, %v1819_v34  ;;  %v835_v30 = vsel %vm9589_vm11, %v9027_v3, %v834_v32  ;;  %v840_v45 = vrot.slane %v838_v40, 7  ;;  %v1672_v51 = vld [vmem:[#allocation2 + $0x4c] sm:$0x8] }
  0xdf   : > { %1635 = vst.msk [vmem:[#allocation3 + $0x4] sm:$0xf] %vm1633_vm13, %v1540_v38  ;;  %v802_v15 = vshrl.u32 %v485_v52, 16  ;;  %2088 = vrot.lane.b32.xlu0 %v1845_v36, %s9361_s26  ;;  %v1735_v5 = vsel %vm9589_vm11, %v1727_v8, %v1734_v47  ;;  %v1874_v23 = vshrl.u32 %v1688_v6, 16  ;;  %v1877_v25 = vshll.u32 %v1688_v6, 16 }
  0xe0   : > { %907 = vst.msk [vmem:[#allocation3 + $0x78] sm:$0xf] %vm232_vm0, %v835_v30  ;;  %2068 = vrot.lane.b32.xlu2 %v1735_v5, %s9361_s26  ;;  %v1823_v38 = vsel %vm9589_vm11, %v1815_v20, %v1822_v58  ;;  %v843_v19 = vor.u32 %v841_v56, %v840_v45  ;;  %v1767_v8 = vshll.u32 %v10049_v0, 16  ;;  %v9035_v32 = vrot.slane %v1869_v10, 11  ;;  %v1684_v7 = vld [vmem:[#allocation2 + $0xac] sm:$0x8] }
  0xe1   : > { %1100 = vst.msk [vmem:[#allocation3 + $0x78] sm:$0xf] %vm1069_vm12, %v10095_v53  ;;  %v9026_v50 = vrot.slane %v802_v15, 11  ;;  %2084 = vrot.lane.b32.xlu1 %v1823_v38, %s9361_s26  ;;  %v10186_v16 = vrot.slane %v1874_v23, 7  ;;  %v1759_v14 = vshrl.u32 %v1672_v51, 16  ;;  %v10188_v18 = vpop.permute.xlu2 %1555  ;;  %v1847_v17 = vshrl.u32 %v1684_v7, 16 }
  0xe2   : > { %v844_v53 = vsel %vm9589_vm11, %v836_v26, %v843_v19  ;;  %v1769_v59 = vor.u32 %v1767_v8, %v10059_v24  ;;  %v1685_v31 = vld [vmem:[#allocation2 + $0xb0] sm:$0xf]  ;;  %v10200_v20 = vld [vmem:[#allocation2 + $0xe0] sm:$0xf]  ;;  %v1793_v24 = vrot.slane %v10118_v33, 4  ;;  %v1833_v36 = vshll.u32 %v10148_v39, 16 }
  0xe3   : > { %v813_v48 = vsel %vm9589_vm11, %v9026_v50, %v812_v61  ;;  %v1879_v49 = vor.u32 %v1877_v25, %v10186_v16  ;;  %v9030_v1 = vrot.slane %v1759_v14, 11  ;;  %v1852_v41 = vshrl.u32 %v1685_v31, 16  ;;  %908 = vst.msk [vmem:[#allocation3 + $0x7c] sm:$0xf] %vm232_vm0, %v844_v53  ;;  %v1692_v43 = vld [vmem:[#allocation2 + $0xe4] sm:$0xf] }
  0xe4   : > { %v10162_v2 = vpop.permute.xlu1 %1541  ;;  %905 = vst.msk [vmem:[#allocation3 + $0x70] sm:$0xf] %vm232_vm0, %v813_v48  ;;  %v1855_v27 = vshll.u32 %v1685_v31, 16  ;;  %v9034_v55 = vrot.slane %v1847_v17, 11  ;;  %v1896_v42 = vshrl.u32 %v10200_v20, 16  ;;  %v1908_v33 = vshll.u32 %v1692_v43, 16 }
  0xe5   : > { %1098 = vst.msk [vmem:[#allocation3 + $0x70] sm:$0xf] %vm1069_vm12, %v10097_v29  ;;  %v1880_v54 = vsel %vm9589_vm11, %v9035_v32, %v1879_v49  ;;  %v1770_v46 = vsel %vm9589_vm11, %v9030_v1, %v1769_v59  ;;  %v10208_v13 = vrot.slane %v1852_v41, 7  ;;  %v1905_v29 = vshrl.u32 %v1692_v43, 16  ;;  %v1677_v57 = vld [vmem:[#allocation2 + $0x6c] sm:$0xf] }
  0xe6   : > { %v1546_v28 = vpop.permute.xlu0 %1545  ;;  %1101 = vst.msk [vmem:[#allocation3 + $0x7c] sm:$0xf] %vm1069_vm12, %v10131_v12  ;;  %v1795_v22 = vshrl.u32 %v1677_v57, 16  ;;  %v1798_v34 = vshll.u32 %v1677_v57, 16  ;;  %v1689_v26 = vld [vmem:[#allocation2 + $0xcc] sm:$0xf]  ;;  %v1835_v48 = vor.u32 %v1833_v36, %v10156_v63 }
  0xe7   : > { %1638 = vst.msk [vmem:[#allocation3 + $0x10] sm:$0xf] %vm1633_vm13, %v1546_v28  ;;  %2094 = vrot.lane.b32.xlu0 %v1880_v54, %s9361_s26  ;;  %v1857_v35 = vor.u32 %v1855_v27, %v10208_v13  ;;  %v10218_v28 = vrot.slane %v1896_v42, 7  ;;  %v1907_v12 = vrot.slane %v1905_v29, 7  ;;  %v1881_v3 = vrot.slane %v10186_v16, 4 }
  0xe8   : > { %2074 = vrot.lane.b32.xlu2 %v1770_v46, %s9361_s26  ;;  %1637 = vst.msk [vmem:[#allocation3 + $0xc] sm:$0xf] %vm1633_vm13, %v10120_v11  ;;  %v1797_v56 = vrot.slane %v1795_v22, 7  ;;  %v1883_v52 = vshrl.u32 %v1689_v26, 16  ;;  %v1886_v61 = vshll.u32 %v1689_v26, 16 }
  0xe9   : > { %1636 = vst.msk [vmem:[#allocation3 + $0x8] sm:$0xf] %vm1633_vm13, %v10162_v2  ;;  %v1858_v47 = vsel %vm9589_vm11, %v9034_v55, %v1857_v35  ;;  %v1903_v40 = vrot.slane %v10218_v28, 4  ;;  %v1910_v11 = vor.u32 %v1908_v33, %v1907_v12  ;;  %v1696_v2 = vld [vmem:[#allocation2 + $0x10c] sm:$0x8]  ;;  %v1562_v50 = vpop.permute.xlu2 %1561 }
  0xea   : > { %2090 = vrot.lane.b32.xlu1 %v1858_v47, %s9361_s26  ;;  %1640 = vst.msk [vmem:[#allocation3 + $0x18] sm:$0xf] %vm1633_vm13, %v10154_v21  ;;  %v1800_v30 = vor.u32 %v1798_v34, %v1797_v56  ;;  %v1885_v15 = vrot.slane %v1883_v52, 7  ;;  %v1697_v5 = vld [vmem:[#allocation2 + $0x110] sm:$0xf]  ;;  %v1935_v45 = vshrl.u32 %v1696_v2, 16 }
  0xeb   : > { %v1911_v6 = vsel %vm9589_vm11, %v1903_v40, %v1910_v11  ;;  %v1940_v38 = vshrl.u32 %v1697_v5, 16  ;;  %v1943_v10 = vshll.u32 %v1697_v5, 16  ;;  %v1681_v23 = vld [vmem:[#allocation2 + $0x94] sm:$0x8]  ;;  %v1694_v51 = vld [vmem:[#allocation2 + $0xf8] sm:$0xf] }
  0xec   : > { %v1548_v44 = vpop.permute.xlu1 %1547  ;;  %v1693_v25 = vld [vmem:[#allocation2 + $0xf4] sm:$0x8]  ;;  %v1801_v21 = vsel %vm9589_vm11, %v1793_v24, %v1800_v30  ;;  %v1888_v39 = vor.u32 %v1886_v61, %v1885_v15  ;;  %v1825_v19 = vshrl.u32 %v1681_v23, 16  ;;  %v9038_v8 = vrot.slane %v1935_v45, 11  ;;  %1643 = vst.msk [vmem:[#allocation3 + $0x24] sm:$0xf] %vm1633_vm13, %v10188_v18 }
  0xed   : > { %1639 = vst.msk [vmem:[#allocation3 + $0x14] sm:$0xf] %vm1633_vm13, %v1548_v44  ;;  %v10238_v32 = vrot.slane %v1940_v38, 7  ;;  %v1913_v16 = vshrl.u32 %v1693_v25, 16  ;;  %v1918_v14 = vshrl.u32 %v1694_v51, 16  ;;  %v1921_v53 = vshll.u32 %v1694_v51, 16 }
  0xee   : > { %v1552_v0 = vpop.permute.xlu0 %1551  ;;  %v1889_v7 = vsel %vm9589_vm11, %v1881_v3, %v1888_v39  ;;  %v10247_v59 = vld [vmem:[#allocation2 + $0x128] sm:$0xf]  ;;  %v9033_v17 = vrot.slane %v1825_v19, 11  ;;  %v1701_v44 = vld [vmem:[#allocation2 + $0x12c] sm:$0xf]  ;;  %v377_v61 = vld [vmem:[%s9417_s23 + $0xf0] sm:$0xff] }
  0xef   : > { %1641 = vst.msk [vmem:[#allocation3 + $0x1c] sm:$0xf] %vm1633_vm13, %v1552_v0  ;;  %2100 = vrot.lane.b32.xlu0 %v1911_v6, %s9361_s26  ;;  %v1945_v31 = vor.u32 %v1943_v10, %v10238_v32  ;;  %v10250_v0 = vrot.slane %v1918_v14, 7  ;;  %v1962_v18 = vshrl.u32 %v10247_v59, 16  ;;  %v1971_v49 = vshrl.u32 %v1701_v44, 16 }
  0xf0   : > { %2080 = vrot.lane.b32.xlu2 %v1801_v21, %s9361_s26  ;;  %v1686_v1 = vld [vmem:[#allocation2 + $0xb4] sm:$0xf]  ;;  %v9037_v27 = vrot.slane %v1913_v16, 11  ;;  %v1974_v55 = vshll.u32 %v1701_v44, 16  ;;  %1646 = vst.msk [vmem:[#allocation3 + $0x30] sm:$0xf] %vm1633_vm13, %v1562_v50  ;;  %v1836_v57 = vsel %vm9589_vm11, %v9033_v17, %v1835_v48  ;;  %v409_v23 = vpack.c.bf16 %v377_v61, %v377_v61 }
  0xf1   : > { %v1698_v41 = vld [vmem:[#allocation2 + $0x114] sm:$0xf]  ;;  %v1946_v63 = vsel %vm9589_vm11, %v9038_v8, %v1945_v31  ;;  %v1861_v24 = vshrl.u32 %v1686_v1, 16  ;;  %v1923_v43 = vor.u32 %v1921_v53, %v10250_v0  ;;  %v10258_v42 = vrot.slane %v1962_v18, 7  ;;  %v1706_v34 = vld [vmem:[#allocation2 + $0x158] sm:$0xf] }
  0xf2   : > { %2096 = vrot.lane.b32.xlu1 %v1889_v7, %s9361_s26  ;;  %v1973_v29 = vrot.slane %v1971_v49, 7  ;;  %v1949_v33 = vshrl.u32 %v1698_v41, 16  ;;  %v1864_v22 = vshll.u32 %v1686_v1, 16  ;;  %v1952_v26 = vshll.u32 %v1698_v41, 16  ;;  %v1705_v3 = vld [vmem:[#allocation2 + $0x154] sm:$0x8] }
  0xf3   : > { %v1863_v35 = vrot.slane %v1861_v24, 7  ;;  %v1924_v40 = vsel %vm9589_vm11, %v9037_v27, %v1923_v43  ;;  %v1969_v56 = vrot.slane %v10258_v42, 4  ;;  %v2006_v11 = vshrl.u32 %v1706_v34, 16  ;;  %v1690_v30 = vld [vmem:[#allocation2 + $0xdc] sm:$0x8] }
  0xf4   : > { %v1554_v62 = vpop.permute.xlu1 %1553  ;;  %v1951_v12 = vrot.slane %v1949_v33, 7  ;;  %v1976_v52 = vor.u32 %v1974_v55, %v1973_v29  ;;  %v1859_v2 = vrot.slane %v10208_v13, 4  ;;  %v1947_v15 = vrot.slane %v10238_v32, 4  ;;  %v1702_v6 = vld [vmem:[#allocation2 + $0x13c] sm:$0x8] }
  0xf5   : > { %1642 = vst.msk [vmem:[#allocation3 + $0x20] sm:$0xf] %vm1633_vm13, %v1554_v62  ;;  %v1866_v36 = vor.u32 %v1864_v22, %v1863_v35  ;;  %v2001_v62 = vshrl.u32 %v1705_v3, 16  ;;  %v2009_v45 = vshll.u32 %v1706_v34, 16  ;;  %v10276_v50 = vrot.slane %v2006_v11, 7 }
  0xf6   : > { %v1558_v58 = vpop.permute.xlu0 %1557  ;;  %v1568_v47 = vpop.permute.xlu2 %1567  ;;  %v1954_v5 = vor.u32 %v1952_v26, %v1951_v12  ;;  %v1977_v25 = vsel %vm9589_vm11, %v1969_v56, %v1976_v52  ;;  %v10279_v21 = vld [vmem:[#allocation2 + $0x170] sm:$0xf]  ;;  %v1891_v19 = vshrl.u32 %v1690_v30, 16  ;;  %v1899_v51 = vshll.u32 %v10200_v20, 16  ;;  %v1710_v8 = vld [vmem:[#allocation2 + $0x174] sm:$0xf] }
  0xf7   : > { %1644 = vst.msk [vmem:[#allocation3 + $0x28] sm:$0xf] %vm1633_vm13, %v1558_v58  ;;  %2106 = vrot.lane.b32.xlu0 %v1946_v63, %s9361_s26  ;;  %v1703_v58 = vld [vmem:[#allocation2 + $0x140] sm:$0xf]  ;;  %v1867_v39 = vsel %vm9589_vm11, %v1859_v2, %v1866_v36  ;;  %v9041_v32 = vrot.slane %v2001_v62, 11  ;;  %v1979_v16 = vshrl.u32 %v1702_v6, 16  ;;  %v2011_v20 = vor.u32 %v2009_v45, %v10276_v50 }
  0xf8   : > { %2086 = vrot.lane.b32.xlu2 %v1836_v57, %s9361_s26  ;;  %1649 = vst.msk [vmem:[#allocation3 + $0x3c] sm:$0xf] %vm1633_vm13, %v1568_v47  ;;  %v1984_v13 = vshrl.u32 %v1703_v58, 16  ;;  %v1695_v14 = vld [vmem:[#allocation2 + $0xfc] sm:$0xf]  ;;  %v1955_v7 = vsel %vm9589_vm11, %v1947_v15, %v1954_v5  ;;  %v1987_v48 = vshll.u32 %v1703_v58, 16  ;;  %v1901_v41 = vor.u32 %v1899_v51, %v10218_v28 }
  0xf9   : > { %v2028_v53 = vshrl.u32 %v10279_v21, 16  ;;  %v296_v17 = vld [vmem:[#allocation2 + $0x184] sm:$0x8]  ;;  %441 = vst.msk [vmem:[#allocation2 + $0x188] sm:$0xf] %vm232_vm0, %v409_v23  ;;  %v2037_v18 = vshrl.u32 %v1710_v8, 16  ;;  %v2012_v29 = vsel %vm9589_vm11, %v9041_v32, %v2011_v20 }
  0xfa   : > { %2102 = vrot.lane.b32.xlu1 %v1924_v40, %s9361_s26  ;;  %v10292_v44 = vrot.slane %v1984_v13, 7  ;;  %v297_v49 = vsel %vm9524_vm8, 0, %v296_v17  ;;  %v9036_v1 = vrot.slane %v1891_v19, 11  ;;  %v1927_v63 = vshrl.u32 %v1695_v14, 16  ;;  %v1707_v27 = vld [vmem:[#allocation2 + $0x15c] sm:$0xf] }
  0xfb   : > { %298 = vst [vmem:[#allocation2 + $0x184] sm:$0x8] %v297_v49  ;;  %v9040_v55 = vrot.slane %v1979_v16, 11  ;;  %v10299_v24 = vrot.slane %v2028_v53, 7  ;;  %v2039_v57 = vrot.slane %v2037_v18, 7  ;;  %v2015_v35 = vshrl.u32 %v1707_v27, 16 }
  0xfc   : > { %v1560_v46 = vpop.permute.xlu1 %1559  ;;  %v1989_v33 = vor.u32 %v1987_v48, %v10292_v44  ;;  %v1902_v28 = vsel %vm9589_vm11, %v9036_v1, %v1901_v41  ;;  %v1929_v22 = vrot.slane %v1927_v63, 7  ;;  %v1930_v34 = vshll.u32 %v1695_v14, 16  ;;  %v378_v12 = vld [vmem:[%s9417_s23 + $0xf8] sm:$0xff]  ;;  %v1699_v36 = vld [vmem:[#allocation2 + $0x124] sm:$0x8] }
  0xfd   : > { %1645 = vst.msk [vmem:[#allocation3 + $0x2c] sm:$0xf] %vm1633_vm13, %v1560_v46  ;;  %v410_v26 = vpack.c.bf16 %v378_v12, %v378_v12  ;;  %v2035_v3 = vrot.slane %v10299_v24, 4  ;;  %v2017_v56 = vrot.slane %v2015_v35, 7  ;;  %v2018_v52 = vshll.u32 %v1707_v27, 16 }
  0xfe   : > { %v1564_v54 = vpop.permute.xlu0 %1563  ;;  %v1574_v31 = vpop.permute.xlu2 %1573  ;;  %v1990_v47 = vsel %vm9589_vm11, %v9040_v55, %v1989_v33  ;;  %v1925_v11 = vrot.slane %v10250_v0, 4  ;;  %v1932_v61 = vor.u32 %v1930_v34, %v1929_v22  ;;  %v2013_v15 = vrot.slane %v10276_v50, 4  ;;  %v1704_v23 = vld [vmem:[#allocation2 + $0x144] sm:$0xf]  ;;  %v2195_v14 = vld [vmem:[#allocation2 + $0x20] sm:$0xf] }
  0xff   : > { %1647 = vst.msk [vmem:[#allocation3 + $0x34] sm:$0xf] %vm1633_vm13, %v1564_v54  ;;  %2112 = vrot.lane.b32.xlu0 %v1977_v25, %s9361_s26  ;;  %v2040_v54 = vshll.u32 %v1710_v8, 16  ;;  %v2020_v5 = vor.u32 %v2018_v52, %v2017_v56  ;;  %v1957_v6 = vshrl.u32 %v1699_v36, 16  ;;  %v1993_v8 = vshrl.u32 %v1704_v23, 16 }
 0x100   : > { %2092 = vrot.lane.b32.xlu2 %v1867_v39, %s9361_s26  ;;  %1652 = vst.msk [vmem:[#allocation3 + $0x48] sm:$0xf] %vm1633_vm13, %v1574_v31  ;;  %v1712_v2 = vld [vmem:[#allocation2 + $0x188] sm:$0xf]  ;;  %v1933_v0 = vsel %vm9589_vm11, %v1925_v11, %v1932_v61  ;;  %v1996_v17 = vshll.u32 %v1704_v23, 16  ;;  %v1991_v20 = vrot.slane %v10292_v44, 4 }
 0x101   : > { %v2042_v40 = vor.u32 %v2040_v54, %v2039_v57  ;;  %442 = vst.msk [vmem:[#allocation2 + $0x18c] sm:$0xf] %vm232_vm0, %v410_v26  ;;  %v2050_v45 = vshrl.u32 %v1712_v2, 16  ;;  %v2021_v25 = vsel %vm9589_vm11, %v2013_v15, %v2020_v5  ;;  %v2053_v39 = vshll.u32 %v1712_v2, 16  ;;  %v1708_v1 = vld [vmem:[#allocation2 + $0x16c] sm:$0x8] }
 0x102   : > { %2108 = vrot.lane.b32.xlu1 %v1955_v7, %s9361_s26  ;;  %v9039_v19 = vrot.slane %v1957_v6, 11  ;;  %v1995_v31 = vrot.slane %v1993_v8, 7  ;;  %v2198_v63 = vld [vmem:[#allocation2 + $0x3c] sm:$0xf]  ;;  %v2023_v54 = vshrl.u32 %v1708_v1, 16 }
 0x103   : > { %v2043_v30 = vsel %vm9589_vm11, %v2035_v3, %v2042_v40  ;;  %v2052_v13 = vrot.slane %v2050_v45, 7  ;;  %v2201_v35 = vld [vmem:[#allocation2 + $0x68] sm:$0xf]  ;;  %v2199_v12 = vld [vmem:[#allocation2 + $0x50] sm:$0xf] }
 0x104   : > { %v1566_v10 = vpop.permute.xlu1 %1565  ;;  %v1998_v18 = vor.u32 %v1996_v17, %v1995_v31  ;;  %v2202_v11 = vld [vmem:[#allocation2 + $0x6c] sm:$0xf]  ;;  %v2207_v2 = vld [vmem:[#allocation2 + $0xb0] sm:$0xf]  ;;  %v2197_v36 = vld [vmem:[#allocation2 + $0x38] sm:$0xf] }
 0x105   : > { %1648 = vst.msk [vmem:[#allocation3 + $0x38] sm:$0xf] %vm1633_vm13, %v1566_v10  ;;  %v1711_v10 = vld [vmem:[#allocation2 + $0x184] sm:$0x8]  ;;  %v2055_v48 = vor.u32 %v2053_v39, %v2052_v13  ;;  %v2057_v3 = vrot.slane %v2052_v13, 4 }
 0x106   : > { %v1570_v38 = vpop.permute.xlu0 %1569  ;;  %v2045_v50 = vshrl.u32 %v1711_v10, 16  ;;  %v1999_v55 = vsel %vm9589_vm11, %v1991_v20, %v1998_v18  ;;  %v2210_v5 = vld [vmem:[#allocation2 + $0xcc] sm:$0xf]  ;;  %v2200_v45 = vld [vmem:[#allocation2 + $0x54] sm:$0xf] }
 0x107   : > { %1650 = vst.msk [vmem:[#allocation3 + $0x40] sm:$0xf] %vm1633_vm13, %v1570_v38  ;;  %2118 = vrot.lane.b32.xlu0 %v2012_v29, %s9361_s26  ;;  %v1965_v38 = vshll.u32 %v10247_v59, 16  ;;  %v9042_v29 = vrot.slane %v2023_v54, 11  ;;  %v2208_v6 = vld [vmem:[#allocation2 + $0xb4] sm:$0xf] }
 0x108   : > { %2098 = vrot.lane.b32.xlu2 %v1902_v28, %s9361_s26  ;;  %v9043_v7 = vrot.slane %v2045_v50, 11  ;;  %v1713_v44 = vld [vmem:[#allocation2 + $0x18c] sm:$0xf]  ;;  %v2213_v10 = vld [vmem:[#allocation2 + $0xf8] sm:$0xf] }
 0x109   : > { %v1967_v51 = vor.u32 %v1965_v38, %v10258_v42  ;;  %v2059_v57 = vshrl.u32 %v1713_v44, 16  ;;  %v2211_v13 = vld [vmem:[#allocation2 + $0xe0] sm:$0xf]  ;;  %v2214_v8 = vld [vmem:[#allocation2 + $0xfc] sm:$0xf] }
 0x10a   : > { %2114 = vrot.lane.b32.xlu1 %v1990_v47, %s9361_s26  ;;  %v2056_v42 = vsel %vm9589_vm11, %v9043_v7, %v2055_v48  ;;  %v2204_v47 = vld [vmem:[#allocation2 + $0x84] sm:$0xf]  ;;  %v2209_v7 = vld [vmem:[#allocation2 + $0xc8] sm:$0xf] }
 0x10b   : > { %v1968_v53 = vsel %vm9589_vm11, %v9039_v19, %v1967_v51  ;;  %v2061_v22 = vrot.slane %v2059_v57, 7  ;;  %v2216_v19 = vld [vmem:[#allocation2 + $0x114] sm:$0xf]  ;;  %v2206_v51 = vld [vmem:[#allocation2 + $0x9c] sm:$0xf] }
 0x10c   : > { %v1572_v43 = vpop.permute.xlu1 %1571  ;;  %v2217_v48 = vld [vmem:[#allocation2 + $0x128] sm:$0xf]  ;;  %v2389_v31 = vld [vmem:[#allocation2 + $0x24] sm:$0xf] }
 0x10d   : > { %1651 = vst.msk [vmem:[#allocation3 + $0x44] sm:$0xf] %vm1633_vm13, %v1572_v43  ;;  %v2196_v43 = vld [vmem:[#allocation2 + $0x24] sm:$0xf]  ;;  %v2446_v20 = vshll.u32 %v2389_v31, 16  ;;  %v2450_v18 = vshrl.u32 %v2389_v31, 16 }
 0x10e   : > { %v1576_v46 = vpop.permute.xlu0 %1575  ;;  %v2212_v1 = vld [vmem:[#allocation2 + $0xe4] sm:$0xf]  ;;  %v2225_v57 = vld [vmem:[#allocation2 + $0x188] sm:$0xf] }
 0x10f   : > { %1653 = vst.msk [vmem:[#allocation3 + $0x4c] sm:$0xf] %vm1633_vm13, %v1576_v46  ;;  %2124 = vrot.lane.b32.xlu0 %v2043_v30, %s9361_s26  ;;  %v2031_v46 = vshll.u32 %v10279_v21, 16  ;;  %v2062_v21 = vshll.u32 %v1713_v44, 16 }
 0x110   : > { %2104 = vrot.lane.b32.xlu2 %v1933_v0, %s9361_s26 }
 0x111   : > { %v1580_v32 = vpop.permute.xlu2 %1579  ;;  %v2033_v33 = vor.u32 %v2031_v46, %v10299_v24  ;;  %v2064_v24 = vor.u32 %v2062_v21, %v2061_v22  ;;  %v2390_v46 = vld [vmem:[#allocation2 + $0x28] sm:$0x1]  ;;  %v2215_v21 = vld [vmem:[#allocation2 + $0x110] sm:$0xf] }
 0x112   : > { %2120 = vrot.lane.b32.xlu1 %v2021_v25, %s9361_s26  ;;  %1655 = vst.msk [vmem:[#allocation3 + $0x54] sm:$0xf] %vm1633_vm13, %v1580_v32  ;;  %v2203_v25 = vld [vmem:[#allocation2 + $0x80] sm:$0xf] }
 0x113   : > { %v2034_v28 = vsel %vm9589_vm11, %v9042_v29, %v2033_v33  ;;  %v2065_v40 = vsel %vm9589_vm11, %v2057_v3, %v2064_v24  ;;  %v2391_v33 = vld [vmem:[#allocation2 + $0x38] sm:$0xf] }
 0x114   : > { %v1578_v62 = vpop.permute.xlu1 %1577 }
 0x115   : > { %1654 = vst.msk [vmem:[#allocation3 + $0x50] sm:$0xf] %vm1633_vm13, %v1578_v62  ;;  %v2205_v62 = vld [vmem:[#allocation2 + $0x98] sm:$0xf] }
 0x116   : > { %v1582_v58 = vpop.permute.xlu0 %1581 }
 0x117   : > { %1656 = vst.msk [vmem:[#allocation3 + $0x58] sm:$0xf] %vm1633_vm13, %v1582_v58  ;;  %2259 = vrot.lane.b32.xlu0 %v2195_v14, %s9362_s27  ;;  %v2219_v14 = vld [vmem:[#allocation2 + $0x140] sm:$0xf] }
 0x118   : > { %2110 = vrot.lane.b32.xlu2 %v1968_v53, %s9361_s26 }
 0x11a   : > { %v1586_v49 = vpop.permute.xlu2 %1585  ;;  %2126 = vrot.lane.b32.xlu1 %v2056_v42, %s9361_s26  ;;  %v2222_v42 = vld [vmem:[#allocation2 + $0x15c] sm:$0xf] }
 0x11b   : > { %1658 = vst.msk [vmem:[#allocation3 + $0x60] sm:$0xf] %vm1633_vm13, %v1586_v49 }
 0x11c   : > { %v1584_v16 = vpop.permute.xlu1 %1583 }
 0x11d   : > { %1657 = vst.msk [vmem:[#allocation3 + $0x5c] sm:$0xf] %vm1633_vm13, %v1584_v16 }
 0x11e   : > { %v1588_v59 = vpop.permute.xlu0 %1587 }
 0x11f   : > { %1659 = vst.msk [vmem:[#allocation3 + $0x64] sm:$0xf] %vm1633_vm13, %v1588_v59  ;;  %2265 = vrot.lane.b32.xlu0 %v2198_v63, %s9362_s27  ;;  %v10398_v63 = vrot.slane %v2446_v20, 5  ;;  %v2396_v20 = vld [vmem:[#allocation2 + $0x58] sm:$0x1] }
 0x120   : > { %2116 = vrot.lane.b32.xlu2 %v1999_v55, %s9361_s26  ;;  %v2394_v55 = vld [vmem:[#allocation2 + $0x50] sm:$0xf] }
 0x121   : > { %v2488_v29 = vshll.u32 %v2394_v55, 16 }
 0x122   : > { %2261 = vrot.lane.b32.xlu1 %v2196_v43, %s9362_s27  ;;  %v2485_v43 = vshrl.u32 %v2394_v55, 16  ;;  %v2221_v55 = vld [vmem:[#allocation2 + $0x158] sm:$0xf] }
 0x123   : > { %v2490_v24 = vrot.slane %v2488_v29, 5 }
 0x124   : > { %v1590_v27 = vpop.permute.xlu1 %1589  ;;  %v2487_v3 = vrot.slane %v2485_v43, 4 }
 0x125   : > { %1660 = vst.msk [vmem:[#allocation3 + $0x68] sm:$0xf] %vm1633_vm13, %v1590_v27  ;;  %v2452_v27 = vrot.slane %v2450_v18, 4 }
 0x126   : > { %v1594_v41 = vpop.permute.xlu0 %1593 }
 0x127   : > { %1662 = vst.msk [vmem:[#allocation3 + $0x70] sm:$0xf] %vm1633_vm13, %v1594_v41  ;;  %2271 = vrot.lane.b32.xlu0 %v2201_v35, %s9362_s27  ;;  %v2220_v41 = vld [vmem:[#allocation2 + $0x144] sm:$0xf]  ;;  %v2453_v35 = vor.u32 %v2452_v27, %v10398_v63 }
 0x128   : > { %2122 = vrot.lane.b32.xlu2 %v2034_v28, %s9361_s26  ;;  %v2456_v28 = vshll.u32 %v2390_v46, 16 }
 0x129   : > { %v1592_v26 = vpop.permute.xlu2 %1591 }
 0x12a   : > { %1661 = vst.msk [vmem:[#allocation3 + $0x6c] sm:$0xf] %vm1633_vm13, %v1592_v26  ;;  %2267 = vrot.lane.b32.xlu1 %v2199_v12, %s9362_s27  ;;  %v2464_v12 = vshll.u32 %v2391_v33, 16  ;;  %v2395_v26 = vld [vmem:[#allocation2 + $0x54] sm:$0xf] }
 0x12c   : > { %v1596_v56 = vpop.permute.xlu1 %1595 }
 0x12d   : > { %1663 = vst.msk [vmem:[#allocation3 + $0x74] sm:$0xf] %vm1633_vm13, %v1596_v56  ;;  %v2458_v56 = vrot.slane %v2456_v28, 5 }
 0x12e   : > { %v1600_v34 = vpop.permute.xlu0 %1599 }
 0x12f   : > { %1665 = vst.msk [vmem:[#allocation3 + $0x7c] sm:$0xf] %vm1633_vm13, %v1600_v34  ;;  %2277 = vrot.lane.b32.xlu0 %v2204_v47, %s9362_s27  ;;  %v2461_v34 = vshrl.u32 %v2391_v33, 16  ;;  %v2223_v47 = vld [vmem:[#allocation2 + $0x170] sm:$0xf] }
 0x130   : > { %2128 = vrot.lane.b32.xlu2 %v2065_v40, %s9361_s26  ;;  %v2454_v40 = vrot.slane %v2453_v35, 4 }
 0x131   : > { %v1598_v61 = vpop.permute.xlu2 %1597 }
 0x132   : > { %1664 = vst.msk [vmem:[#allocation3 + $0x78] sm:$0xf] %vm1633_vm13, %v1598_v61  ;;  %2273 = vrot.lane.b32.xlu1 %v2202_v11, %s9362_s27 }
 0x134   : > { %v2067_v58 = vpop.permute.xlu1 %2066 }
 0x135   : > { %2163 = vst.msk [vmem:[#allocation3] sm:$0xf] %vm2162_vm14, %v2067_v58  ;;  %v2466_v58 = vrot.slane %v2464_v12, 5 }
 0x136   : > { %v2071_v52 = vpop.permute.xlu0 %2070 }
 0x137   : > { %2165 = vst.msk [vmem:[#allocation3 + $0x8] sm:$0xf] %vm2162_vm14, %v2071_v52  ;;  %2283 = vrot.lane.b32.xlu0 %v2207_v2, %s9362_s27  ;;  %v2398_v52 = vld [vmem:[#allocation2 + $0x6c] sm:$0xf]  ;;  %v2494_v2 = vshll.u32 %v2395_v26, 16 }
 0x138   : > { %2263 = vrot.lane.b32.xlu2 %v2197_v36, %s9362_s27  ;;  %v2463_v36 = vrot.slane %v2461_v34, 4  ;;  %v2407_v34 = vld [vmem:[#allocation2 + $0xb4] sm:$0xf] }
 0x13a   : > { %v2069_v15 = vpop.permute.xlu2 %2068  ;;  %2279 = vrot.lane.b32.xlu1 %v2205_v62, %s9362_s27  ;;  %v2491_v62 = vor.u32 %v2490_v24, %v2487_v3 }
 0x13b   : > { %2164 = vst.msk [vmem:[#allocation3 + $0x4] sm:$0xf] %vm2162_vm14, %v2069_v15  ;;  %v2518_v15 = vshll.u32 %v2398_v52, 16 }
 0x13c   : > { %v2073_v0 = vpop.permute.xlu1 %2072 }
 0x13d   : > { %2166 = vst.msk [vmem:[#allocation3 + $0xc] sm:$0xf] %vm2162_vm14, %v2073_v0 }
 0x13e   : > { %v2077_v30 = vpop.permute.xlu0 %2076 }
 0x13f   : > { %2168 = vst.msk [vmem:[#allocation3 + $0x14] sm:$0xf] %vm2162_vm14, %v2077_v30  ;;  %2289 = vrot.lane.b32.xlu0 %v2210_v5, %s9362_s27  ;;  %v10410_v30 = vld [vmem:[#allocation2 + $0x3c] sm:$0xf]  ;;  %v2522_v5 = vshrl.u32 %v2398_v52, 16 }
 0x140   : > { %2269 = vrot.lane.b32.xlu2 %v2200_v45, %s9362_s27  ;;  %v2459_v45 = vsel %vm9560_vm10, %v2454_v40, %v2458_v56  ;;  %v10435_v40 = vld [vmem:[#allocation2 + $0x84] sm:$0xf] }
 0x142   : > { %v2075_v38 = vpop.permute.xlu2 %2074  ;;  %2285 = vrot.lane.b32.xlu1 %v2208_v6, %s9362_s27  ;;  %v2218_v6 = vld [vmem:[#allocation2 + $0x12c] sm:$0xf] }
 0x143   : > { %2167 = vst.msk [vmem:[#allocation3 + $0x10] sm:$0xf] %vm2162_vm14, %v2075_v38  ;;  %v2496_v38 = vrot.slane %v2494_v2, 5 }
 0x146   : > { %v2083_v23 = vpop.permute.xlu0 %2082 }
 0x147   : > { %2171 = vst.msk [vmem:[#allocation3 + $0x20] sm:$0xf] %vm2162_vm14, %v2083_v23  ;;  %2295 = vrot.lane.b32.xlu0 %v2213_v10, %s9362_s27  ;;  %v2079_v50 = vpop.permute.xlu1 %2078  ;;  %v2467_v10 = vor.u32 %v2466_v58, %v2463_v36  ;;  %v2470_v23 = vshll.u32 %v10410_v30, 16 }
 0x148   : > { %2275 = vrot.lane.b32.xlu2 %v2203_v25, %s9362_s27  ;;  %2169 = vst.msk [vmem:[#allocation3 + $0x18] sm:$0xf] %vm2162_vm14, %v2079_v50  ;;  %v2492_v25 = vrot.slane %v2491_v62, 4  ;;  %v10417_v50 = vrot.slane %v2518_v15, 5 }
 0x14a   : > { %v2081_v39 = vpop.permute.xlu2 %2080  ;;  %2291 = vrot.lane.b32.xlu1 %v2211_v13, %s9362_s27  ;;  %v2524_v13 = vrot.slane %v2522_v5, 4  ;;  %v2224_v5 = vld [vmem:[#allocation2 + $0x174] sm:$0xf] }
 0x14b   : > { %2170 = vst.msk [vmem:[#allocation3 + $0x1c] sm:$0xf] %vm2162_vm14, %v2081_v39  ;;  %v2498_v39 = vshrl.u32 %v2395_v26, 16  ;;  %v2404_v26 = vld [vmem:[#allocation2 + $0x9c] sm:$0xf] }
 0x14c   : > { %v2525_v31 = vor.u32 %v2524_v13, %v10417_v50  ;;  %v2566_v58 = vshll.u32 %v2404_v26, 16 }
 0x14e   : > { %v2526_v43 = vrot.slane %v2525_v31, 4 }
 0x14f   : > { %2301 = vrot.lane.b32.xlu0 %v2216_v19, %s9362_s27  ;;  %v2226_v19 = vld [vmem:[#allocation2 + $0x18c] sm:$0xf] }
 0x150   : > { %2281 = vrot.lane.b32.xlu2 %v2206_v51, %s9362_s27  ;;  %v2399_v51 = vld [vmem:[#allocation2 + $0x70] sm:$0x1] }
 0x151   : > { %v2089_v32 = vpop.permute.xlu0 %2088 }
 0x152   : > { %2174 = vst.msk [vmem:[#allocation3 + $0x2c] sm:$0xf] %vm2162_vm14, %v2089_v32  ;;  %v2087_v59 = vpop.permute.xlu2 %2086  ;;  %2297 = vrot.lane.b32.xlu1 %v2214_v8, %s9362_s27  ;;  %v2403_v32 = vld [vmem:[#allocation2 + $0x98] sm:$0xf] }
 0x153   : > { %2173 = vst.msk [vmem:[#allocation3 + $0x28] sm:$0xf] %vm2162_vm14, %v2087_v59  ;;  %v2085_v16 = vpop.permute.xlu1 %2084  ;;  %v2388_v59 = vld [vmem:[#allocation2 + $0x20] sm:$0xf]  ;;  %v2557_v18 = vshrl.u32 %v2403_v32, 16 }
 0x154   : > { %2172 = vst.msk [vmem:[#allocation3 + $0x24] sm:$0xf] %vm2162_vm14, %v2085_v16 }
 0x155   : > { %v2559_v35 = vrot.slane %v2557_v18, 4 }
 0x157   : > { %2307 = vrot.lane.b32.xlu0 %v2219_v14, %s9362_s27  ;;  %v2468_v14 = vrot.slane %v2467_v10, 4 }
 0x158   : > { %2287 = vrot.lane.b32.xlu2 %v2209_v7, %s9362_s27  ;;  %v10421_v7 = vrot.slane %v2470_v23, 5  ;;  %v2570_v23 = vshrl.u32 %v2404_v26, 16 }
 0x159   : > { %v2095_v53 = vpop.permute.xlu0 %2094 }
 0x15a   : > { %2177 = vst.msk [vmem:[#allocation3 + $0x38] sm:$0xf] %vm2162_vm14, %v2095_v53  ;;  %v2093_v17 = vpop.permute.xlu2 %2092  ;;  %2303 = vrot.lane.b32.xlu1 %v2217_v48, %s9362_s27  ;;  %v2400_v48 = vld [vmem:[#allocation2 + $0x80] sm:$0xf]  ;;  %v2497_v53 = vsel %vm9560_vm10, %v2492_v25, %v2496_v38 }
 0x15b   : > { %2176 = vst.msk [vmem:[#allocation3 + $0x34] sm:$0xf] %vm2162_vm14, %v2093_v17  ;;  %v2528_v17 = vshll.u32 %v2399_v51, 16  ;;  %v2536_v46 = vshll.u32 %v2400_v48, 16  ;;  %v2408_v51 = vld [vmem:[#allocation2 + $0xb8] sm:$0x1] }
 0x15c   : > { %v2091_v49 = vpop.permute.xlu1 %2090 }
 0x15d   : > { %2175 = vst.msk [vmem:[#allocation3 + $0x30] sm:$0xf] %vm2162_vm14, %v2091_v49  ;;  %v2560_v49 = vshll.u32 %v2403_v32, 16  ;;  %v2530_v29 = vrot.slane %v2528_v17, 5  ;;  %v2538_v24 = vrot.slane %v2536_v46, 5  ;;  %v2600_v17 = vshll.u32 %v2408_v51, 16 }
 0x15f   : > { %2313 = vrot.lane.b32.xlu0 %v2222_v42, %s9362_s27  ;;  %v2500_v42 = vrot.slane %v2498_v39, 4  ;;  %v2562_v28 = vrot.slane %v2560_v49, 5  ;;  %v2531_v2 = vsel %vm9560_vm10, %v2526_v43, %v2530_v29  ;;  %v2568_v39 = vrot.slane %v2566_v58, 5  ;;  %v2405_v49 = vld [vmem:[#allocation2 + $0xa0] sm:$0x1] }
 0x160   : > { %2293 = vrot.lane.b32.xlu2 %v2212_v1, %s9362_s27  ;;  %v2437_v1 = vshrl.u32 %v2388_v59, 16  ;;  %v2409_v43 = vld [vmem:[#allocation2 + $0xc8] sm:$0xf] }
 0x161   : > { %v2101_v54 = vpop.permute.xlu0 %2100  ;;  %v2501_v33 = vor.u32 %v2500_v42, %v2496_v38  ;;  %v2563_v36 = vor.u32 %v2562_v28, %v2559_v35  ;;  %v2572_v42 = vrot.slane %v2570_v23, 4  ;;  %v2576_v35 = vshll.u32 %v2405_v49, 16  ;;  %v2416_v28 = vld [vmem:[#allocation2 + $0xfc] sm:$0xf]  ;;  %v10475_v23 = vld [vmem:[#allocation2 + $0xcc] sm:$0xf] }
 0x162   : > { %2180 = vst.msk [vmem:[#allocation3 + $0x44] sm:$0xf] %vm2162_vm14, %v2101_v54  ;;  %v2099_v44 = vpop.permute.xlu2 %2098  ;;  %2309 = vrot.lane.b32.xlu1 %v2220_v41, %s9362_s27  ;;  %v2440_v41 = vshll.u32 %v2388_v59, 16  ;;  %v2533_v54 = vshrl.u32 %v2400_v48, 16  ;;  %v2393_v48 = vld [vmem:[#allocation2 + $0x40] sm:$0x1] }
 0x163   : > { %2179 = vst.msk [vmem:[#allocation3 + $0x40] sm:$0xf] %vm2162_vm14, %v2099_v44  ;;  %v2473_v44 = vsel %vm9560_vm10, %v2468_v14, %v10421_v7  ;;  %v2502_v56 = vrot.slane %v2501_v33, 4  ;;  %v2564_v13 = vrot.slane %v2563_v36, 4  ;;  %v2602_v33 = vrot.slane %v2600_v17, 5 }
 0x164   : > { %v2097_v22 = vpop.permute.xlu1 %2096  ;;  %v2535_v3 = vrot.slane %v2533_v54, 4  ;;  %v2480_v54 = vshll.u32 %v2393_v48, 16  ;;  %v2578_v36 = vrot.slane %v2576_v35, 5  ;;  %v2406_v48 = vld [vmem:[#allocation2 + $0xb0] sm:$0xf] }
 0x165   : > { %2178 = vst.msk [vmem:[#allocation3 + $0x3c] sm:$0xf] %vm2162_vm14, %v2097_v22  ;;  %v2439_v22 = vrot.slane %v2437_v1, 4  ;;  %v2402_v17 = vld [vmem:[#allocation2 + $0x88] sm:$0x1] }
 0x166   : > { %v2552_v35 = vshll.u32 %v2402_v17, 16 }
 0x167   : > { %2319 = vrot.lane.b32.xlu0 %v2225_v57, %s9362_s27  ;;  %v2504_v57 = vshll.u32 %v2396_v20, 16  ;;  %v2569_v20 = vsel %vm9560_vm10, %v2564_v13, %v2568_v39 }
 0x168   : > { %2299 = vrot.lane.b32.xlu2 %v2215_v21, %s9362_s27  ;;  %v2442_v21 = vrot.slane %v2440_v41, 5 }
 0x169   : > { %v2107_v11 = vpop.permute.xlu0 %2106  ;;  %v2506_v52 = vrot.slane %v2504_v57, 5  ;;  %v2573_v57 = vor.u32 %v2572_v42, %v2568_v39 }
 0x16a   : > { %2183 = vst.msk [vmem:[#allocation3 + $0x50] sm:$0xf] %vm2162_vm14, %v2107_v11  ;;  %v2105_v61 = vpop.permute.xlu2 %2104  ;;  %2315 = vrot.lane.b32.xlu1 %v2223_v47, %s9362_s27  ;;  %v2590_v11 = vshll.u32 %v2407_v34, 16  ;;  %v2443_v62 = vor.u32 %v2442_v21, %v2439_v22 }
 0x16b   : > { %2182 = vst.msk [vmem:[#allocation3 + $0x4c] sm:$0xf] %vm2162_vm14, %v2105_v61  ;;  %v2594_v61 = vshrl.u32 %v2407_v34, 16  ;;  %v2507_v25 = vsel %vm9560_vm10, %v2502_v56, %v2506_v52  ;;  %v2605_v34 = vshrl.u32 %v2409_v43, 16 }
 0x16c   : > { %v2103_v0 = vpop.permute.xlu1 %2102  ;;  %v10445_v38 = vrot.slane %v2590_v11, 5  ;;  %v2662_v11 = vshll.u32 %v2416_v28, 16 }
 0x16d   : > { %2181 = vst.msk [vmem:[#allocation3 + $0x48] sm:$0xf] %vm2162_vm14, %v2103_v0  ;;  %v2542_v0 = vshll.u32 %v10435_v40, 16  ;;  %v2596_v10 = vrot.slane %v2594_v61, 4  ;;  %v2666_v61 = vshrl.u32 %v2416_v28, 16 }
 0x16e   : > { %v10479_v13 = vrot.slane %v2662_v11, 5  ;;  %v2418_v28 = vld [vmem:[#allocation2 + $0x110] sm:$0xf] }
 0x16f   : > { %2822 = vrot.lane.b32.xlu0 %v2459_v45, %s9363_s28  ;;  %v2539_v45 = vor.u32 %v2538_v24, %v2535_v3  ;;  %v2597_v31 = vor.u32 %v2596_v10, %v10445_v38  ;;  %v2482_v24 = vrot.slane %v2480_v54, 5  ;;  %v2668_v39 = vrot.slane %v2666_v61, 4 }
 0x170   : > { %2305 = vrot.lane.b32.xlu2 %v2218_v6, %s9362_s27  ;;  %v2474_v6 = vshrl.u32 %v10410_v30, 16  ;;  %v10450_v30 = vrot.slane %v2542_v0, 5  ;;  %v2581_v54 = vshrl.u32 %v2406_v48, 16  ;;  %v2554_v61 = vrot.slane %v2552_v35, 5 }
 0x171   : > { %v2113_v8 = vpop.permute.xlu0 %2112  ;;  %v2540_v32 = vrot.slane %v2539_v45, 4 }
 0x172   : > { %2186 = vst.msk [vmem:[#allocation3 + $0x5c] sm:$0xf] %vm2162_vm14, %v2113_v8  ;;  %v2111_v16 = vpop.permute.xlu2 %2110  ;;  %2321 = vrot.lane.b32.xlu1 %v2226_v19, %s9362_s27  ;;  %v2444_v19 = vrot.slane %v2443_v62, 4  ;;  %v2476_v59 = vrot.slane %v2474_v6, 4 }
 0x173   : > { %2185 = vst.msk [vmem:[#allocation3 + $0x58] sm:$0xf] %vm2162_vm14, %v2111_v16  ;;  %v2412_v16 = vld [vmem:[#allocation2 + $0xe0] sm:$0xf]  ;;  %v2545_v29 = vsel %vm9560_vm10, %v2540_v32, %v10450_v30 }
 0x174   : > { %v2109_v27 = vpop.permute.xlu1 %2108  ;;  %v2449_v18 = vsel %vm9560_vm10, %v2444_v19, %v10398_v63  ;;  %v2629_v1 = vshrl.u32 %v2412_v16, 16  ;;  %v2632_v41 = vshll.u32 %v2412_v16, 16  ;;  %v2598_v63 = vrot.slane %v2597_v31, 4 }
 0x175   : > { %2184 = vst.msk [vmem:[#allocation3 + $0x54] sm:$0xf] %vm2162_vm14, %v2109_v27 }
 0x176   : > { %v2631_v22 = vrot.slane %v2629_v1, 4  ;;  %v2634_v21 = vrot.slane %v2632_v41, 5  ;;  %v2603_v62 = vsel %vm9560_vm10, %v2598_v63, %v2602_v33  ;;  %v2414_v1 = vld [vmem:[#allocation2 + $0xe8] sm:$0x1] }
 0x177   : > { %2828 = vrot.lane.b32.xlu0 %v2497_v53, %s9363_s28  ;;  %v2397_v53 = vld [vmem:[#allocation2 + $0x68] sm:$0xf] }
 0x178   : > { %2311 = vrot.lane.b32.xlu2 %v2221_v55, %s9362_s27  ;;  %v2477_v55 = vor.u32 %v2476_v59, %v10421_v7  ;;  %v2509_v46 = vshrl.u32 %v2397_v53, 16  ;;  %v2413_v7 = vld [vmem:[#allocation2 + $0xe4] sm:$0xf] }
 0x179   : > { %v2119_v12 = vpop.permute.xlu0 %2118  ;;  %v2638_v58 = vshll.u32 %v2413_v7, 16  ;;  %v2642_v19 = vshrl.u32 %v2413_v7, 16 }
 0x17a   : > { %2189 = vst.msk [vmem:[#allocation3 + $0x68] sm:$0xf] %vm2162_vm14, %v2119_v12  ;;  %v2117_v47 = vpop.permute.xlu2 %2116  ;;  %2824 = vrot.lane.b32.xlu1 %v2473_v44, %s9363_s28  ;;  %v2512_v44 = vshll.u32 %v2397_v53, 16  ;;  %v2608_v12 = vshll.u32 %v2409_v43, 16  ;;  %v2478_v3 = vrot.slane %v2477_v55, 4 }
 0x17b   : > { %2188 = vst.msk [vmem:[#allocation3 + $0x64] sm:$0xf] %vm2162_vm14, %v2117_v47  ;;  %v2511_v47 = vrot.slane %v2509_v46, 4  ;;  %v2640_v51 = vrot.slane %v2638_v58, 5  ;;  %v2644_v41 = vrot.slane %v2642_v19, 4  ;;  %v2584_v46 = vshll.u32 %v2406_v48, 16 }
 0x17c   : > { %v2115_v15 = vpop.permute.xlu1 %2114  ;;  %v2514_v56 = vrot.slane %v2512_v44, 5  ;;  %v2610_v45 = vrot.slane %v2608_v12, 5  ;;  %v2483_v6 = vsel %vm9560_vm10, %v2478_v3, %v2482_v24  ;;  %v2583_v3 = vrot.slane %v2581_v54, 4  ;;  %v2411_v54 = vld [vmem:[#allocation2 + $0xd0] sm:$0x1] }
 0x17d   : > { %2187 = vst.msk [vmem:[#allocation3 + $0x60] sm:$0xf] %vm2162_vm14, %v2115_v15  ;;  %v2635_v15 = vor.u32 %v2634_v21, %v2631_v22  ;;  %v2645_v21 = vor.u32 %v2644_v41, %v2640_v51  ;;  %v2586_v24 = vrot.slane %v2584_v46, 5  ;;  %v2415_v46 = vld [vmem:[#allocation2 + $0xf8] sm:$0xf] }
 0x17e   : > { %v2515_v10 = vor.u32 %v2514_v56, %v2511_v47  ;;  %v2677_v47 = vshrl.u32 %v2418_v28, 16  ;;  %v2680_v56 = vshll.u32 %v2418_v28, 16 }
 0x17f   : > { %2834 = vrot.lane.b32.xlu0 %v2531_v2, %s9363_s28  ;;  %v2574_v2 = vrot.slane %v2573_v57, 4  ;;  %v2636_v59 = vrot.slane %v2635_v15, 4  ;;  %v2646_v15 = vrot.slane %v2645_v21, 4  ;;  %v2427_v21 = vld [vmem:[#allocation2 + $0x158] sm:$0xf] }
 0x180   : > { %2317 = vrot.lane.b32.xlu2 %v2224_v5, %s9362_s27  ;;  %v2607_v5 = vrot.slane %v2605_v34, 4  ;;  %v2516_v31 = vrot.slane %v2515_v10, 4  ;;  %v2648_v34 = vshll.u32 %v2414_v1, 16  ;;  %v2587_v10 = vor.u32 %v2586_v24, %v2583_v3 }
 0x181   : > { %v2125_v8 = vpop.permute.xlu0 %2124  ;;  %v2579_v32 = vsel %vm9560_vm10, %v2574_v2, %v2578_v36  ;;  %v2641_v44 = vsel %vm9560_vm10, %v2636_v59, %v2640_v51  ;;  %v2425_v2 = vld [vmem:[#allocation2 + $0x144] sm:$0xf]  ;;  %v344_v36 = vld [vmem:[#allocation2 + $0x190] sm:$0x1]  ;;  %v2682_v19 = vrot.slane %v2680_v56, 5  ;;  %v2653_v3 = vshrl.u32 %v2415_v46, 16 }
 0x182   : > { %2192 = vst.msk [vmem:[#allocation3 + $0x74] sm:$0xf] %vm2162_vm14, %v2125_v8  ;;  %v2123_v14 = vpop.permute.xlu2 %2122  ;;  %2830 = vrot.lane.b32.xlu1 %v2507_v25, %s9363_s28  ;;  %v2546_v25 = vshrl.u32 %v10435_v40, 16  ;;  %v2417_v8 = vld [vmem:[#allocation2 + $0x100] sm:$0x1]  ;;  %v2611_v16 = vor.u32 %v2610_v45, %v2607_v5  ;;  %v2521_v33 = vsel %vm9560_vm10, %v2516_v31, %v10417_v50  ;;  %v2650_v5 = vrot.slane %v2648_v34, 5 }
 0x183   : > { %2191 = vst.msk [vmem:[#allocation3 + $0x70] sm:$0xf] %vm2162_vm14, %v2123_v14  ;;  %v2614_v14 = vshll.u32 %v10475_v23, 16  ;;  %v2421_v40 = vld [vmem:[#allocation2 + $0x128] sm:$0xf]  ;;  %v2672_v49 = vshll.u32 %v2417_v8, 16 }
 0x184   : > { %v2121_v27 = vpop.permute.xlu1 %2120  ;;  %v2548_v42 = vrot.slane %v2546_v25, 4  ;;  %v2704_v55 = vshll.u32 %v2421_v40, 16  ;;  %v2612_v43 = vrot.slane %v2611_v16, 4  ;;  %v10507_v45 = vld [vmem:[#allocation2 + $0x114] sm:$0xf]  ;;  %v345_v25 = vsel %vm9487_vm3, 0, %v344_v36 }
 0x185   : > { %2190 = vst.msk [vmem:[#allocation3 + $0x6c] sm:$0xf] %vm2162_vm14, %v2121_v27  ;;  %v2701_v27 = vshrl.u32 %v2421_v40, 16  ;;  %v2674_v22 = vrot.slane %v2672_v49, 5  ;;  %v2734_v51 = vshll.u32 %v2425_v2, 16  ;;  %v2738_v8 = vshrl.u32 %v2425_v2, 16 }
 0x186   : > { %v2549_v57 = vor.u32 %v2548_v42, %v10450_v30  ;;  %v2422_v30 = vld [vmem:[#allocation2 + $0x12c] sm:$0xf]  ;;  %346 = vst [vmem:[#allocation2 + $0x190] sm:$0x1] %v345_v25  ;;  %v2686_v16 = vshll.u32 %v10507_v45, 16  ;;  %v2651_v17 = vsel %vm9560_vm10, %v2646_v15, %v2650_v5  ;;  %v2656_v24 = vshll.u32 %v2415_v46, 16 }
 0x187   : > { %2840 = vrot.lane.b32.xlu0 %v2569_v20, %s9363_s28  ;;  %v2703_v12 = vrot.slane %v2701_v27, 4  ;;  %v2714_v31 = vshrl.u32 %v2422_v30, 16  ;;  %v2740_v49 = vrot.slane %v2738_v8, 4  ;;  %v2430_v27 = vld [vmem:[#allocation2 + $0x170] sm:$0xf]  ;;  %v2752_v56 = vshll.u32 %v2427_v21, 16 }
 0x188   : > { %2820 = vrot.lane.b32.xlu2 %v2449_v18, %s9363_s28  ;;  %v2669_v18 = vor.u32 %v2668_v39, %v10479_v13  ;;  %v2550_v11 = vrot.slane %v2549_v57, 4  ;;  %v2679_v39 = vrot.slane %v2677_v47, 4  ;;  %v2749_v47 = vshrl.u32 %v2427_v21, 16 }
 0x189   : > { %v2260_v26 = vpop.permute.xlu0 %2259  ;;  %v2716_v57 = vrot.slane %v2714_v31, 4  ;;  %v2655_v15 = vrot.slane %v2653_v3, 4  ;;  %v2658_v5 = vrot.slane %v2656_v24, 5  ;;  %v2690_v31 = vshrl.u32 %v10507_v45, 16 }
 0x18a   : > { %2356 = vst.msk [vmem:[#allocation3] sm:$0xf] %vm2355_vm15, %v2260_v26  ;;  %v2129_v52 = vpop.permute.xlu2 %2128  ;;  %2836 = vrot.lane.b32.xlu1 %v2545_v29, %s9363_s28  ;;  %v10492_v29 = vrot.slane %v2614_v14, 5  ;;  %v2670_v7 = vrot.slane %v2669_v18, 4  ;;  %v2706_v26 = vrot.slane %v2704_v55, 5  ;;  %v2555_v59 = vsel %vm9560_vm10, %v2550_v11, %v2554_v61 }
 0x18b   : > { %2194 = vst.msk [vmem:[#allocation3 + $0x7c] sm:$0xf] %vm2162_vm14, %v2129_v52  ;;  %v2618_v14 = vshrl.u32 %v10475_v23, 16  ;;  %v2683_v42 = vor.u32 %v2682_v19, %v2679_v39  ;;  %v10522_v18 = vrot.slane %v2734_v51, 5  ;;  %v10524_v23 = vrot.slane %v2686_v16, 5 }
 0x18c   : > { %v2127_v0 = vpop.permute.xlu1 %2126  ;;  %v2617_v50 = vsel %vm9560_vm10, %v2612_v43, %v10492_v29  ;;  %v2751_v19 = vrot.slane %v2749_v47, 4  ;;  %v2754_v51 = vrot.slane %v2752_v56, 5  ;;  %v2953_v56 = vld [vmem:[#allocation2 + $0x4c] sm:$0x8] }
 0x18d   : > { %2193 = vst.msk [vmem:[#allocation3 + $0x78] sm:$0xf] %vm2162_vm14, %v2127_v0  ;;  %v2707_v0 = vor.u32 %v2706_v26, %v2703_v12  ;;  %v2620_v41 = vrot.slane %v2618_v14, 4  ;;  %v2684_v35 = vrot.slane %v2683_v42, 4  ;;  %v2741_v28 = vor.u32 %v2740_v49, %v10522_v18 }
 0x18e   : > { %v2624_v26 = vshll.u32 %v2411_v54, 16  ;;  %v2424_v54 = vld [vmem:[#allocation2 + $0x140] sm:$0xf] }
 0x18f   : > { %2846 = vrot.lane.b32.xlu0 %v2603_v62, %s9363_s28  ;;  %v2675_v62 = vsel %vm9560_vm10, %v2670_v7, %v2674_v22  ;;  %v2708_v40 = vrot.slane %v2707_v0, 4  ;;  %v2773_v7 = vshrl.u32 %v2430_v27, 16  ;;  %v2776_v22 = vshll.u32 %v2430_v27, 16  ;;  %v2434_v0 = vld [vmem:[#allocation2 + $0x18c] sm:$0xf] }
 0x190   : > { %2826 = vrot.lane.b32.xlu2 %v2483_v6, %s9363_s28  ;;  %v2710_v6 = vshll.u32 %v2422_v30, 16  ;;  %v2621_v12 = vor.u32 %v2620_v41, %v10492_v29  ;;  %v2742_v11 = vrot.slane %v2741_v28, 4  ;;  %v2431_v29 = vld [vmem:[#allocation2 + $0x174] sm:$0xf]  ;;  %v2806_v16 = vshll.u32 %v2434_v0, 16 }
 0x191   : > { %v2266_v53 = vpop.permute.xlu0 %2265  ;;  %v2775_v61 = vrot.slane %v2773_v7, 4  ;;  %v2778_v2 = vrot.slane %v2776_v22, 5  ;;  %v2782_v39 = vshll.u32 %v2431_v29, 16  ;;  %v2810_v14 = vshrl.u32 %v2434_v0, 16 }
 0x192   : > { %2359 = vst.msk [vmem:[#allocation3 + $0xc] sm:$0xf] %vm2355_vm15, %v2266_v53  ;;  %v2264_v20 = vpop.permute.xlu2 %2263  ;;  %2842 = vrot.lane.b32.xlu1 %v2579_v32, %s9363_s28  ;;  %v2712_v48 = vrot.slane %v2710_v6, 5  ;;  %v2588_v53 = vrot.slane %v2587_v10, 4  ;;  %v10558_v41 = vrot.slane %v2806_v16, 5  ;;  %v2725_v28 = vshrl.u32 %v2424_v54, 16 }
 0x193   : > { %2358 = vst.msk [vmem:[#allocation3 + $0x8] sm:$0xf] %vm2355_vm15, %v2264_v20  ;;  %v2426_v20 = vld [vmem:[#allocation2 + $0x148] sm:$0x1]  ;;  %v2784_v42 = vrot.slane %v2782_v39, 5  ;;  %v2812_v27 = vrot.slane %v2810_v14, 4 }
 0x194   : > { %v2262_v63 = vpop.permute.xlu1 %2261  ;;  %v2593_v43 = vsel %vm9560_vm10, %v2588_v53, %v10445_v38  ;;  %v2717_v30 = vor.u32 %v2716_v57, %v2712_v48  ;;  %v2659_v53 = vor.u32 %v2658_v5, %v2655_v15  ;;  %v2728_v7 = vshll.u32 %v2424_v54, 16  ;;  %v2950_v39 = vld [vmem:[#allocation2 + $0x34] sm:$0x8] }
 0x195   : > { %2357 = vst.msk [vmem:[#allocation3 + $0x4] sm:$0xf] %vm2355_vm15, %v2262_v63  ;;  %v2744_v63 = vshll.u32 %v2426_v20, 16  ;;  %v2755_v20 = vor.u32 %v2754_v51, %v2751_v19  ;;  %v2813_v21 = vor.u32 %v2812_v27, %v10558_v41  ;;  %v3021_v0 = vshrl.u32 %v2953_v56, 16 }
 0x196   : > { %v2718_v25 = vrot.slane %v2717_v30, 4  ;;  %v2660_v46 = vrot.slane %v2659_v53, 4  ;;  %v2432_v30 = vld [vmem:[#allocation2 + $0x178] sm:$0x1] }
 0x197   : > { %2852 = vrot.lane.b32.xlu0 %v2641_v44, %s9363_s28  ;;  %v2713_v44 = vsel %vm9560_vm10, %v2708_v40, %v2712_v48  ;;  %v2746_v38 = vrot.slane %v2744_v63, 5  ;;  %v2756_v57 = vrot.slane %v2755_v20, 4 }
 0x198   : > { %2832 = vrot.lane.b32.xlu2 %v2521_v33, %s9363_s28  ;;  %v2423_v33 = vld [vmem:[#allocation2 + $0x130] sm:$0x1]  ;;  %v2665_v24 = vsel %vm9560_vm10, %v2660_v46, %v10479_v13  ;;  %v2955_v46 = vld [vmem:[#allocation2 + $0x54] sm:$0xf] }
 0x199   : > { %v2272_v52 = vpop.permute.xlu0 %2271  ;;  %v2747_v8 = vsel %vm9560_vm10, %v2742_v11, %v2746_v38  ;;  %v2727_v11 = vrot.slane %v2725_v28, 4 }
 0x19a   : > { %2362 = vst.msk [vmem:[#allocation3 + $0x18] sm:$0xf] %vm2355_vm15, %v2272_v52  ;;  %v2270_v58 = vpop.permute.xlu2 %2269  ;;  %2848 = vrot.lane.b32.xlu1 %v2617_v50, %s9363_s28  ;;  %v2720_v50 = vshll.u32 %v2423_v33, 16  ;;  %v2689_v52 = vsel %vm9560_vm10, %v2684_v35, %v10524_v23  ;;  %v2420_v33 = vld [vmem:[#allocation2 + $0x118] sm:$0x1] }
 0x19b   : > { %2361 = vst.msk [vmem:[#allocation3 + $0x14] sm:$0xf] %vm2355_vm15, %v2270_v58  ;;  %v2622_v58 = vrot.slane %v2621_v12, 4  ;;  %v2696_v38 = vshll.u32 %v2420_v33, 16 }
 0x19c   : > { %v2268_v32 = vpop.permute.xlu1 %2267  ;;  %v2722_v10 = vrot.slane %v2720_v50, 5 }
 0x19d   : > { %2360 = vst.msk [vmem:[#allocation3 + $0x10] sm:$0xf] %vm2355_vm15, %v2268_v32  ;;  %v2779_v32 = vor.u32 %v2778_v2, %v2775_v61  ;;  %v2814_v61 = vrot.slane %v2813_v21, 4  ;;  %v2698_v15 = vrot.slane %v2696_v38, 5 }
 0x19f   : > { %2858 = vrot.lane.b32.xlu0 %v2675_v62, %s9363_s28  ;;  %v2626_v62 = vrot.slane %v2624_v26, 5  ;;  %v2954_v26 = vld [vmem:[#allocation2 + $0x50] sm:$0xf] }
 0x1a0   : > { %2838 = vrot.lane.b32.xlu2 %v2555_v59, %s9363_s28  ;;  %v10547_v59 = vld [vmem:[#allocation2 + $0x15c] sm:$0xf] }
 0x1a1   : > { %v2278_v1 = vpop.permute.xlu0 %2277  ;;  %v2627_v48 = vsel %vm9560_vm10, %v2622_v58, %v2626_v62  ;;  %v2758_v49 = vshll.u32 %v10547_v59, 16  ;;  %v2762_v53 = vshrl.u32 %v10547_v59, 16 }
 0x1a2   : > { %2365 = vst.msk [vmem:[#allocation3 + $0x24] sm:$0xf] %vm2355_vm15, %v2278_v1  ;;  %v2276_v55 = vpop.permute.xlu2 %2275  ;;  %2854 = vrot.lane.b32.xlu1 %v2651_v17, %s9363_s28  ;;  %v2723_v17 = vsel %vm9560_vm10, %v2718_v25, %v2722_v10  ;;  %v2780_v1 = vrot.slane %v2779_v32, 4 }
 0x1a3   : > { %2364 = vst.msk [vmem:[#allocation3 + $0x20] sm:$0xf] %vm2355_vm15, %v2276_v55  ;;  %v2786_v55 = vshrl.u32 %v2431_v29, 16  ;;  %v10563_v35 = vrot.slane %v2758_v49, 5  ;;  %v2730_v29 = vrot.slane %v2728_v7, 5 }
 0x1a4   : > { %v2274_v34 = vpop.permute.xlu1 %2273  ;;  %v2785_v22 = vsel %vm9560_vm10, %v2780_v1, %v2784_v42 }
 0x1a5   : > { %2363 = vst.msk [vmem:[#allocation3 + $0x1c] sm:$0xf] %vm2355_vm15, %v2274_v34  ;;  %v2788_v12 = vrot.slane %v2786_v55, 4  ;;  %v2761_v47 = vsel %vm9560_vm10, %v2756_v57, %v10563_v35  ;;  %v2731_v25 = vor.u32 %v2730_v29, %v2727_v11 }
 0x1a7   : > { %2864 = vrot.lane.b32.xlu0 %v2713_v44, %s9363_s28  ;;  %v2435_v44 = vld [vmem:[#allocation2 + $0x190] sm:$0x1]  ;;  %v2789_v2 = vor.u32 %v2788_v12, %v2784_v42  ;;  %v2732_v20 = vrot.slane %v2731_v25, 4  ;;  %v3035_v12 = vshrl.u32 %v2955_v46, 16 }
 0x1a8   : > { %2844 = vrot.lane.b32.xlu2 %v2593_v43, %s9363_s28  ;;  %v2692_v43 = vrot.slane %v2690_v31, 4  ;;  %v2816_v34 = vshll.u32 %v2435_v44, 16  ;;  %v9045_v31 = vrot.slane %v3021_v0, 11 }
 0x1a9   : > { %v2284_v36 = vpop.permute.xlu0 %2283  ;;  %v2737_v57 = vsel %vm9560_vm10, %v2732_v20, %v10522_v18  ;;  %v3037_v29 = vrot.slane %v3035_v12, 7 }
 0x1aa   : > { %2368 = vst.msk [vmem:[#allocation3 + $0x30] sm:$0xf] %vm2355_vm15, %v2284_v36  ;;  %v2282_v6 = vpop.permute.xlu2 %2281  ;;  %2860 = vrot.lane.b32.xlu1 %v2689_v52, %s9363_s28  ;;  %v2693_v50 = vor.u32 %v2692_v43, %v10524_v23  ;;  %v3026_v52 = vshrl.u32 %v2954_v26, 16  ;;  %v2818_v13 = vrot.slane %v2816_v34, 5  ;;  %v2792_v23 = vshll.u32 %v2432_v30, 16 }
 0x1ab   : > { %2367 = vst.msk [vmem:[#allocation3 + $0x2c] sm:$0xf] %vm2355_vm15, %v2282_v6  ;;  %v2951_v36 = vld [vmem:[#allocation2 + $0x38] sm:$0xf]  ;;  %v3029_v6 = vshll.u32 %v2954_v26, 16 }
 0x1ac   : > { %v2280_v40 = vpop.permute.xlu1 %2279  ;;  %v2694_v62 = vrot.slane %v2693_v50, 4  ;;  %v10581_v10 = vrot.slane %v3026_v52, 7  ;;  %v3004_v19 = vshrl.u32 %v2951_v36, 16  ;;  %v2819_v51 = vsel %vm9560_vm10, %v2814_v61, %v2818_v13  ;;  %v2429_v43 = vld [vmem:[#allocation2 + $0x160] sm:$0x1] }
 0x1ad   : > { %2366 = vst.msk [vmem:[#allocation3 + $0x28] sm:$0xf] %vm2355_vm15, %v2280_v40  ;;  %v2794_v32 = vrot.slane %v2792_v23, 5  ;;  %v10587_v40 = vld [vmem:[#allocation2 + $0x68] sm:$0xf]  ;;  %v3007_v1 = vshll.u32 %v2951_v36, 16 }
 0x1ae   : > { %v2699_v14 = vsel %vm9560_vm10, %v2694_v62, %v2698_v15  ;;  %v3031_v42 = vor.u32 %v3029_v6, %v10581_v10  ;;  %v10593_v49 = vrot.slane %v3004_v19, 7  ;;  %v3048_v55 = vshrl.u32 %v10587_v40, 16  ;;  %v2963_v26 = vld [vmem:[#allocation2 + $0x98] sm:$0xf]  ;;  %v2960_v61 = vld [vmem:[#allocation2 + $0x80] sm:$0xf] }
 0x1af   : > { %2870 = vrot.lane.b32.xlu0 %v2747_v8, %s9363_s28  ;;  %v2790_v8 = vrot.slane %v2789_v2, 4  ;;  %v2768_v50 = vshll.u32 %v2429_v43, 16  ;;  %v3092_v56 = vshrl.u32 %v2963_v26, 16  ;;  %v3095_v0 = vshll.u32 %v2963_v26, 16 }
 0x1b0   : > { %2850 = vrot.lane.b32.xlu2 %v2627_v48, %s9363_s28  ;;  %v2958_v48 = vld [vmem:[#allocation2 + $0x6c] sm:$0xf]  ;;  %v3032_v33 = vsel %vm9589_vm11, %v9045_v31, %v3031_v42  ;;  %v3009_v7 = vor.u32 %v3007_v1, %v10593_v49  ;;  %v3070_v6 = vshrl.u32 %v2960_v61, 16  ;;  %v2952_v31 = vld [vmem:[#allocation2 + $0x3c] sm:$0xf]  ;;  %v3073_v20 = vshll.u32 %v2960_v61, 16 }
 0x1b1   : > { %v2290_v45 = vpop.permute.xlu0 %2289  ;;  %v2795_v27 = vsel %vm9560_vm10, %v2790_v8, %v2794_v32  ;;  %v3057_v59 = vshrl.u32 %v2958_v48, 16  ;;  %v3060_v34 = vshll.u32 %v2958_v48, 16  ;;  %v2770_v23 = vrot.slane %v2768_v50, 5  ;;  %v2967_v48 = vld [vmem:[#allocation2 + $0xb4] sm:$0xf] }
 0x1b2   : > { %2371 = vst.msk [vmem:[#allocation3 + $0x3c] sm:$0xf] %vm2355_vm15, %v2290_v45  ;;  %v2288_v63 = vpop.permute.xlu2 %2287  ;;  %2866 = vrot.lane.b32.xlu1 %v2723_v17, %s9363_s28  ;;  %v2999_v17 = vshrl.u32 %v2950_v39, 16  ;;  %v2764_v45 = vrot.slane %v2762_v53, 4  ;;  %v3033_v39 = vrot.slane %v10581_v10, 4  ;;  %v10632_v10 = vrot.slane %v3070_v6, 7 }
 0x1b3   : > { %2370 = vst.msk [vmem:[#allocation3 + $0x38] sm:$0xf] %vm2355_vm15, %v2288_v63  ;;  %v2433_v63 = vld [vmem:[#allocation2 + $0x188] sm:$0xf]  ;;  %v3059_v21 = vrot.slane %v3057_v59, 7 }
 0x1b4   : > { %v2286_v3 = vpop.permute.xlu1 %2285  ;;  %v9044_v28 = vrot.slane %v2999_v17, 11  ;;  %v2797_v38 = vshrl.u32 %v2433_v63, 16  ;;  %v2800_v30 = vshll.u32 %v2433_v63, 16  ;;  %v10664_v6 = vld [vmem:[#allocation2 + $0xf8] sm:$0xf] }
 0x1b5   : > { %2369 = vst.msk [vmem:[#allocation3 + $0x34] sm:$0xf] %vm2355_vm15, %v2286_v3  ;;  %v3062_v11 = vor.u32 %v3060_v34, %v3059_v21  ;;  %v2972_v34 = vld [vmem:[#allocation2 + $0xe0] sm:$0xf] }
 0x1b6   : > { %v3010_v18 = vsel %vm9589_vm11, %v9044_v28, %v3009_v7  ;;  %v2799_v36 = vrot.slane %v2797_v38, 4  ;;  %v3126_v7 = vshll.u32 %v2967_v48, 16  ;;  %v3158_v38 = vshrl.u32 %v2972_v34, 16 }
 0x1b7   : > { %2876 = vrot.lane.b32.xlu0 %v2785_v22, %s9363_s28  ;;  %v10608_v22 = vrot.slane %v3048_v55, 7  ;;  %v3123_v55 = vshrl.u32 %v2967_v48, 16 }
 0x1b8   : > { %2856 = vrot.lane.b32.xlu2 %v2665_v24, %s9363_s28  ;;  %v2765_v24 = vor.u32 %v2764_v45, %v10563_v35  ;;  %v3038_v35 = vshll.u32 %v2955_v46, 16  ;;  %v3013_v45 = vshrl.u32 %v2952_v31, 16  ;;  %v2964_v46 = vld [vmem:[#allocation2 + $0x9c] sm:$0xf] }
 0x1b9   : > { %v2296_v58 = vpop.permute.xlu0 %2295  ;;  %v3055_v52 = vrot.slane %v10608_v22, 4  ;;  %v3125_v28 = vrot.slane %v3123_v55, 7  ;;  %v3101_v21 = vshrl.u32 %v2964_v46, 16 }
 0x1ba   : > { %2374 = vst.msk [vmem:[#allocation3 + $0x48] sm:$0xf] %vm2355_vm15, %v2296_v58  ;;  %v2294_v5 = vpop.permute.xlu2 %2293  ;;  %2872 = vrot.lane.b32.xlu1 %v2761_v47, %s9363_s28  ;;  %v2962_v47 = vld [vmem:[#allocation2 + $0x94] sm:$0x8]  ;;  %v2766_v2 = vrot.slane %v2765_v24, 4  ;;  %v2802_v58 = vrot.slane %v2800_v30, 5  ;;  %v3040_v19 = vor.u32 %v3038_v35, %v3037_v29 }
 0x1bb   : > { %2373 = vst.msk [vmem:[#allocation3 + $0x44] sm:$0xf] %vm2355_vm15, %v2294_v5  ;;  %v3087_v15 = vshrl.u32 %v2962_v47, 16  ;;  %v10620_v5 = vrot.slane %v3092_v56, 7  ;;  %v3063_v25 = vsel %vm9589_vm11, %v3055_v52, %v3062_v11  ;;  %v3016_v24 = vshll.u32 %v2952_v31, 16 }
 0x1bc   : > { %v2292_v16 = vpop.permute.xlu1 %2291  ;;  %v2771_v32 = vsel %vm9560_vm10, %v2766_v2, %v2770_v23  ;;  %v3041_v1 = vsel %vm9589_vm11, %v3033_v39, %v3040_v19  ;;  %v3103_v47 = vrot.slane %v3101_v21, 7  ;;  %v3104_v56 = vshll.u32 %v2964_v46, 16  ;;  %v2971_v52 = vld [vmem:[#allocation2 + $0xdc] sm:$0x8]  ;;  %v2969_v35 = vld [vmem:[#allocation2 + $0xc8] sm:$0xf] }
 0x1bd   : > { %2372 = vst.msk [vmem:[#allocation3 + $0x40] sm:$0xf] %vm2355_vm15, %v2292_v16  ;;  %v2803_v16 = vor.u32 %v2802_v58, %v2799_v36  ;;  %v9048_v53 = vrot.slane %v3087_v15, 11  ;;  %v3097_v17 = vor.u32 %v3095_v0, %v10620_v5  ;;  %v3153_v2 = vshrl.u32 %v2971_v52, 16  ;;  %v2968_v15 = vld [vmem:[#allocation2 + $0xc4] sm:$0x8] }
 0x1be   : > { %v10659_v23 = vrot.slane %v3158_v38, 7  ;;  %v3161_v36 = vshll.u32 %v2972_v34, 16  ;;  %v3136_v0 = vshrl.u32 %v2969_v35, 16  ;;  %v3131_v48 = vshrl.u32 %v2968_v15, 16 }
 0x1bf   : > { %2882 = vrot.lane.b32.xlu0 %v2819_v51, %s9363_s28  ;;  %v2959_v51 = vld [vmem:[#allocation2 + $0x7c] sm:$0x8]  ;;  %v3098_v43 = vsel %vm9589_vm11, %v9048_v53, %v3097_v17  ;;  %v3180_v53 = vshrl.u32 %v10664_v6, 16  ;;  %v3077_v52 = vrot.slane %v10632_v10, 4 }
 0x1c0   : > { %2862 = vrot.lane.b32.xlu2 %v2699_v14, %s9363_s28  ;;  %v10627_v14 = vld [vmem:[#allocation2 + $0xb0] sm:$0xf]  ;;  %v3065_v42 = vshrl.u32 %v2959_v51, 16  ;;  %v3051_v51 = vshll.u32 %v10587_v40, 16  ;;  %v10676_v17 = vrot.slane %v3136_v0, 7  ;;  %v3139_v40 = vshll.u32 %v2969_v35, 16 }
 0x1c1   : > { %v2302_v54 = vpop.permute.xlu0 %2301  ;;  %v9050_v46 = vrot.slane %v3131_v48, 11  ;;  %v3165_v35 = vrot.slane %v10659_v23, 4 }
 0x1c2   : > { %2377 = vst.msk [vmem:[#allocation3 + $0x54] sm:$0xf] %vm2355_vm15, %v2302_v54  ;;  %v2300_v44 = vpop.permute.xlu2 %2299  ;;  %2878 = vrot.lane.b32.xlu1 %v2795_v27, %s9363_s28  ;;  %v3114_v27 = vshrl.u32 %v10627_v14, 16  ;;  %v2804_v54 = vrot.slane %v2803_v16, 4  ;;  %v9047_v63 = vrot.slane %v3065_v42, 11  ;;  %v3163_v16 = vor.u32 %v3161_v36, %v10659_v23 }
 0x1c3   : > { %2376 = vst.msk [vmem:[#allocation3 + $0x50] sm:$0xf] %vm2355_vm15, %v2300_v44  ;;  %v2985_v23 = vld [vmem:[#allocation2 + $0x144] sm:$0xf] }
 0x1c4   : > { %v2298_v3 = vpop.permute.xlu1 %2297  ;;  %v2809_v26 = vsel %vm9560_vm10, %v2804_v54, %v10558_v41  ;;  %v3011_v41 = vrot.slane %v10593_v49, 4  ;;  %v3106_v49 = vor.u32 %v3104_v56, %v3103_v47  ;;  %v2978_v47 = vld [vmem:[#allocation2 + $0x110] sm:$0xf] }
 0x1c5   : > { %2375 = vst.msk [vmem:[#allocation3 + $0x4c] sm:$0xf] %vm2355_vm15, %v2298_v3  ;;  %v3015_v3 = vrot.slane %v3013_v45, 7 }
 0x1c7   : > { %3354 = vrot.lane.b32.xlu0 %v3032_v33, %s9364_s29  ;;  %v3075_v33 = vor.u32 %v3073_v20, %v10632_v10  ;;  %v3018_v29 = vor.u32 %v3016_v24, %v3015_v3 }
 0x1c8   : > { %2868 = vrot.lane.b32.xlu2 %v2737_v57, %s9363_s28  ;;  %v10644_v57 = vrot.slane %v3114_v27, 7  ;;  %v3053_v27 = vor.u32 %v3051_v51, %v10608_v22 }
 0x1c9   : > { %v2308_v13 = vpop.permute.xlu0 %2307  ;;  %v3076_v50 = vsel %vm9589_vm11, %v9047_v63, %v3075_v33  ;;  %v3019_v39 = vsel %vm9589_vm11, %v3011_v41, %v3018_v29  ;;  %v2965_v29 = vld [vmem:[#allocation2 + $0xac] sm:$0x8] }
 0x1ca   : > { %2380 = vst.msk [vmem:[#allocation3 + $0x60] sm:$0xf] %vm2355_vm15, %v2308_v13  ;;  %v2306_v62 = vpop.permute.xlu2 %2305  ;;  %3350 = vrot.lane.b32.xlu1 %v3010_v18, %s9364_s29  ;;  %v3121_v30 = vrot.slane %v10644_v57, 4  ;;  %v3128_v18 = vor.u32 %v3126_v7, %v3125_v28  ;;  %v2956_v13 = vld [vmem:[#allocation2 + $0x64] sm:$0x8] }
 0x1cb   : > { %2379 = vst.msk [vmem:[#allocation3 + $0x5c] sm:$0xf] %vm2355_vm15, %v2306_v62  ;;  %v3099_v62 = vrot.slane %v10620_v5, 4  ;;  %v3043_v19 = vshrl.u32 %v2956_v13, 16  ;;  %v9051_v5 = vrot.slane %v3153_v2, 11  ;;  %v3202_v13 = vshrl.u32 %v2978_v47, 16 }
 0x1cc   : > { %v2304_v8 = vpop.permute.xlu1 %2303  ;;  %v3129_v58 = vsel %vm9589_vm11, %v3121_v30, %v3128_v18  ;;  %v2980_v30 = vld [vmem:[#allocation2 + $0x124] sm:$0x8] }
 0x1cd   : > { %2378 = vst.msk [vmem:[#allocation3 + $0x58] sm:$0xf] %vm2355_vm15, %v2304_v8  ;;  %v2976_v8 = vld [vmem:[#allocation2 + $0xfc] sm:$0xf]  ;;  %v3107_v31 = vsel %vm9589_vm11, %v3099_v62, %v3106_v49  ;;  %v3164_v45 = vsel %vm9589_vm11, %v9051_v5, %v3163_v16  ;;  %v2977_v62 = vld [vmem:[#allocation2 + $0x10c] sm:$0x8] }
 0x1ce   : > { %v3189_v42 = vshrl.u32 %v2976_v8, 16  ;;  %v3192_v33 = vshll.u32 %v2976_v8, 16  ;;  %v10704_v49 = vld [vmem:[#allocation2 + $0x140] sm:$0xf]  ;;  %v3197_v51 = vshrl.u32 %v2977_v62, 16  ;;  %v10711_v8 = vrot.slane %v3202_v13, 7 }
 0x1cf   : > { %3360 = vrot.lane.b32.xlu0 %v3063_v25, %s9364_s29  ;;  %v3246_v5 = vshrl.u32 %v10704_v49, 16 }
 0x1d0   : > { %2874 = vrot.lane.b32.xlu2 %v2771_v32, %s9363_s28  ;;  %v2961_v32 = vld [vmem:[#allocation2 + $0x84] sm:$0xf]  ;;  %v3191_v63 = vrot.slane %v3189_v42, 7 }
 0x1d1   : > { %v2314_v59 = vpop.permute.xlu0 %2313  ;;  %v3079_v55 = vshrl.u32 %v2961_v32, 16  ;;  %v3082_v34 = vshll.u32 %v2961_v32, 16  ;;  %v3205_v32 = vshll.u32 %v2978_v47, 16  ;;  %v3143_v47 = vrot.slane %v10676_v17, 4 }
 0x1d2   : > { %2383 = vst.msk [vmem:[#allocation3 + $0x6c] sm:$0xf] %vm2355_vm15, %v2314_v59  ;;  %v2312_v44 = vpop.permute.xlu2 %2311  ;;  %3356 = vrot.lane.b32.xlu1 %v3041_v1, %s9364_s29  ;;  %v9046_v1 = vrot.slane %v3043_v19, 11  ;;  %v2973_v59 = vld [vmem:[#allocation2 + $0xe4] sm:$0xf] }
 0x1d3   : > { %2382 = vst.msk [vmem:[#allocation3 + $0x68] sm:$0xf] %vm2355_vm15, %v2312_v44  ;;  %v10684_v44 = vrot.slane %v3180_v53, 7  ;;  %v3167_v22 = vshrl.u32 %v2973_v59, 16  ;;  %v3081_v21 = vrot.slane %v3079_v55, 7  ;;  %v3170_v3 = vshll.u32 %v2973_v59, 16 }
 0x1d4   : > { %v2310_v12 = vpop.permute.xlu1 %2309  ;;  %v3054_v7 = vsel %vm9589_vm11, %v9046_v1, %v3053_v27  ;;  %v2970_v19 = vld [vmem:[#allocation2 + $0xcc] sm:$0xf]  ;;  %v3255_v53 = vshrl.u32 %v2985_v23, 16  ;;  %v242_v27 = vld [vmem:[#allocation2 + $0x19c] sm:$0x8] }
 0x1d5   : > { %2381 = vst.msk [vmem:[#allocation3 + $0x64] sm:$0xf] %vm2355_vm15, %v2310_v12  ;;  %v2981_v12 = vld [vmem:[#allocation2 + $0x128] sm:$0xf]  ;;  %v3169_v38 = vrot.slane %v3167_v22, 7  ;;  %v243_v59 = vsel %vm9524_vm8, 0, %v242_v27 }
 0x1d6   : > { %v3224_v18 = vshrl.u32 %v2981_v12, 16  ;;  %v3227_v10 = vshll.u32 %v2981_v12, 16  ;;  %v2982_v1 = vld [vmem:[#allocation2 + $0x12c] sm:$0xf]  ;;  %v2990_v22 = vld [vmem:[#allocation2 + $0x170] sm:$0xf] }
 0x1d7   : > { %3366 = vrot.lane.b32.xlu0 %v3098_v43, %s9364_s29  ;;  %v3141_v43 = vor.u32 %v3139_v40, %v10676_v17  ;;  %v3172_v36 = vor.u32 %v3170_v3, %v3169_v38  ;;  %244 = vst [vmem:[#allocation2 + $0x19c] sm:$0x8] %v243_v59  ;;  %v2989_v12 = vld [vmem:[#allocation2 + $0x16c] sm:$0x8]  ;;  %v3236_v38 = vshll.u32 %v2982_v1, 16 }
 0x1d8   : > { %2880 = vrot.lane.b32.xlu2 %v2809_v26, %s9363_s28  ;;  %v3187_v26 = vrot.slane %v10684_v44, 4 }
 0x1d9   : > { %v2320_v11 = vpop.permute.xlu0 %2319  ;;  %v3142_v24 = vsel %vm9589_vm11, %v9050_v46, %v3141_v43  ;;  %v3173_v16 = vsel %vm9589_vm11, %v3165_v35, %v3172_v36  ;;  %v10725_v46 = vrot.slane %v3246_v5, 7  ;;  %v3258_v43 = vshll.u32 %v2985_v23, 16  ;;  %v2986_v36 = vld [vmem:[#allocation2 + $0x154] sm:$0x8] }
 0x1da   : > { %2386 = vst.msk [vmem:[#allocation3 + $0x78] sm:$0xf] %vm2355_vm15, %v2320_v11  ;;  %v2318_v61 = vpop.permute.xlu2 %2317  ;;  %3362 = vrot.lane.b32.xlu1 %v3076_v50, %s9364_s29  ;;  %v3194_v50 = vor.u32 %v3192_v33, %v3191_v63  ;;  %v3084_v11 = vor.u32 %v3082_v34, %v3081_v21  ;;  %v3257_v63 = vrot.slane %v3255_v53, 7  ;;  %v3233_v33 = vshrl.u32 %v2982_v1, 16 }
 0x1db   : > { %2385 = vst.msk [vmem:[#allocation3 + $0x74] sm:$0xf] %vm2355_vm15, %v2318_v61  ;;  %v3219_v61 = vshrl.u32 %v2980_v30, 16  ;;  %v3148_v21 = vshll.u32 %v2970_v19, 16  ;;  %v3253_v3 = vrot.slane %v10725_v46, 4  ;;  %v3293_v35 = vshll.u32 %v2990_v22, 16 }
 0x1dc   : > { %v2316_v25 = vpop.permute.xlu1 %2315  ;;  %v3195_v2 = vsel %vm9589_vm11, %v3187_v26, %v3194_v50  ;;  %v3085_v0 = vsel %vm9589_vm11, %v3077_v52, %v3084_v11  ;;  %v3290_v26 = vshrl.u32 %v2990_v22, 16  ;;  %v3235_v50 = vrot.slane %v3233_v33, 7  ;;  %v2987_v30 = vld [vmem:[#allocation2 + $0x158] sm:$0xf] }
 0x1dd   : > { %2384 = vst.msk [vmem:[#allocation3 + $0x70] sm:$0xf] %vm2355_vm15, %v2316_v25  ;;  %v3109_v25 = vshrl.u32 %v2965_v29, 16  ;;  %v9054_v48 = vrot.slane %v3219_v61, 11  ;;  %v3285_v11 = vshrl.u32 %v2989_v12, 16  ;;  %v3268_v61 = vshrl.u32 %v2987_v30, 16 }
 0x1de   : > { %v10741_v29 = vrot.slane %v3290_v26, 7  ;;  %v3238_v17 = vor.u32 %v3236_v38, %v3235_v50  ;;  %v3271_v5 = vshll.u32 %v2987_v30, 16  ;;  %v3209_v12 = vrot.slane %v10711_v8, 4  ;;  %v2983_v50 = vld [vmem:[#allocation2 + $0x13c] sm:$0x8] }
 0x1df   : > { %3372 = vrot.lane.b32.xlu0 %v3129_v58, %s9364_s29  ;;  %v10702_v58 = vrot.slane %v3224_v18, 7  ;;  %v9049_v40 = vrot.slane %v3109_v25, 11  ;;  %v10749_v25 = vld [vmem:[#allocation2 + $0x188] sm:$0xf]  ;;  %v9057_v23 = vrot.slane %v3285_v11, 11  ;;  %v3249_v11 = vshll.u32 %v10704_v49, 16 }
 0x1e0   : > { %3352 = vrot.lane.b32.xlu2 %v3019_v39, %s9364_s29  ;;  %v3117_v39 = vshll.u32 %v10627_v14, 16  ;;  %v3297_v30 = vrot.slane %v10741_v29, 4 }
 0x1e1   : > { %v2823_v20 = vpop.permute.xlu0 %2822  ;;  %v3229_v14 = vor.u32 %v3227_v10, %v10702_v58 }
 0x1e2   : > { %2918 = vst.msk [vmem:[#allocation3 + $0x4] sm:$0xf] %vm2916_vm1, %v2823_v20  ;;  %v2821_v54 = vpop.permute.xlu2 %2820  ;;  %3368 = vrot.lane.b32.xlu1 %v3107_v31, %s9364_s29  ;;  %v3119_v42 = vor.u32 %v3117_v39, %v10644_v57  ;;  %v3145_v20 = vshrl.u32 %v2970_v19, 16  ;;  %v2994_v39 = vld [vmem:[#allocation2 + $0x18c] sm:$0xf] }
 0x1e3   : > { %2917 = vst.msk [vmem:[#allocation3] sm:$0xf] %vm2916_vm1, %v2821_v54  ;;  %v9053_v54 = vrot.slane %v3197_v51, 11  ;;  %v3230_v57 = vsel %vm9589_vm11, %v9054_v48, %v3229_v14  ;;  %v2979_v19 = vld [vmem:[#allocation2 + $0x114] sm:$0xf]  ;;  %v3263_v51 = vshrl.u32 %v2986_v36, 16 }
 0x1e4   : > { %v2322_v28 = vpop.permute.xlu1 %2321  ;;  %v3120_v60 = vsel %vm9589_vm11, %v9049_v40, %v3119_v42  ;;  %v3321_v48 = vshrl.u32 %v2994_v39, 16  ;;  %v3211_v40 = vshrl.u32 %v2979_v19, 16  ;;  %v2991_v42 = vld [vmem:[#allocation2 + $0x174] sm:$0xf]  ;;  %v3214_v33 = vshll.u32 %v2979_v19, 16 }
 0x1e5   : > { %2387 = vst.msk [vmem:[#allocation3 + $0x7c] sm:$0xf] %vm2355_vm15, %v2322_v28  ;;  %v9056_v27 = vrot.slane %v3263_v51, 11 }
 0x1e7   : > { %3378 = vrot.lane.b32.xlu0 %v3164_v45, %s9364_s29  ;;  %v3207_v45 = vor.u32 %v3205_v32, %v10711_v8  ;;  %v10754_v32 = vrot.slane %v3268_v61, 7 }
 0x1e8   : > { %3358 = vrot.lane.b32.xlu2 %v3054_v7, %s9364_s29  ;;  %v3147_v7 = vrot.slane %v3145_v20, 7 }
 0x1e9   : > { %v2829_v56 = vpop.permute.xlu0 %2828  ;;  %v3208_v34 = vsel %vm9589_vm11, %v9053_v54, %v3207_v45  ;;  %v3323_v54 = vrot.slane %v3321_v48, 7  ;;  %v3324_v45 = vshll.u32 %v2994_v39, 16 }
 0x1ea   : > { %2921 = vst.msk [vmem:[#allocation3 + $0x10] sm:$0xf] %vm2916_vm1, %v2829_v56  ;;  %v2827_v41 = vpop.permute.xlu2 %2826  ;;  %3374 = vrot.lane.b32.xlu1 %v3142_v24, %s9364_s29  ;;  %v3260_v24 = vor.u32 %v3258_v43, %v3257_v63  ;;  %v3150_v56 = vor.u32 %v3148_v21, %v3147_v7  ;;  %v3213_v63 = vrot.slane %v3211_v40, 7  ;;  %v3302_v21 = vshll.u32 %v2991_v42, 16 }
 0x1eb   : > { %2920 = vst.msk [vmem:[#allocation3 + $0xc] sm:$0xf] %vm2916_vm1, %v2827_v41  ;;  %v2974_v41 = vld [vmem:[#allocation2 + $0xf4] sm:$0x8] }
 0x1ec   : > { %v2825_v15 = vpop.permute.xlu1 %2824  ;;  %v3261_v13 = vsel %vm9589_vm11, %v3253_v3, %v3260_v24  ;;  %v3151_v62 = vsel %vm9589_vm11, %v3143_v47, %v3150_v56  ;;  %v3216_v26 = vor.u32 %v3214_v33, %v3213_v63  ;;  %v2996_v3 = vld [vmem:[#allocation2 + $0x1a0] sm:$0xf] }
 0x1ed   : > { %2919 = vst.msk [vmem:[#allocation3 + $0x8] sm:$0xf] %vm2916_vm1, %v2825_v15  ;;  %v3175_v15 = vshrl.u32 %v2974_v41, 16  ;;  %v3334_v47 = vshrl.u32 %v2996_v3, 16  ;;  %v2995_v41 = vld [vmem:[#allocation2 + $0x19c] sm:$0x8] }
 0x1ee   : > { %v3217_v8 = vsel %vm9589_vm11, %v3209_v12, %v3216_v26  ;;  %v3329_v61 = vshrl.u32 %v2995_v41, 16  ;;  %v3486_v26 = vld [vmem:[#allocation2 + $0x84] sm:$0xf]  ;;  %v3492_v41 = vld [vmem:[#allocation2 + $0xcc] sm:$0xf] }
 0x1ef   : > { %3384 = vrot.lane.b32.xlu0 %v3195_v2, %s9364_s29  ;;  %v3231_v2 = vrot.slane %v10702_v58, 4  ;;  %v3295_v58 = vor.u32 %v3293_v35, %v10741_v29  ;;  %v9052_v53 = vrot.slane %v3175_v15, 11  ;;  %v2988_v35 = vld [vmem:[#allocation2 + $0x15c] sm:$0xf]  ;;  %v3479_v15 = vld [vmem:[#allocation2 + $0x38] sm:$0xf] }
 0x1f0   : > { %3364 = vrot.lane.b32.xlu2 %v3085_v0, %s9364_s29  ;;  %v3183_v0 = vshll.u32 %v10664_v6, 16  ;;  %v3277_v49 = vshrl.u32 %v2988_v35, 16  ;;  %v3280_v51 = vshll.u32 %v2988_v35, 16 }
 0x1f1   : > { %v2835_v31 = vpop.permute.xlu0 %2834  ;;  %v3239_v6 = vsel %vm9589_vm11, %v3231_v2, %v3238_v17  ;;  %v3296_v1 = vsel %vm9589_vm11, %v9057_v23, %v3295_v58  ;;  %v3337_v2 = vshll.u32 %v2996_v3, 16 }
 0x1f2   : > { %2924 = vst.msk [vmem:[#allocation3 + $0x1c] sm:$0xf] %vm2916_vm1, %v2835_v31  ;;  %v2833_v55 = vpop.permute.xlu2 %2832  ;;  %3380 = vrot.lane.b32.xlu1 %v3173_v16, %s9364_s29  ;;  %v3312_v16 = vshrl.u32 %v10749_v25, 16  ;;  %v3185_v31 = vor.u32 %v3183_v0, %v10684_v44  ;;  %v3299_v44 = vshrl.u32 %v2991_v42, 16  ;;  %v9059_v0 = vrot.slane %v3329_v61, 11 }
 0x1f3   : > { %2923 = vst.msk [vmem:[#allocation3 + $0x18] sm:$0xf] %vm2916_vm1, %v2833_v55  ;;  %v3273_v55 = vor.u32 %v3271_v5, %v10754_v32  ;;  %v3279_v58 = vrot.slane %v3277_v49, 7  ;;  %v3497_v61 = vld [vmem:[#allocation2 + $0x110] sm:$0xf] }
 0x1f4   : > { %v2831_v28 = vpop.permute.xlu1 %2830  ;;  %v10767_v59 = vrot.slane %v3312_v16, 7  ;;  %v3301_v7 = vrot.slane %v3299_v44, 7  ;;  %v3500_v49 = vld [vmem:[#allocation2 + $0x12c] sm:$0xf] }
 0x1f5   : > { %2922 = vst.msk [vmem:[#allocation3 + $0x14] sm:$0xf] %vm2916_vm1, %v2831_v28  ;;  %v3274_v22 = vsel %vm9589_vm11, %v9056_v27, %v3273_v55  ;;  %v3282_v16 = vor.u32 %v3280_v51, %v3279_v58  ;;  %v3493_v51 = vld [vmem:[#allocation2 + $0xe0] sm:$0xf] }
 0x1f6   : > { %v3319_v28 = vrot.slane %v10767_v59, 4 }
 0x1f7   : > { %3390 = vrot.lane.b32.xlu0 %v3230_v57, %s9364_s29  ;;  %v3186_v57 = vsel %vm9589_vm11, %v9052_v53, %v3185_v31  ;;  %v3482_v53 = vld [vmem:[#allocation2 + $0x54] sm:$0xf] }
 0x1f8   : > { %3370 = vrot.lane.b32.xlu2 %v3120_v60, %s9364_s29  ;;  %v3326_v60 = vor.u32 %v3324_v45, %v3323_v54 }
 0x1f9   : > { %v2841_v18 = vpop.permute.xlu0 %2840 }
 0x1fa   : > { %2927 = vst.msk [vmem:[#allocation3 + $0x28] sm:$0xf] %vm2916_vm1, %v2841_v18  ;;  %v2839_v52 = vpop.permute.xlu2 %2838  ;;  %3386 = vrot.lane.b32.xlu1 %v3208_v34, %s9364_s29  ;;  %v3327_v38 = vsel %vm9589_vm11, %v3319_v28, %v3326_v60  ;;  %v3304_v18 = vor.u32 %v3302_v21, %v3301_v7  ;;  %v3488_v21 = vld [vmem:[#allocation2 + $0x9c] sm:$0xf] }
 0x1fb   : > { %2926 = vst.msk [vmem:[#allocation3 + $0x24] sm:$0xf] %vm2916_vm1, %v2839_v52  ;;  %v3241_v52 = vshrl.u32 %v2983_v50, 16  ;;  %v3491_v50 = vld [vmem:[#allocation2 + $0xc8] sm:$0xf] }
 0x1fc   : > { %v2837_v10 = vpop.permute.xlu1 %2836  ;;  %v3305_v29 = vsel %vm9589_vm11, %v3297_v30, %v3304_v18  ;;  %v3481_v30 = vld [vmem:[#allocation2 + $0x50] sm:$0xf] }
 0x1fd   : > { %2925 = vst.msk [vmem:[#allocation3 + $0x20] sm:$0xf] %vm2916_vm1, %v2837_v10  ;;  %v9055_v36 = vrot.slane %v3241_v52, 11  ;;  %v3251_v10 = vor.u32 %v3249_v11, %v10725_v46  ;;  %v3489_v18 = vld [vmem:[#allocation2 + $0xb0] sm:$0xf] }
 0x1fe   : > { %v3484_v11 = vld [vmem:[#allocation2 + $0x6c] sm:$0xf] }
 0x1ff   : > { %3396 = vrot.lane.b32.xlu0 %v3261_v13, %s9364_s29  ;;  %v10792_v13 = vrot.slane %v3334_v47, 7  ;;  %v3252_v19 = vsel %vm9589_vm11, %v9055_v36, %v3251_v10 }
 0x200   : > { %3376 = vrot.lane.b32.xlu2 %v3151_v62, %s9364_s29 }
 0x201   : > { %v2847_v14 = vpop.permute.xlu0 %2846  ;;  %v3339_v39 = vor.u32 %v3337_v2, %v10792_v13  ;;  %v3341_v28 = vrot.slane %v10792_v13, 4  ;;  %v3487_v2 = vld [vmem:[#allocation2 + $0x98] sm:$0xf] }
 0x202   : > { %2930 = vst.msk [vmem:[#allocation3 + $0x34] sm:$0xf] %vm2916_vm1, %v2847_v14  ;;  %v2845_v20 = vpop.permute.xlu2 %2844  ;;  %3392 = vrot.lane.b32.xlu1 %v3239_v6, %s9364_s29  ;;  %v3275_v6 = vrot.slane %v10754_v32, 4  ;;  %v2992_v14 = vld [vmem:[#allocation2 + $0x184] sm:$0x8] }
 0x203   : > { %2929 = vst.msk [vmem:[#allocation3 + $0x30] sm:$0xf] %vm2916_vm1, %v2845_v20  ;;  %v3340_v46 = vsel %vm9589_vm11, %v9059_v0, %v3339_v39  ;;  %v3307_v42 = vshrl.u32 %v2992_v14, 16  ;;  %v3315_v20 = vshll.u32 %v10749_v25, 16  ;;  %v2997_v32 = vld [vmem:[#allocation2 + $0x1a4] sm:$0xf] }
 0x204   : > { %v2843_v43 = vpop.permute.xlu1 %2842  ;;  %v3283_v40 = vsel %vm9589_vm11, %v3275_v6, %v3282_v16  ;;  %v3343_v45 = vshrl.u32 %v2997_v32, 16  ;;  %v3485_v25 = vld [vmem:[#allocation2 + $0x80] sm:$0xf]  ;;  %v3346_v33 = vshll.u32 %v2997_v32, 16  ;;  %v3498_v0 = vld [vmem:[#allocation2 + $0x114] sm:$0xf] }
 0x205   : > { %2928 = vst.msk [vmem:[#allocation3 + $0x2c] sm:$0xf] %vm2916_vm1, %v2843_v43  ;;  %v9058_v55 = vrot.slane %v3307_v42, 11  ;;  %v3317_v54 = vor.u32 %v3315_v20, %v10767_v59  ;;  %v3483_v59 = vld [vmem:[#allocation2 + $0x68] sm:$0xf] }
 0x206   : > { %v3345_v63 = vrot.slane %v3343_v45, 7  ;;  %v3673_v6 = vld [vmem:[#allocation2 + $0x3c] sm:$0xf]  ;;  %v3675_v45 = vld [vmem:[#allocation2 + $0x50] sm:$0xf] }
 0x207   : > { %3402 = vrot.lane.b32.xlu0 %v3296_v1, %s9364_s29  ;;  %v3480_v1 = vld [vmem:[#allocation2 + $0x3c] sm:$0xf]  ;;  %v3730_v14 = vshll.u32 %v3673_v6, 16 }
 0x208   : > { %3382 = vrot.lane.b32.xlu2 %v3186_v57, %s9364_s29  ;;  %v3318_v57 = vsel %vm9589_vm11, %v9058_v55, %v3317_v54  ;;  %v3348_v60 = vor.u32 %v3346_v33, %v3345_v63  ;;  %v3504_v42 = vld [vmem:[#allocation2 + $0x15c] sm:$0xf]  ;;  %v3678_v55 = vld [vmem:[#allocation2 + $0x68] sm:$0xf] }
 0x209   : > { %v2853_v34 = vpop.permute.xlu0 %2852  ;;  %v10870_v20 = vrot.slane %v3730_v14, 5  ;;  %v3772_v63 = vshll.u32 %v3678_v55, 16 }
 0x20a   : > { %2933 = vst.msk [vmem:[#allocation3 + $0x40] sm:$0xf] %vm2916_vm1, %v2853_v34  ;;  %v2851_v24 = vpop.permute.xlu2 %2850  ;;  %3398 = vrot.lane.b32.xlu1 %v3274_v22, %s9364_s29  ;;  %v3349_v12 = vsel %vm9589_vm11, %v3341_v28, %v3348_v60  ;;  %v3748_v28 = vshll.u32 %v3675_v45, 16  ;;  %v3507_v60 = vld [vmem:[#allocation2 + $0x188] sm:$0xf] }
 0x20b   : > { %2932 = vst.msk [vmem:[#allocation3 + $0x3c] sm:$0xf] %vm2916_vm1, %v2851_v24 }
 0x20c   : > { %v2849_v56 = vpop.permute.xlu1 %2848 }
 0x20d   : > { %2931 = vst.msk [vmem:[#allocation3 + $0x38] sm:$0xf] %vm2916_vm1, %v2849_v56 }
 0x20f   : > { %3408 = vrot.lane.b32.xlu0 %v3327_v38, %s9364_s29 }
 0x210   : > { %3388 = vrot.lane.b32.xlu2 %v3217_v8, %s9364_s29  ;;  %v3494_v8 = vld [vmem:[#allocation2 + $0xe4] sm:$0xf] }
 0x211   : > { %v2859_v17 = vpop.permute.xlu0 %2858 }
 0x212   : > { %2936 = vst.msk [vmem:[#allocation3 + $0x4c] sm:$0xf] %vm2916_vm1, %v2859_v17  ;;  %v2857_v62 = vpop.permute.xlu2 %2856  ;;  %3404 = vrot.lane.b32.xlu1 %v3305_v29, %s9364_s29  ;;  %v3495_v17 = vld [vmem:[#allocation2 + $0xf8] sm:$0xf] }
 0x213   : > { %2935 = vst.msk [vmem:[#allocation3 + $0x48] sm:$0xf] %vm2916_vm1, %v2857_v62 }
 0x214   : > { %v2855_v23 = vpop.permute.xlu1 %2854 }
 0x215   : > { %2934 = vst.msk [vmem:[#allocation3 + $0x44] sm:$0xf] %vm2916_vm1, %v2855_v23 }
 0x217   : > { %3543 = vrot.lane.b32.xlu0 %v3479_v15, %s9365_s30  ;;  %v3490_v15 = vld [vmem:[#allocation2 + $0xb4] sm:$0xf] }
 0x218   : > { %3394 = vrot.lane.b32.xlu2 %v3252_v19, %s9364_s29  ;;  %v3503_v19 = vld [vmem:[#allocation2 + $0x158] sm:$0xf] }
 0x219   : > { %v2865_v5 = vpop.permute.xlu0 %2864 }
 0x21a   : > { %2939 = vst.msk [vmem:[#allocation3 + $0x58] sm:$0xf] %vm2916_vm1, %v2865_v5  ;;  %v2863_v48 = vpop.permute.xlu2 %2862  ;;  %3410 = vrot.lane.b32.xlu1 %v3340_v46, %s9364_s29  ;;  %v3501_v46 = vld [vmem:[#allocation2 + $0x140] sm:$0xf] }
 0x21b   : > { %2938 = vst.msk [vmem:[#allocation3 + $0x54] sm:$0xf] %vm2916_vm1, %v2863_v48  ;;  %v3506_v48 = vld [vmem:[#allocation2 + $0x174] sm:$0xf] }
 0x21c   : > { %v2861_v31 = vpop.permute.xlu1 %2860 }
 0x21d   : > { %2937 = vst.msk [vmem:[#allocation3 + $0x50] sm:$0xf] %vm2916_vm1, %v2861_v31 }
 0x21f   : > { %3549 = vrot.lane.b32.xlu0 %v3482_v53, %s9365_s30  ;;  %v3734_v53 = vshrl.u32 %v3673_v6, 16 }
 0x220   : > { %3400 = vrot.lane.b32.xlu2 %v3283_v40, %s9364_s29  ;;  %v3496_v40 = vld [vmem:[#allocation2 + $0xfc] sm:$0xf] }
 0x221   : > { %v2871_v27 = vpop.permute.xlu0 %2870  ;;  %v3736_v32 = vrot.slane %v3734_v53, 4 }
 0x222   : > { %2942 = vst.msk [vmem:[#allocation3 + $0x64] sm:$0xf] %vm2916_vm1, %v2871_v27  ;;  %v2869_v44 = vpop.permute.xlu2 %2868  ;;  %3545 = vrot.lane.b32.xlu1 %v3480_v1, %s9365_s30  ;;  %v3674_v27 = vld [vmem:[#allocation2 + $0x40] sm:$0x1] }
 0x223   : > { %2941 = vst.msk [vmem:[#allocation3 + $0x60] sm:$0xf] %vm2916_vm1, %v2869_v44  ;;  %v3509_v44 = vld [vmem:[#allocation2 + $0x1a0] sm:$0xf] }
 0x224   : > { %v2867_v43 = vpop.permute.xlu1 %2866 }
 0x225   : > { %2940 = vst.msk [vmem:[#allocation3 + $0x5c] sm:$0xf] %vm2916_vm1, %v2867_v43  ;;  %v3740_v43 = vshll.u32 %v3674_v27, 16 }
 0x227   : > { %3555 = vrot.lane.b32.xlu0 %v3485_v25, %s9365_s30  ;;  %v3737_v25 = vor.u32 %v3736_v32, %v10870_v20 }
 0x228   : > { %3406 = vrot.lane.b32.xlu2 %v3318_v57, %s9364_s29  ;;  %v3769_v57 = vshrl.u32 %v3678_v55, 16 }
 0x229   : > { %v2877_v22 = vpop.permute.xlu0 %2876 }
 0x22a   : > { %2945 = vst.msk [vmem:[#allocation3 + $0x70] sm:$0xf] %vm2916_vm1, %v2877_v22  ;;  %v2875_v7 = vpop.permute.xlu2 %2874  ;;  %3551 = vrot.lane.b32.xlu1 %v3483_v59, %s9365_s30  ;;  %v3499_v59 = vld [vmem:[#allocation2 + $0x128] sm:$0xf]  ;;  %v3745_v22 = vshrl.u32 %v3675_v45, 16 }
 0x22b   : > { %2944 = vst.msk [vmem:[#allocation3 + $0x6c] sm:$0xf] %vm2916_vm1, %v2875_v7  ;;  %v3738_v7 = vrot.slane %v3737_v25, 4 }
 0x22c   : > { %v2873_v34 = vpop.permute.xlu1 %2872 }
 0x22d   : > { %2943 = vst.msk [vmem:[#allocation3 + $0x68] sm:$0xf] %vm2916_vm1, %v2873_v34  ;;  %v3771_v34 = vrot.slane %v3769_v57, 4 }
 0x22f   : > { %3561 = vrot.lane.b32.xlu0 %v3488_v21, %s9365_s30  ;;  %v3742_v21 = vrot.slane %v3740_v43, 5 }
 0x230   : > { %3412 = vrot.lane.b32.xlu2 %v3349_v12, %s9364_s29  ;;  %v3774_v12 = vrot.slane %v3772_v63, 5 }
 0x231   : > { %v2883_v3 = vpop.permute.xlu0 %2882 }
 0x232   : > { %2948 = vst.msk [vmem:[#allocation3 + $0x7c] sm:$0xf] %vm2916_vm1, %v2883_v3  ;;  %v2881_v24 = vpop.permute.xlu2 %2880  ;;  %3557 = vrot.lane.b32.xlu1 %v3486_v26, %s9365_s30  ;;  %v3682_v3 = vld [vmem:[#allocation2 + $0x84] sm:$0xf] }
 0x233   : > { %2947 = vst.msk [vmem:[#allocation3 + $0x78] sm:$0xf] %vm2916_vm1, %v2881_v24 }
 0x234   : > { %v2879_v38 = vpop.permute.xlu1 %2878 }
 0x235   : > { %2946 = vst.msk [vmem:[#allocation3 + $0x74] sm:$0xf] %vm2916_vm1, %v2879_v38  ;;  %v3747_v38 = vrot.slane %v3745_v22, 4  ;;  %v10906_v22 = vld [vmem:[#allocation2 + $0x9c] sm:$0xf] }
 0x237   : > { %3567 = vrot.lane.b32.xlu0 %v3491_v50, %s9365_s30  ;;  %v10880_v50 = vld [vmem:[#allocation2 + $0x54] sm:$0xf] }
 0x238   : > { %3547 = vrot.lane.b32.xlu2 %v3481_v30, %s9365_s30  ;;  %v3750_v30 = vrot.slane %v3748_v28, 5  ;;  %v3691_v28 = vld [vmem:[#allocation2 + $0xcc] sm:$0xf] }
 0x239   : > { %v3355_v47 = vpop.permute.xlu0 %3354 }
 0x23a   : > { %3449 = vst.msk [vmem:[#allocation3 + $0x8] sm:$0xf] %vm3446_vm2, %v3355_v47  ;;  %v3353_v56 = vpop.permute.xlu2 %3352  ;;  %3563 = vrot.lane.b32.xlu1 %v3489_v18, %s9365_s30  ;;  %v3679_v18 = vld [vmem:[#allocation2 + $0x6c] sm:$0xf]  ;;  %v3743_v47 = vsel %vm9560_vm10, %v3738_v7, %v3742_v21 }
 0x23b   : > { %3448 = vst.msk [vmem:[#allocation3 + $0x4] sm:$0xf] %vm3446_vm2, %v3353_v56  ;;  %v3775_v56 = vor.u32 %v3774_v12, %v3771_v34  ;;  %v3688_v34 = vld [vmem:[#allocation2 + $0xb4] sm:$0xf] }
 0x23c   : > { %v3351_v52 = vpop.permute.xlu1 %3350 }
 0x23d   : > { %3447 = vst.msk [vmem:[#allocation3] sm:$0xf] %vm3446_vm2, %v3351_v52  ;;  %v3806_v52 = vshrl.u32 %v3682_v3, 16 }
 0x23f   : > { %3573 = vrot.lane.b32.xlu0 %v3494_v8, %s9365_s30  ;;  %v3802_v8 = vshll.u32 %v3682_v3, 16 }
 0x240   : > { %3553 = vrot.lane.b32.xlu2 %v3484_v11, %s9365_s30 }
 0x241   : > { %v3361_v35 = vpop.permute.xlu0 %3360 }
 0x242   : > { %3452 = vst.msk [vmem:[#allocation3 + $0x14] sm:$0xf] %vm3446_vm2, %v3361_v35  ;;  %v3359_v29 = vpop.permute.xlu2 %3358  ;;  %3569 = vrot.lane.b32.xlu1 %v3492_v41, %s9365_s30  ;;  %v3502_v41 = vld [vmem:[#allocation2 + $0x144] sm:$0xf]  ;;  %v3754_v35 = vshll.u32 %v10880_v50, 16 }
 0x243   : > { %3451 = vst.msk [vmem:[#allocation3 + $0x10] sm:$0xf] %vm3446_vm2, %v3359_v29  ;;  %v3751_v29 = vor.u32 %v3750_v30, %v3747_v38  ;;  %v3874_v38 = vshll.u32 %v3691_v28, 16  ;;  %v3878_v30 = vshrl.u32 %v3691_v28, 16 }
 0x244   : > { %v3357_v13 = vpop.permute.xlu1 %3356 }
 0x245   : > { %3450 = vst.msk [vmem:[#allocation3 + $0xc] sm:$0xf] %vm3446_vm2, %v3357_v13  ;;  %v3510_v13 = vld [vmem:[#allocation2 + $0x1a4] sm:$0xf] }
 0x247   : > { %3579 = vrot.lane.b32.xlu0 %v3497_v61, %s9365_s30  ;;  %v3778_v61 = vshll.u32 %v3679_v18, 16 }
 0x248   : > { %3559 = vrot.lane.b32.xlu2 %v3487_v2, %s9365_s30  ;;  %v3776_v2 = vrot.slane %v3775_v56, 4 }
 0x249   : > { %v3367_v36 = vpop.permute.xlu0 %3366 }
 0x24a   : > { %3455 = vst.msk [vmem:[#allocation3 + $0x20] sm:$0xf] %vm3446_vm2, %v3367_v36  ;;  %v3365_v10 = vpop.permute.xlu2 %3364  ;;  %3575 = vrot.lane.b32.xlu1 %v3495_v17, %s9365_s30  ;;  %v3782_v17 = vshrl.u32 %v3679_v18, 16  ;;  %v10890_v36 = vrot.slane %v3802_v8, 5  ;;  %v3826_v8 = vshll.u32 %v10906_v22, 16 }
 0x24b   : > { %3454 = vst.msk [vmem:[#allocation3 + $0x1c] sm:$0xf] %vm3446_vm2, %v3365_v10  ;;  %v3808_v10 = vrot.slane %v3806_v52, 4  ;;  %v3850_v52 = vshll.u32 %v3688_v34, 16 }
 0x24c   : > { %v3363_v62 = vpop.permute.xlu1 %3362 }
 0x24d   : > { %3453 = vst.msk [vmem:[#allocation3 + $0x18] sm:$0xf] %vm3446_vm2, %v3363_v62  ;;  %v3809_v14 = vor.u32 %v3808_v10, %v10890_v36  ;;  %v3681_v10 = vld [vmem:[#allocation2 + $0x80] sm:$0xf] }
 0x24f   : > { %3585 = vrot.lane.b32.xlu0 %v3500_v49, %s9365_s30  ;;  %v3687_v49 = vld [vmem:[#allocation2 + $0xb0] sm:$0xf]  ;;  %v3810_v43 = vrot.slane %v3809_v14, 4 }
 0x250   : > { %3565 = vrot.lane.b32.xlu2 %v3490_v15, %s9365_s30  ;;  %v10892_v15 = vrot.slane %v3754_v35, 5  ;;  %v3854_v35 = vshrl.u32 %v3688_v34, 16  ;;  %v3697_v34 = vld [vmem:[#allocation2 + $0xfc] sm:$0xf] }
 0x251   : > { %v3373_v39 = vpop.permute.xlu0 %3372 }
 0x252   : > { %3458 = vst.msk [vmem:[#allocation3 + $0x2c] sm:$0xf] %vm3446_vm2, %v3373_v39  ;;  %v3371_v23 = vpop.permute.xlu2 %3370  ;;  %3581 = vrot.lane.b32.xlu1 %v3498_v0, %s9365_s30  ;;  %v3683_v0 = vld [vmem:[#allocation2 + $0x88] sm:$0x1] }
 0x253   : > { %3457 = vst.msk [vmem:[#allocation3 + $0x28] sm:$0xf] %vm3446_vm2, %v3371_v23  ;;  %v3752_v23 = vrot.slane %v3751_v29, 4  ;;  %v3812_v53 = vshll.u32 %v3683_v0, 16  ;;  %v3852_v0 = vrot.slane %v3850_v52, 5  ;;  %v3922_v52 = vshll.u32 %v3697_v34, 16 }
 0x254   : > { %v3369_v58 = vpop.permute.xlu1 %3368 }
 0x255   : > { %3456 = vst.msk [vmem:[#allocation3 + $0x24] sm:$0xf] %vm3446_vm2, %v3369_v58  ;;  %v3672_v58 = vld [vmem:[#allocation2 + $0x38] sm:$0xf]  ;;  %v3814_v57 = vrot.slane %v3812_v53, 5 }
 0x256   : > { %v3724_v32 = vshll.u32 %v3672_v58, 16  ;;  %v3693_v53 = vld [vmem:[#allocation2 + $0xe0] sm:$0xf] }
 0x257   : > { %3591 = vrot.lane.b32.xlu0 %v3503_v19, %s9365_s30  ;;  %v3780_v19 = vrot.slane %v3778_v61, 5 }
 0x258   : > { %3571 = vrot.lane.b32.xlu2 %v3493_v51, %s9365_s30  ;;  %v3684_v51 = vld [vmem:[#allocation2 + $0x98] sm:$0xf] }
 0x259   : > { %v3379_v5 = vpop.permute.xlu0 %3378  ;;  %v3781_v6 = vsel %vm9560_vm10, %v3776_v2, %v3780_v19  ;;  %v3820_v27 = vshll.u32 %v3684_v51, 16  ;;  %v10920_v2 = vrot.slane %v3874_v38, 5 }
 0x25a   : > { %3461 = vst.msk [vmem:[#allocation3 + $0x38] sm:$0xf] %vm3446_vm2, %v3379_v5  ;;  %v3377_v16 = vpop.permute.xlu2 %3376  ;;  %3587 = vrot.lane.b32.xlu1 %v3501_v46, %s9365_s30  ;;  %v3841_v46 = vshrl.u32 %v3687_v49, 16  ;;  %v3844_v5 = vshll.u32 %v3687_v49, 16 }
 0x25b   : > { %3460 = vst.msk [vmem:[#allocation3 + $0x34] sm:$0xf] %vm3446_vm2, %v3377_v16  ;;  %v3680_v16 = vld [vmem:[#allocation2 + $0x70] sm:$0x1]  ;;  %v3822_v21 = vrot.slane %v3820_v27, 5 }
 0x25c   : > { %v3375_v31 = vpop.permute.xlu1 %3374  ;;  %v3788_v55 = vshll.u32 %v3680_v16, 16  ;;  %v3846_v45 = vrot.slane %v3844_v5, 5 }
 0x25d   : > { %3459 = vst.msk [vmem:[#allocation3 + $0x30] sm:$0xf] %vm3446_vm2, %v3375_v31 }
 0x25e   : > { %v3790_v12 = vrot.slane %v3788_v55, 5 }
 0x25f   : > { %3597 = vrot.lane.b32.xlu0 %v3506_v48, %s9365_s30  ;;  %v3784_v48 = vrot.slane %v3782_v17, 4  ;;  %v3880_v17 = vrot.slane %v3878_v30, 4  ;;  %v10945_v30 = vld [vmem:[#allocation2 + $0xe4] sm:$0xf] }
 0x260   : > { %3577 = vrot.lane.b32.xlu2 %v3496_v40, %s9365_s30  ;;  %v3505_v40 = vld [vmem:[#allocation2 + $0x170] sm:$0xf] }
 0x261   : > { %v3385_v1 = vpop.permute.xlu0 %3384  ;;  %v3785_v25 = vor.u32 %v3784_v48, %v3780_v19  ;;  %v3793_v48 = vshrl.u32 %v3681_v10, 16  ;;  %v3881_v14 = vor.u32 %v3880_v17, %v10920_v2  ;;  %v3898_v17 = vshll.u32 %v10945_v30, 16 }
 0x262   : > { %3464 = vst.msk [vmem:[#allocation3 + $0x44] sm:$0xf] %vm3446_vm2, %v3385_v1  ;;  %v3383_v54 = vpop.permute.xlu2 %3382  ;;  %3593 = vrot.lane.b32.xlu1 %v3504_v42, %s9365_s30  ;;  %v3721_v42 = vshrl.u32 %v3672_v58, 16  ;;  %v3817_v1 = vshrl.u32 %v3684_v51, 16  ;;  %v3856_v51 = vrot.slane %v3854_v35, 4 }
 0x263   : > { %3463 = vst.msk [vmem:[#allocation3 + $0x40] sm:$0xf] %vm3446_vm2, %v3383_v54  ;;  %v3843_v54 = vrot.slane %v3841_v46, 4  ;;  %v3786_v3 = vrot.slane %v3785_v25, 4  ;;  %v3677_v46 = vld [vmem:[#allocation2 + $0x58] sm:$0x1] }
 0x264   : > { %v3381_v33 = vpop.permute.xlu1 %3380  ;;  %v3819_v7 = vrot.slane %v3817_v1, 4  ;;  %v3764_v55 = vshll.u32 %v3677_v46, 16  ;;  %v3686_v46 = vld [vmem:[#allocation2 + $0xa0] sm:$0x1] }
 0x265   : > { %3462 = vst.msk [vmem:[#allocation3 + $0x3c] sm:$0xf] %vm3446_vm2, %v3381_v33  ;;  %v3723_v33 = vrot.slane %v3721_v42, 4  ;;  %v3791_v61 = vsel %vm9560_vm10, %v3786_v3, %v3790_v12 }
 0x267   : > { %3603 = vrot.lane.b32.xlu0 %v3509_v44, %s9365_s30  ;;  %v3757_v44 = vsel %vm9560_vm10, %v3752_v23, %v10892_v15  ;;  %v3696_v23 = vld [vmem:[#allocation2 + $0xf8] sm:$0xf] }
 0x268   : > { %3583 = vrot.lane.b32.xlu2 %v3499_v59, %s9365_s30  ;;  %v3726_v59 = vrot.slane %v3724_v32, 5  ;;  %v3916_v42 = vshll.u32 %v3696_v23, 16 }
 0x269   : > { %v3391_v26 = vpop.permute.xlu0 %3390 }
 0x26a   : > { %3467 = vst.msk [vmem:[#allocation3 + $0x50] sm:$0xf] %vm3446_vm2, %v3391_v26  ;;  %v3389_v24 = vpop.permute.xlu2 %3388  ;;  %3599 = vrot.lane.b32.xlu1 %v3507_v60, %s9365_s30  ;;  %v3847_v26 = vor.u32 %v3846_v45, %v3843_v54  ;;  %v3727_v56 = vor.u32 %v3726_v59, %v3723_v33  ;;  %v3857_v45 = vor.u32 %v3856_v51, %v3852_v0  ;;  %v3918_v59 = vrot.slane %v3916_v42, 5 }
 0x26b   : > { %3466 = vst.msk [vmem:[#allocation3 + $0x4c] sm:$0xf] %vm3446_vm2, %v3389_v24  ;;  %v3815_v24 = vsel %vm9560_vm10, %v3810_v43, %v3814_v57  ;;  %v3889_v43 = vshrl.u32 %v3693_v53, 16  ;;  %v3892_v57 = vshll.u32 %v3693_v53, 16 }
 0x26c   : > { %v3387_v11 = vpop.permute.xlu1 %3386  ;;  %v3848_v29 = vrot.slane %v3847_v26, 4  ;;  %v3858_v12 = vrot.slane %v3857_v45, 4 }
 0x26d   : > { %3465 = vst.msk [vmem:[#allocation3 + $0x48] sm:$0xf] %vm3446_vm2, %v3387_v11  ;;  %v3758_v11 = vshrl.u32 %v10880_v50, 16  ;;  %v10922_v50 = vrot.slane %v3826_v8, 5  ;;  %v3891_v3 = vrot.slane %v3889_v43, 4 }
 0x26e   : > { %v3853_v5 = vsel %vm9560_vm10, %v3848_v29, %v3852_v0 }
 0x26f   : > { %4106 = vrot.lane.b32.xlu0 %v3743_v47, %s9366_s6  ;;  %v3508_v47 = vld [vmem:[#allocation2 + $0x18c] sm:$0xf] }
 0x270   : > { %3589 = vrot.lane.b32.xlu2 %v3502_v41, %s9365_s30  ;;  %v3823_v41 = vor.u32 %v3822_v21, %v3819_v7  ;;  %v3766_v7 = vrot.slane %v3764_v55, 5 }
 0x271   : > { %v3397_v62 = vpop.permute.xlu0 %3396 }
 0x272   : > { %3470 = vst.msk [vmem:[#allocation3 + $0x5c] sm:$0xf] %vm3446_vm2, %v3397_v62  ;;  %v3395_v39 = vpop.permute.xlu2 %3394  ;;  %3605 = vrot.lane.b32.xlu1 %v3510_v13, %s9365_s30  ;;  %v3692_v13 = vld [vmem:[#allocation2 + $0xd0] sm:$0x1]  ;;  %v3728_v62 = vrot.slane %v3727_v56, 4  ;;  %v3824_v58 = vrot.slane %v3823_v41, 4 }
 0x273   : > { %3469 = vst.msk [vmem:[#allocation3 + $0x58] sm:$0xf] %vm3446_vm2, %v3395_v39  ;;  %v3760_v39 = vrot.slane %v3758_v11, 4  ;;  %v3884_v16 = vshll.u32 %v3692_v13, 16  ;;  %v3830_v11 = vshrl.u32 %v10906_v22, 16 }
 0x274   : > { %v3393_v31 = vpop.permute.xlu1 %3392  ;;  %v3733_v1 = vsel %vm9560_vm10, %v3728_v62, %v10870_v20  ;;  %v3829_v54 = vsel %vm9560_vm10, %v3824_v58, %v10922_v50  ;;  %v3882_v20 = vrot.slane %v3881_v14, 4  ;;  %v3700_v41 = vld [vmem:[#allocation2 + $0x114] sm:$0xf]  ;;  %v3701_v58 = vld [vmem:[#allocation2 + $0x118] sm:$0x1] }
 0x275   : > { %3468 = vst.msk [vmem:[#allocation3 + $0x54] sm:$0xf] %vm3446_vm2, %v3393_v31  ;;  %v3796_v31 = vshll.u32 %v3681_v10, 16  ;;  %v3761_v27 = vor.u32 %v3760_v39, %v10892_v15  ;;  %v3886_v25 = vrot.slane %v3884_v16, 5  ;;  %v3946_v35 = vshll.u32 %v3700_v41, 16 }
 0x276   : > { %v3950_v29 = vshrl.u32 %v3700_v41, 16  ;;  %v3926_v10 = vshrl.u32 %v3697_v34, 16  ;;  %v10961_v16 = vrot.slane %v3898_v17, 5 }
 0x277   : > { %4112 = vrot.lane.b32.xlu0 %v3781_v6, %s9366_s6  ;;  %v3689_v6 = vld [vmem:[#allocation2 + $0xb8] sm:$0x1]  ;;  %v3798_v15 = vrot.slane %v3796_v31, 5  ;;  %v3887_v38 = vsel %vm9560_vm10, %v3882_v20, %v3886_v25  ;;  %v10956_v0 = vrot.slane %v3946_v35, 5  ;;  %v3695_v35 = vld [vmem:[#allocation2 + $0xe8] sm:$0x1] }
 0x278   : > { %3595 = vrot.lane.b32.xlu2 %v3505_v40, %s9365_s30  ;;  %v3913_v40 = vshrl.u32 %v3696_v23, 16  ;;  %v3952_v22 = vrot.slane %v3950_v29, 4  ;;  %v3924_v23 = vrot.slane %v3922_v52, 5 }
 0x279   : > { %v3403_v63 = vpop.permute.xlu0 %3402 }
 0x27a   : > { %3473 = vst.msk [vmem:[#allocation3 + $0x68] sm:$0xf] %vm3446_vm2, %v3403_v63  ;;  %v3401_v60 = vpop.permute.xlu2 %3400  ;;  %4108 = vrot.lane.b32.xlu1 %v3757_v44, %s9366_s6  ;;  %v3860_v44 = vshll.u32 %v3689_v6, 16  ;;  %v3795_v63 = vrot.slane %v3793_v48, 4  ;;  %v3915_v33 = vrot.slane %v3913_v40, 4  ;;  %v3928_v48 = vrot.slane %v3926_v10, 4 }
 0x27b   : > { %3472 = vst.msk [vmem:[#allocation3 + $0x64] sm:$0xf] %vm3446_vm2, %v3401_v60  ;;  %v3762_v60 = vrot.slane %v3761_v27, 4  ;;  %v3953_v31 = vor.u32 %v3952_v22, %v10956_v0  ;;  %v3956_v40 = vshll.u32 %v3701_v58, 16  ;;  %v3836_v27 = vshll.u32 %v3686_v46, 16 }
 0x27c   : > { %v3399_v18 = vpop.permute.xlu1 %3398  ;;  %v3862_v26 = vrot.slane %v3860_v44, 5  ;;  %v3699_v22 = vld [vmem:[#allocation2 + $0x110] sm:$0xf] }
 0x27d   : > { %3471 = vst.msk [vmem:[#allocation3 + $0x60] sm:$0xf] %vm3446_vm2, %v3399_v18  ;;  %v3799_v18 = vor.u32 %v3798_v15, %v3795_v63  ;;  %v3767_v8 = vsel %vm9560_vm10, %v3762_v60, %v3766_v7  ;;  %v3954_v25 = vrot.slane %v3953_v31, 4  ;;  %v3958_v43 = vrot.slane %v3956_v40, 5  ;;  %v3706_v31 = vld [vmem:[#allocation2 + $0x144] sm:$0xf] }
 0x27f   : > { %4118 = vrot.lane.b32.xlu0 %v3815_v24, %s9366_s6  ;;  %v3894_v24 = vrot.slane %v3892_v57, 5  ;;  %v3959_v60 = vsel %vm9560_vm10, %v3954_v25, %v3958_v43 }
 0x280   : > { %3601 = vrot.lane.b32.xlu2 %v3508_v47, %s9365_s30  ;;  %v3919_v47 = vor.u32 %v3918_v59, %v3915_v33 }
 0x281   : > { %v3409_v49 = vpop.permute.xlu0 %3408  ;;  %v3895_v13 = vor.u32 %v3894_v24, %v3891_v3  ;;  %v10985_v3 = vld [vmem:[#allocation2 + $0x12c] sm:$0xf] }
 0x282   : > { %3476 = vst.msk [vmem:[#allocation3 + $0x74] sm:$0xf] %vm3446_vm2, %v3409_v49  ;;  %v3407_v19 = vpop.permute.xlu2 %3406  ;;  %4114 = vrot.lane.b32.xlu1 %v3791_v61, %s9366_s6  ;;  %v3863_v61 = vsel %vm9560_vm10, %v3858_v12, %v3862_v26  ;;  %v3800_v49 = vrot.slane %v3799_v18, 4  ;;  %v3920_v62 = vrot.slane %v3919_v47, 4  ;;  %v3902_v12 = vshrl.u32 %v10945_v30, 16 }
 0x283   : > { %3475 = vst.msk [vmem:[#allocation3 + $0x70] sm:$0xf] %vm3446_vm2, %v3407_v19  ;;  %v3832_v19 = vrot.slane %v3830_v11, 4  ;;  %v3896_v6 = vrot.slane %v3895_v13, 4  ;;  %v3702_v26 = vld [vmem:[#allocation2 + $0x128] sm:$0xf] }
 0x284   : > { %v3405_v32 = vpop.permute.xlu1 %3404  ;;  %v3805_v14 = vsel %vm9560_vm10, %v3800_v49, %v10890_v36  ;;  %v3925_v53 = vsel %vm9560_vm10, %v3920_v62, %v3924_v23  ;;  %v3929_v36 = vor.u32 %v3928_v48, %v3924_v23  ;;  %v3961_v24 = vshrl.u32 %v3702_v26, 16 }
 0x285   : > { %3474 = vst.msk [vmem:[#allocation3 + $0x6c] sm:$0xf] %vm3446_vm2, %v3405_v32  ;;  %v3698_v32 = vld [vmem:[#allocation2 + $0x100] sm:$0x1]  ;;  %v3901_v45 = vsel %vm9560_vm10, %v3896_v6, %v10961_v16  ;;  %v3904_v11 = vrot.slane %v3902_v12, 4  ;;  %v3908_v62 = vshll.u32 %v3695_v35, 16 }
 0x286   : > { %v3932_v44 = vshll.u32 %v3698_v32, 16  ;;  %v3930_v59 = vrot.slane %v3929_v36, 4  ;;  %v3963_v47 = vrot.slane %v3961_v24, 4  ;;  %v3940_v23 = vshll.u32 %v3699_v22, 16  ;;  %v4269_v35 = vld [vmem:[%s12476_s1 + $0x10] sm:$0x3] }
 0x287   : > { %4124 = vrot.lane.b32.xlu0 %v3853_v5, %s9366_s6  ;;  %v3690_v5 = vld [vmem:[#allocation2 + $0xc8] sm:$0xf]  ;;  %v3905_v49 = vor.u32 %v3904_v11, %v10961_v16  ;;  %v3910_v46 = vrot.slane %v3908_v62, 5  ;;  %v3994_v32 = vshll.u32 %v3706_v31, 16 }
 0x288   : > { %4104 = vrot.lane.b32.xlu2 %v3733_v1, %s9366_s6  ;;  %v3833_v1 = vor.u32 %v3832_v19, %v10922_v50  ;;  %v3865_v55 = vshrl.u32 %v3690_v5, 16  ;;  %v3838_v50 = vrot.slane %v3836_v27, 5  ;;  %v3942_v6 = vrot.slane %v3940_v23, 5 }
 0x289   : > { %v3544_v28 = vpop.permute.xlu0 %3543  ;;  %v3998_v27 = vshrl.u32 %v3706_v31, 16 }
 0x28a   : > { %3640 = vst.msk [vmem:[#allocation3] sm:$0xf] %vm3639_vm4, %v3544_v28  ;;  %v3413_v21 = vpop.permute.xlu2 %3412  ;;  %4120 = vrot.lane.b32.xlu1 %v3829_v54, %s9366_s6  ;;  %v3868_v54 = vshll.u32 %v3690_v5, 16  ;;  %v3834_v63 = vrot.slane %v3833_v1, 4  ;;  %v3867_v20 = vrot.slane %v3865_v55, 4  ;;  %v3934_v28 = vrot.slane %v3932_v44, 5 }
 0x28b   : > { %3478 = vst.msk [vmem:[#allocation3 + $0x7c] sm:$0xf] %vm3446_vm2, %v3413_v21  ;;  %v3707_v1 = vld [vmem:[#allocation2 + $0x148] sm:$0x1]  ;;  %v4000_v43 = vrot.slane %v3998_v27, 4 }
 0x28c   : > { %v3411_v56 = vpop.permute.xlu1 %3410  ;;  %v3870_v15 = vrot.slane %v3868_v54, 5  ;;  %v3839_v21 = vsel %vm9560_vm10, %v3834_v63, %v3838_v50  ;;  %v3935_v18 = vsel %vm9560_vm10, %v3930_v59, %v3934_v28  ;;  %v4004_v36 = vshll.u32 %v3707_v1, 16 }
 0x28d   : > { %3477 = vst.msk [vmem:[#allocation3 + $0x78] sm:$0xf] %vm3446_vm2, %v3411_v56 }
 0x28e   : > { %v3871_v34 = vor.u32 %v3870_v15, %v3867_v20  ;;  %v4006_v20 = vrot.slane %v4004_v36, 5  ;;  %v3708_v36 = vld [vmem:[#allocation2 + $0x158] sm:$0xf] }
 0x28f   : > { %4130 = vrot.lane.b32.xlu0 %v3887_v38, %s9366_s6  ;;  %v3964_v38 = vshll.u32 %v3702_v26, 16 }
 0x290   : > { %4110 = vrot.lane.b32.xlu2 %v3767_v8, %s9366_s6  ;;  %v3970_v8 = vshll.u32 %v10985_v3, 16  ;;  %v3872_v30 = vrot.slane %v3871_v34, 4 }
 0x291   : > { %v3550_v39 = vpop.permute.xlu0 %3549  ;;  %v3966_v56 = vrot.slane %v3964_v38, 5 }
 0x292   : > { %3643 = vst.msk [vmem:[#allocation3 + $0xc] sm:$0xf] %vm3639_vm4, %v3550_v39  ;;  %v3548_v51 = vpop.permute.xlu2 %3547  ;;  %4126 = vrot.lane.b32.xlu1 %v3863_v61, %s9366_s6  ;;  %v10995_v13 = vrot.slane %v3970_v8, 5  ;;  %v3877_v10 = vsel %vm9560_vm10, %v3872_v30, %v10920_v2  ;;  %v3937_v39 = vshrl.u32 %v3699_v22, 16 }
 0x293   : > { %3642 = vst.msk [vmem:[#allocation3 + $0x8] sm:$0xf] %vm3639_vm4, %v3548_v51  ;;  %v3967_v29 = vor.u32 %v3966_v56, %v3963_v47  ;;  %v3906_v51 = vrot.slane %v3905_v49, 4  ;;  %v3709_v56 = vld [vmem:[#allocation2 + $0x15c] sm:$0xf] }
 0x294   : > { %v3546_v42 = vpop.permute.xlu1 %3545  ;;  %v3939_v5 = vrot.slane %v3937_v39, 4  ;;  %v4018_v30 = vshll.u32 %v3709_v56, 16  ;;  %v4022_v11 = vshrl.u32 %v3709_v56, 16 }
 0x295   : > { %3641 = vst.msk [vmem:[#allocation3 + $0x4] sm:$0xf] %vm3639_vm4, %v3546_v42  ;;  %v3968_v61 = vrot.slane %v3967_v29, 4  ;;  %v3911_v48 = vsel %vm9560_vm10, %v3906_v51, %v3910_v46 }
 0x296   : > { %v11037_v29 = vrot.slane %v4018_v30, 5  ;;  %v3716_v30 = vld [vmem:[#allocation2 + $0x190] sm:$0x1] }
 0x297   : > { %4136 = vrot.lane.b32.xlu0 %v3925_v53, %s9366_s6  ;;  %v3973_v19 = vsel %vm9560_vm10, %v3968_v61, %v10995_v13  ;;  %v3705_v53 = vld [vmem:[#allocation2 + $0x140] sm:$0xf]  ;;  %v4024_v61 = vrot.slane %v4022_v11, 4 }
 0x298   : > { %4116 = vrot.lane.b32.xlu2 %v3805_v14, %s9366_s6  ;;  %v3943_v14 = vor.u32 %v3942_v6, %v3939_v5  ;;  %v3985_v40 = vshrl.u32 %v3705_v53, 16  ;;  %v3988_v42 = vshll.u32 %v3705_v53, 16  ;;  %v9305_v5 = vld [vmem:[%s12476_s1 + $0x8] sm:$0xff] }
 0x299   : > { %v3556_v57 = vpop.permute.xlu0 %3555  ;;  %v4025_v49 = vor.u32 %v4024_v61, %v11037_v29 }
 0x29a   : > { %3646 = vst.msk [vmem:[#allocation3 + $0x18] sm:$0xf] %vm3639_vm4, %v3556_v57  ;;  %v3554_v33 = vpop.permute.xlu2 %3553  ;;  %4132 = vrot.lane.b32.xlu1 %v3901_v45, %s9366_s6  ;;  %v3987_v55 = vrot.slane %v3985_v40, 4  ;;  %v3990_v54 = vrot.slane %v3988_v42, 5  ;;  %v3996_v45 = vrot.slane %v3994_v32, 5  ;;  %v3944_v25 = vrot.slane %v3943_v14, 4 }
 0x29b   : > { %3645 = vst.msk [vmem:[#allocation3 + $0x14] sm:$0xf] %vm3639_vm4, %v3554_v33  ;;  %v4026_v39 = vrot.slane %v4025_v49, 4 }
 0x29c   : > { %v3552_v7 = vpop.permute.xlu1 %3551  ;;  %v3991_v63 = vor.u32 %v3990_v54, %v3987_v55  ;;  %v4001_v50 = vor.u32 %v4000_v43, %v3996_v45  ;;  %v3949_v59 = vsel %vm9560_vm10, %v3944_v25, %v10956_v0  ;;  %v4009_v25 = vshrl.u32 %v3708_v36, 16 }
 0x29d   : > { %3644 = vst.msk [vmem:[#allocation3 + $0x10] sm:$0xf] %vm3639_vm4, %v3552_v7  ;;  %v3704_v7 = vld [vmem:[#allocation2 + $0x130] sm:$0x1]  ;;  %v4012_v43 = vshll.u32 %v3708_v36, 16 }
 0x29e   : > { %v3992_v15 = vrot.slane %v3991_v63, 4  ;;  %v4002_v28 = vrot.slane %v4001_v50, 4  ;;  %v3980_v12 = vshll.u32 %v3704_v7, 16  ;;  %v4673_v63 = vld [vmem:[#allocation2 + $0xc] sm:$0xf]  ;;  %v4011_v50 = vrot.slane %v4009_v25, 4 }
 0x29f   : > { %4142 = vrot.lane.b32.xlu0 %v3959_v60, %s9366_s6  ;;  %v4671_v7 = vld [vmem:[#allocation2 + $0x4] sm:$0x8] }
 0x2a0   : > { %4122 = vrot.lane.b32.xlu2 %v3839_v21, %s9366_s6  ;;  %v3997_v60 = vsel %vm9560_vm10, %v3992_v15, %v3996_v45  ;;  %v3974_v21 = vshrl.u32 %v10985_v3, 16  ;;  %v4007_v34 = vsel %vm9560_vm10, %v4002_v28, %v4006_v20  ;;  %v4014_v20 = vrot.slane %v4012_v43, 5 }
 0x2a1   : > { %v3562_v52 = vpop.permute.xlu0 %3561 }
 0x2a2   : > { %3649 = vst.msk [vmem:[#allocation3 + $0x24] sm:$0xf] %vm3639_vm4, %v3562_v52  ;;  %v3560_v41 = vpop.permute.xlu2 %3559  ;;  %4138 = vrot.lane.b32.xlu1 %v3935_v18, %s9366_s6  ;;  %v3976_v0 = vrot.slane %v3974_v21, 4  ;;  %v3982_v18 = vrot.slane %v3980_v12, 5  ;;  %v3710_v52 = vld [vmem:[#allocation2 + $0x160] sm:$0x1]  ;;  %v4015_v28 = vor.u32 %v4014_v20, %v4011_v50 }
 0x2a3   : > { %3648 = vst.msk [vmem:[#allocation3 + $0x20] sm:$0xf] %vm3639_vm4, %v3560_v41  ;;  %v4028_v41 = vshll.u32 %v3710_v52, 16 }
 0x2a4   : > { %v3558_v17 = vpop.permute.xlu1 %3557  ;;  %v3977_v38 = vor.u32 %v3976_v0, %v10995_v13  ;;  %v4363_v13 = vunpack.c.l.b16 %v4269_v35  ;;  %v4016_v21 = vrot.slane %v4015_v28, 4  ;;  %v4737_v0 = vshll.u32 %v4673_v63, 16 }
 0x2a5   : > { %3647 = vst.msk [vmem:[#allocation3 + $0x1c] sm:$0xf] %vm3639_vm4, %v3558_v17  ;;  %v4030_v62 = vrot.slane %v4028_v41, 5 }
 0x2a6   : > { %v3978_v3 = vrot.slane %v3977_v38, 4  ;;  %v4366_v22 = vpack.c.b16 %v4363_v13, %v4363_v13  ;;  %v4021_v38 = vsel %vm9560_vm10, %v4016_v21, %v11037_v29  ;;  %v4076_v13 = vshll.u32 %v3716_v30, 16 }
 0x2a7   : > { %4148 = vrot.lane.b32.xlu0 %v3997_v60, %s9366_s6  ;;  %v4734_v60 = vshrl.u32 %v4673_v63, 16 }
 0x2a8   : > { %4128 = vrot.lane.b32.xlu2 %v3877_v10, %s9366_s6  ;;  %v3983_v8 = vsel %vm9560_vm10, %v3978_v3, %v3982_v18  ;;  %v4420_v23 = vsel %vm4418_vm5, %v4366_v22, 0 }
 0x2a9   : > { %v3568_v58 = vpop.permute.xlu0 %3567  ;;  %4427 = vmatpush.bf16.msra.mxu0 %v4420_v23  ;;  %9324 = vmatpush.bf16.msra.mxu2 %v4420_v23  ;;  %v4736_v56 = vrot.slane %v4734_v60, 7  ;;  %v4078_v23 = vrot.slane %v4076_v13, 5 }
 0x2aa   : > { %3652 = vst.msk [vmem:[#allocation3 + $0x30] sm:$0xf] %vm3639_vm4, %v3568_v58  ;;  %v3566_v2 = vpop.permute.xlu2 %3565  ;;  %4144 = vrot.lane.b32.xlu1 %v3973_v19, %s9366_s6  ;;  %v4031_v58 = vsel %vm9560_vm10, %v4026_v39, %v4030_v62 }
 0x2ab   : > { %3651 = vst.msk [vmem:[#allocation3 + $0x2c] sm:$0xf] %vm3639_vm4, %v3566_v2  ;;  %v9304_v2 = vld [vmem:[%s12476_s1] sm:$0xff]  ;;  %v4739_v22 = vor.u32 %v4737_v0, %v4736_v56 }
 0x2ac   : > { %v3564_v16 = vpop.permute.xlu1 %3563 }
 0x2ad   : > { %3650 = vst.msk [vmem:[#allocation3 + $0x28] sm:$0xf] %vm3639_vm4, %v3564_v16  ;;  %4428 = vmatpush.bf16.msra.mxu0 %v9305_v5  ;;  %v3711_v16 = vld [vmem:[#allocation2 + $0x170] sm:$0xf]  ;;  %9325 = vmatpush.bf16.msra.mxu2 %v9305_v5 }
 0x2ae   : > { %v4033_v14 = vshrl.u32 %v3711_v16, 16  ;;  %v4036_v53 = vshll.u32 %v3711_v16, 16 }
 0x2af   : > { %4154 = vrot.lane.b32.xlu0 %v4031_v58, %s9366_s6 }
 0x2b0   : > { %4134 = vrot.lane.b32.xlu2 %v3911_v48, %s9366_s6  ;;  %v11056_v48 = vld [vmem:[#allocation2 + $0x174] sm:$0xf]  ;;  %v4035_v40 = vrot.slane %v4033_v14, 4  ;;  %v4038_v32 = vrot.slane %v4036_v53, 5 }
 0x2b1   : > { %v3574_v44 = vpop.permute.xlu0 %3573  ;;  %v4042_v31 = vshll.u32 %v11056_v48, 16  ;;  %4429 = vmatpush.bf16.msra.mxu0 %v9304_v2  ;;  %9326 = vmatpush.bf16.msra.mxu2 %v9304_v2  ;;  %v3713_v2 = vld [vmem:[#allocation2 + $0x178] sm:$0x1]  ;;  %v4046_v16 = vshrl.u32 %v11056_v48, 16 }
 0x2b2   : > { %3655 = vst.msk [vmem:[#allocation3 + $0x3c] sm:$0xf] %vm3639_vm4, %v3574_v44  ;;  %v3572_v57 = vpop.permute.xlu2 %3571  ;;  %4150 = vrot.lane.b32.xlu1 %v4007_v34, %s9366_s6  ;;  %v4039_v27 = vor.u32 %v4038_v32, %v4035_v40  ;;  %v4672_v44 = vld [vmem:[#allocation2 + $0x8] sm:$0xf] }
 0x2b3   : > { %3654 = vst.msk [vmem:[#allocation3 + $0x38] sm:$0xf] %vm3639_vm4, %v3572_v57  ;;  %v11061_v55 = vrot.slane %v4042_v31, 5  ;;  %v4728_v52 = vshll.u32 %v4672_v44, 16  ;;  %v4052_v31 = vshll.u32 %v3713_v2, 16 }
 0x2b4   : > { %v3570_v33 = vpop.permute.xlu1 %3569  ;;  %v4040_v45 = vrot.slane %v4039_v27, 4 }
 0x2b5   : > { %3653 = vst.msk [vmem:[#allocation3 + $0x34] sm:$0xf] %vm3639_vm4, %v3570_v33  ;;  %v4725_v33 = vshrl.u32 %v4672_v44, 16 }
 0x2b6   : > { %v4045_v57 = vsel %vm9560_vm10, %v4040_v45, %v11061_v55  ;;  %v4054_v45 = vrot.slane %v4052_v31, 5 }
 0x2b7   : > { %v4727_v12 = vrot.slane %v4725_v33, 7 }
 0x2b8   : > { %4140 = vrot.lane.b32.xlu2 %v3949_v59, %s9366_s6 }
 0x2b9   : > { %v3580_v26 = vpop.permute.xlu0 %3579  ;;  %v4732_v62 = vrot.slane %v4727_v12, 4  ;;  %v4730_v58 = vor.u32 %v4728_v52, %v4727_v12 }
 0x2ba   : > { %3658 = vst.msk [vmem:[#allocation3 + $0x48] sm:$0xf] %vm3639_vm4, %v3580_v26  ;;  %v3578_v24 = vpop.permute.xlu2 %3577  ;;  %4156 = vrot.lane.b32.xlu1 %v4045_v57, %s9366_s6  ;;  %v3714_v26 = vld [vmem:[#allocation2 + $0x188] sm:$0xf] }
 0x2bb   : > { %3657 = vst.msk [vmem:[#allocation3 + $0x44] sm:$0xf] %vm3639_vm4, %v3578_v24  ;;  %v3715_v24 = vld [vmem:[#allocation2 + $0x18c] sm:$0xf]  ;;  %v4057_v18 = vshrl.u32 %v3714_v26, 16  ;;  %v4060_v3 = vshll.u32 %v3714_v26, 16  ;;  %v4740_v14 = vsel %vm9589_vm11, %v4732_v62, %v4739_v22 }
 0x2bc   : > { %v3576_v47 = vpop.permute.xlu1 %3575  ;;  %v4070_v11 = vshrl.u32 %v3715_v24, 16  ;;  %v3718_v22 = vld [vmem:[#allocation2 + $0x1a4] sm:$0xf] }
 0x2bd   : > { %3656 = vst.msk [vmem:[#allocation3 + $0x40] sm:$0xf] %vm3639_vm4, %v3576_v47  ;;  %v4066_v47 = vshll.u32 %v3715_v24, 16  ;;  %v4059_v41 = vrot.slane %v4057_v18, 4  ;;  %v4062_v35 = vrot.slane %v4060_v3, 5 }
 0x2bf   : > { %v4068_v61 = vrot.slane %v4066_v47, 5  ;;  %v4063_v29 = vor.u32 %v4062_v35, %v4059_v41 }
 0x2c0   : > { %4146 = vrot.lane.b32.xlu2 %v3983_v8, %s9366_s6  ;;  %v4720_v8 = vshrl.u32 %v4671_v7, 16 }
 0x2c1   : > { %v3586_v17 = vpop.permute.xlu0 %3585 }
 0x2c2   : > { %3661 = vst.msk [vmem:[#allocation3 + $0x54] sm:$0xf] %vm3639_vm4, %v3586_v17  ;;  %v3584_v10 = vpop.permute.xlu2 %3583 }
 0x2c3   : > { %3660 = vst.msk [vmem:[#allocation3 + $0x50] sm:$0xf] %vm3639_vm4, %v3584_v10  ;;  %v4072_v10 = vrot.slane %v4070_v11, 4 }
 0x2c4   : > { %v3582_v19 = vpop.permute.xlu1 %3581 }
 0x2c5   : > { %3659 = vst.msk [vmem:[#allocation3 + $0x4c] sm:$0xf] %vm3639_vm4, %v3582_v19  ;;  %v4073_v39 = vor.u32 %v4072_v10, %v4068_v61  ;;  %v9148_v19 = vrot.slane %v4720_v8, 11  ;;  %v247_v10 = vld [vmem:[#allocation2 + $0x1a8] sm:$0x1] }
 0x2c6   : > { %v248_v62 = vsel %vm9487_vm3, 0, %v247_v10 }
 0x2c7   : > { %v4074_v5 = vrot.slane %v4073_v39, 4  ;;  %v4731_v40 = vsel %vm9589_vm11, %v9148_v19, %v4730_v58  ;;  %249 = vst [vmem:[#allocation2 + $0x1a8] sm:$0x1] %v248_v62  ;;  %v4090_v39 = vshll.u32 %v3718_v22, 16  ;;  %v4677_v62 = vld [vmem:[#allocation2 + $0x34] sm:$0x8] }
 0x2c8   : > { %4152 = vrot.lane.b32.xlu2 %v4021_v38, %s9366_s6 }
 0x2c9   : > { %v3592_v51 = vpop.permute.xlu0 %3591  ;;  %v4079_v53 = vsel %vm9560_vm10, %v4074_v5, %v4078_v23  ;;  %v4094_v23 = vshrl.u32 %v3718_v22, 16  ;;  %v4092_v19 = vrot.slane %v4090_v39, 5 }
 0x2ca   : > { %3664 = vst.msk [vmem:[#allocation3 + $0x60] sm:$0xf] %vm3639_vm4, %v3592_v51  ;;  %v3590_v46 = vpop.permute.xlu2 %3589  ;;  %v4064_v51 = vrot.slane %v4063_v29, 4  ;;  %4162 = vrot.lane.b32.xlu1 %v4079_v53, %s9366_s6 }
 0x2cb   : > { %3663 = vst.msk [vmem:[#allocation3 + $0x5c] sm:$0xf] %vm3639_vm4, %v3590_v46  ;;  %v4096_v58 = vrot.slane %v4094_v23, 4 }
 0x2cc   : > { %v3588_v6 = vpop.permute.xlu1 %3587 }
 0x2cd   : > { %3662 = vst.msk [vmem:[#allocation3 + $0x58] sm:$0xf] %vm3639_vm4, %v3588_v6  ;;  %v4069_v6 = vsel %vm9560_vm10, %v4064_v51, %v4068_v61 }
 0x2ce   : > { %4160 = vrot.lane.b32.xlu0 %v4069_v6, %s9366_s6  ;;  %v3719_v51 = vld [vmem:[#allocation2 + $0x1a8] sm:$0x1] }
 0x2cf   : > { %v4100_v5 = vshll.u32 %v3719_v51, 16 }
 0x2d1   : > { %v3598_v42 = vpop.permute.xlu0 %3597  ;;  %v4102_v2 = vrot.slane %v4100_v5, 5 }
 0x2d2   : > { %3667 = vst.msk [vmem:[#allocation3 + $0x6c] sm:$0xf] %vm3639_vm4, %v3598_v42  ;;  %v3596_v1 = vpop.permute.xlu2 %3595  ;;  %v4048_v42 = vrot.slane %v4046_v16, 4  ;;  %v3717_v16 = vld [vmem:[#allocation2 + $0x1a0] sm:$0xf] }
 0x2d3   : > { %3666 = vst.msk [vmem:[#allocation3 + $0x68] sm:$0xf] %vm3639_vm4, %v3596_v1  ;;  %v4084_v53 = vshll.u32 %v3717_v16, 16 }
 0x2d4   : > { %v3594_v54 = vpop.permute.xlu1 %3593 }
 0x2d5   : > { %3665 = vst.msk [vmem:[#allocation3 + $0x64] sm:$0xf] %vm3639_vm4, %v3594_v54  ;;  %v4049_v54 = vor.u32 %v4048_v42, %v11061_v55 }
 0x2d7   : > { %v4050_v44 = vrot.slane %v4049_v54, 4 }
 0x2d9   : > { %v3604_v15 = vpop.permute.xlu0 %3603  ;;  %v4055_v43 = vsel %vm9560_vm10, %v4050_v44, %v4054_v45  ;;  %v5136_v44 = vld [vmem:[#allocation2 + $0xc] sm:$0xf] }
 0x2da   : > { %3670 = vst.msk [vmem:[#allocation3 + $0x78] sm:$0xf] %vm3639_vm4, %v3604_v15  ;;  %v3602_v59 = vpop.permute.xlu2 %3601  ;;  %4158 = vrot.lane.b32.xlu2 %v4055_v43, %s9366_s6 }
 0x2db   : > { %3669 = vst.msk [vmem:[#allocation3 + $0x74] sm:$0xf] %vm3639_vm4, %v3602_v59 }
 0x2dc   : > { %v3600_v34 = vpop.permute.xlu1 %3599 }
 0x2dd   : > { %3668 = vst.msk [vmem:[#allocation3 + $0x70] sm:$0xf] %vm3639_vm4, %v3600_v34 }
 0x2e1   : > { %v4107_v17 = vpop.permute.xlu0 %4106 }
 0x2e2   : > { %4202 = vst.msk [vmem:[#allocation3 + $0x4] sm:$0xf] %vm4200_vm6, %v4107_v17  ;;  %v4105_v49 = vpop.permute.xlu2 %4104 }
 0x2e3   : > { %4201 = vst.msk [vmem:[#allocation3] sm:$0xf] %vm4200_vm6, %v4105_v49 }
 0x2e4   : > { %v3606_v46 = vpop.permute.xlu1 %3605 }
 0x2e5   : > { %3671 = vst.msk [vmem:[#allocation3 + $0x7c] sm:$0xf] %vm3639_vm4, %v3606_v46  ;;  %v4097_v46 = vor.u32 %v4096_v58, %v4092_v19  ;;  %v4764_v58 = vshrl.u32 %v4677_v62, 16 }
 0x2e7   : > { %v4098_v6 = vrot.slane %v4097_v46, 4 }
 0x2e9   : > { %v9288_v32 = vld [vmem:[#allocation3] sm:$0xf0]  ;;  %v4113_v1 = vpop.permute.xlu0 %4112  ;;  %v4103_v4 = vsel %vm9560_vm10, %v4098_v6, %v4102_v2 }
 0x2ea   : > { %5104 = vst.msk [vmem:[#allocation3 + $0x4] sm:$0xf] %vm232_vm0, %v4740_v14  ;;  %v9062_v48 = vld [vmem:[#allocation3] sm:$0xf]  ;;  %v4111_v27 = vpop.permute.xlu2 %4110  ;;  %v4081_v14 = vshrl.u32 %v3717_v16, 16  ;;  %4166 = vrot.lane.b32.xlu0 %v4103_v4, %s9366_s6  ;;  %v9150_v4 = vrot.slane %v4764_v58, 11 }
 0x2eb   : > { %5103 = vst.msk [vmem:[#allocation3] sm:$0xf] %vm232_vm0, %v4731_v40  ;;  %v9063_v36 = vor.u32 %v9288_v32, %v9062_v48  ;;  %v4086_v32 = vrot.slane %v4084_v53, 5 }
 0x2ec   : > { %4204 = vst.msk [vmem:[#allocation3 + $0xc] sm:$0xf] %vm4200_vm6, %v4111_v27  ;;  %v4109_v25 = vpop.permute.xlu1 %4108  ;;  %v4083_v42 = vrot.slane %v4081_v14, 4 }
 0x2ed   : > { %9132 = vmatmul.msk.bf16.vlgmr.msra.gmra.mxu0 %vm4369_vm7, %v9063_v36  ;;  %4205 = vst.msk [vmem:[#allocation3 + $0x10] sm:$0xf] %vm4200_vm6, %v4113_v1  ;;  %v5135_v1 = vld [vmem:[#allocation2 + $0x8] sm:$0xf] }
 0x2ee   : > { %4203 = vst.msk [vmem:[#allocation3 + $0x8] sm:$0xf] %vm4200_vm6, %v4109_v25  ;;  %5199 = vrot.lane.b32.xlu1 %v5135_v1, %s9359_s24  ;;  %v4087_v54 = vor.u32 %v4086_v32, %v4083_v42  ;;  %v11148_v25 = vld [vmem:[%s12477_s2] ss:$0 sm:$0xff] }
 0x2f0   : > { %v4088_v45 = vrot.slane %v4087_v54, 4 }
 0x2f1   : > { %v4119_v55 = vpop.permute.xlu0 %4118 }
 0x2f2   : > { %v4117_v57 = vpop.permute.xlu2 %4116  ;;  %4208 = vst.msk [vmem:[#allocation3 + $0x1c] sm:$0xf] %vm4200_vm6, %v4119_v55  ;;  %v4093_v36 = vsel %vm9560_vm10, %v4088_v45, %v4092_v19 }
 0x2f3   : > { %4207 = vst.msk [vmem:[#allocation3 + $0x18] sm:$0xf] %vm4200_vm6, %v4117_v57  ;;  %4164 = vrot.lane.b32.xlu2 %v4093_v36, %s9366_s6 }
 0x2f4   : > { %v4115_v63 = vpop.permute.xlu1 %4114 }
 0x2f5   : > { %4206 = vst.msk [vmem:[#allocation3 + $0x14] sm:$0xf] %vm4200_vm6, %v4115_v63  ;;  %v9289_v15 = vld [vmem:[#allocation3 + $0x8] sm:$0xff] }
 0x2f9   : > { %v4125_v50 = vpop.permute.xlu0 %4124 }
 0x2fa   : > { %v4123_v20 = vpop.permute.xlu2 %4122  ;;  %4211 = vst.msk [vmem:[#allocation3 + $0x28] sm:$0xf] %vm4200_vm6, %v4125_v50  ;;  %v9291_v18 = vld [vmem:[#allocation3 + $0x18] sm:$0xff] }
 0x2fb   : > { %4210 = vst.msk [vmem:[#allocation3 + $0x24] sm:$0xf] %vm4200_vm6, %v4123_v20  ;;  %5201 = vrot.lane.b32.xlu2 %v5136_v44, %s9359_s24 }
 0x2fc   : > { %v4121_v33 = vpop.permute.xlu1 %4120  ;;  %v9290_v34 = vld [vmem:[#allocation3 + $0x10] sm:$0xff] }
 0x2fd   : > { %9133 = vmatmul.msk.bf16.gmra.mxu0 %vm4369_vm7, %v9289_v15  ;;  %4209 = vst.msk [vmem:[#allocation3 + $0x20] sm:$0xf] %vm4200_vm6, %v4121_v33 }
 0x301   : > { %v4131_v59 = vpop.permute.xlu0 %4130 }
 0x302   : > { %v4129_v28 = vpop.permute.xlu2 %4128  ;;  %4214 = vst.msk [vmem:[#allocation3 + $0x34] sm:$0xf] %vm4200_vm6, %v4131_v59 }
 0x303   : > { %4213 = vst.msk [vmem:[#allocation3 + $0x30] sm:$0xf] %vm4200_vm6, %v4129_v28  ;;  %v4674_v28 = vld [vmem:[#allocation2 + $0x1c] sm:$0x8] }
 0x304   : > { %v4127_v60 = vpop.permute.xlu1 %4126  ;;  %v9292_v52 = vld [vmem:[#allocation3 + $0x20] sm:$0xff] }
 0x305   : > { %4212 = vst.msk [vmem:[#allocation3 + $0x2c] sm:$0xf] %vm4200_vm6, %v4127_v60 }
 0x309   : > { %v4137_v7 = vpop.permute.xlu0 %4136 }
 0x30a   : > { %v4135_v21 = vpop.permute.xlu2 %4134  ;;  %4217 = vst.msk [vmem:[#allocation3 + $0x40] sm:$0xf] %vm4200_vm6, %v4137_v7  ;;  %v9294_v49 = vld [vmem:[#allocation3 + $0x30] sm:$0xff] }
 0x30b   : > { %4216 = vst.msk [vmem:[#allocation3 + $0x3c] sm:$0xf] %vm4200_vm6, %v4135_v21  ;;  %v4742_v21 = vshrl.u32 %v4674_v28, 16 }
 0x30c   : > { %v4133_v12 = vpop.permute.xlu1 %4132  ;;  %v9293_v35 = vld [vmem:[#allocation3 + $0x28] sm:$0xff] }
 0x30d   : > { %9134 = vmatmul.msk.bf16.gmra.mxu0 %vm4369_vm7, %v9290_v34  ;;  %4215 = vst.msk [vmem:[#allocation3 + $0x38] sm:$0xf] %vm4200_vm6, %v4133_v12 }
 0x311   : > { %v4143_v0 = vpop.permute.xlu0 %4142 }
 0x312   : > { %4220 = vst.msk [vmem:[#allocation3 + $0x4c] sm:$0xf] %vm4200_vm6, %v4143_v0  ;;  %v4141_v26 = vpop.permute.xlu2 %4140 }
 0x313   : > { %4219 = vst.msk [vmem:[#allocation3 + $0x48] sm:$0xf] %vm4200_vm6, %v4141_v26 }
 0x314   : > { %v4139_v24 = vpop.permute.xlu1 %4138  ;;  %v9295_v48 = vld [vmem:[#allocation3 + $0x38] sm:$0xff] }
 0x315   : > { %4218 = vst.msk [vmem:[#allocation3 + $0x44] sm:$0xf] %vm4200_vm6, %v4139_v24 }
 0x319   : > { %v4149_v56 = vpop.permute.xlu0 %4148 }
 0x31a   : > { %v4147_v38 = vpop.permute.xlu2 %4146  ;;  %4223 = vst.msk [vmem:[#allocation3 + $0x58] sm:$0xf] %vm4200_vm6, %v4149_v56  ;;  %v9297_v30 = vld [vmem:[#allocation3 + $0x48] sm:$0xff] }
 0x31b   : > { %4222 = vst.msk [vmem:[#allocation3 + $0x54] sm:$0xf] %vm4200_vm6, %v4147_v38 }
 0x31c   : > { %v9296_v3 = vld [vmem:[#allocation3 + $0x40] sm:$0xff]  ;;  %v4145_v47 = vpop.permute.xlu1 %4144 }
 0x31d   : > { %9135 = vmatmul.msk.bf16.gmra.mxu0 %vm4369_vm7, %v9291_v18  ;;  %4221 = vst.msk [vmem:[#allocation3 + $0x50] sm:$0xf] %vm4200_vm6, %v4145_v47  ;;  %9140 = vmatmul.msk.bf16.vlgmr.msra.gmra.mxu2 %vm4369_vm7, %v9296_v3  ;;  %v9149_v18 = vrot.slane %v4742_v21, 11 }
 0x321   : > { %v4155_v11 = vpop.permute.xlu0 %4154 }
 0x322   : > { %v4153_v41 = vpop.permute.xlu2 %4152  ;;  %4226 = vst.msk [vmem:[#allocation3 + $0x64] sm:$0xf] %vm4200_vm6, %v4155_v11 }
 0x323   : > { %4225 = vst.msk [vmem:[#allocation3 + $0x60] sm:$0xf] %vm4200_vm6, %v4153_v41 }
 0x324   : > { %v4151_v8 = vpop.permute.xlu1 %4150  ;;  %v9298_v61 = vld [vmem:[#allocation3 + $0x50] sm:$0xff] }
 0x325   : > { %4224 = vst.msk [vmem:[#allocation3 + $0x5c] sm:$0xf] %vm4200_vm6, %v4151_v8 }
 0x32a   : > { %v9300_v27 = vld [vmem:[#allocation3 + $0x60] sm:$0xff] }
 0x32c   : > { %v4157_v17 = vpop.permute.xlu1 %4156  ;;  %v9299_v29 = vld [vmem:[#allocation3 + $0x58] sm:$0xff] }
 0x32d   : > { %9136 = vmatmul.msk.bf16.gmra.mxu0 %vm4369_vm7, %v9292_v52  ;;  %9141 = vmatmul.msk.bf16.gmra.mxu2 %vm4369_vm7, %v9297_v30  ;;  %4227 = vst.msk [vmem:[#allocation3 + $0x68] sm:$0xf] %vm4200_vm6, %v4157_v17 }
 0x334   : > { %v4159_v13 = vpop.permute.xlu2 %4158 }
 0x335   : > { %4228 = vst.msk [vmem:[#allocation3 + $0x6c] sm:$0xf] %vm4200_vm6, %v4159_v13 }
 0x33c   : > { %v4163_v40 = vpop.permute.xlu1 %4162  ;;  %v9301_v57 = vld [vmem:[#allocation3 + $0x68] sm:$0xff] }
 0x33d   : > { %9137 = vmatmul.msk.bf16.gmra.mxu0 %vm4369_vm7, %v9293_v35  ;;  %9142 = vmatmul.msk.bf16.gmra.mxu2 %vm4369_vm7, %v9298_v61  ;;  %4230 = vst.msk [vmem:[#allocation3 + $0x74] sm:$0xf] %vm4200_vm6, %v4163_v40 }
 0x340   : > { %v4161_v31 = vpop.permute.xlu0 %4160 }
 0x341   : > { %4229 = vst.msk [vmem:[#allocation3 + $0x70] sm:$0xf] %vm4200_vm6, %v4161_v31 }
 0x348   : > { %v9302_v38 = vld [vmem:[#allocation3 + $0x70] sm:$0xff] }
 0x34d   : > { %9138 = vmatmul.msk.bf16.gmra.mxu0 %vm4369_vm7, %v9294_v49  ;;  %9143 = vmatmul.msk.bf16.gmra.mxu2 %vm4369_vm7, %v9299_v29 }
 0x35d   : > { %9139 = vmatmul.msk.bf16.gmra.mxu0 %vm4369_vm7, %v9295_v48  ;;  %9144 = vmatmul.msk.bf16.gmra.mxu2 %vm4369_vm7, %v9300_v27 }
 0x36a   : > { %v4431_v43 = vpop.f32.mrf.mxu0 }
 0x36b   : > { %v4432_v55 = vadd.f32 %v11148_v25, %v4431_v43 }
 0x36d   : > { %vm4511_vm3 = vcmp.ge.f32.partialorder %v4432_v55, 0.0  ;;  %v4543_v63 = vmul.f32 0.2, %v4432_v55  ;;  %9145 = vmatmul.msk.bf16.gmra.mxu2 %vm4369_vm7, %v9301_v57  ;;  %v4680_v57 = vld [vmem:[#allocation2 + $0x4c] sm:$0x8] }
 0x36f   : > { %v4575_v50 = vsel %vm4511_vm3, %v4432_v55, %v4543_v63 }
 0x370   : > { %v4607_v20 = vpack.c.bf16 %v4575_v50, %v4575_v50 }
 0x372   : > { %4639 = vst.msk [vmem:[#allocation2 + $0x20] sm:$0xf] %vm232_vm0, %v4607_v20  ;;  %v4433_v15 = vpop.f32.mrf.mxu0 }
 0x373   : > { %v4434_v33 = vadd.f32 %v11148_v25, %v4433_v15 }
 0x375   : > { %vm4512_vm8 = vcmp.ge.f32.partialorder %v4434_v33, 0.0  ;;  %v4544_v59 = vmul.f32 0.2, %v4434_v33 }
 0x377   : > { %v4576_v60 = vsel %vm4512_vm8, %v4434_v33, %v4544_v59  ;;  %v4786_v59 = vshrl.u32 %v4680_v57, 16 }
 0x378   : > { %v4608_v7 = vpack.c.bf16 %v4576_v60, %v4576_v60 }
 0x379   : > { %v5137_v34 = vld [vmem:[#allocation2 + $0x20] sm:$0xf] }
 0x37a   : > { %v4675_v12 = vld [vmem:[#allocation2 + $0x20] sm:$0xf]  ;;  %4640 = vst.msk [vmem:[#allocation2 + $0x24] sm:$0xf] %vm232_vm0, %v4608_v7  ;;  %5203 = vrot.lane.b32.xlu0 %v5137_v34, %s9359_s24  ;;  %v4436_v0 = vpop.f32.mrf.mxu0 }
 0x37b   : > { %v4747_v26 = vshrl.u32 %v4675_v12, 16  ;;  %v4437_v24 = vadd.f32 %v11148_v25, %v4436_v0  ;;  %v4750_v47 = vshll.u32 %v4675_v12, 16  ;;  %v9151_v0 = vrot.slane %v4786_v59, 11  ;;  %v4686_v59 = vld [vmem:[#allocation2 + $0x7c] sm:$0x8] }
 0x37d   : > { %v4749_v3 = vrot.slane %v4747_v26, 7  ;;  %vm4513_vm9 = vcmp.ge.f32.partialorder %v4437_v24, 0.0  ;;  %v4545_v56 = vmul.f32 0.2, %v4437_v24  ;;  %9146 = vmatmul.msk.bf16.gmra.mxu2 %vm4369_vm7, %v9302_v38 }
 0x37f   : > { %v4752_v8 = vor.u32 %v4750_v47, %v4749_v3  ;;  %v4577_v52 = vsel %vm4513_vm9, %v4437_v24, %v4545_v56  ;;  %v4754_v39 = vrot.slane %v4749_v3, 4 }
 0x380   : > { %v4609_v30 = vpack.c.bf16 %v4577_v52, %v4577_v52 }
 0x381   : > { %v4753_v11 = vsel %vm9589_vm11, %v9149_v18, %v4752_v8  ;;  %v5138_v41 = vld [vmem:[#allocation2 + $0x24] sm:$0xf] }
 0x382   : > { %5105 = vst.msk [vmem:[#allocation3 + $0x8] sm:$0xf] %vm232_vm0, %v4753_v11  ;;  %v4676_v35 = vld [vmem:[#allocation2 + $0x24] sm:$0xf]  ;;  %5205 = vrot.lane.b32.xlu1 %v5138_v41, %s9359_s24  ;;  %v4438_v61 = vpop.f32.mrf.mxu0 }
 0x383   : > { %4641 = vst.msk [vmem:[#allocation2 + $0x38] sm:$0xf] %vm232_vm0, %v4609_v30  ;;  %v4756_v13 = vshrl.u32 %v4676_v35, 16  ;;  %v4439_v17 = vadd.f32 %v11148_v25, %v4438_v61  ;;  %v4759_v49 = vshll.u32 %v4676_v35, 16 }
 0x385   : > { %v4758_v10 = vrot.slane %v4756_v13, 7  ;;  %vm4514_vm3 = vcmp.ge.f32.partialorder %v4439_v17, 0.0  ;;  %v4546_v29 = vmul.f32 0.2, %v4439_v17 }
 0x387   : > { %v4761_v22 = vor.u32 %v4759_v49, %v4758_v10  ;;  %v4578_v23 = vsel %vm4514_vm3, %v4439_v17, %v4546_v29  ;;  %v4683_v17 = vld [vmem:[#allocation2 + $0x64] sm:$0x8] }
 0x388   : > { %v4610_v19 = vpack.c.bf16 %v4578_v23, %v4578_v23 }
 0x389   : > { %v4762_v51 = vsel %vm9589_vm11, %v4754_v39, %v4761_v22 }
 0x38a   : > { %v5139_v46 = vld [vmem:[#allocation2 + $0x38] sm:$0xf]  ;;  %5106 = vst.msk [vmem:[#allocation3 + $0xc] sm:$0xf] %vm232_vm0, %v4762_v51  ;;  %v4441_v6 = vpop.f32.mrf.mxu0  ;;  %v4808_v51 = vshrl.u32 %v4683_v17, 16 }
 0x38b   : > { %v4678_v5 = vld [vmem:[#allocation2 + $0x38] sm:$0xf]  ;;  %4642 = vst.msk [vmem:[#allocation2 + $0x3c] sm:$0xf] %vm232_vm0, %v4610_v19  ;;  %5207 = vrot.lane.b32.xlu2 %v5139_v46, %s9359_s24  ;;  %v4442_v16 = vadd.f32 %v11148_v25, %v4441_v6 }
 0x38c   : > { %v4769_v2 = vshrl.u32 %v4678_v5, 16  ;;  %v4772_v53 = vshll.u32 %v4678_v5, 16 }
 0x38d   : > { %vm4515_vm8 = vcmp.ge.f32.partialorder %v4442_v16, 0.0  ;;  %v4547_v31 = vmul.f32 0.2, %v4442_v16 }
 0x38e   : > { %v4771_v14 = vrot.slane %v4769_v2, 7 }
 0x38f   : > { %v4579_v42 = vsel %vm4515_vm8, %v4442_v16, %v4547_v31 }
 0x390   : > { %v4774_v40 = vor.u32 %v4772_v53, %v4771_v14  ;;  %v4611_v32 = vpack.c.bf16 %v4579_v42, %v4579_v42  ;;  %v4776_v63 = vrot.slane %v4771_v14, 4  ;;  %v9152_v53 = vrot.slane %v4808_v51, 11 }
 0x392   : > { %v4775_v1 = vsel %vm9589_vm11, %v9150_v4, %v4774_v40  ;;  %v5140_v48 = vld [vmem:[#allocation2 + $0x3c] sm:$0xf]  ;;  %4643 = vst.msk [vmem:[#allocation2 + $0x50] sm:$0xf] %vm232_vm0, %v4611_v32  ;;  %v4443_v54 = vpop.f32.mrf.mxu0 }
 0x393   : > { %5107 = vst.msk [vmem:[#allocation3 + $0x10] sm:$0xf] %vm232_vm0, %v4775_v1  ;;  %v4679_v27 = vld [vmem:[#allocation2 + $0x3c] sm:$0xf]  ;;  %5209 = vrot.lane.b32.xlu0 %v5140_v48, %s9359_s24  ;;  %v4444_v36 = vadd.f32 %v11148_v25, %v4443_v54 }
 0x394   : > { %v4778_v45 = vshrl.u32 %v4679_v27, 16  ;;  %v4781_v43 = vshll.u32 %v4679_v27, 16 }
 0x395   : > { %vm4516_vm9 = vcmp.ge.f32.partialorder %v4444_v36, 0.0  ;;  %v4548_v55 = vmul.f32 0.2, %v4444_v36 }
 0x396   : > { %v4780_v44 = vrot.slane %v4778_v45, 7 }
 0x397   : > { %v4580_v20 = vsel %vm4516_vm9, %v4444_v36, %v4548_v55 }
 0x398   : > { %v4783_v50 = vor.u32 %v4781_v43, %v4780_v44  ;;  %v4612_v15 = vpack.c.bf16 %v4580_v20, %v4580_v20 }
 0x399   : > { %v5141_v28 = vld [vmem:[#allocation2 + $0x50] sm:$0xf] }
 0x39a   : > { %v4784_v33 = vsel %vm9589_vm11, %v4776_v63, %v4783_v50  ;;  %v4681_v60 = vld [vmem:[#allocation2 + $0x50] sm:$0xf]  ;;  %4644 = vst.msk [vmem:[#allocation2 + $0x54] sm:$0xf] %vm232_vm0, %v4612_v15  ;;  %v4446_v7 = vpop.f32.mrf.mxu0  ;;  %5211 = vrot.lane.b32.xlu1 %v5141_v28, %s9359_s24 }
 0x39b   : > { %5108 = vst.msk [vmem:[#allocation3 + $0x14] sm:$0xf] %vm232_vm0, %v4784_v33  ;;  %v4791_v21 = vshrl.u32 %v4681_v60, 16  ;;  %v4447_v34 = vadd.f32 %v11148_v25, %v4446_v7  ;;  %v4794_v26 = vshll.u32 %v4681_v60, 16 }
 0x39d   : > { %v4793_v12 = vrot.slane %v4791_v21, 7  ;;  %vm4517_vm3 = vcmp.ge.f32.partialorder %v4447_v34, 0.0  ;;  %v4549_v24 = vmul.f32 0.2, %v4447_v34 }
 0x39f   : > { %v4796_v38 = vor.u32 %v4794_v26, %v4793_v12  ;;  %v4581_v18 = vsel %vm4517_vm3, %v4447_v34, %v4549_v24  ;;  %v4798_v29 = vrot.slane %v4793_v12, 4  ;;  %v4830_v26 = vshrl.u32 %v4686_v59, 16 }
 0x3a0   : > { %v4613_v3 = vpack.c.bf16 %v4581_v18, %v4581_v18  ;;  %v4471_v52 = vpop.f32.mrf.mxu2 }
 0x3a1   : > { %v4797_v47 = vsel %vm9589_vm11, %v9151_v0, %v4796_v38  ;;  %v5142_v56 = vld [vmem:[#allocation2 + $0x54] sm:$0xf]  ;;  %v4472_v41 = vadd.f32 %v11148_v25, %v4471_v52  ;;  %v4165_v52 = vpop.permute.xlu2 %4164 }
 0x3a2   : > { %v4682_v8 = vld [vmem:[#allocation2 + $0x54] sm:$0xf]  ;;  %5109 = vst.msk [vmem:[#allocation3 + $0x18] sm:$0xf] %vm232_vm0, %v4797_v47  ;;  %v4448_v30 = vpop.f32.mrf.mxu0  ;;  %5213 = vrot.lane.b32.xlu2 %v5142_v56, %s9359_s24 }
 0x3a3   : > { %4645 = vst.msk [vmem:[#allocation2 + $0x68] sm:$0xf] %vm232_vm0, %v4613_v3  ;;  %v4800_v11 = vshrl.u32 %v4682_v8, 16  ;;  %v4449_v35 = vadd.f32 %v11148_v25, %v4448_v30  ;;  %v4803_v13 = vshll.u32 %v4682_v8, 16  ;;  %vm4527_vm8 = vcmp.ge.f32.partialorder %v4472_v41, 0.0 }
 0x3a4   : > { %v4559_v10 = vmul.f32 0.2, %v4472_v41  ;;  %4231 = vst.msk [vmem:[#allocation3 + $0x78] sm:$0xf] %vm4200_vm6, %v4165_v52 }
 0x3a5   : > { %v4802_v61 = vrot.slane %v4800_v11, 7  ;;  %vm4518_vm9 = vcmp.ge.f32.partialorder %v4449_v35, 0.0  ;;  %v4550_v49 = vmul.f32 0.2, %v4449_v35 }
 0x3a6   : > { %v4591_v22 = vsel %vm4527_vm8, %v4472_v41, %v4559_v10 }
 0x3a7   : > { %v4805_v62 = vor.u32 %v4803_v13, %v4802_v61  ;;  %v4582_v39 = vsel %vm4518_vm9, %v4449_v35, %v4550_v49  ;;  %v4623_v23 = vpack.c.bf16 %v4591_v22, %v4591_v22  ;;  %v9153_v49 = vrot.slane %v4830_v26, 11 }
 0x3a8   : > { %v4614_v19 = vpack.c.bf16 %v4582_v39, %v4582_v39  ;;  %v4473_v6 = vpop.f32.mrf.mxu2 }
 0x3a9   : > { %v4806_v58 = vsel %vm9589_vm11, %v4798_v29, %v4805_v62  ;;  %4655 = vst.msk [vmem:[#allocation2 + $0xe0] sm:$0xf] %vm232_vm0, %v4623_v23  ;;  %v4474_v4 = vadd.f32 %v11148_v25, %v4473_v6 }
 0x3aa   : > { %v5143_v46 = vld [vmem:[#allocation2 + $0x68] sm:$0xf]  ;;  %5110 = vst.msk [vmem:[#allocation3 + $0x1c] sm:$0xf] %vm232_vm0, %v4806_v58  ;;  %v4451_v2 = vpop.f32.mrf.mxu0 }
 0x3ab   : > { %v4684_v5 = vld [vmem:[#allocation2 + $0x68] sm:$0xf]  ;;  %5215 = vrot.lane.b32.xlu0 %v5143_v46, %s9359_s24  ;;  %4646 = vst.msk [vmem:[#allocation2 + $0x6c] sm:$0xf] %vm232_vm0, %v4614_v19  ;;  %v4452_v14 = vadd.f32 %v11148_v25, %v4451_v2  ;;  %vm4528_vm3 = vcmp.ge.f32.partialorder %v4474_v4, 0.0  ;;  %v5202_v46 = vpop.permute.xlu2 %5201 }
 0x3ac   : > { %v4813_v16 = vshrl.u32 %v4684_v5, 16  ;;  %v4816_v40 = vshll.u32 %v4684_v5, 16  ;;  %v4560_v42 = vmul.f32 0.2, %v4474_v4  ;;  %5296 = vst.msk [vmem:[#allocation3 + $0x4] sm:$0xf] %vm1069_vm12, %v5202_v46 }
 0x3ad   : > { %vm4519_vm8 = vcmp.ge.f32.partialorder %v4452_v14, 0.0  ;;  %v4551_v32 = vmul.f32 0.2, %v4452_v14 }
 0x3ae   : > { %v4815_v31 = vrot.slane %v4813_v16, 7  ;;  %v4592_v48 = vsel %vm4528_vm3, %v4474_v4, %v4560_v42 }
 0x3af   : > { %v4583_v27 = vsel %vm4519_vm8, %v4452_v14, %v4551_v32  ;;  %v4624_v54 = vpack.c.bf16 %v4592_v48, %v4592_v48 }
 0x3b0   : > { %v4818_v1 = vor.u32 %v4816_v40, %v4815_v31  ;;  %v4615_v45 = vpack.c.bf16 %v4583_v27, %v4583_v27  ;;  %v4476_v44 = vpop.f32.mrf.mxu2  ;;  %v4820_v24 = vrot.slane %v4815_v31, 4  ;;  %v4689_v27 = vld [vmem:[#allocation2 + $0x94] sm:$0x8] }
 0x3b1   : > { %4656 = vst.msk [vmem:[#allocation2 + $0xe4] sm:$0xf] %vm232_vm0, %v4624_v54  ;;  %v4477_v63 = vadd.f32 %v11148_v25, %v4476_v44 }
 0x3b2   : > { %v4819_v36 = vsel %vm9589_vm11, %v9152_v53, %v4818_v1  ;;  %v4453_v43 = vpop.f32.mrf.mxu0  ;;  %v5144_v55 = vld [vmem:[#allocation2 + $0x6c] sm:$0xf]  ;;  %4647 = vst.msk [vmem:[#allocation2 + $0x80] sm:$0xf] %vm232_vm0, %v4615_v45 }
 0x3b3   : > { %5111 = vst.msk [vmem:[#allocation3 + $0x20] sm:$0xf] %vm232_vm0, %v4819_v36  ;;  %v4685_v57 = vld [vmem:[#allocation2 + $0x6c] sm:$0xf]  ;;  %v4454_v50 = vadd.f32 %v11148_v25, %v4453_v43  ;;  %5217 = vrot.lane.b32.xlu1 %v5144_v55, %s9359_s24  ;;  %vm4529_vm9 = vcmp.ge.f32.partialorder %v4477_v63, 0.0 }
 0x3b4   : > { %v4822_v20 = vshrl.u32 %v4685_v57, 16  ;;  %v4561_v15 = vmul.f32 0.2, %v4477_v63  ;;  %v4825_v60 = vshll.u32 %v4685_v57, 16  ;;  %v4167_v57 = vpop.permute.xlu0 %4166 }
 0x3b5   : > { %vm4520_vm3 = vcmp.ge.f32.partialorder %v4454_v50, 0.0  ;;  %v4552_v33 = vmul.f32 0.2, %v4454_v50  ;;  %4232 = vst.msk [vmem:[#allocation3 + $0x7c] sm:$0xf] %vm4200_vm6, %v4167_v57 }
 0x3b6   : > { %v4824_v28 = vrot.slane %v4822_v20, 7  ;;  %v4593_v7 = vsel %vm4529_vm9, %v4477_v63, %v4561_v15  ;;  %v4852_v20 = vshrl.u32 %v4689_v27, 16 }
 0x3b7   : > { %v4584_v21 = vsel %vm4520_vm3, %v4454_v50, %v4552_v33  ;;  %v4625_v34 = vpack.c.bf16 %v4593_v7, %v4593_v7 }
 0x3b8   : > { %v4616_v12 = vpack.c.bf16 %v4584_v21, %v4584_v21  ;;  %v4827_v0 = vor.u32 %v4825_v60, %v4824_v28  ;;  %v4478_v38 = vpop.f32.mrf.mxu2  ;;  %v11233_v28 = vld [vmem:[#allocation2 + $0xe0] sm:$0xf]  ;;  %v4700_v26 = vld [vmem:[#allocation2 + $0xe4] sm:$0xf] }
 0x3b9   : > { %4657 = vst.msk [vmem:[#allocation2 + $0xf8] sm:$0xf] %vm232_vm0, %v4625_v34  ;;  %v5145_v3 = vld [vmem:[#allocation2 + $0x80] sm:$0xf]  ;;  %v4479_v56 = vadd.f32 %v11148_v25, %v4478_v38  ;;  %v4923_v38 = vshrl.u32 %v11233_v28, 16  ;;  %v4935_v46 = vshll.u32 %v4700_v26, 16 }
 0x3ba   : > { %v4456_v18 = vpop.f32.mrf.mxu0  ;;  %v4687_v47 = vld [vmem:[#allocation2 + $0x80] sm:$0xf]  ;;  %4648 = vst.msk [vmem:[#allocation2 + $0x84] sm:$0xf] %vm232_vm0, %v4616_v12  ;;  %5219 = vrot.lane.b32.xlu2 %v5145_v3, %s9359_s24  ;;  %v4828_v11 = vsel %vm9589_vm11, %v4820_v24, %v4827_v0  ;;  %v9154_v0 = vrot.slane %v4852_v20, 11 }
 0x3bb   : > { %v4457_v8 = vadd.f32 %v11148_v25, %v4456_v18  ;;  %v4835_v30 = vshrl.u32 %v4687_v47, 16  ;;  %vm4530_vm8 = vcmp.ge.f32.partialorder %v4479_v56, 0.0  ;;  %v4562_v41 = vmul.f32 0.2, %v4479_v56  ;;  %5112 = vst.msk [vmem:[#allocation3 + $0x24] sm:$0xf] %vm232_vm0, %v4828_v11 }
 0x3bc   : > { %v4838_v13 = vshll.u32 %v4687_v47, 16 }
 0x3bd   : > { %vm4521_vm9 = vcmp.ge.f32.partialorder %v4457_v8, 0.0  ;;  %v4553_v35 = vmul.f32 0.2, %v4457_v8  ;;  %v4837_v61 = vrot.slane %v4835_v30, 7  ;;  %v4594_v17 = vsel %vm4530_vm8, %v4479_v56, %v4562_v41  ;;  %v5200_v30 = vpop.permute.xlu1 %5199 }
 0x3be   : > { %v4626_v29 = vpack.c.bf16 %v4594_v17, %v4594_v17  ;;  %v4932_v41 = vshrl.u32 %v4700_v26, 16  ;;  %5295 = vst.msk [vmem:[#allocation3] sm:$0xf] %vm1069_vm12, %v5200_v30 }
 0x3bf   : > { %v4585_v10 = vsel %vm4521_vm9, %v4457_v8, %v4553_v35  ;;  %v4840_v22 = vor.u32 %v4838_v13, %v4837_v61  ;;  %v4842_v48 = vrot.slane %v4837_v61, 4 }
 0x3c0   : > { %v4617_v62 = vpack.c.bf16 %v4585_v10, %v4585_v10  ;;  %4658 = vst.msk [vmem:[#allocation2 + $0xfc] sm:$0xf] %vm232_vm0, %v4626_v29  ;;  %v4481_v39 = vpop.f32.mrf.mxu2 }
 0x3c1   : > { %v5146_v19 = vld [vmem:[#allocation2 + $0x84] sm:$0xf]  ;;  %v4482_v58 = vadd.f32 %v11148_v25, %v4481_v39  ;;  %v4841_v5 = vsel %vm9589_vm11, %v9153_v49, %v4840_v22  ;;  %v4934_v22 = vrot.slane %v4932_v41, 7 }
 0x3c2   : > { %v4458_v23 = vpop.f32.mrf.mxu0  ;;  %4649 = vst.msk [vmem:[#allocation2 + $0x98] sm:$0xf] %vm232_vm0, %v4617_v62  ;;  %5221 = vrot.lane.b32.xlu0 %v5146_v19, %s9359_s24  ;;  %v4688_v6 = vld [vmem:[#allocation2 + $0x84] sm:$0xf]  ;;  %v11245_v62 = vrot.slane %v4923_v38, 7 }
 0x3c3   : > { %v4459_v51 = vadd.f32 %v11148_v25, %v4458_v23  ;;  %v4844_v2 = vshrl.u32 %v4688_v6, 16  ;;  %vm4531_vm3 = vcmp.ge.f32.partialorder %v4482_v58, 0.0  ;;  %v4563_v16 = vmul.f32 0.2, %v4482_v58  ;;  %5113 = vst.msk [vmem:[#allocation3 + $0x28] sm:$0xf] %vm232_vm0, %v4841_v5 }
 0x3c4   : > { %v4847_v53 = vshll.u32 %v4688_v6, 16  ;;  %v4695_v38 = vld [vmem:[#allocation2 + $0xc4] sm:$0x8] }
 0x3c5   : > { %vm4522_vm8 = vcmp.ge.f32.partialorder %v4459_v51, 0.0  ;;  %v4554_v4 = vmul.f32 0.2, %v4459_v51  ;;  %v4846_v14 = vrot.slane %v4844_v2, 7  ;;  %v4595_v31 = vsel %vm4531_vm3, %v4482_v58, %v4563_v16 }
 0x3c6   : > { %v4627_v42 = vpack.c.bf16 %v4595_v31, %v4595_v31  ;;  %v4937_v31 = vor.u32 %v4935_v46, %v4934_v22  ;;  %v4896_v30 = vshrl.u32 %v4695_v38, 16  ;;  %v9303_v46 = vld [vmem:[#allocation3 + $0x78] sm:$0xff] }
 0x3c7   : > { %v4586_v40 = vsel %vm4522_vm8, %v4459_v51, %v4554_v4  ;;  %v4849_v1 = vor.u32 %v4847_v53, %v4846_v14  ;;  %v4692_v51 = vld [vmem:[#allocation2 + $0xac] sm:$0x8]  ;;  %9147 = vmatmul.msk.bf16.gmra.mxu2 %vm4369_vm7, %v9303_v46 }
 0x3c8   : > { %v4618_v32 = vpack.c.bf16 %v4586_v40, %v4586_v40  ;;  %4659 = vst.msk [vmem:[#allocation2 + $0x110] sm:$0xf] %vm232_vm0, %v4627_v42  ;;  %v4483_v54 = vpop.f32.mrf.mxu2  ;;  %v4874_v53 = vshrl.u32 %v4692_v51, 16  ;;  %v4930_v42 = vrot.slane %v11245_v62, 4  ;;  %v5154_v51 = vld [vmem:[#allocation2 + $0xe4] sm:$0xf] }
 0x3c9   : > { %v5147_v36 = vld [vmem:[#allocation2 + $0x98] sm:$0xf]  ;;  %v4484_v43 = vadd.f32 %v11148_v25, %v4483_v54  ;;  %v4850_v50 = vsel %vm9589_vm11, %v4842_v48, %v4849_v1 }
 0x3ca   : > { %v4461_v45 = vpop.f32.mrf.mxu0  ;;  %v4690_v44 = vld [vmem:[#allocation2 + $0x98] sm:$0xf]  ;;  %4650 = vst.msk [vmem:[#allocation2 + $0x9c] sm:$0xf] %vm232_vm0, %v4618_v32  ;;  %5223 = vrot.lane.b32.xlu1 %v5147_v36, %s9359_s24  ;;  %v4938_v36 = vsel %vm9589_vm11, %v4930_v42, %v4937_v31 }
 0x3cb   : > { %v4462_v55 = vadd.f32 %v11148_v25, %v4461_v45  ;;  %v4857_v63 = vshrl.u32 %v4690_v44, 16  ;;  %vm4532_vm9 = vcmp.ge.f32.partialorder %v4484_v43, 0.0  ;;  %v4564_v15 = vmul.f32 0.2, %v4484_v43  ;;  %5114 = vst.msk [vmem:[#allocation3 + $0x2c] sm:$0xf] %vm232_vm0, %v4850_v50 }
 0x3cc   : > { %v4860_v21 = vshll.u32 %v4690_v44, 16  ;;  %v9155_v45 = vrot.slane %v4874_v53, 11  ;;  %5122 = vst.msk [vmem:[#allocation3 + $0x4c] sm:$0xf] %vm232_vm0, %v4938_v36 }
 0x3cd   : > { %vm4523_vm3 = vcmp.ge.f32.partialorder %v4462_v55, 0.0  ;;  %v4555_v33 = vmul.f32 0.2, %v4462_v55  ;;  %v4859_v59 = vrot.slane %v4857_v63, 7  ;;  %v4596_v60 = vsel %vm4532_vm9, %v4484_v43, %v4564_v15 }
 0x3ce   : > { %v4628_v34 = vpack.c.bf16 %v4596_v60, %v4596_v60 }
 0x3cf   : > { %v4587_v7 = vsel %vm4523_vm3, %v4462_v55, %v4555_v33  ;;  %v4862_v24 = vor.u32 %v4860_v21, %v4859_v59  ;;  %v4864_v19 = vrot.slane %v4859_v59, 4 }
 0x3d0   : > { %v4619_v12 = vpack.c.bf16 %v4587_v7, %v4587_v7  ;;  %4660 = vst.msk [vmem:[#allocation2 + $0x114] sm:$0xf] %vm232_vm0, %v4628_v34  ;;  %v4486_v18 = vpop.f32.mrf.mxu2 }
 0x3d1   : > { %v5148_v47 = vld [vmem:[#allocation2 + $0x9c] sm:$0xf]  ;;  %v4487_v8 = vadd.f32 %v11148_v25, %v4486_v18  ;;  %v4863_v35 = vsel %vm9589_vm11, %v9154_v0, %v4862_v24 }
 0x3d2   : > { %v4463_v3 = vpop.f32.mrf.mxu0  ;;  %v4691_v56 = vld [vmem:[#allocation2 + $0x9c] sm:$0xf]  ;;  %4651 = vst.msk [vmem:[#allocation2 + $0xb0] sm:$0xf] %vm232_vm0, %v4619_v12  ;;  %5225 = vrot.lane.b32.xlu2 %v5148_v47, %s9359_s24 }
 0x3d3   : > { %v4464_v52 = vadd.f32 %v11148_v25, %v4463_v3  ;;  %v4866_v11 = vshrl.u32 %v4691_v56, 16  ;;  %vm4533_vm8 = vcmp.ge.f32.partialorder %v4487_v8, 0.0  ;;  %v4565_v61 = vmul.f32 0.2, %v4487_v8  ;;  %5115 = vst.msk [vmem:[#allocation3 + $0x30] sm:$0xf] %vm232_vm0, %v4863_v35 }
 0x3d4   : > { %v4869_v10 = vshll.u32 %v4691_v56, 16  ;;  %v5153_v3 = vld [vmem:[#allocation2 + $0xe0] sm:$0xf] }
 0x3d5   : > { %vm4524_vm9 = vcmp.ge.f32.partialorder %v4464_v52, 0.0  ;;  %v4556_v13 = vmul.f32 0.2, %v4464_v52  ;;  %v4868_v17 = vrot.slane %v4866_v11, 7  ;;  %v4597_v49 = vsel %vm4533_vm8, %v4487_v8, %v4565_v61 }
 0x3d6   : > { %v4629_v39 = vpack.c.bf16 %v4597_v49, %v4597_v49 }
 0x3d7   : > { %v4588_v29 = vsel %vm4524_vm9, %v4464_v52, %v4556_v13  ;;  %v4871_v58 = vor.u32 %v4869_v10, %v4868_v17  ;;  %v9156_v17 = vrot.slane %v4896_v30, 11 }
 0x3d8   : > { %v4620_v23 = vpack.c.bf16 %v4588_v29, %v4588_v29  ;;  %4661 = vst.msk [vmem:[#allocation2 + $0x128] sm:$0xf] %vm232_vm0, %v4629_v39  ;;  %v4488_v5 = vpop.f32.mrf.mxu2  ;;  %v5156_v39 = vld [vmem:[#allocation2 + $0xfc] sm:$0xf] }
 0x3d9   : > { %v5149_v2 = vld [vmem:[#allocation2 + $0xb0] sm:$0xf]  ;;  %v4872_v16 = vsel %vm9589_vm11, %v4864_v19, %v4871_v58  ;;  %v4489_v4 = vadd.f32 %v11148_v25, %v4488_v5 }
 0x3da   : > { %v4466_v6 = vpop.f32.mrf.mxu0  ;;  %4652 = vst.msk [vmem:[#allocation2 + $0xb4] sm:$0xf] %vm232_vm0, %v4620_v23  ;;  %5227 = vrot.lane.b32.xlu0 %v5149_v2, %s9359_s24  ;;  %v4693_v40 = vld [vmem:[#allocation2 + $0xb0] sm:$0xf] }
 0x3db   : > { %v4467_v14 = vadd.f32 %v11148_v25, %v4466_v6  ;;  %5116 = vst.msk [vmem:[#allocation3 + $0x34] sm:$0xf] %vm232_vm0, %v4872_v16  ;;  %vm4534_vm3 = vcmp.ge.f32.partialorder %v4489_v4, 0.0  ;;  %v4566_v32 = vmul.f32 0.2, %v4489_v4  ;;  %v4879_v48 = vshrl.u32 %v4693_v40, 16 }
 0x3dc   : > { %v4882_v57 = vshll.u32 %v4693_v40, 16 }
 0x3dd   : > { %vm4525_vm8 = vcmp.ge.f32.partialorder %v4467_v14, 0.0  ;;  %v4557_v1 = vmul.f32 0.2, %v4467_v14  ;;  %v4598_v27 = vsel %vm4534_vm3, %v4489_v4, %v4566_v32  ;;  %v11258_v55 = vrot.slane %v4879_v48, 7  ;;  %v4704_v4 = vld [vmem:[#allocation2 + $0x10c] sm:$0x8] }
 0x3de   : > { %v4630_v44 = vpack.c.bf16 %v4598_v27, %v4598_v27  ;;  %v4705_v32 = vld [vmem:[#allocation2 + $0x110] sm:$0xf] }
 0x3df   : > { %v4589_v54 = vsel %vm4525_vm8, %v4467_v14, %v4557_v1  ;;  %v4884_v15 = vor.u32 %v4882_v57, %v11258_v55  ;;  %v4886_v40 = vrot.slane %v11258_v55, 4  ;;  %v4962_v1 = vshrl.u32 %v4704_v4, 16 }
 0x3e0   : > { %v4621_v43 = vpack.c.bf16 %v4589_v54, %v4589_v54  ;;  %4662 = vst.msk [vmem:[#allocation2 + $0x12c] sm:$0xf] %vm232_vm0, %v4630_v44  ;;  %v4491_v63 = vpop.f32.mrf.mxu2  ;;  %v5159_v54 = vld [vmem:[#allocation2 + $0x128] sm:$0xf]  ;;  %v5157_v44 = vld [vmem:[#allocation2 + $0x110] sm:$0xf] }
 0x3e1   : > { %v5150_v20 = vld [vmem:[#allocation2 + $0xb4] sm:$0xf]  ;;  %v4492_v33 = vadd.f32 %v11148_v25, %v4491_v63  ;;  %v4885_v7 = vsel %vm9589_vm11, %v9155_v45, %v4884_v15  ;;  %v5155_v45 = vld [vmem:[#allocation2 + $0xf8] sm:$0xf]  ;;  %v4970_v55 = vshll.u32 %v4705_v32, 16  ;;  %v9159_v63 = vrot.slane %v4962_v1, 11 }
 0x3e2   : > { %v4468_v50 = vpop.f32.mrf.mxu0  ;;  %4653 = vst.msk [vmem:[#allocation2 + $0xc8] sm:$0xf] %vm232_vm0, %v4621_v43  ;;  %5229 = vrot.lane.b32.xlu1 %v5150_v20, %s9359_s24  ;;  %v4694_v35 = vld [vmem:[#allocation2 + $0xb4] sm:$0xf]  ;;  %v4967_v43 = vshrl.u32 %v4705_v32, 16 }
 0x3e3   : > { %v4469_v59 = vadd.f32 %v11148_v25, %v4468_v50  ;;  %vm4535_vm9 = vcmp.ge.f32.partialorder %v4492_v33, 0.0  ;;  %v4567_v21 = vmul.f32 0.2, %v4492_v33  ;;  %5117 = vst.msk [vmem:[#allocation3 + $0x38] sm:$0xf] %vm232_vm0, %v4885_v7  ;;  %v4888_v29 = vshrl.u32 %v4694_v35, 16 }
 0x3e4   : > { %v4891_v16 = vshll.u32 %v4694_v35, 16  ;;  %v11300_v20 = vrot.slane %v4967_v43, 7  ;;  %v5158_v7 = vld [vmem:[#allocation2 + $0x114] sm:$0xf]  ;;  %v5331_v32 = vld [vmem:[#allocation2 + $0x24] sm:$0xf] }
 0x3e5   : > { %v5208_v60 = vpop.permute.xlu2 %5207  ;;  %vm4526_vm3 = vcmp.ge.f32.partialorder %v4469_v59, 0.0  ;;  %v4558_v34 = vmul.f32 0.2, %v4469_v59  ;;  %v4599_v12 = vsel %vm4535_vm9, %v4492_v33, %v4567_v21  ;;  %v4890_v2 = vrot.slane %v4888_v29, 7 }
 0x3e6   : > { %5299 = vst.msk [vmem:[#allocation3 + $0x10] sm:$0xf] %vm1069_vm12, %v5208_v60  ;;  %v4631_v26 = vpack.c.bf16 %v4599_v12, %v4599_v12  ;;  %v4972_v33 = vor.u32 %v4970_v55, %v11300_v20  ;;  %v5327_v12 = vld [vmem:[#allocation2 + $0x8] sm:$0xf] }
 0x3e7   : > { %v4590_v0 = vsel %vm4526_vm3, %v4469_v59, %v4558_v34  ;;  %v4893_v53 = vor.u32 %v4891_v16, %v4890_v2  ;;  %v4698_v59 = vld [vmem:[#allocation2 + $0xdc] sm:$0x8]  ;;  %v5160_v21 = vld [vmem:[#allocation2 + $0x12c] sm:$0xf] }
 0x3e8   : > { %v4622_v24 = vpack.c.bf16 %v4590_v0, %v4590_v0  ;;  %4663 = vst.msk [vmem:[#allocation2 + $0x140] sm:$0xf] %vm232_vm0, %v4631_v26  ;;  %v4493_v18 = vpop.f32.mrf.mxu2  ;;  %v5328_v34 = vld [vmem:[#allocation2 + $0xc] sm:$0xf]  ;;  %v4973_v0 = vsel %vm9589_vm11, %v9159_v63, %v4972_v33  ;;  %v4702_v26 = vld [vmem:[#allocation2 + $0xf8] sm:$0xf] }
 0x3e9   : > { %v5151_v47 = vld [vmem:[#allocation2 + $0xc8] sm:$0xf]  ;;  %v4494_v56 = vadd.f32 %v11148_v25, %v4493_v18  ;;  %v4894_v48 = vsel %vm9589_vm11, %v4886_v40, %v4893_v53  ;;  %v4918_v18 = vshrl.u32 %v4698_v59, 16  ;;  %5125 = vst.msk [vmem:[#allocation3 + $0x58] sm:$0xf] %vm232_vm0, %v4973_v0  ;;  %v4945_v30 = vshrl.u32 %v4702_v26, 16 }
 0x3ea   : > { %4654 = vst.msk [vmem:[#allocation2 + $0xcc] sm:$0xf] %vm232_vm0, %v4622_v24  ;;  %5235 = vrot.lane.b32.xlu1 %v5153_v3, %s9359_s24  ;;  %5231 = vrot.lane.b32.xlu2 %v5151_v47, %s9359_s24  ;;  %v4696_v52 = vld [vmem:[#allocation2 + $0xc8] sm:$0xf]  ;;  %v4926_v47 = vshll.u32 %v11233_v28, 16  ;;  %v5385_v35 = vshll.u32 %v5328_v34, 16 }
 0x3eb   : > { %vm4536_vm8 = vcmp.ge.f32.partialorder %v4494_v56, 0.0  ;;  %v4568_v11 = vmul.f32 0.2, %v4494_v56  ;;  %v4901_v41 = vshrl.u32 %v4696_v52, 16  ;;  %v4904_v49 = vshll.u32 %v4696_v52, 16 }
 0x3ec   : > { %v5204_v8 = vpop.permute.xlu0 %5203  ;;  %5118 = vst.msk [vmem:[#allocation3 + $0x3c] sm:$0xf] %vm232_vm0, %v4894_v48  ;;  %v9157_v52 = vrot.slane %v4918_v18, 11  ;;  %v11320_v40 = vrot.slane %v5385_v35, 5  ;;  %v5333_v63 = vld [vmem:[#allocation2 + $0x38] sm:$0xf] }
 0x3ed   : > { %5297 = vst.msk [vmem:[#allocation3 + $0x8] sm:$0xf] %vm1069_vm12, %v5204_v8  ;;  %v4600_v61 = vsel %vm4536_vm8, %v4494_v56, %v4568_v11  ;;  %v11277_v10 = vrot.slane %v4901_v41, 7  ;;  %v4703_v56 = vld [vmem:[#allocation2 + $0xfc] sm:$0xf]  ;;  %v5409_v59 = vshll.u32 %v5331_v32, 16 }
 0x3ee   : > { %v4632_v13 = vpack.c.bf16 %v4600_v61, %v4600_v61  ;;  %v4701_v11 = vld [vmem:[#allocation2 + $0xf4] sm:$0x8]  ;;  %v4928_v61 = vor.u32 %v4926_v47, %v11245_v62  ;;  %v4954_v29 = vshrl.u32 %v4703_v56, 16  ;;  %v4957_v46 = vshll.u32 %v4703_v56, 16  ;;  %v4707_v47 = vld [vmem:[#allocation2 + $0x124] sm:$0x8] }
 0x3ef   : > { %v4906_v19 = vor.u32 %v4904_v49, %v11277_v10  ;;  %v4947_v49 = vrot.slane %v4945_v30, 7  ;;  %v5161_v16 = vld [vmem:[#allocation2 + $0x140] sm:$0xf] }
 0x3f0   : > { %4664 = vst.msk [vmem:[#allocation2 + $0x144] sm:$0xf] %vm232_vm0, %v4632_v13  ;;  %v4496_v22 = vpop.f32.mrf.mxu2  ;;  %v5389_v13 = vshrl.u32 %v5328_v34, 16  ;;  %v4929_v28 = vsel %vm9589_vm11, %v9157_v52, %v4928_v61  ;;  %v5334_v34 = vld [vmem:[#allocation2 + $0x3c] sm:$0xf] }
 0x3f1   : > { %v5152_v23 = vld [vmem:[#allocation2 + $0xcc] sm:$0xf]  ;;  %v4497_v58 = vadd.f32 %v11148_v25, %v4496_v22  ;;  %v4907_v6 = vsel %vm9589_vm11, %v9156_v17, %v4906_v19  ;;  %v5376_v17 = vshrl.u32 %v5327_v12, 16  ;;  %5121 = vst.msk [vmem:[#allocation3 + $0x48] sm:$0xf] %vm232_vm0, %v4929_v28  ;;  %v4952_v4 = vrot.slane %v4947_v49, 4 }
 0x3f2   : > { %5241 = vrot.lane.b32.xlu1 %v5156_v39, %s9359_s24  ;;  %5233 = vrot.lane.b32.xlu0 %v5152_v23, %s9359_s24  ;;  %5119 = vst.msk [vmem:[#allocation3 + $0x40] sm:$0xf] %vm232_vm0, %v4907_v6  ;;  %v4940_v39 = vshrl.u32 %v4701_v11, 16  ;;  %v4948_v23 = vshll.u32 %v4702_v26, 16  ;;  %v5424_v26 = vshrl.u32 %v5333_v63, 16  ;;  %v5437_v28 = vshrl.u32 %v5334_v34, 16 }
 0x3f3   : > { %5237 = vrot.lane.b32.xlu2 %v5154_v51, %s9359_s24  ;;  %vm4537_vm9 = vcmp.ge.f32.partialorder %v4497_v58, 0.0  ;;  %v4569_v14 = vmul.f32 0.2, %v4497_v58  ;;  %v4956_v51 = vrot.slane %v4954_v29, 7  ;;  %v5335_v30 = vld [vmem:[#allocation2 + $0x40] sm:$0x1] }
 0x3f4   : > { %v5206_v5 = vpop.permute.xlu1 %5205  ;;  %v9158_v6 = vrot.slane %v4940_v39, 11  ;;  %v4950_v2 = vor.u32 %v4948_v23, %v4947_v49  ;;  %v5337_v29 = vld [vmem:[#allocation2 + $0x54] sm:$0xf] }
 0x3f5   : > { %5298 = vst.msk [vmem:[#allocation3 + $0xc] sm:$0xf] %vm1069_vm12, %v5206_v5  ;;  %v4601_v31 = vsel %vm4537_vm9, %v4497_v58, %v4569_v14  ;;  %v5379_v58 = vshll.u32 %v5327_v12, 16  ;;  %v5330_v5 = vld [vmem:[#allocation2 + $0x20] sm:$0xf]  ;;  %v4959_v14 = vor.u32 %v4957_v46, %v4956_v51  ;;  %v5443_v46 = vshll.u32 %v5335_v30, 16 }
 0x3f6   : > { %v4633_v42 = vpack.c.bf16 %v4601_v31, %v4601_v31  ;;  %v4951_v1 = vsel %vm9589_vm11, %v9158_v6, %v4950_v2  ;;  %v4708_v12 = vld [vmem:[#allocation2 + $0x128] sm:$0xf]  ;;  %v5457_v6 = vshll.u32 %v5337_v29, 16  ;;  %v5461_v2 = vshrl.u32 %v5337_v29, 16  ;;  %v4697_v29 = vld [vmem:[#allocation2 + $0xcc] sm:$0xf] }
 0x3f7   : > { %v5162_v38 = vld [vmem:[#allocation2 + $0x144] sm:$0xf]  ;;  %5123 = vst.msk [vmem:[#allocation3 + $0x50] sm:$0xf] %vm232_vm0, %v4951_v1  ;;  %v4992_v56 = vshll.u32 %v4708_v12, 16 }
 0x3f8   : > { %4665 = vst.msk [vmem:[#allocation2 + $0x158] sm:$0xf] %vm232_vm0, %v4633_v42  ;;  %v4498_v27 = vpop.f32.mrf.mxu2  ;;  %v5391_v42 = vrot.slane %v5389_v13, 4 }
 0x3f9   : > { %v4499_v36 = vadd.f32 %v11148_v25, %v4498_v27  ;;  %v5329_v27 = vld [vmem:[#allocation2 + $0x10] sm:$0x1] }
 0x3fa   : > { %5247 = vrot.lane.b32.xlu1 %v5159_v54, %s9359_s24  ;;  %5239 = vrot.lane.b32.xlu0 %v5155_v45, %s9359_s24  ;;  %v5378_v54 = vrot.slane %v5376_v17, 4  ;;  %v5381_v45 = vrot.slane %v5379_v58, 5  ;;  %v5392_v55 = vor.u32 %v5391_v42, %v11320_v40  ;;  %v5411_v17 = vrot.slane %v5409_v59, 5 }
 0x3fb   : > { %5243 = vrot.lane.b32.xlu2 %v5157_v44, %s9359_s24  ;;  %vm4538_vm3 = vcmp.ge.f32.partialorder %v4499_v36, 0.0  ;;  %v4570_v50 = vmul.f32 0.2, %v4499_v36  ;;  %v5400_v44 = vshrl.u32 %v5330_v5, 16  ;;  %v5426_v58 = vrot.slane %v5424_v26, 4 }
 0x3fc   : > { %v5214_v57 = vpop.permute.xlu2 %5213  ;;  %v5382_v33 = vor.u32 %v5381_v45, %v5378_v54  ;;  %v5439_v42 = vrot.slane %v5437_v28, 4  ;;  %v5338_v45 = vld [vmem:[#allocation2 + $0x58] sm:$0x1]  ;;  %v5343_v28 = vld [vmem:[#allocation2 + $0x84] sm:$0xf] }
 0x3fd   : > { %5302 = vst.msk [vmem:[#allocation3 + $0x1c] sm:$0xf] %vm1069_vm12, %v5214_v57  ;;  %v4602_v15 = vsel %vm4538_vm3, %v4499_v36, %v4570_v50  ;;  %v4960_v36 = vsel %vm9589_vm11, %v4952_v4, %v4959_v14  ;;  %v5395_v57 = vshll.u32 %v5329_v27, 16  ;;  %v5403_v50 = vshll.u32 %v5330_v5, 16  ;;  %v4709_v14 = vld [vmem:[#allocation2 + $0x12c] sm:$0xf] }
 0x3fe   : > { %v4634_v60 = vpack.c.bf16 %v4602_v15, %v4602_v15  ;;  %5124 = vst.msk [vmem:[#allocation3 + $0x54] sm:$0xf] %vm232_vm0, %v4960_v36  ;;  %v5402_v61 = vrot.slane %v5400_v44, 4  ;;  %v11346_v36 = vrot.slane %v5457_v6, 5  ;;  %v5346_v6 = vld [vmem:[#allocation2 + $0x9c] sm:$0xf] }
 0x3ff   : > { %v5163_v31 = vld [vmem:[#allocation2 + $0x158] sm:$0xf]  ;;  %v5397_v18 = vrot.slane %v5395_v57, 5  ;;  %v5405_v13 = vrot.slane %v5403_v50, 5  ;;  %v5339_v50 = vld [vmem:[#allocation2 + $0x68] sm:$0xf] }
 0x400   : > { %4666 = vst.msk [vmem:[#allocation2 + $0x15c] sm:$0xf] %vm232_vm0, %v4634_v60  ;;  %v4501_v24 = vpop.f32.mrf.mxu2  ;;  %v5413_v60 = vshrl.u32 %v5331_v32, 16  ;;  %v4998_v32 = vshrl.u32 %v4709_v14, 16 }
 0x401   : > { %v4502_v3 = vadd.f32 %v11148_v25, %v4501_v24  ;;  %v4989_v24 = vshrl.u32 %v4708_v12, 16  ;;  %v5406_v1 = vor.u32 %v5405_v13, %v5402_v61 }
 0x402   : > { %5253 = vrot.lane.b32.xlu1 %v5162_v38, %s9359_s24  ;;  %5245 = vrot.lane.b32.xlu0 %v5158_v7, %s9359_s24  ;;  %v5332_v7 = vld [vmem:[#allocation2 + $0x28] sm:$0x1]  ;;  %v5393_v38 = vrot.slane %v5392_v55, 4  ;;  %v5415_v49 = vrot.slane %v5413_v60, 4  ;;  %v5000_v44 = vrot.slane %v4998_v32, 7 }
 0x403   : > { %5249 = vrot.lane.b32.xlu2 %v5160_v21, %s9359_s24  ;;  %vm4539_vm8 = vcmp.ge.f32.partialorder %v4502_v3, 0.0  ;;  %v4571_v41 = vmul.f32 0.2, %v4502_v3  ;;  %v5419_v52 = vshll.u32 %v5332_v7, 16  ;;  %v4991_v11 = vrot.slane %v4989_v24, 7 }
 0x404   : > { %v5407_v60 = vrot.slane %v5406_v1, 4  ;;  %v5467_v7 = vshll.u32 %v5338_v45, 16  ;;  %v5342_v24 = vld [vmem:[#allocation2 + $0x80] sm:$0xf]  ;;  %v5344_v32 = vld [vmem:[#allocation2 + $0x88] sm:$0x1] }
 0x405   : > { %v5210_v8 = vpop.permute.xlu0 %5209  ;;  %v4603_v22 = vsel %vm4539_vm8, %v4502_v3, %v4571_v41  ;;  %v5427_v3 = vshll.u32 %v5333_v63, 16  ;;  %v4984_v41 = vshrl.u32 %v4707_v47, 16  ;;  %v4994_v23 = vor.u32 %v4992_v56, %v4991_v11 }
 0x406   : > { %5300 = vst.msk [vmem:[#allocation3 + $0x14] sm:$0xf] %vm1069_vm12, %v5210_v8  ;;  %v4635_v19 = vpack.c.bf16 %v4603_v22, %v4603_v22  ;;  %v5383_v8 = vrot.slane %v5382_v33, 4  ;;  %v5433_v22 = vshll.u32 %v5334_v34, 16  ;;  %v5421_v55 = vrot.slane %v5419_v52, 5 }
 0x407   : > { %v5164_v0 = vld [vmem:[#allocation2 + $0x15c] sm:$0xf]  ;;  %v9160_v39 = vrot.slane %v4984_v41, 11  ;;  %v5429_v51 = vrot.slane %v5427_v3, 5  ;;  %v5340_v34 = vld [vmem:[#allocation2 + $0x6c] sm:$0xf]  ;;  %v5412_v3 = vsel %vm9560_vm10, %v5407_v60, %v5411_v17 }
 0x408   : > { %4667 = vst.msk [vmem:[#allocation2 + $0x170] sm:$0xf] %vm232_vm0, %v4635_v19  ;;  %v4503_v62 = vpop.f32.mrf.mxu2  ;;  %v5398_v19 = vsel %vm9560_vm10, %v5393_v38, %v5397_v18  ;;  %v5388_v5 = vsel %vm9560_vm10, %v5383_v8, %v11320_v40  ;;  %v5472_v47 = vshrl.u32 %v5339_v50, 16  ;;  %v5475_v56 = vshll.u32 %v5339_v50, 16  ;;  %v5341_v41 = vld [vmem:[#allocation2 + $0x70] sm:$0x1] }
 0x409   : > { %v4504_v53 = vadd.f32 %v11148_v25, %v4503_v62  ;;  %v5336_v62 = vld [vmem:[#allocation2 + $0x50] sm:$0xf]  ;;  %v5430_v40 = vor.u32 %v5429_v51, %v5426_v58  ;;  %v5481_v30 = vshll.u32 %v5340_v34, 16  ;;  %v5499_v61 = vshll.u32 %v5342_v24, 16  ;;  %v5347_v60 = vld [vmem:[#allocation2 + $0xa0] sm:$0x1] }
 0x40a   : > { %5251 = vrot.lane.b32.xlu0 %v5161_v16, %s9359_s24  ;;  %v4995_v16 = vsel %vm9589_vm11, %v9160_v39, %v4994_v23  ;;  %v5451_v27 = vshll.u32 %v5336_v62, 16  ;;  %v5474_v39 = vrot.slane %v5472_v47, 4  ;;  %v5477_v23 = vrot.slane %v5475_v56, 5 }
 0x40b   : > { %5255 = vrot.lane.b32.xlu2 %v5163_v31, %s9359_s24  ;;  %vm4540_vm9 = vcmp.ge.f32.partialorder %v4504_v53, 0.0  ;;  %v4572_v25 = vmul.f32 0.2, %v4504_v53  ;;  %5127 = vst.msk [vmem:[#allocation3 + $0x60] sm:$0xf] %vm232_vm0, %v4995_v16  ;;  %v5416_v31 = vor.u32 %v5415_v49, %v5411_v17  ;;  %v5431_v59 = vrot.slane %v5430_v40, 4 }
 0x40c   : > { %v5212_v48 = vpop.permute.xlu1 %5211  ;;  %v5453_v26 = vrot.slane %v5451_v27, 5  ;;  %v5469_v17 = vrot.slane %v5467_v7, 5  ;;  %v4910_v58 = vshrl.u32 %v4697_v29, 16  ;;  %v5529_v40 = vshll.u32 %v5346_v6, 16 }
 0x40d   : > { %5301 = vst.msk [vmem:[#allocation3 + $0x18] sm:$0xf] %vm1069_vm12, %v5212_v48  ;;  %v4604_v43 = vsel %vm4540_vm9, %v4504_v53, %v4572_v25  ;;  %v5435_v53 = vrot.slane %v5433_v22, 5  ;;  %v5448_v48 = vshrl.u32 %v5336_v62, 16  ;;  %v5463_v25 = vrot.slane %v5461_v2, 4 }
 0x40e   : > { %v4636_v15 = vpack.c.bf16 %v4604_v43, %v4604_v43  ;;  %v5001_v43 = vshll.u32 %v4709_v14, 16  ;;  %v5417_v57 = vrot.slane %v5416_v31, 4  ;;  %v5501_v62 = vrot.slane %v5499_v61, 5 }
 0x40f   : > { %v5165_v21 = vld [vmem:[#allocation2 + $0x170] sm:$0xf]  ;;  %v5440_v63 = vor.u32 %v5439_v42, %v5435_v53  ;;  %v5464_v12 = vor.u32 %v5463_v25, %v11346_v36  ;;  %v5436_v18 = vsel %vm9560_vm10, %v5431_v59, %v5435_v53  ;;  %v4912_v16 = vrot.slane %v4910_v58, 7  ;;  %v4713_v58 = vld [vmem:[#allocation2 + $0x154] sm:$0x8] }
 0x410   : > { %4668 = vst.msk [vmem:[#allocation2 + $0x174] sm:$0xf] %vm232_vm0, %v4636_v15  ;;  %5259 = vrot.lane.b32.xlu1 %v5165_v21, %s9359_s24  ;;  %v4996_v15 = vrot.slane %v4991_v11, 4  ;;  %v5003_v33 = vor.u32 %v5001_v43, %v5000_v44  ;;  %v5445_v21 = vrot.slane %v5443_v46, 5  ;;  %v5422_v8 = vsel %vm9560_vm10, %v5417_v57, %v5421_v55 }
 0x411   : > { %v5441_v52 = vrot.slane %v5440_v63, 4  ;;  %v5485_v11 = vshrl.u32 %v5340_v34, 16  ;;  %v5465_v13 = vrot.slane %v5464_v12, 4  ;;  %v5483_v46 = vrot.slane %v5481_v30, 5  ;;  %v5351_v30 = vld [vmem:[#allocation2 + $0xc8] sm:$0xf] }
 0x412   : > { %5257 = vrot.lane.b32.xlu0 %v5164_v0, %s9359_s24  ;;  %v5450_v0 = vrot.slane %v5448_v48, 4  ;;  %v5004_v38 = vsel %vm9589_vm11, %v4996_v15, %v5003_v33  ;;  %v5505_v31 = vshll.u32 %v5343_v28, 16  ;;  %v5509_v42 = vshrl.u32 %v5343_v28, 16  ;;  %v5345_v48 = vld [vmem:[#allocation2 + $0x98] sm:$0xf] }
 0x413   : > { %5128 = vst.msk [vmem:[#allocation3 + $0x64] sm:$0xf] %vm232_vm0, %v5004_v38  ;;  %v5446_v51 = vsel %vm9560_vm10, %v5441_v52, %v5445_v21  ;;  %v5470_v14 = vsel %vm9560_vm10, %v5465_v13, %v5469_v17  ;;  %v5533_v1 = vshrl.u32 %v5346_v6, 16  ;;  %v4908_v27 = vrot.slane %v11277_v10, 4  ;;  %v11376_v15 = vld [vmem:[#allocation2 + $0xe0] sm:$0xf] }
 0x414   : > { %v5220_v35 = vpop.permute.xlu2 %5219  ;;  %v5454_v49 = vor.u32 %v5453_v26, %v5450_v0  ;;  %v5478_v25 = vor.u32 %v5477_v23, %v5474_v39  ;;  %v5515_v57 = vshll.u32 %v5344_v32, 16  ;;  %v5520_v10 = vshrl.u32 %v5345_v48, 16  ;;  %v5349_v0 = vld [vmem:[#allocation2 + $0xb4] sm:$0xf]  ;;  %v5348_v38 = vld [vmem:[#allocation2 + $0xb0] sm:$0xf] }
 0x415   : > { %5305 = vst.msk [vmem:[#allocation3 + $0x28] sm:$0xf] %vm1069_vm12, %v5220_v35  ;;  %v5496_v35 = vshrl.u32 %v5342_v24, 16  ;;  %v5523_v50 = vshll.u32 %v5345_v48, 16  ;;  %v5507_v59 = vrot.slane %v5505_v31, 5  ;;  %v5535_v7 = vrot.slane %v5533_v1, 4 }
 0x416   : > { %v5455_v53 = vrot.slane %v5454_v49, 4  ;;  %v5511_v21 = vrot.slane %v5509_v42, 4  ;;  %v5479_v34 = vrot.slane %v5478_v25, 4  ;;  %v5517_v24 = vrot.slane %v5515_v57, 5  ;;  %v5355_v13 = vld [vmem:[#allocation2 + $0xe4] sm:$0xf] }
 0x417   : > { %v5166_v4 = vld [vmem:[#allocation2 + $0x174] sm:$0xf]  ;;  %v5498_v2 = vrot.slane %v5496_v35, 4  ;;  %v5539_v56 = vshll.u32 %v5347_v60, 16  ;;  %v5525_v52 = vrot.slane %v5523_v50, 5  ;;  %v5553_v61 = vshll.u32 %v5349_v0, 16 }
 0x418   : > { %5761 = vrot.lane.b32.xlu1 %v5398_v19, %s9360_s25  ;;  %5261 = vrot.lane.b32.xlu2 %v5166_v4, %s9359_s24  ;;  %v5491_v19 = vshll.u32 %v5341_v41, 16  ;;  %v4913_v4 = vshll.u32 %v4697_v29, 16  ;;  %v5460_v45 = vsel %vm9560_vm10, %v5455_v53, %v11346_v36  ;;  %v11379_v36 = vrot.slane %v5529_v40, 5  ;;  %v4714_v17 = vld [vmem:[#allocation2 + $0x158] sm:$0xf] }
 0x419   : > { %v5502_v43 = vor.u32 %v5501_v62, %v5498_v2  ;;  %v5484_v47 = vsel %vm9560_vm10, %v5479_v34, %v5483_v46  ;;  %v5512_v35 = vor.u32 %v5511_v21, %v5507_v59  ;;  %v5544_v29 = vshrl.u32 %v5348_v38, 16  ;;  %v5350_v31 = vld [vmem:[#allocation2 + $0xb8] sm:$0x1]  ;;  %v5352_v42 = vld [vmem:[#allocation2 + $0xcc] sm:$0xf] }
 0x41a   : > { %5759 = vrot.lane.b32.xlu0 %v5388_v5, %s9360_s25  ;;  %v5487_v5 = vrot.slane %v5485_v11, 4  ;;  %v5493_v55 = vrot.slane %v5491_v19, 5  ;;  %v5536_v41 = vor.u32 %v5535_v7, %v11379_v36  ;;  %v5033_v28 = vshrl.u32 %v4714_v17, 16  ;;  %v5357_v7 = vld [vmem:[#allocation2 + $0xf8] sm:$0xf] }
 0x41b   : > { %v5503_v26 = vrot.slane %v5502_v43, 4  ;;  %v5568_v39 = vshrl.u32 %v5351_v30, 16  ;;  %v5571_v23 = vshll.u32 %v5351_v30, 16  ;;  %v5547_v19 = vshll.u32 %v5348_v38, 16  ;;  %v5356_v30 = vld [vmem:[#allocation2 + $0xe8] sm:$0x1] }
 0x41c   : > { %v5488_v44 = vor.u32 %v5487_v5, %v5483_v46  ;;  %v5601_v5 = vshll.u32 %v5355_v13, 16  ;;  %v5028_v6 = vshrl.u32 %v4713_v58, 16  ;;  %v11394_v2 = vrot.slane %v5033_v28, 7  ;;  %v5364_v58 = vld [vmem:[#allocation2 + $0x12c] sm:$0xf] }
 0x41d   : > { %v5216_v54 = vpop.permute.xlu0 %5215  ;;  %v5508_v11 = vsel %vm9560_vm10, %v5503_v26, %v5507_v59  ;;  %v5555_v53 = vrot.slane %v5553_v61, 5  ;;  %v5570_v48 = vrot.slane %v5568_v39, 4  ;;  %v5605_v43 = vshrl.u32 %v5355_v13, 16  ;;  %v5353_v61 = vld [vmem:[#allocation2 + $0xd0] sm:$0x1] }
 0x41e   : > { %5303 = vst.msk [vmem:[#allocation3 + $0x20] sm:$0xf] %vm1069_vm12, %v5216_v54  ;;  %v4915_v54 = vor.u32 %v4913_v4, %v4912_v16  ;;  %v5489_v12 = vrot.slane %v5488_v44, 4  ;;  %v5537_v16 = vrot.slane %v5536_v41, 4  ;;  %v5541_v4 = vrot.slane %v5539_v56, 5 }
 0x41f   : > { %v9162_v40 = vrot.slane %v5028_v6, 11  ;;  %v5563_v44 = vshll.u32 %v5350_v31, 16  ;;  %v5581_v50 = vshrl.u32 %v5352_v42, 16  ;;  %v5358_v56 = vld [vmem:[#allocation2 + $0xfc] sm:$0xf]  ;;  %v5616_v41 = vshrl.u32 %v5357_v7, 16 }
 0x420   : > { %5767 = vrot.lane.b32.xlu1 %v5436_v18, %s9360_s25  ;;  %5763 = vrot.lane.b32.xlu2 %v5412_v3, %s9360_s25  ;;  %v4916_v63 = vsel %vm9589_vm11, %v4908_v27, %v4915_v54  ;;  %v5592_v18 = vshrl.u32 %v11376_v15, 16  ;;  %v5595_v3 = vshll.u32 %v11376_v15, 16  ;;  %v5494_v49 = vsel %vm9560_vm10, %v5489_v12, %v5493_v55 }
 0x421   : > { %5120 = vst.msk [vmem:[#allocation3 + $0x44] sm:$0xf] %vm232_vm0, %v4916_v63  ;;  %v5573_v27 = vrot.slane %v5571_v23, 5  ;;  %v5546_v54 = vrot.slane %v5544_v29, 4  ;;  %v5542_v57 = vsel %vm9560_vm10, %v5537_v16, %v5541_v4  ;;  %v11411_v12 = vrot.slane %v5601_v5, 5 }
 0x422   : > { %5765 = vrot.lane.b32.xlu0 %v5422_v8, %s9360_s25  ;;  %v5522_v8 = vrot.slane %v5520_v10, 4  ;;  %v5577_v10 = vshll.u32 %v5352_v42, 16  ;;  %v5565_v26 = vrot.slane %v5563_v44, 5  ;;  %v5597_v38 = vrot.slane %v5595_v3, 5 }
 0x423   : > { %v5574_v21 = vor.u32 %v5573_v27, %v5570_v48  ;;  %v5619_v13 = vshll.u32 %v5357_v7, 16  ;;  %v5629_v29 = vshrl.u32 %v5358_v56, 16  ;;  %v5611_v3 = vshll.u32 %v5356_v30, 16  ;;  %v4706_v7 = vld [vmem:[#allocation2 + $0x114] sm:$0xf] }
 0x424   : > { %v5526_v46 = vor.u32 %v5525_v52, %v5522_v8  ;;  %v5579_v52 = vrot.slane %v5577_v10, 5  ;;  %v5618_v6 = vrot.slane %v5616_v41, 4  ;;  %v5673_v42 = vshll.u32 %v5364_v58, 16 }
 0x425   : > { %v5218_v22 = vpop.permute.xlu1 %5217  ;;  %v5613_v31 = vrot.slane %v5611_v3, 5 }
 0x426   : > { %5304 = vst.msk [vmem:[#allocation3 + $0x24] sm:$0xf] %vm1069_vm12, %v5218_v22  ;;  %v5557_v22 = vshrl.u32 %v5349_v0, 16  ;;  %v5527_v25 = vrot.slane %v5526_v46, 4  ;;  %v5594_v0 = vrot.slane %v5592_v18, 4 }
 0x427   : > { %v5361_v46 = vld [vmem:[#allocation2 + $0x114] sm:$0xf] }
 0x428   : > { %5773 = vrot.lane.b32.xlu1 %v5470_v14, %s9360_s25  ;;  %5769 = vrot.lane.b32.xlu2 %v5446_v51, %s9360_s25  ;;  %v5036_v51 = vshll.u32 %v4714_v17, 16  ;;  %v5513_v14 = vrot.slane %v5512_v35, 4  ;;  %v5559_v32 = vrot.slane %v5557_v22, 4  ;;  %v5532_v59 = vsel %vm9560_vm10, %v5527_v25, %v11379_v36 }
 0x429   : > { %v5583_v36 = vrot.slane %v5581_v50, 4  ;;  %v5575_v17 = vrot.slane %v5574_v21, 4  ;;  %v5598_v16 = vor.u32 %v5597_v38, %v5594_v0  ;;  %v5653_v25 = vshrl.u32 %v5361_v46, 16 }
 0x42a   : > { %5771 = vrot.lane.b32.xlu0 %v5460_v45, %s9360_s25  ;;  %v5038_v1 = vor.u32 %v5036_v51, %v11394_v2  ;;  %v5549_v45 = vrot.slane %v5547_v19, 5  ;;  %v5518_v63 = vsel %vm9560_vm10, %v5513_v14, %v5517_v24  ;;  %v5560_v60 = vor.u32 %v5559_v32, %v5555_v53 }
 0x42b   : > { %v5607_v24 = vrot.slane %v5605_v43, 4  ;;  %v5580_v28 = vsel %vm9560_vm10, %v5575_v17, %v5579_v52  ;;  %v5584_v23 = vor.u32 %v5583_v36, %v5579_v52  ;;  %v5587_v19 = vshll.u32 %v5353_v61, 16  ;;  %v5359_v43 = vld [vmem:[#allocation2 + $0x100] sm:$0x1]  ;;  %v5369_v61 = vld [vmem:[#allocation2 + $0x158] sm:$0xf] }
 0x42c   : > { %v5226_v33 = vpop.permute.xlu2 %5225  ;;  %v5039_v55 = vsel %vm9589_vm11, %v9162_v40, %v5038_v1  ;;  %v5550_v34 = vor.u32 %v5549_v45, %v5546_v54  ;;  %v5561_v35 = vrot.slane %v5560_v60, 4  ;;  %v5631_v14 = vrot.slane %v5629_v29, 4  ;;  %v5363_v40 = vld [vmem:[#allocation2 + $0x128] sm:$0xf] }
 0x42d   : > { %5308 = vst.msk [vmem:[#allocation3 + $0x34] sm:$0xf] %vm1069_vm12, %v5226_v33  ;;  %v5360_v33 = vld [vmem:[#allocation2 + $0x110] sm:$0xf]  ;;  %v5608_v15 = vor.u32 %v5607_v24, %v11411_v12  ;;  %v5677_v32 = vshrl.u32 %v5364_v58, 16  ;;  %v5585_v48 = vrot.slane %v5584_v23, 4 }
 0x42e   : > { %5131 = vst.msk [vmem:[#allocation3 + $0x70] sm:$0xf] %vm232_vm0, %v5039_v55  ;;  %v5551_v18 = vrot.slane %v5550_v34, 4  ;;  %v5566_v51 = vsel %vm9560_vm10, %v5561_v35, %v5565_v26  ;;  %v5589_v27 = vrot.slane %v5587_v19, 5  ;;  %v5649_v54 = vshll.u32 %v5361_v46, 16 }
 0x42f   : > { %v5599_v55 = vrot.slane %v5598_v16, 4  ;;  %v5667_v10 = vshll.u32 %v5363_v40, 16  ;;  %v5679_v60 = vrot.slane %v5677_v32, 4  ;;  %v5635_v26 = vshll.u32 %v5359_v43, 16  ;;  %v5366_v24 = vld [vmem:[#allocation2 + $0x140] sm:$0xf] }
 0x430   : > { %5779 = vrot.lane.b32.xlu1 %v5508_v11, %s9360_s25  ;;  %5775 = vrot.lane.b32.xlu2 %v5484_v47, %s9360_s25  ;;  %v5640_v47 = vshrl.u32 %v5360_v33, 16  ;;  %v5643_v11 = vshll.u32 %v5360_v33, 16  ;;  %v5556_v39 = vsel %vm9560_vm10, %v5551_v18, %v5555_v53  ;;  %v5609_v53 = vrot.slane %v5608_v15, 4  ;;  %v5365_v33 = vld [vmem:[#allocation2 + $0x130] sm:$0x1] }
 0x431   : > { %v5590_v21 = vsel %vm9560_vm10, %v5585_v48, %v5589_v27  ;;  %v5604_v34 = vsel %vm9560_vm10, %v5599_v55, %v11411_v12  ;;  %v5651_v0 = vrot.slane %v5649_v54, 5  ;;  %v4976_v52 = vshrl.u32 %v4706_v7, 16  ;;  %v11463_v54 = vld [vmem:[#allocation2 + $0x170] sm:$0xf]  ;;  %v5373_v43 = vld [vmem:[#allocation2 + $0x174] sm:$0xf] }
 0x432   : > { %5777 = vrot.lane.b32.xlu0 %v5494_v49, %s9360_s25  ;;  %v5625_v49 = vshll.u32 %v5358_v56, 16  ;;  %v5642_v22 = vrot.slane %v5640_v47, 4  ;;  %v5645_v5 = vrot.slane %v5643_v11, 5  ;;  %v5614_v50 = vsel %vm9560_vm10, %v5609_v53, %v5613_v31  ;;  %v5362_v11 = vld [vmem:[#allocation2 + $0x118] sm:$0x1] }
 0x433   : > { %v5655_v56 = vrot.slane %v5653_v25, 4  ;;  %v5683_v36 = vshll.u32 %v5365_v33, 16  ;;  %v5669_v35 = vrot.slane %v5667_v10, 5  ;;  %v4978_v17 = vrot.slane %v4976_v52, 7  ;;  %v5368_v33 = vld [vmem:[#allocation2 + $0x148] sm:$0x1] }
 0x434   : > { %v5222_v62 = vpop.permute.xlu0 %5221  ;;  %v11426_v4 = vrot.slane %v5625_v49, 5  ;;  %v5646_v45 = vor.u32 %v5645_v5, %v5642_v22  ;;  %v4979_v18 = vshll.u32 %v4706_v7, 16  ;;  %v5637_v29 = vrot.slane %v5635_v26, 5 }
 0x435   : > { %5306 = vst.msk [vmem:[#allocation3 + $0x2c] sm:$0xf] %vm1069_vm12, %v5222_v62  ;;  %v5621_v62 = vrot.slane %v5619_v13, 5  ;;  %v5688_v13 = vshrl.u32 %v5366_v24, 16  ;;  %v5691_v15 = vshll.u32 %v5366_v24, 16  ;;  %v5659_v23 = vshll.u32 %v5362_v11, 16 }
 0x436   : > { %v5647_v38 = vrot.slane %v5646_v45, 4  ;;  %v4974_v19 = vrot.slane %v11300_v20, 4  ;;  %v4981_v58 = vor.u32 %v4979_v18, %v4978_v17  ;;  %v5685_v16 = vrot.slane %v5683_v36, 5  ;;  %v4718_v45 = vld [vmem:[#allocation2 + $0x174] sm:$0xf] }
 0x437   : > { %v5622_v44 = vor.u32 %v5621_v62, %v5618_v6  ;;  %v5712_v6 = vshrl.u32 %v5369_v61, 16  ;;  %v5715_v31 = vshll.u32 %v5369_v61, 16  ;;  %v5693_v20 = vrot.slane %v5691_v15, 5  ;;  %v5372_v18 = vld [vmem:[#allocation2 + $0x170] sm:$0xf] }
 0x438   : > { %5785 = vrot.lane.b32.xlu1 %v5542_v57, %s9360_s25  ;;  %5781 = vrot.lane.b32.xlu2 %v5518_v63, %s9360_s25  ;;  %v5632_v57 = vor.u32 %v5631_v14, %v11426_v4  ;;  %v5664_v63 = vshrl.u32 %v5363_v40, 16  ;;  %v5690_v14 = vrot.slane %v5688_v13, 4  ;;  %v4982_v53 = vsel %vm9589_vm11, %v4974_v19, %v4981_v58  ;;  %v5371_v19 = vld [vmem:[#allocation2 + $0x160] sm:$0x1] }
 0x439   : > { %v5623_v47 = vrot.slane %v5622_v44, 4  ;;  %5126 = vst.msk [vmem:[#allocation3 + $0x5c] sm:$0xf] %vm232_vm0, %v4982_v53  ;;  %v11461_v27 = vrot.slane %v5712_v6, 4  ;;  %v5370_v44 = vld [vmem:[#allocation2 + $0x15c] sm:$0xf] }
 0x43a   : > { %5783 = vrot.lane.b32.xlu0 %v5532_v59, %s9360_s25  ;;  %v11432_v59 = vrot.slane %v5673_v42, 5  ;;  %v5633_v30 = vrot.slane %v5632_v57, 4  ;;  %v5666_v41 = vrot.slane %v5664_v63, 4  ;;  %v5055_v55 = vshrl.u32 %v11463_v54, 16 }
 0x43b   : > { %v5628_v46 = vsel %vm9560_vm10, %v5623_v47, %v11426_v4  ;;  %v5064_v57 = vshrl.u32 %v4718_v45, 16  ;;  %v5717_v10 = vrot.slane %v5715_v31, 5  ;;  %v5067_v7 = vshll.u32 %v4718_v45, 16  ;;  %v5374_v31 = vld [vmem:[#allocation2 + $0x178] sm:$0x1] }
 0x43c   : > { %v5224_v8 = vpop.permute.xlu1 %5223  ;;  %v5680_v12 = vor.u32 %v5679_v60, %v11432_v59  ;;  %v5670_v5 = vor.u32 %v5669_v35, %v5666_v41  ;;  %v5638_v4 = vsel %vm9560_vm10, %v5633_v30, %v5637_v29  ;;  %v11470_v26 = vrot.slane %v5055_v55, 7  ;;  %v11496_v45 = vld [vmem:[#allocation2 + $0x38] sm:$0xf] }
 0x43d   : > { %5307 = vst.msk [vmem:[#allocation3 + $0x30] sm:$0xf] %vm1069_vm12, %v5224_v8  ;;  %v5367_v8 = vld [vmem:[#allocation2 + $0x144] sm:$0xf]  ;;  %v5066_v24 = vrot.slane %v5064_v57, 7  ;;  %v5745_v52 = vshll.u32 %v5373_v43, 16 }
 0x43e   : > { %v5697_v3 = vshll.u32 %v5367_v8, 16  ;;  %v5701_v22 = vshrl.u32 %v5367_v8, 16  ;;  %v5681_v62 = vrot.slane %v5680_v12, 4  ;;  %v5671_v48 = vrot.slane %v5670_v5, 4 }
 0x43f   : > { %v5725_v8 = vshrl.u32 %v5370_v44, 16  ;;  %v5062_v36 = vrot.slane %v11470_v26, 4  ;;  %v5069_v11 = vor.u32 %v5067_v7, %v5066_v24  ;;  %v5749_v17 = vshrl.u32 %v5373_v43, 16  ;;  %v5889_v7 = vld [vmem:[#allocation2 + $0x24] sm:$0xf] }
 0x440   : > { %5791 = vrot.lane.b32.xlu1 %v5580_v28, %s9360_s25  ;;  %5787 = vrot.lane.b32.xlu2 %v5556_v39, %s9360_s25  ;;  %v5656_v39 = vor.u32 %v5655_v56, %v5651_v0  ;;  %v11453_v42 = vrot.slane %v5697_v3, 5  ;;  %v5703_v32 = vrot.slane %v5701_v22, 4  ;;  %v5686_v25 = vsel %vm9560_vm10, %v5681_v62, %v5685_v16  ;;  %v4710_v62 = vld [vmem:[#allocation2 + $0x13c] sm:$0x8]  ;;  %v5890_v24 = vld [vmem:[#allocation2 + $0x34] sm:$0x8] }
 0x441   : > { %v5721_v56 = vshll.u32 %v5370_v44, 16  ;;  %v5676_v61 = vsel %vm9560_vm10, %v5671_v48, %v11432_v59  ;;  %v5070_v29 = vsel %vm9589_vm11, %v5062_v36, %v5069_v11  ;;  %v5718_v22 = vor.u32 %v5717_v10, %v11461_v27 }
 0x442   : > { %5789 = vrot.lane.b32.xlu0 %v5566_v51, %s9360_s25  ;;  %v5652_v51 = vsel %vm9560_vm10, %v5647_v38, %v5651_v0  ;;  %v5657_v40 = vrot.slane %v5656_v39, 4  ;;  %v5704_v60 = vor.u32 %v5703_v32, %v11453_v42  ;;  %v5727_v59 = vrot.slane %v5725_v8, 4  ;;  %5134 = vst.msk [vmem:[#allocation3 + $0x7c] sm:$0xf] %vm232_vm0, %v5070_v29 }
 0x443   : > { %v5736_v58 = vshrl.u32 %v5372_v18, 16  ;;  %v5751_v6 = vrot.slane %v5749_v17, 4  ;;  %v5719_v32 = vrot.slane %v5718_v22, 4  ;;  %v5755_v55 = vshll.u32 %v5374_v31, 16  ;;  %v5892_v22 = vld [vmem:[#allocation2 + $0x3c] sm:$0xf] }
 0x444   : > { %v5232_v1 = vpop.permute.xlu2 %5231  ;;  %v5705_v39 = vrot.slane %v5704_v60, 4  ;;  %v5731_v57 = vshll.u32 %v5371_v19, 16  ;;  %v5963_v60 = vshrl.u32 %v11496_v45, 16  ;;  %v5972_v31 = vshrl.u32 %v5892_v22, 16 }
 0x445   : > { %5311 = vst.msk [vmem:[#allocation3 + $0x40] sm:$0xf] %vm1069_vm12, %v5232_v1  ;;  %v5661_v1 = vrot.slane %v5659_v23, 5  ;;  %v11486_v23 = vrot.slane %v5745_v52, 5  ;;  %v5738_v48 = vrot.slane %v5736_v58, 4 }
 0x446   : > { %v5733_v36 = vrot.slane %v5731_v57, 5  ;;  %v5895_v58 = vld [vmem:[#allocation2 + $0x54] sm:$0xf]  ;;  %v5897_v57 = vld [vmem:[#allocation2 + $0x68] sm:$0xf] }
 0x447   : > { %v5662_v12 = vsel %vm9560_vm10, %v5657_v40, %v5661_v1  ;;  %v5752_v43 = vor.u32 %v5751_v6, %v11486_v23  ;;  %v5040_v6 = vrot.slane %v11394_v2, 4  ;;  %v5893_v2 = vld [vmem:[#allocation2 + $0x4c] sm:$0x8] }
 0x448   : > { %5797 = vrot.lane.b32.xlu1 %v5614_v50, %s9360_s25  ;;  %5793 = vrot.lane.b32.xlu2 %v5590_v21, %s9360_s25  ;;  %v5694_v50 = vor.u32 %v5693_v20, %v5690_v14  ;;  %v4711_v21 = vld [vmem:[#allocation2 + $0x140] sm:$0xf]  ;;  %v5006_v20 = vshrl.u32 %v4710_v62, 16 }
 0x449   : > { %v5011_v38 = vshrl.u32 %v4711_v21, 16  ;;  %v5014_v16 = vshll.u32 %v4711_v21, 16  ;;  %v5753_v52 = vrot.slane %v5752_v43, 4 }
 0x44a   : > { %5795 = vrot.lane.b32.xlu0 %v5604_v34, %s9360_s25  ;;  %v4712_v34 = vld [vmem:[#allocation2 + $0x144] sm:$0xf]  ;;  %v5695_v13 = vrot.slane %v5694_v50, 4  ;;  %v4716_v50 = vld [vmem:[#allocation2 + $0x16c] sm:$0x8] }
 0x44b   : > { %v5020_v47 = vshrl.u32 %v4712_v34, 16  ;;  %v5023_v30 = vshll.u32 %v4712_v34, 16  ;;  %v5013_v41 = vrot.slane %v5011_v38, 7  ;;  %v5050_v21 = vshrl.u32 %v4716_v50, 16 }
 0x44c   : > { %v5228_v49 = vpop.permute.xlu0 %5227  ;;  %v5980_v50 = vshrl.u32 %v5893_v2, 16 }
 0x44d   : > { %5309 = vst.msk [vmem:[#allocation3 + $0x38] sm:$0xf] %vm1069_vm12, %v5228_v49  ;;  %v5238_v28 = vpop.permute.xlu2 %5237  ;;  %v5022_v35 = vrot.slane %v5020_v47, 7  ;;  %v5707_v49 = vshll.u32 %v5368_v33, 16  ;;  %v5018_v15 = vrot.slane %v5013_v41, 4  ;;  %v5016_v40 = vor.u32 %v5014_v16, %v5013_v41 }
 0x44e   : > { %5314 = vst.msk [vmem:[#allocation3 + $0x4c] sm:$0xf] %vm1069_vm12, %v5238_v28  ;;  %v5723_v28 = vrot.slane %v5721_v56, 5  ;;  %v5058_v33 = vshll.u32 %v11463_v54, 16  ;;  %v5887_v54 = vld [vmem:[#allocation2 + $0x1c] sm:$0x8] }
 0x44f   : > { %v5025_v3 = vor.u32 %v5023_v30, %v5022_v35  ;;  %v5709_v53 = vrot.slane %v5707_v49, 5  ;;  %v5757_v30 = vrot.slane %v5755_v55, 5  ;;  %v9163_v11 = vrot.slane %v5050_v21, 11 }
 0x450   : > { %5803 = vrot.lane.b32.xlu1 %v5652_v51, %s9360_s25  ;;  %5799 = vrot.lane.b32.xlu2 %v5628_v46, %s9360_s25  ;;  %v5739_v51 = vshll.u32 %v5372_v18, 16  ;;  %v5728_v1 = vor.u32 %v5727_v59, %v5723_v28  ;;  %v5724_v44 = vsel %vm9560_vm10, %v5719_v32, %v5723_v28  ;;  %v5060_v47 = vor.u32 %v5058_v33, %v11470_v26  ;;  %v5900_v33 = vld [vmem:[#allocation2 + $0x80] sm:$0xf] }
 0x451   : > { %v5026_v46 = vsel %vm9589_vm11, %v5018_v15, %v5025_v3  ;;  %v5950_v35 = vshrl.u32 %v5889_v7, 16  ;;  %v11517_v18 = vrot.slane %v5963_v60, 7  ;;  %v5936_v49 = vshrl.u32 %v5887_v54, 16 }
 0x452   : > { %5801 = vrot.lane.b32.xlu0 %v5638_v4, %s9360_s25  ;;  %5130 = vst.msk [vmem:[#allocation3 + $0x6c] sm:$0xf] %vm232_vm0, %v5026_v46  ;;  %v5700_v4 = vsel %vm9560_vm10, %v5695_v13, %v11453_v42  ;;  %v5741_v27 = vrot.slane %v5739_v51, 5  ;;  %v5710_v42 = vsel %vm9560_vm10, %v5705_v39, %v5709_v53  ;;  %v5729_v34 = vrot.slane %v5728_v1, 4 }
 0x453   : > { %v5061_v13 = vsel %vm9589_vm11, %v9163_v11, %v5060_v47  ;;  %v5758_v15 = vsel %vm9560_vm10, %v5753_v52, %v5757_v30  ;;  %v5952_v19 = vrot.slane %v5950_v35, 7  ;;  %v5966_v51 = vshll.u32 %v11496_v45, 16  ;;  %v5896_v30 = vld [vmem:[#allocation2 + $0x64] sm:$0x8]  ;;  %v5899_v11 = vld [vmem:[#allocation2 + $0x7c] sm:$0x8] }
 0x454   : > { %v5230_v63 = vpop.permute.xlu1 %5229  ;;  %v5734_v3 = vsel %vm9560_vm10, %v5729_v34, %v5733_v36  ;;  %5133 = vst.msk [vmem:[#allocation3 + $0x78] sm:$0xf] %vm232_vm0, %v5061_v13  ;;  %v5953_v53 = vshll.u32 %v5889_v7, 16  ;;  %v5997_v60 = vshll.u32 %v5895_v58, 16  ;;  %v5898_v7 = vld [vmem:[#allocation2 + $0x6c] sm:$0xf] }
 0x455   : > { %5310 = vst.msk [vmem:[#allocation3 + $0x3c] sm:$0xf] %vm1069_vm12, %v5230_v63  ;;  %v5244_v0 = vpop.permute.xlu2 %5243  ;;  %v5888_v63 = vld [vmem:[#allocation2 + $0x20] sm:$0xf]  ;;  %v6029_v52 = vshrl.u32 %v5900_v33, 16  ;;  %v9166_v36 = vrot.slane %v5980_v50, 11 }
 0x456   : > { %5317 = vst.msk [vmem:[#allocation3 + $0x58] sm:$0xf] %vm1069_vm12, %v5244_v0  ;;  %v5742_v0 = vor.u32 %v5741_v27, %v5738_v48  ;;  %v5941_v38 = vshrl.u32 %v5888_v63, 16  ;;  %v5944_v46 = vshll.u32 %v5888_v63, 16  ;;  %v5955_v48 = vor.u32 %v5953_v53, %v5952_v19  ;;  %v5906_v50 = vld [vmem:[#allocation2 + $0xb0] sm:$0xf] }
 0x457   : > { %v6032_v19 = vshll.u32 %v5900_v33, 16 }
 0x458   : > { %5809 = vrot.lane.b32.xlu1 %v5686_v25, %s9360_s25  ;;  %5805 = vrot.lane.b32.xlu2 %v5662_v12, %s9360_s25  ;;  %v9161_v25 = vrot.slane %v5006_v20, 11  ;;  %v4715_v12 = vld [vmem:[#allocation2 + $0x15c] sm:$0xf]  ;;  %v5743_v26 = vrot.slane %v5742_v0, 4  ;;  %v5943_v29 = vrot.slane %v5941_v38, 7 }
 0x459   : > { %v5042_v17 = vshrl.u32 %v4715_v12, 16  ;;  %v5045_v39 = vshll.u32 %v4715_v12, 16 }
 0x45a   : > { %5807 = vrot.lane.b32.xlu0 %v5676_v61, %s9360_s25  ;;  %v5017_v10 = vsel %vm9589_vm11, %v9161_v25, %v5016_v40  ;;  %v5958_v61 = vshrl.u32 %v5890_v24, 16  ;;  %v5748_v59 = vsel %vm9560_vm10, %v5743_v26, %v11486_v23  ;;  %v5946_v23 = vor.u32 %v5944_v46, %v5943_v29 }
 0x45b   : > { %5129 = vst.msk [vmem:[#allocation3 + $0x68] sm:$0xf] %vm232_vm0, %v5017_v10  ;;  %v5044_v28 = vrot.slane %v5042_v17, 7  ;;  %v5994_v40 = vshrl.u32 %v5895_v58, 16  ;;  %v5948_v45 = vrot.slane %v5943_v29, 4  ;;  %v5974_v25 = vrot.slane %v5972_v31, 7  ;;  %v4506_v17 = vpop.f32.mrf.mxu2 }
 0x45c   : > { %v5236_v5 = vpop.permute.xlu1 %5235  ;;  %v9165_v16 = vrot.slane %v5958_v61, 11  ;;  %v5975_v10 = vshll.u32 %v5892_v22, 16  ;;  %v6007_v24 = vshrl.u32 %v5897_v57, 16  ;;  %v6002_v61 = vshrl.u32 %v5896_v30, 16  ;;  %v5901_v29 = vld [vmem:[#allocation2 + $0x84] sm:$0xf] }
 0x45d   : > { %5313 = vst.msk [vmem:[#allocation3 + $0x48] sm:$0xf] %vm1069_vm12, %v5236_v5  ;;  %v5250_v14 = vpop.permute.xlu2 %5249  ;;  %v5894_v5 = vld [vmem:[#allocation2 + $0x50] sm:$0xf]  ;;  %v5047_v62 = vor.u32 %v5045_v39, %v5044_v28  ;;  %v5996_v55 = vrot.slane %v5994_v40, 7  ;;  %v5956_v63 = vsel %vm9589_vm11, %v5948_v45, %v5955_v48  ;;  %v6010_v28 = vshll.u32 %v5897_v57, 16 }
 0x45e   : > { %5320 = vst.msk [vmem:[#allocation3 + $0x64] sm:$0xf] %vm1069_vm12, %v5250_v14  ;;  %v9164_v14 = vrot.slane %v5936_v49, 11  ;;  %v5985_v27 = vshrl.u32 %v5894_v5, 16  ;;  %v5977_v34 = vor.u32 %v5975_v10, %v5974_v25  ;;  %v5988_v0 = vshll.u32 %v5894_v5, 16 }
 0x45f   : > { %v5048_v1 = vsel %vm9589_vm11, %v5040_v6, %v5047_v62  ;;  %v6009_v13 = vrot.slane %v6007_v24, 7  ;;  %v11555_v49 = vrot.slane %v6029_v52, 7  ;;  %v5903_v58 = vld [vmem:[#allocation2 + $0x98] sm:$0xf]  ;;  %v9167_v5 = vrot.slane %v6002_v61, 11 }
 0x460   : > { %5815 = vrot.lane.b32.xlu1 %v5724_v44, %s9360_s25  ;;  %5811 = vrot.lane.b32.xlu2 %v5700_v4, %s9360_s25  ;;  %v5968_v4 = vor.u32 %v5966_v51, %v11517_v18  ;;  %5132 = vst.msk [vmem:[#allocation3 + $0x74] sm:$0xf] %vm232_vm0, %v5048_v1  ;;  %v5947_v43 = vsel %vm9589_vm11, %v9164_v14, %v5946_v23  ;;  %v6019_v62 = vshll.u32 %v5898_v7, 16  ;;  %v6051_v23 = vshrl.u32 %v5903_v58, 16  ;;  %v5902_v1 = vld [vmem:[#allocation2 + $0x94] sm:$0x8] }
 0x461   : > { %v6012_v6 = vor.u32 %v6010_v28, %v6009_v13  ;;  %v6034_v31 = vor.u32 %v6032_v19, %v11555_v49  ;;  %v5909_v10 = vld [vmem:[#allocation2 + $0xc8] sm:$0xf]  ;;  %v5905_v52 = vld [vmem:[#allocation2 + $0xac] sm:$0x8]  ;;  %v6073_v30 = vshrl.u32 %v5906_v50, 16  ;;  %v6076_v19 = vshll.u32 %v5906_v50, 16 }
 0x462   : > { %5813 = vrot.lane.b32.xlu0 %v5710_v42, %s9360_s25  ;;  %v5969_v44 = vsel %vm9589_vm11, %v9165_v16, %v5968_v4  ;;  %v5987_v42 = vrot.slane %v5985_v27, 7  ;;  %v6038_v16 = vshrl.u32 %v5901_v29, 16  ;;  %v6014_v27 = vrot.slane %v6009_v13, 4 }
 0x463   : > { %v6013_v48 = vsel %vm9589_vm11, %v9167_v5, %v6012_v6  ;;  %v4508_v45 = vpop.f32.mrf.mxu2 }
 0x464   : > { %v5242_v56 = vpop.permute.xlu1 %5241  ;;  %v5234_v8 = vpop.permute.xlu0 %5233  ;;  %v5990_v54 = vor.u32 %v5988_v0, %v5987_v42  ;;  %v5992_v35 = vrot.slane %v5987_v42, 4  ;;  %v6040_v2 = vrot.slane %v6038_v16, 7  ;;  %v6046_v42 = vshrl.u32 %v5902_v1, 16 }
 0x465   : > { %5316 = vst.msk [vmem:[#allocation3 + $0x54] sm:$0xf] %vm1069_vm12, %v5242_v56  ;;  %v5256_v41 = vpop.permute.xlu2 %5255  ;;  %v5999_v56 = vor.u32 %v5997_v60, %v5996_v55  ;;  %v5907_v60 = vld [vmem:[#allocation2 + $0xb4] sm:$0xf]  ;;  %v6036_v0 = vrot.slane %v11555_v49, 4 }
 0x466   : > { %5312 = vst.msk [vmem:[#allocation3 + $0x44] sm:$0xf] %vm1069_vm12, %v5234_v8  ;;  %v5970_v8 = vrot.slane %v11517_v18, 4  ;;  %v6024_v18 = vshrl.u32 %v5899_v11, 16  ;;  %v5991_v22 = vsel %vm9589_vm11, %v9166_v36, %v5990_v54  ;;  %v9169_v54 = vrot.slane %v6046_v42, 11 }
 0x467   : > { %5323 = vst.msk [vmem:[#allocation3 + $0x70] sm:$0xf] %vm1069_vm12, %v5256_v41  ;;  %v6016_v41 = vshrl.u32 %v5898_v7, 16  ;;  %v6000_v26 = vsel %vm9589_vm11, %v5992_v35, %v5999_v56  ;;  %v6082_v35 = vshrl.u32 %v5907_v60, 16  ;;  %v6085_v5 = vshll.u32 %v5907_v60, 16 }
 0x468   : > { %5821 = vrot.lane.b32.xlu1 %v5758_v15, %s9360_s25  ;;  %5817 = vrot.lane.b32.xlu2 %v5734_v3, %s9360_s25  ;;  %v5978_v12 = vsel %vm9589_vm11, %v5970_v8, %v5977_v34  ;;  %v9349_v15 = vld [vmem:[%s12477_s2] ss:$0 sm:$0xff]  ;;  %v9168_v53 = vrot.slane %v6024_v18, 11  ;;  %v6095_v8 = vshrl.u32 %v5909_v10, 16  ;;  %v5916_v42 = vld [vmem:[#allocation2 + $0xfc] sm:$0xf] }
 0x469   : > { %v4507_v3 = vadd.f32 %v9349_v15, %v4506_v17  ;;  %v6018_v39 = vrot.slane %v6016_v41, 7  ;;  %v4509_v55 = vadd.f32 %v9349_v15, %v4508_v45  ;;  %v5908_v41 = vld [vmem:[#allocation2 + $0xc4] sm:$0x8]  ;;  %v6068_v17 = vshrl.u32 %v5905_v52, 16  ;;  %v5915_v45 = vld [vmem:[#allocation2 + $0xf8] sm:$0xf] }
 0x46a   : > { %5819 = vrot.lane.b32.xlu0 %v5748_v59, %s9360_s25  ;;  %v5904_v59 = vld [vmem:[#allocation2 + $0x9c] sm:$0xf]  ;;  %v6035_v25 = vsel %vm9589_vm11, %v9168_v53, %v6034_v31  ;;  %v6090_v49 = vshrl.u32 %v5908_v41, 16  ;;  %v6075_v15 = vrot.slane %v6073_v30, 7  ;;  %v6084_v28 = vrot.slane %v6082_v35, 7 }
 0x46b   : > { %vm4541_vm3 = vcmp.ge.f32.partialorder %v4507_v3, 0.0  ;;  %v4573_v51 = vmul.f32 0.2, %v4507_v3  ;;  %v6021_v4 = vor.u32 %v6019_v62, %v6018_v39  ;;  %v6063_v33 = vshll.u32 %v5904_v59, 16  ;;  %v5910_v39 = vld [vmem:[#allocation2 + $0xcc] sm:$0xf] }
 0x46c   : > { %v5248_v20 = vpop.permute.xlu1 %5247  ;;  %v5240_v32 = vpop.permute.xlu0 %5239  ;;  %vm4542_vm8 = vcmp.ge.f32.partialorder %v4509_v55, 0.0  ;;  %v4574_v7 = vmul.f32 0.2, %v4509_v55  ;;  %v6078_v31 = vor.u32 %v6076_v19, %v6075_v15  ;;  %v6139_v60 = vshrl.u32 %v5915_v45, 16  ;;  %v5919_v41 = vld [vmem:[#allocation2 + $0x114] sm:$0xf] }
 0x46d   : > { %5319 = vst.msk [vmem:[#allocation3 + $0x60] sm:$0xf] %vm1069_vm12, %v5248_v20  ;;  %v6060_v20 = vshrl.u32 %v5904_v59, 16  ;;  %v6022_v57 = vsel %vm9589_vm11, %v6014_v27, %v6021_v4  ;;  %v6098_v59 = vshll.u32 %v5909_v10, 16  ;;  %v5911_v4 = vld [vmem:[#allocation2 + $0xdc] sm:$0x8] }
 0x46e   : > { %5315 = vst.msk [vmem:[#allocation3 + $0x50] sm:$0xf] %vm1069_vm12, %v5240_v32  ;;  %v4605_v32 = vsel %vm4541_vm3, %v4507_v3, %v4573_v51  ;;  %v4606_v36 = vsel %vm4542_vm8, %v4509_v55, %v4574_v7  ;;  %v5913_v3 = vld [vmem:[#allocation2 + $0xe4] sm:$0xf] }
 0x46f   : > { %v4637_v40 = vpack.c.bf16 %v4605_v32, %v4605_v32  ;;  %v6126_v62 = vshrl.u32 %v5913_v3, 16  ;;  %v6087_v32 = vor.u32 %v6085_v5, %v6084_v28 }
 0x470   : > { %6291 = vrot.lane.b32.xlu1 %v5969_v44, %s9361_s26  ;;  %6287 = vrot.lane.b32.xlu2 %v5947_v43, %s9361_s26  ;;  %v6062_v44 = vrot.slane %v6060_v20, 7  ;;  %v6041_v43 = vshll.u32 %v5901_v29, 16  ;;  %v11587_v29 = vrot.slane %v6095_v8, 7  ;;  %v6104_v20 = vshrl.u32 %v5910_v39, 16 }
 0x471   : > { %4669 = vst.msk [vmem:[#allocation2 + $0x188] sm:$0xf] %vm232_vm0, %v4637_v40  ;;  %v6128_v40 = vrot.slane %v6126_v62, 7  ;;  %v6148_v8 = vshrl.u32 %v5916_v42, 16  ;;  %v5920_v62 = vld [vmem:[#allocation2 + $0x124] sm:$0x8] }
 0x472   : > { %6289 = vrot.lane.b32.xlu0 %v5956_v63, %s9361_s26  ;;  %v5262_v21 = vpop.permute.xlu2 %5261  ;;  %v6053_v63 = vrot.slane %v6051_v23, 7  ;;  %v6043_v24 = vor.u32 %v6041_v43, %v6040_v2  ;;  %v6065_v56 = vor.u32 %v6063_v33, %v6062_v44  ;;  %v6100_v53 = vor.u32 %v6098_v59, %v11587_v29 }
 0x473   : > { %5326 = vst.msk [vmem:[#allocation3 + $0x7c] sm:$0xf] %vm1069_vm12, %v5262_v21  ;;  %v6080_v23 = vrot.slane %v6075_v15, 4  ;;  %v6106_v2 = vrot.slane %v6104_v20, 7  ;;  %v6129_v44 = vshll.u32 %v5913_v3, 16  ;;  %v6112_v43 = vshrl.u32 %v5911_v4, 16 }
 0x474   : > { %v5254_v38 = vpop.permute.xlu1 %5253  ;;  %v5246_v47 = vpop.permute.xlu0 %5245  ;;  %v6058_v61 = vrot.slane %v6053_v63, 4  ;;  %v6044_v13 = vsel %vm9589_vm11, %v6036_v0, %v6043_v24  ;;  %v5914_v24 = vld [vmem:[#allocation2 + $0xf4] sm:$0x8]  ;;  %v6102_v52 = vrot.slane %v11587_v29, 4  ;;  %v6170_v29 = vshrl.u32 %v5919_v41, 16 }
 0x475   : > { %5322 = vst.msk [vmem:[#allocation3 + $0x6c] sm:$0xf] %vm1069_vm12, %v5254_v38  ;;  %v6054_v38 = vshll.u32 %v5903_v58, 16  ;;  %v6131_v33 = vor.u32 %v6129_v44, %v6128_v40 }
 0x476   : > { %5318 = vst.msk [vmem:[#allocation3 + $0x5c] sm:$0xf] %vm1069_vm12, %v5246_v47  ;;  %v6066_v18 = vsel %vm9589_vm11, %v6058_v61, %v6065_v56  ;;  %v5917_v56 = vld [vmem:[#allocation2 + $0x10c] sm:$0x8] }
 0x477   : > { %v6056_v11 = vor.u32 %v6054_v38, %v6053_v63  ;;  %v6107_v63 = vshll.u32 %v5910_v39, 16  ;;  %v9172_v38 = vrot.slane %v6112_v43, 11  ;;  %v6151_v39 = vshll.u32 %v5916_v42, 16 }
 0x478   : > { %6297 = vrot.lane.b32.xlu1 %v6000_v26, %s9361_s26  ;;  %6293 = vrot.lane.b32.xlu2 %v5978_v12, %s9361_s26  ;;  %v4638_v12 = vpack.c.bf16 %v4606_v36, %v4606_v36  ;;  %v5912_v26 = vld [vmem:[#allocation2 + $0xe0] sm:$0xf]  ;;  %v6134_v36 = vshrl.u32 %v5914_v24, 16 }
 0x479   : > { %v6117_v6 = vshrl.u32 %v5912_v26, 16  ;;  %v6120_v55 = vshll.u32 %v5912_v26, 16 }
 0x47a   : > { %6295 = vrot.lane.b32.xlu0 %v5991_v22, %s9361_s26  ;;  %v5764_v46 = vpop.permute.xlu2 %5763  ;;  %4670 = vst.msk [vmem:[#allocation2 + $0x18c] sm:$0xf] %vm232_vm0, %v4638_v12  ;;  %v6057_v22 = vsel %vm9589_vm11, %v9169_v54, %v6056_v11  ;;  %v6141_v54 = vrot.slane %v6139_v60, 7  ;;  %v6142_v11 = vshll.u32 %v5915_v45, 16  ;;  %v6156_v12 = vshrl.u32 %v5917_v56, 16 }
 0x47b   : > { %5857 = vst.msk [vmem:[#allocation3 + $0x8] sm:$0xf] %vm1633_vm13, %v5764_v46  ;;  %v9170_v46 = vrot.slane %v6068_v17, 11  ;;  %v6119_v27 = vrot.slane %v6117_v6, 7  ;;  %v5922_v17 = vld [vmem:[#allocation2 + $0x12c] sm:$0xf] }
 0x47c   : > { %v5252_v14 = vpop.permute.xlu0 %5251  ;;  %v6144_v28 = vor.u32 %v6142_v11, %v6141_v54  ;;  %v6192_v59 = vshrl.u32 %v5922_v17, 16  ;;  %v6172_v6 = vrot.slane %v6170_v29, 7  ;;  %v5931_v11 = vld [vmem:[#allocation2 + $0x174] sm:$0xf] }
 0x47d   : > { %5321 = vst.msk [vmem:[#allocation3 + $0x68] sm:$0xf] %vm1069_vm12, %v5252_v14  ;;  %v9171_v14 = vrot.slane %v6090_v49, 11  ;;  %v5921_v49 = vld [vmem:[#allocation2 + $0x128] sm:$0xf] }
 0x47e   : > { %v6186_v4 = vshll.u32 %v5921_v49, 16 }
 0x47f   : > { %v6101_v1 = vsel %vm9589_vm11, %v9171_v14, %v6100_v53  ;;  %v6146_v14 = vrot.slane %v6141_v54, 4  ;;  %v6194_v53 = vrot.slane %v6192_v59, 7 }
 0x480   : > { %6303 = vrot.lane.b32.xlu1 %v6035_v25, %s9361_s26  ;;  %6299 = vrot.lane.b32.xlu2 %v6013_v48, %s9361_s26  ;;  %v6079_v48 = vsel %vm9589_vm11, %v9170_v46, %v6078_v31  ;;  %v6088_v25 = vsel %vm9589_vm11, %v6080_v23, %v6087_v32  ;;  %v6183_v46 = vshrl.u32 %v5921_v49, 16  ;;  %v6173_v32 = vshll.u32 %v5919_v41, 16  ;;  %v5924_v23 = vld [vmem:[#allocation2 + $0x140] sm:$0xf] }
 0x482   : > { %6301 = vrot.lane.b32.xlu0 %v6022_v57, %s9361_s26  ;;  %v5260_v21 = vpop.permute.xlu1 %5259  ;;  %v5770_v34 = vpop.permute.xlu2 %5769  ;;  %v5918_v57 = vld [vmem:[#allocation2 + $0x110] sm:$0xf]  ;;  %v6185_v20 = vrot.slane %v6183_v46, 7  ;;  %v6175_v45 = vor.u32 %v6173_v32, %v6172_v6 }
 0x483   : > { %5325 = vst.msk [vmem:[#allocation3 + $0x78] sm:$0xf] %vm1069_vm12, %v5260_v21  ;;  %v6124_v21 = vrot.slane %v6119_v27, 4  ;;  %v6161_v0 = vshrl.u32 %v5918_v57, 16 }
 0x484   : > { %v5258_v47 = vpop.permute.xlu0 %5257  ;;  %5860 = vst.msk [vmem:[#allocation3 + $0x14] sm:$0xf] %vm1633_vm13, %v5770_v34  ;;  %v6109_v34 = vor.u32 %v6107_v63, %v6106_v2  ;;  %v5925_v2 = vld [vmem:[#allocation2 + $0x144] sm:$0xf] }
 0x485   : > { %5324 = vst.msk [vmem:[#allocation3 + $0x74] sm:$0xf] %vm1069_vm12, %v5258_v47  ;;  %v6122_v47 = vor.u32 %v6120_v55, %v6119_v27  ;;  %v6132_v30 = vsel %vm9589_vm11, %v6124_v21, %v6131_v33  ;;  %v6163_v61 = vrot.slane %v6161_v0, 7  ;;  %v5927_v27 = vld [vmem:[#allocation2 + $0x158] sm:$0xf]  ;;  %v6190_v33 = vrot.slane %v6185_v20, 4 }
 0x486   : > { %v6110_v35 = vsel %vm9589_vm11, %v6102_v52, %v6109_v34  ;;  %v6227_v42 = vshrl.u32 %v5927_v27, 16  ;;  %v5926_v21 = vld [vmem:[#allocation2 + $0x154] sm:$0x8]  ;;  %v6230_v52 = vshll.u32 %v5927_v27, 16  ;;  %v6217_v41 = vshll.u32 %v5925_v2, 16 }
 0x487   : > { %v6123_v26 = vsel %vm9589_vm11, %v9172_v38, %v6122_v47  ;;  %v6168_v55 = vrot.slane %v6163_v61, 4  ;;  %v6208_v47 = vshll.u32 %v5924_v23, 16  ;;  %v6222_v56 = vshrl.u32 %v5926_v21, 16 }
 0x488   : > { %6309 = vrot.lane.b32.xlu1 %v6066_v18, %s9361_s26  ;;  %6305 = vrot.lane.b32.xlu2 %v6044_v13, %s9361_s26  ;;  %v6164_v13 = vshll.u32 %v5918_v57, 16  ;;  %v6150_v18 = vrot.slane %v6148_v8, 7  ;;  %v6205_v57 = vshrl.u32 %v5924_v23, 16  ;;  %v6229_v8 = vrot.slane %v6227_v42, 7 }
 0x489   : > { %v6176_v34 = vsel %vm9589_vm11, %v6168_v55, %v6175_v45  ;;  %v9177_v49 = vrot.slane %v6222_v56, 11  ;;  %v5932_v45 = vld [vmem:[#allocation2 + $0x184] sm:$0x8] }
 0x48a   : > { %6307 = vrot.lane.b32.xlu0 %v6057_v22, %s9361_s26  ;;  %v5762_v58 = vpop.permute.xlu1 %5761  ;;  %v5776_v51 = vpop.permute.xlu2 %5775  ;;  %v9173_v22 = vrot.slane %v6134_v36, 11  ;;  %v6153_v5 = vor.u32 %v6151_v39, %v6150_v18  ;;  %v6207_v38 = vrot.slane %v6205_v57, 7  ;;  %v5928_v36 = vld [vmem:[#allocation2 + $0x15c] sm:$0xf]  ;;  %v6232_v29 = vor.u32 %v6230_v52, %v6229_v8  ;;  %v5929_v39 = vld [vmem:[#allocation2 + $0x16c] sm:$0x8] }
 0x48b   : > { %5856 = vst.msk [vmem:[#allocation3 + $0x4] sm:$0xf] %vm1633_vm13, %v5762_v58  ;;  %v9174_v58 = vrot.slane %v6156_v12, 11  ;;  %v6239_v6 = vshll.u32 %v5928_v36, 16  ;;  %v6266_v57 = vshrl.u32 %v5932_v45, 16 }
 0x48c   : > { %v5760_v16 = vpop.permute.xlu0 %5759  ;;  %5863 = vst.msk [vmem:[#allocation3 + $0x20] sm:$0xf] %vm1633_vm13, %v5776_v51  ;;  %v6166_v51 = vor.u32 %v6164_v13, %v6163_v61  ;;  %v6154_v40 = vsel %vm9589_vm11, %v6146_v14, %v6153_v5  ;;  %v5933_v14 = vld [vmem:[#allocation2 + $0x188] sm:$0xf]  ;;  %v6435_v45 = vld [vmem:[#allocation2 + $0x110] sm:$0xf] }
 0x48d   : > { %5855 = vst.msk [vmem:[#allocation3] sm:$0xf] %vm1633_vm13, %v5760_v16  ;;  %v6145_v16 = vsel %vm9589_vm11, %v9173_v22, %v6144_v28  ;;  %v6212_v28 = vrot.slane %v6207_v38, 4  ;;  %v6274_v42 = vshll.u32 %v5933_v14, 16 }
 0x48e   : > { %v6167_v31 = vsel %vm9589_vm11, %v9174_v58, %v6166_v51 }
 0x490   : > { %6315 = vrot.lane.b32.xlu1 %v6101_v1, %s9361_s26  ;;  %6311 = vrot.lane.b32.xlu2 %v6079_v48, %s9361_s26  ;;  %v6195_v1 = vshll.u32 %v5922_v17, 16  ;;  %v6178_v48 = vshrl.u32 %v5920_v62, 16  ;;  %v6210_v17 = vor.u32 %v6208_v47, %v6207_v38  ;;  %v6244_v62 = vshrl.u32 %v5929_v39, 16  ;;  %v6415_v47 = vld [vmem:[#allocation2 + $0x20] sm:$0xf] }
 0x492   : > { %6313 = vrot.lane.b32.xlu0 %v6088_v25, %s9361_s26  ;;  %v5768_v10 = vpop.permute.xlu1 %5767  ;;  %v5782_v50 = vpop.permute.xlu2 %5781  ;;  %v6197_v43 = vor.u32 %v6195_v1, %v6194_v53  ;;  %v9175_v60 = vrot.slane %v6178_v48, 11  ;;  %v6261_v53 = vshll.u32 %v5931_v11, 16  ;;  %v6234_v1 = vrot.slane %v6229_v8, 4 }
 0x493   : > { %5859 = vst.msk [vmem:[#allocation3 + $0x10] sm:$0xf] %vm1633_vm13, %v5768_v10  ;;  %v5923_v10 = vld [vmem:[#allocation2 + $0x13c] sm:$0x8]  ;;  %v6271_v48 = vshrl.u32 %v5933_v14, 16  ;;  %v9178_v27 = vrot.slane %v6244_v62, 11 }
 0x494   : > { %v5766_v7 = vpop.permute.xlu0 %5765  ;;  %5866 = vst.msk [vmem:[#allocation3 + $0x2c] sm:$0xf] %vm1633_vm13, %v5782_v50  ;;  %v6214_v50 = vshrl.u32 %v5925_v2, 16  ;;  %v6198_v0 = vsel %vm9589_vm11, %v6190_v33, %v6197_v43  ;;  %v6200_v24 = vshrl.u32 %v5923_v10, 16  ;;  %v6430_v62 = vld [vmem:[#allocation2 + $0xcc] sm:$0xf] }
 0x495   : > { %5858 = vst.msk [vmem:[#allocation3 + $0xc] sm:$0xf] %vm1633_vm13, %v5766_v7  ;;  %v6188_v7 = vor.u32 %v6186_v4, %v6185_v20  ;;  %v6429_v14 = vld [vmem:[#allocation2 + $0xc8] sm:$0xf] }
 0x496   : > { %v9176_v13 = vrot.slane %v6200_v24, 11 }
 0x497   : > { %v6189_v54 = vsel %vm9589_vm11, %v9175_v60, %v6188_v7 }
 0x498   : > { %6321 = vrot.lane.b32.xlu1 %v6132_v30, %s9361_s26  ;;  %6317 = vrot.lane.b32.xlu2 %v6110_v35, %s9361_s26  ;;  %v6216_v30 = vrot.slane %v6214_v50, 7  ;;  %v5930_v35 = vld [vmem:[#allocation2 + $0x170] sm:$0xf]  ;;  %v6211_v58 = vsel %vm9589_vm11, %v9176_v13, %v6210_v17  ;;  %v6421_v13 = vld [vmem:[#allocation2 + $0x68] sm:$0xf] }
 0x499   : > { %v6249_v22 = vshrl.u32 %v5930_v35, 16  ;;  %v6419_v17 = vld [vmem:[#allocation2 + $0x50] sm:$0xf] }
 0x49a   : > { %6319 = vrot.lane.b32.xlu0 %v6123_v26, %s9361_s26  ;;  %v5774_v15 = vpop.permute.xlu1 %5773  ;;  %v5788_v3 = vpop.permute.xlu2 %5787  ;;  %v6236_v26 = vshrl.u32 %v5928_v36, 16 }
 0x49b   : > { %5862 = vst.msk [vmem:[#allocation3 + $0x1c] sm:$0xf] %vm1633_vm13, %v5774_v15  ;;  %v6219_v15 = vor.u32 %v6217_v41, %v6216_v30  ;;  %v6251_v5 = vrot.slane %v6249_v22, 7  ;;  %v6417_v41 = vld [vmem:[#allocation2 + $0x38] sm:$0xf] }
 0x49c   : > { %v5772_v19 = vpop.permute.xlu0 %5771  ;;  %5869 = vst.msk [vmem:[#allocation3 + $0x38] sm:$0xf] %vm1633_vm13, %v5788_v3  ;;  %v6258_v3 = vshrl.u32 %v5931_v11, 16  ;;  %v6238_v59 = vrot.slane %v6236_v26, 7  ;;  %v6416_v11 = vld [vmem:[#allocation2 + $0x24] sm:$0xf] }
 0x49d   : > { %5861 = vst.msk [vmem:[#allocation3 + $0x18] sm:$0xf] %vm1633_vm13, %v5772_v19  ;;  %v6233_v19 = vsel %vm9589_vm11, %v9177_v49, %v6232_v29  ;;  %v6220_v51 = vsel %vm9589_vm11, %v6212_v28, %v6219_v15  ;;  %v6420_v26 = vld [vmem:[#allocation2 + $0x54] sm:$0xf]  ;;  %v6424_v15 = vld [vmem:[#allocation2 + $0x84] sm:$0xf] }
 0x49e   : > { %v6260_v46 = vrot.slane %v6258_v3, 7  ;;  %v6241_v4 = vor.u32 %v6239_v6, %v6238_v59  ;;  %v6422_v3 = vld [vmem:[#allocation2 + $0x6c] sm:$0xf]  ;;  %v6423_v22 = vld [vmem:[#allocation2 + $0x80] sm:$0xf] }
 0x4a0   : > { %6327 = vrot.lane.b32.xlu1 %v6167_v31, %s9361_s26  ;;  %6323 = vrot.lane.b32.xlu2 %v6145_v16, %s9361_s26  ;;  %v6252_v16 = vshll.u32 %v5930_v35, 16  ;;  %v5934_v31 = vld [vmem:[#allocation2 + $0x18c] sm:$0xf]  ;;  %v6242_v43 = vsel %vm9589_vm11, %v6234_v1, %v6241_v4  ;;  %v6431_v4 = vld [vmem:[#allocation2 + $0xe0] sm:$0xf] }
 0x4a1   : > { %v6283_v33 = vshll.u32 %v5934_v31, 16 }
 0x4a2   : > { %6325 = vrot.lane.b32.xlu0 %v6154_v40, %s9361_s26  ;;  %v5780_v25 = vpop.permute.xlu1 %5779  ;;  %v5794_v44 = vpop.permute.xlu2 %5793  ;;  %v6263_v40 = vor.u32 %v6261_v53, %v6260_v46  ;;  %v6254_v2 = vor.u32 %v6252_v16, %v6251_v5  ;;  %v6428_v16 = vld [vmem:[#allocation2 + $0xb4] sm:$0xf] }
 0x4a3   : > { %5865 = vst.msk [vmem:[#allocation3 + $0x28] sm:$0xf] %vm1633_vm13, %v5780_v25  ;;  %v6280_v25 = vshrl.u32 %v5934_v31, 16 }
 0x4a4   : > { %v5778_v63 = vpop.permute.xlu0 %5777  ;;  %5872 = vst.msk [vmem:[#allocation3 + $0x44] sm:$0xf] %vm1633_vm13, %v5794_v44  ;;  %v6256_v44 = vrot.slane %v6251_v5, 4  ;;  %v6255_v10 = vsel %vm9589_vm11, %v9178_v27, %v6254_v2  ;;  %v6436_v27 = vld [vmem:[#allocation2 + $0x114] sm:$0xf] }
 0x4a5   : > { %5864 = vst.msk [vmem:[#allocation3 + $0x24] sm:$0xf] %vm1633_vm13, %v5778_v63  ;;  %v6273_v63 = vrot.slane %v6271_v48, 7  ;;  %v6282_v50 = vrot.slane %v6280_v25, 7  ;;  %v6434_v2 = vld [vmem:[#allocation2 + $0xfc] sm:$0xf] }
 0x4a6   : > { %v6264_v55 = vsel %vm9589_vm11, %v6256_v44, %v6263_v40 }
 0x4a7   : > { %v6278_v24 = vrot.slane %v6273_v63, 4  ;;  %v6285_v38 = vor.u32 %v6283_v33, %v6282_v50  ;;  %v6608_v50 = vld [vmem:[#allocation2 + $0x24] sm:$0xf] }
 0x4a8   : > { %6333 = vrot.lane.b32.xlu1 %v6198_v0, %s9361_s26  ;;  %6329 = vrot.lane.b32.xlu2 %v6176_v34, %s9361_s26  ;;  %v9179_v34 = vrot.slane %v6266_v57, 11  ;;  %v6276_v0 = vor.u32 %v6274_v42, %v6273_v63  ;;  %v6437_v57 = vld [vmem:[#allocation2 + $0x128] sm:$0xf]  ;;  %v6438_v63 = vld [vmem:[#allocation2 + $0x12c] sm:$0xf] }
 0x4a9   : > { %v6286_v8 = vsel %vm9589_vm11, %v6278_v24, %v6285_v38  ;;  %v6441_v24 = vld [vmem:[#allocation2 + $0x158] sm:$0xf] }
 0x4aa   : > { %6331 = vrot.lane.b32.xlu0 %v6189_v54, %s9361_s26  ;;  %v5786_v12 = vpop.permute.xlu1 %5785  ;;  %v5800_v61 = vpop.permute.xlu2 %5799  ;;  %v6277_v56 = vsel %vm9589_vm11, %v9179_v34, %v6276_v0  ;;  %v6418_v54 = vld [vmem:[#allocation2 + $0x3c] sm:$0xf]  ;;  %v6440_v34 = vld [vmem:[#allocation2 + $0x144] sm:$0xf]  ;;  %v6607_v0 = vld [vmem:[#allocation2 + $0x20] sm:$0xf] }
 0x4ab   : > { %5868 = vst.msk [vmem:[#allocation3 + $0x34] sm:$0xf] %vm1633_vm13, %v5786_v12 }
 0x4ac   : > { %v5784_v18 = vpop.permute.xlu0 %5783  ;;  %5875 = vst.msk [vmem:[#allocation3 + $0x50] sm:$0xf] %vm1633_vm13, %v5800_v61 }
 0x4ad   : > { %5867 = vst.msk [vmem:[#allocation3 + $0x30] sm:$0xf] %vm1633_vm13, %v5784_v18 }
 0x4b0   : > { %6339 = vrot.lane.b32.xlu1 %v6233_v19, %s9361_s26  ;;  %6335 = vrot.lane.b32.xlu2 %v6211_v58, %s9361_s26  ;;  %v6427_v19 = vld [vmem:[#allocation2 + $0xb0] sm:$0xf]  ;;  %v6425_v58 = vld [vmem:[#allocation2 + $0x98] sm:$0xf] }
 0x4b2   : > { %6337 = vrot.lane.b32.xlu0 %v6220_v51, %s9361_s26  ;;  %v5792_v20 = vpop.permute.xlu1 %5791  ;;  %v5806_v32 = vpop.permute.xlu2 %5805  ;;  %v6426_v51 = vld [vmem:[#allocation2 + $0x9c] sm:$0xf] }
 0x4b3   : > { %5871 = vst.msk [vmem:[#allocation3 + $0x40] sm:$0xf] %vm1633_vm13, %v5792_v20 }
 0x4b4   : > { %v5790_v23 = vpop.permute.xlu0 %5789  ;;  %5878 = vst.msk [vmem:[#allocation3 + $0x5c] sm:$0xf] %vm1633_vm13, %v5806_v32  ;;  %v6433_v32 = vld [vmem:[#allocation2 + $0xf8] sm:$0xf] }
 0x4b5   : > { %5870 = vst.msk [vmem:[#allocation3 + $0x3c] sm:$0xf] %vm1633_vm13, %v5790_v23  ;;  %v6432_v23 = vld [vmem:[#allocation2 + $0xe4] sm:$0xf] }
 0x4b8   : > { %6345 = vrot.lane.b32.xlu1 %v6264_v55, %s9361_s26  ;;  %6341 = vrot.lane.b32.xlu2 %v6242_v43, %s9361_s26  ;;  %v6439_v55 = vld [vmem:[#allocation2 + $0x140] sm:$0xf] }
 0x4ba   : > { %6343 = vrot.lane.b32.xlu0 %v6255_v10, %s9361_s26  ;;  %v5798_v60 = vpop.permute.xlu1 %5797  ;;  %v5812_v7 = vpop.permute.xlu2 %5811 }
 0x4bb   : > { %5874 = vst.msk [vmem:[#allocation3 + $0x4c] sm:$0xf] %vm1633_vm13, %v5798_v60  ;;  %v6665_v60 = vshll.u32 %v6608_v50, 16 }
 0x4bc   : > { %v5796_v21 = vpop.permute.xlu0 %5795  ;;  %5881 = vst.msk [vmem:[#allocation3 + $0x68] sm:$0xf] %vm1633_vm13, %v5812_v7  ;;  %v6669_v7 = vshrl.u32 %v6608_v50, 16 }
 0x4bd   : > { %5873 = vst.msk [vmem:[#allocation3 + $0x48] sm:$0xf] %vm1633_vm13, %v5796_v21  ;;  %v6442_v21 = vld [vmem:[#allocation2 + $0x15c] sm:$0xf]  ;;  %v11732_v38 = vrot.slane %v6665_v60, 5 }
 0x4c0   : > { %6479 = vrot.lane.b32.xlu1 %v6415_v47, %s9362_s27  ;;  %6347 = vrot.lane.b32.xlu2 %v6277_v56, %s9361_s26  ;;  %v6671_v47 = vrot.slane %v6669_v7, 4 }
 0x4c2   : > { %6349 = vrot.lane.b32.xlu0 %v6286_v8, %s9361_s26  ;;  %v5804_v52 = vpop.permute.xlu1 %5803  ;;  %v5818_v30 = vpop.permute.xlu2 %5817 }
 0x4c3   : > { %5877 = vst.msk [vmem:[#allocation3 + $0x58] sm:$0xf] %vm1633_vm13, %v5804_v52  ;;  %v6609_v52 = vld [vmem:[#allocation2 + $0x28] sm:$0x1] }
 0x4c4   : > { %v5802_v36 = vpop.permute.xlu0 %5801  ;;  %5884 = vst.msk [vmem:[#allocation3 + $0x74] sm:$0xf] %vm1633_vm13, %v5818_v30  ;;  %v6656_v30 = vshrl.u32 %v6607_v0, 16 }
 0x4c5   : > { %5876 = vst.msk [vmem:[#allocation3 + $0x54] sm:$0xf] %vm1633_vm13, %v5802_v36  ;;  %v6659_v36 = vshll.u32 %v6607_v0, 16 }
 0x4c8   : > { %6485 = vrot.lane.b32.xlu1 %v6418_v54, %s9362_s27  ;;  %6481 = vrot.lane.b32.xlu2 %v6416_v11, %s9362_s27  ;;  %v6610_v11 = vld [vmem:[#allocation2 + $0x38] sm:$0xf] }
 0x4ca   : > { %6483 = vrot.lane.b32.xlu0 %v6417_v41, %s9362_s27  ;;  %v5810_v35 = vpop.permute.xlu1 %5809  ;;  %v6288_v12 = vpop.permute.xlu2 %6287  ;;  %v6613_v41 = vld [vmem:[#allocation2 + $0x50] sm:$0xf] }
 0x4cb   : > { %5880 = vst.msk [vmem:[#allocation3 + $0x64] sm:$0xf] %vm1633_vm13, %v5810_v35  ;;  %v6672_v35 = vor.u32 %v6671_v47, %v11732_v38 }
 0x4cc   : > { %v5808_v61 = vpop.permute.xlu0 %5807  ;;  %6383 = vst.msk [vmem:[#allocation3] sm:$0xf] %vm2162_vm14, %v6288_v12  ;;  %v6675_v12 = vshll.u32 %v6609_v52, 16 }
 0x4cd   : > { %5879 = vst.msk [vmem:[#allocation3 + $0x60] sm:$0xf] %vm1633_vm13, %v5808_v61  ;;  %v6611_v61 = vld [vmem:[#allocation2 + $0x3c] sm:$0xf] }
 0x4d0   : > { %6491 = vrot.lane.b32.xlu1 %v6421_v13, %s9362_s27  ;;  %6487 = vrot.lane.b32.xlu2 %v6419_v17, %s9362_s27  ;;  %v6658_v13 = vrot.slane %v6656_v30, 4  ;;  %v6661_v17 = vrot.slane %v6659_v36, 5  ;;  %v6622_v36 = vld [vmem:[#allocation2 + $0x98] sm:$0xf] }
 0x4d2   : > { %6489 = vrot.lane.b32.xlu0 %v6420_v26, %s9362_s27  ;;  %v5816_v18 = vpop.permute.xlu1 %5815  ;;  %v6294_v49 = vpop.permute.xlu2 %6293  ;;  %v6680_v26 = vshrl.u32 %v6610_v11, 16 }
 0x4d3   : > { %5883 = vst.msk [vmem:[#allocation3 + $0x70] sm:$0xf] %vm1633_vm13, %v5816_v18  ;;  %v6683_v18 = vshll.u32 %v6610_v11, 16 }
 0x4d4   : > { %v5814_v29 = vpop.permute.xlu0 %5813  ;;  %6386 = vst.msk [vmem:[#allocation3 + $0xc] sm:$0xf] %vm2162_vm14, %v6294_v49  ;;  %v6445_v49 = vld [vmem:[#allocation2 + $0x188] sm:$0xf] }
 0x4d5   : > { %5882 = vst.msk [vmem:[#allocation3 + $0x6c] sm:$0xf] %vm1633_vm13, %v5814_v29  ;;  %v6443_v29 = vld [vmem:[#allocation2 + $0x170] sm:$0xf] }
 0x4d8   : > { %6497 = vrot.lane.b32.xlu1 %v6424_v15, %s9362_s27  ;;  %6493 = vrot.lane.b32.xlu2 %v6422_v3, %s9362_s27  ;;  %v6704_v15 = vshrl.u32 %v6613_v41, 16  ;;  %v6707_v3 = vshll.u32 %v6613_v41, 16 }
 0x4da   : > { %6495 = vrot.lane.b32.xlu0 %v6423_v22, %s9362_s27  ;;  %v5822_v28 = vpop.permute.xlu1 %5821  ;;  %v6300_v39 = vpop.permute.xlu2 %6299  ;;  %v6444_v22 = vld [vmem:[#allocation2 + $0x174] sm:$0xf] }
 0x4db   : > { %5886 = vst.msk [vmem:[#allocation3 + $0x7c] sm:$0xf] %vm1633_vm13, %v5822_v28  ;;  %v6689_v28 = vshll.u32 %v6611_v61, 16 }
 0x4dc   : > { %v5820_v59 = vpop.permute.xlu0 %5819  ;;  %6389 = vst.msk [vmem:[#allocation3 + $0x18] sm:$0xf] %vm2162_vm14, %v6300_v39  ;;  %v6693_v39 = vshrl.u32 %v6611_v61, 16 }
 0x4dd   : > { %5885 = vst.msk [vmem:[#allocation3 + $0x78] sm:$0xf] %vm1633_vm13, %v5820_v59 }
 0x4e0   : > { %6503 = vrot.lane.b32.xlu1 %v6427_v19, %s9362_s27  ;;  %6499 = vrot.lane.b32.xlu2 %v6425_v58, %s9362_s27  ;;  %v6673_v58 = vrot.slane %v6672_v35, 4 }
 0x4e2   : > { %6501 = vrot.lane.b32.xlu0 %v6426_v51, %s9362_s27  ;;  %v6292_v46 = vpop.permute.xlu1 %6291  ;;  %v6306_v5 = vpop.permute.xlu2 %6305  ;;  %v6677_v51 = vrot.slane %v6675_v12, 5  ;;  %v6620_v12 = vld [vmem:[#allocation2 + $0x84] sm:$0xf] }
 0x4e3   : > { %6385 = vst.msk [vmem:[#allocation3 + $0x8] sm:$0xf] %vm2162_vm14, %v6292_v46  ;;  %v6662_v46 = vor.u32 %v6661_v17, %v6658_v13 }
 0x4e4   : > { %v6290_v6 = vpop.permute.xlu0 %6289  ;;  %6392 = vst.msk [vmem:[#allocation3 + $0x24] sm:$0xf] %vm2162_vm14, %v6306_v5  ;;  %v6614_v5 = vld [vmem:[#allocation2 + $0x54] sm:$0xf] }
 0x4e5   : > { %6384 = vst.msk [vmem:[#allocation3 + $0x4] sm:$0xf] %vm2162_vm14, %v6290_v6  ;;  %v6617_v6 = vld [vmem:[#allocation2 + $0x6c] sm:$0xf] }
 0x4e8   : > { %6509 = vrot.lane.b32.xlu1 %v6430_v62, %s9362_s27  ;;  %6505 = vrot.lane.b32.xlu2 %v6428_v16, %s9362_s27  ;;  %v6706_v16 = vrot.slane %v6704_v15, 4  ;;  %v6779_v15 = vshll.u32 %v6622_v36, 16 }
 0x4ea   : > { %6507 = vrot.lane.b32.xlu0 %v6429_v14, %s9362_s27  ;;  %v6298_v53 = vpop.permute.xlu1 %6297  ;;  %v6312_v31 = vpop.permute.xlu2 %6311  ;;  %v6709_v14 = vrot.slane %v6707_v3, 5 }
 0x4eb   : > { %6388 = vst.msk [vmem:[#allocation3 + $0x14] sm:$0xf] %vm2162_vm14, %v6298_v53  ;;  %v6682_v53 = vrot.slane %v6680_v26, 4 }
 0x4ec   : > { %v6296_v20 = vpop.permute.xlu0 %6295  ;;  %6395 = vst.msk [vmem:[#allocation3 + $0x30] sm:$0xf] %vm2162_vm14, %v6312_v31  ;;  %v6685_v31 = vrot.slane %v6683_v18, 5 }
 0x4ed   : > { %6387 = vst.msk [vmem:[#allocation3 + $0x10] sm:$0xf] %vm2162_vm14, %v6296_v20  ;;  %v6691_v20 = vrot.slane %v6689_v28, 5  ;;  %v6765_v28 = vshrl.u32 %v6620_v12, 16 }
 0x4f0   : > { %6515 = vrot.lane.b32.xlu1 %v6433_v32, %s9362_s27  ;;  %6511 = vrot.lane.b32.xlu2 %v6431_v4, %s9362_s27  ;;  %v6612_v32 = vld [vmem:[#allocation2 + $0x40] sm:$0x1]  ;;  %v6695_v4 = vrot.slane %v6693_v39, 4 }
 0x4f2   : > { %6513 = vrot.lane.b32.xlu0 %v6432_v23, %s9362_s27  ;;  %v6304_v40 = vpop.permute.xlu1 %6303  ;;  %v6318_v1 = vpop.permute.xlu2 %6317  ;;  %v6713_v23 = vshll.u32 %v6614_v5, 16 }
 0x4f3   : > { %6391 = vst.msk [vmem:[#allocation3 + $0x20] sm:$0xf] %vm2162_vm14, %v6304_v40  ;;  %v6717_v40 = vshrl.u32 %v6614_v5, 16 }
 0x4f4   : > { %v6302_v48 = vpop.permute.xlu0 %6301  ;;  %6398 = vst.msk [vmem:[#allocation3 + $0x3c] sm:$0xf] %vm2162_vm14, %v6318_v1  ;;  %v6737_v1 = vshll.u32 %v6617_v6, 16 }
 0x4f5   : > { %6390 = vst.msk [vmem:[#allocation3 + $0x1c] sm:$0xf] %vm2162_vm14, %v6302_v48  ;;  %v6741_v48 = vshrl.u32 %v6617_v6, 16 }
 0x4f7   : > { %v6743_v50 = vrot.slane %v6741_v48, 4 }
 0x4f8   : > { %6521 = vrot.lane.b32.xlu1 %v6436_v27, %s9362_s27  ;;  %6517 = vrot.lane.b32.xlu2 %v6434_v2, %s9362_s27  ;;  %v6663_v27 = vrot.slane %v6662_v46, 4  ;;  %v6678_v2 = vsel %vm9560_vm10, %v6673_v58, %v6677_v51 }
 0x4fa   : > { %6519 = vrot.lane.b32.xlu0 %v6435_v45, %s9362_s27  ;;  %v6310_v25 = vpop.permute.xlu1 %6309  ;;  %v6324_v44 = vpop.permute.xlu2 %6323  ;;  %v6446_v45 = vld [vmem:[#allocation2 + $0x18c] sm:$0xf] }
 0x4fb   : > { %6394 = vst.msk [vmem:[#allocation3 + $0x2c] sm:$0xf] %vm2162_vm14, %v6310_v25  ;;  %v6710_v25 = vor.u32 %v6709_v14, %v6706_v16  ;;  %v6623_v14 = vld [vmem:[#allocation2 + $0x9c] sm:$0xf] }
 0x4fc   : > { %v6308_v43 = vpop.permute.xlu0 %6307  ;;  %6401 = vst.msk [vmem:[#allocation3 + $0x48] sm:$0xf] %vm2162_vm14, %v6324_v44  ;;  %v6686_v44 = vor.u32 %v6685_v31, %v6682_v53  ;;  %v6781_v31 = vrot.slane %v6779_v15, 5 }
 0x4fd   : > { %6393 = vst.msk [vmem:[#allocation3 + $0x28] sm:$0xf] %vm2162_vm14, %v6308_v43  ;;  %v6616_v43 = vld [vmem:[#allocation2 + $0x68] sm:$0xf] }
 0x4fe   : > { %v6728_v0 = vshrl.u32 %v6616_v43, 16 }
 0x500   : > { %6527 = vrot.lane.b32.xlu1 %v6439_v55, %s9362_s27  ;;  %6523 = vrot.lane.b32.xlu2 %v6437_v57, %s9362_s27  ;;  %v6668_v55 = vsel %vm9560_vm10, %v6663_v27, %v11732_v38  ;;  %v6696_v57 = vor.u32 %v6695_v4, %v6691_v20  ;;  %v6687_v38 = vrot.slane %v6686_v44, 4  ;;  %v6730_v61 = vrot.slane %v6728_v0, 4  ;;  %v6626_v4 = vld [vmem:[#allocation2 + $0xb4] sm:$0xf] }
 0x501   : > { %v6785_v27 = vshll.u32 %v6623_v14, 16  ;;  %v6809_v44 = vshll.u32 %v6626_v4, 16 }
 0x502   : > { %6525 = vrot.lane.b32.xlu0 %v6438_v63, %s9362_s27  ;;  %v6316_v42 = vpop.permute.xlu1 %6315  ;;  %v6330_v10 = vpop.permute.xlu2 %6329  ;;  %v6699_v63 = vshll.u32 %v6612_v32, 16  ;;  %v6697_v52 = vrot.slane %v6696_v57, 4  ;;  %v6767_v32 = vrot.slane %v6765_v28, 4 }
 0x503   : > { %6397 = vst.msk [vmem:[#allocation3 + $0x38] sm:$0xf] %vm2162_vm14, %v6316_v42  ;;  %v6715_v42 = vrot.slane %v6713_v23, 5 }
 0x504   : > { %v6314_v33 = vpop.permute.xlu0 %6313  ;;  %6404 = vst.msk [vmem:[#allocation3 + $0x54] sm:$0xf] %vm2162_vm14, %v6330_v10  ;;  %v11752_v10 = vrot.slane %v6737_v1, 5  ;;  %v6701_v30 = vrot.slane %v6699_v63, 5 }
 0x505   : > { %6396 = vst.msk [vmem:[#allocation3 + $0x34] sm:$0xf] %vm2162_vm14, %v6314_v33  ;;  %v6719_v33 = vrot.slane %v6717_v40, 4  ;;  %v6621_v40 = vld [vmem:[#allocation2 + $0x88] sm:$0x1] }
 0x506   : > { %v6702_v3 = vsel %vm9560_vm10, %v6697_v52, %v6701_v30 }
 0x507   : > { %v6720_v41 = vor.u32 %v6719_v33, %v6715_v42 }
 0x508   : > { %6533 = vrot.lane.b32.xlu1 %v6442_v21, %s9362_s27  ;;  %6529 = vrot.lane.b32.xlu2 %v6440_v34, %s9362_s27  ;;  %v6618_v21 = vld [vmem:[#allocation2 + $0x70] sm:$0x1]  ;;  %v6615_v34 = vld [vmem:[#allocation2 + $0x58] sm:$0x1] }
 0x509   : > { %v6747_v11 = vshll.u32 %v6618_v21, 16  ;;  %v6723_v35 = vshll.u32 %v6615_v34, 16  ;;  %v6721_v46 = vrot.slane %v6720_v41, 4 }
 0x50a   : > { %6531 = vrot.lane.b32.xlu0 %v6441_v24, %s9362_s27  ;;  %v6322_v56 = vpop.permute.xlu1 %6321  ;;  %v6336_v8 = vpop.permute.xlu2 %6335  ;;  %v6731_v24 = vshll.u32 %v6616_v43, 16  ;;  %v6813_v43 = vshrl.u32 %v6626_v4, 16 }
 0x50b   : > { %6400 = vst.msk [vmem:[#allocation3 + $0x44] sm:$0xf] %vm2162_vm14, %v6322_v56  ;;  %v6711_v56 = vrot.slane %v6710_v25, 4 }
 0x50c   : > { %v6320_v54 = vpop.permute.xlu0 %6319  ;;  %6407 = vst.msk [vmem:[#allocation3 + $0x60] sm:$0xf] %vm2162_vm14, %v6336_v8  ;;  %v6619_v8 = vld [vmem:[#allocation2 + $0x80] sm:$0xf]  ;;  %v6733_v13 = vrot.slane %v6731_v24, 5  ;;  %v6815_v52 = vrot.slane %v6813_v43, 4 }
 0x50d   : > { %6399 = vst.msk [vmem:[#allocation3 + $0x40] sm:$0xf] %vm2162_vm14, %v6320_v54  ;;  %v6744_v54 = vor.u32 %v6743_v50, %v11752_v10  ;;  %v6752_v17 = vshrl.u32 %v6619_v8, 16  ;;  %v6755_v26 = vshll.u32 %v6619_v8, 16  ;;  %v6716_v18 = vsel %vm9560_vm10, %v6711_v56, %v6715_v42  ;;  %v6631_v24 = vld [vmem:[#allocation2 + $0xe0] sm:$0xf] }
 0x50e   : > { %v6734_v5 = vor.u32 %v6733_v13, %v6730_v61  ;;  %v6771_v42 = vshll.u32 %v6621_v40, 16  ;;  %v6811_v8 = vrot.slane %v6809_v44, 5  ;;  %v6628_v13 = vld [vmem:[#allocation2 + $0xc8] sm:$0xf]  ;;  %v6851_v15 = vshll.u32 %v6631_v24, 16 }
 0x50f   : > { %v6745_v39 = vrot.slane %v6744_v54, 4  ;;  %v6754_v6 = vrot.slane %v6752_v17, 4  ;;  %v6824_v28 = vshrl.u32 %v6628_v13, 16  ;;  %v6630_v40 = vld [vmem:[#allocation2 + $0xd0] sm:$0x1] }
 0x510   : > { %6539 = vrot.lane.b32.xlu1 %v6445_v49, %s9362_s27  ;;  %6535 = vrot.lane.b32.xlu2 %v6443_v29, %s9362_s27  ;;  %v6692_v49 = vsel %vm9560_vm10, %v6687_v38, %v6691_v20  ;;  %v6776_v29 = vshrl.u32 %v6622_v36, 16  ;;  %v6735_v48 = vrot.slane %v6734_v5, 4  ;;  %v6773_v30 = vrot.slane %v6771_v42, 5  ;;  %v6627_v36 = vld [vmem:[#allocation2 + $0xb8] sm:$0x1] }
 0x511   : > { %v6816_v17 = vor.u32 %v6815_v52, %v6811_v8  ;;  %v6826_v4 = vrot.slane %v6824_v28, 4  ;;  %v6634_v43 = vld [vmem:[#allocation2 + $0xf8] sm:$0xf] }
 0x512   : > { %6537 = vrot.lane.b32.xlu0 %v6444_v22, %s9362_s27  ;;  %v6328_v59 = vpop.permute.xlu1 %6327  ;;  %v6342_v19 = vpop.permute.xlu2 %6341  ;;  %v6761_v22 = vshll.u32 %v6620_v12, 16  ;;  %v6778_v53 = vrot.slane %v6776_v29, 4  ;;  %v6740_v57 = vsel %vm9560_vm10, %v6735_v48, %v11752_v10 }
 0x513   : > { %6403 = vst.msk [vmem:[#allocation3 + $0x50] sm:$0xf] %vm2162_vm14, %v6328_v59  ;;  %v6749_v59 = vrot.slane %v6747_v11, 5  ;;  %v6629_v11 = vld [vmem:[#allocation2 + $0xcc] sm:$0xf] }
 0x514   : > { %v6326_v62 = vpop.permute.xlu0 %6325  ;;  %6410 = vst.msk [vmem:[#allocation3 + $0x6c] sm:$0xf] %vm2162_vm14, %v6342_v19  ;;  %v6725_v19 = vrot.slane %v6723_v35, 5  ;;  %v6763_v20 = vrot.slane %v6761_v22, 5  ;;  %v6837_v22 = vshrl.u32 %v6629_v11, 16 }
 0x515   : > { %6402 = vst.msk [vmem:[#allocation3 + $0x4c] sm:$0xf] %vm2162_vm14, %v6326_v62  ;;  %v6757_v62 = vrot.slane %v6755_v26, 5  ;;  %v6750_v23 = vsel %vm9560_vm10, %v6745_v39, %v6749_v59  ;;  %v6819_v26 = vshll.u32 %v6627_v36, 16  ;;  %v6827_v39 = vshll.u32 %v6628_v13, 16 }
 0x516   : > { %v6726_v1 = vsel %vm9560_vm10, %v6721_v46, %v6725_v19  ;;  %v6768_v63 = vor.u32 %v6767_v32, %v6763_v20  ;;  %v6635_v46 = vld [vmem:[#allocation2 + $0xfc] sm:$0xf]  ;;  %v6839_v32 = vrot.slane %v6837_v22, 4  ;;  %v6640_v13 = vld [vmem:[#allocation2 + $0x128] sm:$0xf] }
 0x517   : > { %v6758_v25 = vor.u32 %v6757_v62, %v6754_v6  ;;  %v6817_v6 = vrot.slane %v6816_v17, 4  ;;  %v6821_v62 = vrot.slane %v6819_v26, 5  ;;  %v6881_v48 = vshll.u32 %v6635_v46, 16 }
 0x518   : > { %7041 = vrot.lane.b32.xlu1 %v6678_v2, %s9363_s28  ;;  %6541 = vrot.lane.b32.xlu2 %v6446_v45, %s9362_s27  ;;  %v6789_v2 = vshrl.u32 %v6623_v14, 16  ;;  %v6782_v45 = vor.u32 %v6781_v31, %v6778_v53  ;;  %v6769_v10 = vrot.slane %v6768_v63, 4  ;;  %v6853_v31 = vrot.slane %v6851_v15, 5 }
 0x519   : > { %v6759_v38 = vrot.slane %v6758_v25, 4  ;;  %v6843_v63 = vshll.u32 %v6630_v40, 16  ;;  %v6920_v22 = vshrl.u32 %v6640_v13, 16  ;;  %v6923_v28 = vshll.u32 %v6640_v13, 16 }
 0x51a   : > { %7039 = vrot.lane.b32.xlu0 %v6668_v55, %s9363_s28  ;;  %v6334_v60 = vpop.permute.xlu1 %6333  ;;  %v6348_v7 = vpop.permute.xlu2 %6347  ;;  %v6625_v55 = vld [vmem:[#allocation2 + $0xb0] sm:$0xf]  ;;  %v6791_v21 = vrot.slane %v6789_v2, 4  ;;  %v6783_v56 = vrot.slane %v6782_v45, 4  ;;  %v6774_v29 = vsel %vm9560_vm10, %v6769_v10, %v6773_v30  ;;  %v6822_v2 = vsel %vm9560_vm10, %v6817_v6, %v6821_v62 }
 0x51b   : > { %6406 = vst.msk [vmem:[#allocation3 + $0x5c] sm:$0xf] %vm2162_vm14, %v6334_v60  ;;  %v6787_v60 = vrot.slane %v6785_v27, 5  ;;  %v6800_v34 = vshrl.u32 %v6625_v55, 16  ;;  %v6803_v0 = vshll.u32 %v6625_v55, 16  ;;  %v6764_v54 = vsel %vm9560_vm10, %v6759_v38, %v6763_v20 }
 0x51c   : > { %v6332_v47 = vpop.permute.xlu0 %6331  ;;  %6413 = vst.msk [vmem:[#allocation3 + $0x78] sm:$0xf] %vm2162_vm14, %v6348_v7  ;;  %v6624_v7 = vld [vmem:[#allocation2 + $0xa0] sm:$0x1]  ;;  %v6885_v27 = vshrl.u32 %v6635_v46, 16  ;;  %v6845_v10 = vrot.slane %v6843_v63, 5 }
 0x51d   : > { %6405 = vst.msk [vmem:[#allocation3 + $0x58] sm:$0xf] %vm2162_vm14, %v6332_v47  ;;  %v6788_v41 = vsel %vm9560_vm10, %v6783_v56, %v6787_v60  ;;  %v6792_v35 = vor.u32 %v6791_v21, %v6787_v60  ;;  %v6802_v12 = vrot.slane %v6800_v34, 4  ;;  %v6805_v61 = vrot.slane %v6803_v0, 5  ;;  %v6633_v34 = vld [vmem:[#allocation2 + $0xe8] sm:$0x1] }
 0x51e   : > { %v6887_v21 = vrot.slane %v6885_v27, 4  ;;  %v6872_v0 = vshrl.u32 %v6634_v43, 16  ;;  %v6636_v38 = vld [vmem:[#allocation2 + $0x100] sm:$0x1]  ;;  %v6637_v30 = vld [vmem:[#allocation2 + $0x110] sm:$0xf] }
 0x520   : > { %7047 = vrot.lane.b32.xlu1 %v6716_v18, %s9363_s28  ;;  %7043 = vrot.lane.b32.xlu2 %v6692_v49, %s9363_s28  ;;  %v6795_v18 = vshll.u32 %v6624_v7, 16  ;;  %v6848_v49 = vshrl.u32 %v6631_v24, 16  ;;  %v11804_v7 = vrot.slane %v6881_v48, 5  ;;  %v6875_v24 = vshll.u32 %v6634_v43, 16 }
 0x522   : > { %7045 = vrot.lane.b32.xlu0 %v6702_v3, %s9363_s28  ;;  %v6340_v58 = vpop.permute.xlu1 %6339  ;;  %v6482_v51 = vpop.permute.xlu2 %6481  ;;  %v6833_v3 = vshll.u32 %v6629_v11, 16  ;;  %v6797_v14 = vrot.slane %v6795_v18, 5  ;;  %v6850_v53 = vrot.slane %v6848_v49, 4  ;;  %v6638_v11 = vld [vmem:[#allocation2 + $0x114] sm:$0xf]  ;;  %v6867_v49 = vshll.u32 %v6633_v34, 16 }
 0x523   : > { %6409 = vst.msk [vmem:[#allocation3 + $0x68] sm:$0xf] %vm2162_vm14, %v6340_v58  ;;  %v6806_v58 = vor.u32 %v6805_v61, %v6802_v12  ;;  %v6874_v12 = vrot.slane %v6872_v0, 4  ;;  %v6877_v61 = vrot.slane %v6875_v24, 5  ;;  %v6905_v15 = vshll.u32 %v6638_v11, 16 }
 0x524   : > { %v6338_v16 = vpop.permute.xlu0 %6337  ;;  %6576 = vst.msk [vmem:[#allocation3 + $0x4] sm:$0xf] %vm2355_vm15, %v6482_v51  ;;  %v6632_v51 = vld [vmem:[#allocation2 + $0xe4] sm:$0xf]  ;;  %v6835_v20 = vrot.slane %v6833_v3, 5  ;;  %v6854_v42 = vor.u32 %v6853_v31, %v6850_v53  ;;  %v6909_v3 = vshrl.u32 %v6638_v11, 16 }
 0x525   : > { %6408 = vst.msk [vmem:[#allocation3 + $0x64] sm:$0xf] %vm2162_vm14, %v6338_v16  ;;  %v6793_v16 = vrot.slane %v6792_v35, 4  ;;  %v6857_v25 = vshll.u32 %v6632_v51, 16  ;;  %v6861_v44 = vshrl.u32 %v6632_v51, 16  ;;  %v6891_v35 = vshll.u32 %v6636_v38, 16 }
 0x526   : > { %v6855_v36 = vrot.slane %v6854_v42, 4  ;;  %v6641_v53 = vld [vmem:[#allocation2 + $0x12c] sm:$0xf]  ;;  %v6907_v31 = vrot.slane %v6905_v15, 5  ;;  %v7192_v42 = vld [vmem:[#allocation2 + $0xf8] sm:$0xf] }
 0x527   : > { %v6798_v45 = vsel %vm9560_vm10, %v6793_v16, %v6797_v14  ;;  %v6859_v56 = vrot.slane %v6857_v25, 5  ;;  %v6893_v46 = vrot.slane %v6891_v35, 5  ;;  %v6869_v16 = vrot.slane %v6867_v49, 5  ;;  %v6639_v14 = vld [vmem:[#allocation2 + $0x118] sm:$0x1] }
 0x528   : > { %7053 = vrot.lane.b32.xlu1 %v6750_v23, %s9363_s28  ;;  %7049 = vrot.lane.b32.xlu2 %v6726_v1, %s9363_s28  ;;  %v6829_v23 = vrot.slane %v6827_v39, 5  ;;  %v6807_v1 = vrot.slane %v6806_v58, 4  ;;  %v6896_v39 = vshrl.u32 %v6637_v30, 16  ;;  %v6915_v25 = vshll.u32 %v6639_v14, 16 }
 0x529   : > { %v6860_v17 = vsel %vm9560_vm10, %v6855_v36, %v6859_v56  ;;  %v7400_v13 = vshll.u32 %v7192_v42, 16 }
 0x52a   : > { %7051 = vrot.lane.b32.xlu0 %v6740_v57, %s9363_s28  ;;  %v6346_v50 = vpop.permute.xlu1 %6345  ;;  %v6488_v33 = vpop.permute.xlu2 %6487  ;;  %v6812_v55 = vsel %vm9560_vm10, %v6807_v1, %v6811_v8  ;;  %v6840_v57 = vor.u32 %v6839_v32, %v6835_v20  ;;  %v6863_v8 = vrot.slane %v6861_v44, 4  ;;  %v6922_v32 = vrot.slane %v6920_v22, 4  ;;  %v7193_v44 = vld [vmem:[#allocation2 + $0xfc] sm:$0xf] }
 0x52b   : > { %6412 = vst.msk [vmem:[#allocation3 + $0x74] sm:$0xf] %vm2162_vm14, %v6346_v50  ;;  %v6830_v50 = vor.u32 %v6829_v23, %v6826_v4  ;;  %v6925_v4 = vrot.slane %v6923_v28, 5  ;;  %v6898_v23 = vrot.slane %v6896_v39, 4  ;;  %v6917_v0 = vrot.slane %v6915_v25, 5 }
 0x52c   : > { %v6344_v47 = vpop.permute.xlu0 %6343  ;;  %6579 = vst.msk [vmem:[#allocation3 + $0x10] sm:$0xf] %vm2355_vm15, %v6488_v33  ;;  %v6841_v52 = vrot.slane %v6840_v57, 4  ;;  %v6864_v18 = vor.u32 %v6863_v8, %v6859_v56  ;;  %v7397_v56 = vshrl.u32 %v7192_v42, 16  ;;  %v7167_v25 = vld [vmem:[#allocation2 + $0x34] sm:$0x8] }
 0x52d   : > { %6411 = vst.msk [vmem:[#allocation3 + $0x70] sm:$0xf] %vm2162_vm14, %v6344_v47  ;;  %v6926_v57 = vor.u32 %v6925_v4, %v6922_v32 }
 0x52e   : > { %v6865_v62 = vrot.slane %v6864_v18, 4 }
 0x52f   : > { %v6927_v38 = vrot.slane %v6926_v57, 4 }
 0x530   : > { %7059 = vrot.lane.b32.xlu1 %v6788_v41, %s9363_s28  ;;  %7055 = vrot.lane.b32.xlu2 %v6764_v54, %s9363_s28  ;;  %v6831_v54 = vrot.slane %v6830_v50, 4  ;;  %v6888_v41 = vor.u32 %v6887_v21, %v11804_v7  ;;  %v6870_v27 = vsel %vm9560_vm10, %v6865_v62, %v6869_v16 }
 0x532   : > { %7057 = vrot.lane.b32.xlu0 %v6774_v29, %s9363_s28  ;;  %v6480_v59 = vpop.permute.xlu1 %6479  ;;  %v6494_v19 = vpop.permute.xlu2 %6493  ;;  %v6836_v26 = vsel %vm9560_vm10, %v6831_v54, %v6835_v20  ;;  %v6846_v29 = vsel %vm9560_vm10, %v6841_v52, %v6845_v10  ;;  %v6889_v51 = vrot.slane %v6888_v41, 4  ;;  %v6911_v20 = vrot.slane %v6909_v3, 4  ;;  %v7191_v52 = vld [vmem:[#allocation2 + $0xf4] sm:$0x8] }
 0x533   : > { %6575 = vst.msk [vmem:[#allocation3] sm:$0xf] %vm2355_vm15, %v6480_v59  ;;  %v6899_v59 = vshll.u32 %v6637_v30, 16  ;;  %v7911_v30 = vld [vmem:[#allocation2 + $0xf8] sm:$0xf] }
 0x534   : > { %v6350_v5 = vpop.permute.xlu0 %6349  ;;  %6582 = vst.msk [vmem:[#allocation3 + $0x1c] sm:$0xf] %vm2355_vm15, %v6494_v19  ;;  %v6894_v1 = vsel %vm9560_vm10, %v6889_v51, %v6893_v46  ;;  %v8131_v18 = vshll.u32 %v7911_v30, 16 }
 0x535   : > { %6414 = vst.msk [vmem:[#allocation3 + $0x7c] sm:$0xf] %vm2162_vm14, %v6350_v5  ;;  %v6878_v5 = vor.u32 %v6877_v61, %v6874_v12  ;;  %v6901_v40 = vrot.slane %v6899_v59, 5  ;;  %v7399_v12 = vrot.slane %v7397_v56, 7  ;;  %v7392_v61 = vshrl.u32 %v7191_v52, 16 }
 0x536   : > { %v8133_v46 = vrot.slane %v8131_v18, 5 }
 0x537   : > { %v6879_v48 = vrot.slane %v6878_v5, 4  ;;  %v6902_v63 = vor.u32 %v6901_v40, %v6898_v23  ;;  %v9188_v39 = vrot.slane %v7392_v61, 11  ;;  %v7402_v59 = vor.u32 %v7400_v13, %v7399_v12 }
 0x538   : > { %7065 = vrot.lane.b32.xlu1 %v6822_v2, %s9363_s28  ;;  %7061 = vrot.lane.b32.xlu2 %v6798_v45, %s9363_s28  ;;  %v6929_v2 = vshll.u32 %v6641_v53, 16  ;;  %v6933_v45 = vshrl.u32 %v6641_v53, 16  ;;  %v7169_v53 = vld [vmem:[#allocation2 + $0x3c] sm:$0xf] }
 0x539   : > { %v6884_v43 = vsel %vm9560_vm10, %v6879_v48, %v11804_v7  ;;  %v6642_v7 = vld [vmem:[#allocation2 + $0x130] sm:$0x1]  ;;  %v6903_v8 = vrot.slane %v6902_v63, 4  ;;  %v7403_v14 = vsel %vm9589_vm11, %v9188_v39, %v7402_v59 }
 0x53a   : > { %7063 = vrot.lane.b32.xlu0 %v6812_v55, %s9363_s28  ;;  %v6486_v33 = vpop.permute.xlu1 %6485  ;;  %v6500_v60 = vpop.permute.xlu2 %6499  ;;  %v6912_v55 = vor.u32 %v6911_v20, %v6907_v31  ;;  %v6931_v34 = vrot.slane %v6929_v2, 5  ;;  %v6935_v24 = vrot.slane %v6933_v45, 4  ;;  %v6939_v41 = vshll.u32 %v6642_v7, 16  ;;  %v7168_v20 = vld [vmem:[#allocation2 + $0x38] sm:$0xf] }
 0x53b   : > { %6578 = vst.msk [vmem:[#allocation3 + $0xc] sm:$0xf] %vm2355_vm15, %v6486_v33  ;;  %v6908_v54 = vsel %vm9560_vm10, %v6903_v8, %v6907_v31  ;;  %v7913_v2 = vld [vmem:[#allocation2 + $0x100] sm:$0x1]  ;;  %v7224_v56 = vshll.u32 %v7168_v20, 16 }
 0x53c   : > { %v6484_v47 = vpop.permute.xlu0 %6483  ;;  %6585 = vst.msk [vmem:[#allocation3 + $0x28] sm:$0xf] %vm2355_vm15, %v6500_v60  ;;  %v7406_v60 = vshrl.u32 %v7193_v44, 16  ;;  %v6932_v36 = vsel %vm9560_vm10, %v6927_v38, %v6931_v34  ;;  %v6936_v11 = vor.u32 %v6935_v24, %v6931_v34  ;;  %v6941_v28 = vrot.slane %v6939_v41, 5 }
 0x53d   : > { %6577 = vst.msk [vmem:[#allocation3 + $0x8] sm:$0xf] %vm2355_vm15, %v6484_v47  ;;  %v6913_v47 = vrot.slane %v6912_v55, 4  ;;  %v7711_v55 = vld [vmem:[#allocation2 + $0xf8] sm:$0xf]  ;;  %v8147_v42 = vshll.u32 %v7913_v2, 16 }
 0x53e   : > { %v7408_v10 = vrot.slane %v7406_v60, 7  ;;  %v6937_v22 = vrot.slane %v6936_v11, 4  ;;  %v7216_v60 = vshrl.u32 %v7167_v25, 16 }
 0x53f   : > { %v6918_v35 = vsel %vm9560_vm10, %v6913_v47, %v6917_v0  ;;  %v8149_v52 = vrot.slane %v8147_v42, 5 }
 0x540   : > { %7071 = vrot.lane.b32.xlu1 %v6860_v17, %s9363_s28  ;;  %7067 = vrot.lane.b32.xlu2 %v6836_v26, %s9363_s28  ;;  %v7409_v17 = vshll.u32 %v7193_v44, 16  ;;  %v8128_v26 = vshrl.u32 %v7911_v30, 16  ;;  %v7887_v44 = vld [vmem:[#allocation2 + $0x38] sm:$0xf] }
 0x541   : > { %v7936_v34 = vshrl.u32 %v7887_v44, 16  ;;  %v7939_v0 = vshll.u32 %v7887_v44, 16 }
 0x542   : > { %7069 = vrot.lane.b32.xlu0 %v6846_v29, %s9363_s28  ;;  %v6492_v19 = vpop.permute.xlu1 %6491  ;;  %v6506_v58 = vpop.permute.xlu2 %6505  ;;  %v7411_v3 = vor.u32 %v7409_v17, %v7408_v10  ;;  %v8130_v51 = vrot.slane %v8128_v26, 4  ;;  %v9180_v10 = vrot.slane %v7216_v60, 11  ;;  %v7196_v26 = vld [vmem:[#allocation2 + $0x114] sm:$0xf] }
 0x543   : > { %6581 = vst.msk [vmem:[#allocation3 + $0x18] sm:$0xf] %vm2355_vm15, %v6492_v19  ;;  %v7912_v19 = vld [vmem:[#allocation2 + $0xfc] sm:$0xf]  ;;  %v7938_v11 = vrot.slane %v7936_v34, 4  ;;  %v7941_v41 = vrot.slane %v7939_v0, 5 }
 0x544   : > { %v6490_v6 = vpop.permute.xlu0 %6489  ;;  %6588 = vst.msk [vmem:[#allocation3 + $0x34] sm:$0xf] %vm2355_vm15, %v6506_v58  ;;  %v7404_v58 = vrot.slane %v7399_v12, 4  ;;  %v8137_v62 = vshll.u32 %v7912_v19, 16  ;;  %v8141_v16 = vshrl.u32 %v7912_v19, 16  ;;  %v8134_v31 = vor.u32 %v8133_v46, %v8130_v51 }
 0x545   : > { %6580 = vst.msk [vmem:[#allocation3 + $0x14] sm:$0xf] %vm2355_vm15, %v6490_v6  ;;  %v6942_v6 = vsel %vm9560_vm10, %v6937_v22, %v6941_v28  ;;  %v7942_v18 = vor.u32 %v7941_v41, %v7938_v11  ;;  %v7428_v28 = vshrl.u32 %v7196_v26, 16  ;;  %v7889_v19 = vld [vmem:[#allocation2 + $0x40] sm:$0x1] }
 0x546   : > { %v7412_v5 = vsel %vm9589_vm11, %v7404_v58, %v7411_v3  ;;  %v8139_v40 = vrot.slane %v8137_v62, 5  ;;  %v8143_v48 = vrot.slane %v8141_v16, 4  ;;  %v8135_v45 = vrot.slane %v8134_v31, 4  ;;  %v7194_v51 = vld [vmem:[#allocation2 + $0x10c] sm:$0x8] }
 0x547   : > { %v7943_v58 = vrot.slane %v7942_v18, 4  ;;  %v7914_v46 = vld [vmem:[#allocation2 + $0x110] sm:$0xf]  ;;  %v7430_v62 = vrot.slane %v7428_v28, 7  ;;  %v7172_v0 = vld [vmem:[#allocation2 + $0x54] sm:$0xf] }
 0x548   : > { %7077 = vrot.lane.b32.xlu1 %v6894_v1, %s9363_s28  ;;  %7073 = vrot.lane.b32.xlu2 %v6870_v27, %s9363_s28  ;;  %v7230_v1 = vshrl.u32 %v7169_v53, 16  ;;  %v7221_v27 = vshrl.u32 %v7168_v20, 16  ;;  %v8144_v63 = vor.u32 %v8143_v48, %v8139_v40  ;;  %v7414_v20 = vshrl.u32 %v7194_v51, 16  ;;  %v7170_v11 = vld [vmem:[#allocation2 + $0x4c] sm:$0x8] }
 0x549   : > { %v7890_v41 = vld [vmem:[#allocation2 + $0x50] sm:$0xf] }
 0x54a   : > { %7075 = vrot.lane.b32.xlu0 %v6884_v43, %s9363_s28  ;;  %v6498_v50 = vpop.permute.xlu1 %6497  ;;  %v6512_v33 = vpop.permute.xlu2 %6511  ;;  %v8140_v43 = vsel %vm9560_vm10, %v8135_v45, %v8139_v40  ;;  %v7232_v57 = vrot.slane %v7230_v1, 7  ;;  %v8145_v8 = vrot.slane %v8144_v63, 4  ;;  %v8155_v40 = vshll.u32 %v7914_v46, 16 }
 0x54b   : > { %6584 = vst.msk [vmem:[#allocation3 + $0x24] sm:$0xf] %vm2355_vm15, %v6498_v50  ;;  %v7712_v50 = vld [vmem:[#allocation2 + $0xfc] sm:$0xf]  ;;  %v9189_v44 = vrot.slane %v7414_v20, 11 }
 0x54c   : > { %v6496_v21 = vpop.permute.xlu0 %6495  ;;  %6591 = vst.msk [vmem:[#allocation3 + $0x40] sm:$0xf] %vm2355_vm15, %v6512_v33  ;;  %v7223_v33 = vrot.slane %v7221_v27, 7  ;;  %v8150_v12 = vsel %vm9560_vm10, %v8145_v8, %v8149_v52  ;;  %v8157_v42 = vrot.slane %v8155_v40, 5  ;;  %v7252_v52 = vshrl.u32 %v7172_v0, 16 }
 0x54d   : > { %6583 = vst.msk [vmem:[#allocation3 + $0x20] sm:$0xf] %vm2355_vm15, %v6496_v21  ;;  %v7233_v21 = vshll.u32 %v7169_v53, 16  ;;  %v7696_v53 = vld [vmem:[#allocation2 + $0x3c] sm:$0xf] }
 0x54e   : > { %v7226_v30 = vor.u32 %v7224_v56, %v7223_v33 }
 0x54f   : > { %v7235_v38 = vor.u32 %v7233_v21, %v7232_v57 }
 0x550   : > { %7083 = vrot.lane.b32.xlu1 %v6932_v36, %s9363_s28  ;;  %7079 = vrot.lane.b32.xlu2 %v6908_v54, %s9363_s28  ;;  %v7888_v36 = vld [vmem:[#allocation2 + $0x3c] sm:$0xf]  ;;  %v7228_v54 = vrot.slane %v7223_v33, 4  ;;  %v7227_v17 = vsel %vm9589_vm11, %v9180_v10, %v7226_v30 }
 0x551   : > { %v7945_v61 = vshll.u32 %v7888_v36, 16  ;;  %v7949_v13 = vshrl.u32 %v7888_v36, 16  ;;  %v7916_v36 = vld [vmem:[#allocation2 + $0x118] sm:$0x1] }
 0x552   : > { %7081 = vrot.lane.b32.xlu0 %v6918_v35, %s9363_s28  ;;  %v6504_v49 = vpop.permute.xlu1 %6503  ;;  %v6518_v29 = vpop.permute.xlu2 %6517  ;;  %v7236_v35 = vsel %vm9589_vm11, %v7228_v54, %v7235_v38 }
 0x553   : > { %6587 = vst.msk [vmem:[#allocation3 + $0x30] sm:$0xf] %vm2355_vm15, %v6504_v49  ;;  %v7195_v49 = vld [vmem:[#allocation2 + $0x110] sm:$0xf]  ;;  %v7947_v22 = vrot.slane %v7945_v61, 5  ;;  %v7951_v39 = vrot.slane %v7949_v13, 4 }
 0x554   : > { %v6502_v15 = vpop.permute.xlu0 %6501  ;;  %6594 = vst.msk [vmem:[#allocation3 + $0x4c] sm:$0xf] %vm2355_vm15, %v6518_v29  ;;  %v7419_v59 = vshrl.u32 %v7195_v49, 16  ;;  %v7254_v61 = vrot.slane %v7252_v52, 7 }
 0x555   : > { %6586 = vst.msk [vmem:[#allocation3 + $0x2c] sm:$0xf] %vm2355_vm15, %v6502_v15  ;;  %v7952_v16 = vor.u32 %v7951_v39, %v7947_v22 }
 0x556   : > { %v7421_v31 = vrot.slane %v7419_v59, 7 }
 0x557   : > { %v7953_v45 = vrot.slane %v7952_v16, 4 }
 0x558   : > { %7601 = vrot.lane.b32.xlu1 %v7412_v5, %s9364_s29  ;;  %7085 = vrot.lane.b32.xlu2 %v6942_v6, %s9363_s28  ;;  %v7948_v5 = vsel %vm9560_vm10, %v7943_v58, %v7947_v22  ;;  %v7695_v6 = vld [vmem:[#allocation2 + $0x38] sm:$0xf]  ;;  %v7426_v57 = vrot.slane %v7421_v31, 4 }
 0x55a   : > { %7599 = vrot.lane.b32.xlu0 %v7403_v14, %s9364_s29  ;;  %v6510_v32 = vpop.permute.xlu1 %6509  ;;  %v6524_v4 = vpop.permute.xlu2 %6523  ;;  %v7955_v14 = vshll.u32 %v7889_v19, 16 }
 0x55b   : > { %6590 = vst.msk [vmem:[#allocation3 + $0x3c] sm:$0xf] %vm2355_vm15, %v6510_v32  ;;  %v7422_v32 = vshll.u32 %v7195_v49, 16  ;;  %v7238_v49 = vshrl.u32 %v7170_v11, 16 }
 0x55c   : > { %v6508_v23 = vpop.permute.xlu0 %6507  ;;  %6597 = vst.msk [vmem:[#allocation3 + $0x58] sm:$0xf] %vm2355_vm15, %v6524_v4  ;;  %v7431_v4 = vshll.u32 %v7196_v26, 16  ;;  %v7957_v25 = vrot.slane %v7955_v14, 5  ;;  %v7714_v26 = vld [vmem:[#allocation2 + $0x114] sm:$0xf] }
 0x55d   : > { %6589 = vst.msk [vmem:[#allocation3 + $0x38] sm:$0xf] %vm2355_vm15, %v6508_v23  ;;  %v8152_v23 = vshrl.u32 %v7914_v46, 16  ;;  %v9181_v46 = vrot.slane %v7238_v49, 11 }
 0x55e   : > { %v7433_v2 = vor.u32 %v7431_v4, %v7430_v62  ;;  %v7958_v33 = vsel %vm9560_vm10, %v7953_v45, %v7957_v25 }
 0x55f   : > { %v8154_v63 = vrot.slane %v8152_v23, 4  ;;  %v7199_v23 = vld [vmem:[#allocation2 + $0x12c] sm:$0xf] }
 0x560   : > { %8351 = vrot.lane.b32.xlu1 %v8140_v43, %s9366_s6  ;;  %7791 = vrot.lane.b32.xlu2 %v7711_v55, %s9365_s30  ;;  %v7424_v43 = vor.u32 %v7422_v32, %v7421_v31  ;;  %v7915_v55 = vld [vmem:[#allocation2 + $0x114] sm:$0xf]  ;;  %v7450_v25 = vshrl.u32 %v7199_v23, 16 }
 0x561   : > { %v8161_v60 = vshll.u32 %v7915_v55, 16  ;;  %v8165_v21 = vshrl.u32 %v7915_v55, 16  ;;  %v7892_v55 = vld [vmem:[#allocation2 + $0x58] sm:$0x1] }
 0x562   : > { %7793 = vrot.lane.b32.xlu0 %v7712_v50, %s9365_s30  ;;  %v6516_v24 = vpop.permute.xlu1 %6515  ;;  %v6530_v47 = vpop.permute.xlu2 %6529  ;;  %v7434_v50 = vsel %vm9589_vm11, %v7426_v57, %v7433_v2  ;;  %v7425_v34 = vsel %vm9589_vm11, %v9189_v44, %v7424_v43 }
 0x563   : > { %6593 = vst.msk [vmem:[#allocation3 + $0x48] sm:$0xf] %vm2355_vm15, %v6516_v24  ;;  %v8158_v24 = vor.u32 %v8157_v42, %v8154_v63  ;;  %v8163_v8 = vrot.slane %v8161_v60, 5  ;;  %v8167_v10 = vrot.slane %v8165_v21, 4  ;;  %v7197_v63 = vld [vmem:[#allocation2 + $0x124] sm:$0x8] }
 0x564   : > { %v6514_v7 = vpop.permute.xlu0 %6513  ;;  %6600 = vst.msk [vmem:[#allocation3 + $0x64] sm:$0xf] %vm2355_vm15, %v6530_v47  ;;  %v7171_v47 = vld [vmem:[#allocation2 + $0x50] sm:$0xf]  ;;  %v7917_v42 = vld [vmem:[#allocation2 + $0x128] sm:$0xf] }
 0x565   : > { %6592 = vst.msk [vmem:[#allocation3 + $0x44] sm:$0xf] %vm2355_vm15, %v6514_v7  ;;  %v7243_v30 = vshrl.u32 %v7171_v47, 16  ;;  %v8159_v54 = vrot.slane %v8158_v24, 4  ;;  %v8168_v13 = vor.u32 %v8167_v10, %v8163_v8  ;;  %v7246_v39 = vshll.u32 %v7171_v47, 16 }
 0x566   : > { %v7452_v60 = vrot.slane %v7450_v25, 7  ;;  %v7436_v47 = vshrl.u32 %v7197_v63, 16 }
 0x567   : > { %v7245_v18 = vrot.slane %v7243_v30, 7  ;;  %v8169_v58 = vrot.slane %v8168_v13, 4 }
 0x568   : > { %7569 = vrot.lane.b32.xlu1 %v7236_v35, %s9364_s29  ;;  %8353 = vrot.lane.b32.xlu2 %v8150_v12, %s9366_s6  ;;  %v8164_v35 = vsel %vm9560_vm10, %v8159_v54, %v8163_v8  ;;  %v7713_v12 = vld [vmem:[#allocation2 + $0x110] sm:$0xf]  ;;  %v8179_v8 = vshll.u32 %v7917_v42, 16 }
 0x569   : > { %v7250_v62 = vrot.slane %v7245_v18, 4 }
 0x56a   : > { %7567 = vrot.lane.b32.xlu0 %v7227_v17, %s9364_s29  ;;  %v6522_v29 = vpop.permute.xlu1 %6521  ;;  %v6536_v15 = vpop.permute.xlu2 %6535  ;;  %v8171_v17 = vshll.u32 %v7916_v36, 16 }
 0x56b   : > { %6596 = vst.msk [vmem:[#allocation3 + $0x54] sm:$0xf] %vm2355_vm15, %v6522_v29  ;;  %v7255_v29 = vshll.u32 %v7172_v0, 16  ;;  %v7698_v0 = vld [vmem:[#allocation2 + $0x54] sm:$0xf] }
 0x56c   : > { %v6520_v3 = vpop.permute.xlu0 %6519  ;;  %6603 = vst.msk [vmem:[#allocation3 + $0x70] sm:$0xf] %vm2355_vm15, %v6536_v15  ;;  %v7960_v15 = vshrl.u32 %v7890_v41, 16  ;;  %v8173_v51 = vrot.slane %v8171_v17, 5  ;;  %v8181_v17 = vrot.slane %v8179_v8, 5 }
 0x56d   : > { %6595 = vst.msk [vmem:[#allocation3 + $0x50] sm:$0xf] %vm2355_vm15, %v6520_v3  ;;  %v7963_v3 = vshll.u32 %v7890_v41, 16  ;;  %v7257_v19 = vor.u32 %v7255_v29, %v7254_v61  ;;  %v9190_v41 = vrot.slane %v7436_v47, 11  ;;  %v7202_v8 = vld [vmem:[#allocation2 + $0x144] sm:$0xf] }
 0x56e   : > { %v7962_v16 = vrot.slane %v7960_v15, 4  ;;  %v8174_v31 = vsel %vm9560_vm10, %v8169_v58, %v8173_v51 }
 0x56f   : > { %v7965_v14 = vrot.slane %v7963_v3, 5  ;;  %v7175_v3 = vld [vmem:[#allocation2 + $0x6c] sm:$0xf] }
 0x570   : > { %8319 = vrot.lane.b32.xlu1 %v7948_v5, %s9366_s6  ;;  %7759 = vrot.lane.b32.xlu2 %v7695_v6, %s9365_s30  ;;  %v7248_v5 = vor.u32 %v7246_v39, %v7245_v18  ;;  %v7891_v6 = vld [vmem:[#allocation2 + $0x54] sm:$0xf]  ;;  %v7274_v51 = vshrl.u32 %v7175_v3, 16 }
 0x571   : > { %v7969_v20 = vshll.u32 %v7891_v6, 16  ;;  %v7973_v32 = vshrl.u32 %v7891_v6, 16  ;;  %v7966_v40 = vor.u32 %v7965_v14, %v7962_v16  ;;  %v7173_v14 = vld [vmem:[#allocation2 + $0x64] sm:$0x8] }
 0x572   : > { %7761 = vrot.lane.b32.xlu0 %v7696_v53, %s9365_s30  ;;  %v6528_v1 = vpop.permute.xlu1 %6527  ;;  %v6542_v48 = vpop.permute.xlu2 %6541  ;;  %v7258_v53 = vsel %vm9589_vm11, %v7250_v62, %v7257_v19  ;;  %v7249_v4 = vsel %vm9589_vm11, %v9181_v46, %v7248_v5  ;;  %v7893_v5 = vld [vmem:[#allocation2 + $0x68] sm:$0xf]  ;;  %v7919_v62 = vld [vmem:[#allocation2 + $0x130] sm:$0x1] }
 0x573   : > { %6599 = vst.msk [vmem:[#allocation3 + $0x60] sm:$0xf] %vm2355_vm15, %v6528_v1  ;;  %v7198_v1 = vld [vmem:[#allocation2 + $0x128] sm:$0xf]  ;;  %v7971_v45 = vrot.slane %v7969_v20, 5  ;;  %v7975_v44 = vrot.slane %v7973_v32, 4 }
 0x574   : > { %v6526_v27 = vpop.permute.xlu0 %6525  ;;  %6606 = vst.msk [vmem:[#allocation3 + $0x7c] sm:$0xf] %vm2355_vm15, %v6542_v48  ;;  %v7441_v43 = vshrl.u32 %v7198_v1, 16  ;;  %v7967_v57 = vrot.slane %v7966_v40, 4  ;;  %v7276_v20 = vrot.slane %v7274_v51, 7 }
 0x575   : > { %6598 = vst.msk [vmem:[#allocation3 + $0x5c] sm:$0xf] %vm2355_vm15, %v6526_v27  ;;  %v7976_v21 = vor.u32 %v7975_v44, %v7971_v45 }
 0x576   : > { %v7443_v24 = vrot.slane %v7441_v43, 7 }
 0x577   : > { %v7977_v54 = vrot.slane %v7976_v21, 4 }
 0x578   : > { %7605 = vrot.lane.b32.xlu1 %v7434_v50, %s9364_s29  ;;  %8321 = vrot.lane.b32.xlu2 %v7958_v33, %s9366_s6  ;;  %v7972_v50 = vsel %vm9560_vm10, %v7967_v57, %v7971_v45  ;;  %v7697_v33 = vld [vmem:[#allocation2 + $0x50] sm:$0xf]  ;;  %v7448_v61 = vrot.slane %v7443_v24, 4 }
 0x57a   : > { %7603 = vrot.lane.b32.xlu0 %v7425_v34, %s9364_s29  ;;  %v6534_v56 = vpop.permute.xlu1 %6533  ;;  %v7044_v7 = vpop.permute.xlu2 %7043  ;;  %v7979_v34 = vshll.u32 %v7892_v55, 16 }
 0x57b   : > { %6602 = vst.msk [vmem:[#allocation3 + $0x6c] sm:$0xf] %vm2355_vm15, %v6534_v56  ;;  %v7444_v56 = vshll.u32 %v7198_v1, 16  ;;  %v7260_v1 = vshrl.u32 %v7173_v14, 16 }
 0x57c   : > { %v6532_v38 = vpop.permute.xlu0 %6531  ;;  %7137 = vst.msk [vmem:[#allocation3 + $0x8] sm:$0xf] %vm2916_vm1, %v7044_v7  ;;  %v7453_v7 = vshll.u32 %v7199_v23, 16  ;;  %v7981_v11 = vrot.slane %v7979_v34, 5  ;;  %v7716_v23 = vld [vmem:[#allocation2 + $0x12c] sm:$0xf] }
 0x57d   : > { %6601 = vst.msk [vmem:[#allocation3 + $0x68] sm:$0xf] %vm2355_vm15, %v6532_v38  ;;  %v8176_v38 = vshrl.u32 %v7917_v42, 16  ;;  %v7894_v42 = vld [vmem:[#allocation2 + $0x6c] sm:$0xf] }
 0x57e   : > { %v7455_v36 = vor.u32 %v7453_v7, %v7452_v60  ;;  %v7982_v18 = vsel %vm9560_vm10, %v7977_v54, %v7981_v11  ;;  %v7993_v47 = vshll.u32 %v7894_v42, 16  ;;  %v7472_v11 = vshrl.u32 %v7202_v8, 16 }
 0x57f   : > { %v8178_v13 = vrot.slane %v8176_v38, 4 }
 0x580   : > { %8355 = vrot.lane.b32.xlu1 %v8164_v35, %s9366_s6  ;;  %7795 = vrot.lane.b32.xlu2 %v7713_v12, %s9365_s30  ;;  %v7446_v35 = vor.u32 %v7444_v56, %v7443_v24  ;;  %v7918_v12 = vld [vmem:[#allocation2 + $0x12c] sm:$0xf]  ;;  %v7997_v56 = vshrl.u32 %v7894_v42, 16  ;;  %v7995_v54 = vrot.slane %v7993_v47, 5 }
 0x581   : > { %v8185_v49 = vshll.u32 %v7918_v12, 16  ;;  %v8189_v29 = vshrl.u32 %v7918_v12, 16 }
 0x582   : > { %7797 = vrot.lane.b32.xlu0 %v7714_v26, %s9365_s30  ;;  %v6540_v22 = vpop.permute.xlu1 %6539  ;;  %v7050_v28 = vpop.permute.xlu2 %7049  ;;  %v7456_v26 = vsel %vm9589_vm11, %v7448_v61, %v7455_v36  ;;  %v7447_v15 = vsel %vm9589_vm11, %v9190_v41, %v7446_v35  ;;  %v7999_v41 = vrot.slane %v7997_v56, 4  ;;  %v7895_v61 = vld [vmem:[#allocation2 + $0x70] sm:$0x1]  ;;  %v7176_v56 = vld [vmem:[#allocation2 + $0x7c] sm:$0x8] }
 0x583   : > { %6605 = vst.msk [vmem:[#allocation3 + $0x78] sm:$0xf] %vm2355_vm15, %v6540_v22  ;;  %v8182_v22 = vor.u32 %v8181_v17, %v8178_v13  ;;  %v8187_v58 = vrot.slane %v8185_v49, 5  ;;  %v8191_v46 = vrot.slane %v8189_v29, 4  ;;  %v7200_v13 = vld [vmem:[#allocation2 + $0x13c] sm:$0x8] }
 0x584   : > { %v6538_v59 = vpop.permute.xlu0 %6537  ;;  %7140 = vst.msk [vmem:[#allocation3 + $0x14] sm:$0xf] %vm2916_vm1, %v7050_v28  ;;  %v7174_v28 = vld [vmem:[#allocation2 + $0x68] sm:$0xf]  ;;  %v7920_v17 = vld [vmem:[#allocation2 + $0x140] sm:$0xf]  ;;  %v8000_v29 = vor.u32 %v7999_v41, %v7995_v54 }
 0x585   : > { %6604 = vst.msk [vmem:[#allocation3 + $0x74] sm:$0xf] %vm2355_vm15, %v6538_v59  ;;  %v7265_v6 = vshrl.u32 %v7174_v28, 16  ;;  %v8183_v16 = vrot.slane %v8182_v22, 4  ;;  %v8192_v32 = vor.u32 %v8191_v46, %v8187_v58  ;;  %v7268_v44 = vshll.u32 %v7174_v28, 16 }
 0x586   : > { %v7474_v49 = vrot.slane %v7472_v11, 7  ;;  %v7458_v28 = vshrl.u32 %v7200_v13, 16  ;;  %v7282_v41 = vshrl.u32 %v7176_v56, 16 }
 0x587   : > { %v7267_v40 = vrot.slane %v7265_v6, 7  ;;  %v8193_v57 = vrot.slane %v8192_v32, 4 }
 0x588   : > { %7573 = vrot.lane.b32.xlu1 %v7258_v53, %s9364_s29  ;;  %8357 = vrot.lane.b32.xlu2 %v8174_v31, %s9366_s6  ;;  %v8188_v53 = vsel %vm9560_vm10, %v8183_v16, %v8187_v58  ;;  %v7715_v31 = vld [vmem:[#allocation2 + $0x128] sm:$0xf]  ;;  %v8203_v58 = vshll.u32 %v7920_v17, 16  ;;  %v9191_v14 = vrot.slane %v7458_v28, 11 }
 0x589   : > { %v7272_v34 = vrot.slane %v7267_v40, 4 }
 0x58a   : > { %7571 = vrot.lane.b32.xlu0 %v7249_v4, %s9364_s29  ;;  %v7042_v48 = vpop.permute.xlu1 %7041  ;;  %v7056_v27 = vpop.permute.xlu2 %7055  ;;  %v8195_v4 = vshll.u32 %v7919_v62, 16  ;;  %v8001_v62 = vrot.slane %v8000_v29, 4 }
 0x58b   : > { %7136 = vst.msk [vmem:[#allocation3 + $0x4] sm:$0xf] %vm2916_vm1, %v7042_v48  ;;  %v7984_v48 = vshrl.u32 %v7893_v5, 16 }
 0x58c   : > { %v7040_v2 = vpop.permute.xlu0 %7039  ;;  %7143 = vst.msk [vmem:[#allocation3 + $0x20] sm:$0xf] %vm2916_vm1, %v7056_v27  ;;  %v7987_v27 = vshll.u32 %v7893_v5, 16  ;;  %v8197_v63 = vrot.slane %v8195_v4, 5  ;;  %v8205_v4 = vrot.slane %v8203_v58, 5 }
 0x58d   : > { %7135 = vst.msk [vmem:[#allocation3] sm:$0xf] %vm2916_vm1, %v7040_v2  ;;  %v7277_v2 = vshll.u32 %v7175_v3, 16  ;;  %v7986_v60 = vrot.slane %v7984_v48, 4  ;;  %v7700_v3 = vld [vmem:[#allocation2 + $0x6c] sm:$0xf] }
 0x58e   : > { %v7989_v21 = vrot.slane %v7987_v27, 5  ;;  %v8198_v24 = vsel %vm9560_vm10, %v8193_v57, %v8197_v63 }
 0x58f   : > { %v7279_v55 = vor.u32 %v7277_v2, %v7276_v20 }
 0x590   : > { %8323 = vrot.lane.b32.xlu1 %v7972_v50, %s9366_s6  ;;  %7763 = vrot.lane.b32.xlu2 %v7697_v33, %s9365_s30  ;;  %v9182_v50 = vrot.slane %v7260_v1, 11  ;;  %v7270_v33 = vor.u32 %v7268_v44, %v7267_v40  ;;  %v7990_v38 = vor.u32 %v7989_v21, %v7986_v60 }
 0x592   : > { %7765 = vrot.lane.b32.xlu0 %v7698_v0, %s9365_s30  ;;  %v7048_v52 = vpop.permute.xlu1 %7047  ;;  %v7062_v10 = vpop.permute.xlu2 %7061  ;;  %v7280_v0 = vsel %vm9589_vm11, %v7272_v34, %v7279_v55  ;;  %v7271_v7 = vsel %vm9589_vm11, %v9182_v50, %v7270_v33  ;;  %v7991_v35 = vrot.slane %v7990_v38, 4  ;;  %v7177_v55 = vld [vmem:[#allocation2 + $0x80] sm:$0xf]  ;;  %v9323_v34 = vld [vmem:[%s12478_s3 + $0x8] sm:$0xff] }
 0x593   : > { %7139 = vst.msk [vmem:[#allocation3 + $0x10] sm:$0xf] %vm2916_vm1, %v7048_v52  ;;  %v7201_v52 = vld [vmem:[#allocation2 + $0x140] sm:$0xf] }
 0x594   : > { %v7046_v30 = vpop.permute.xlu0 %7045  ;;  %7146 = vst.msk [vmem:[#allocation3 + $0x2c] sm:$0xf] %vm2916_vm1, %v7062_v10  ;;  %v7463_v12 = vshrl.u32 %v7201_v52, 16 }
 0x595   : > { %7138 = vst.msk [vmem:[#allocation3 + $0xc] sm:$0xf] %vm2916_vm1, %v7046_v30 }
 0x596   : > { %v7465_v22 = vrot.slane %v7463_v12, 7 }
 0x598   : > { %7609 = vrot.lane.b32.xlu1 %v7456_v26, %s9364_s29  ;;  %8325 = vrot.lane.b32.xlu2 %v7982_v18, %s9366_s6  ;;  %v7996_v26 = vsel %vm9560_vm10, %v7991_v35, %v7995_v54  ;;  %v7699_v18 = vld [vmem:[#allocation2 + $0x68] sm:$0xf]  ;;  %v7470_v32 = vrot.slane %v7465_v22, 4  ;;  %v7718_v54 = vld [vmem:[#allocation2 + $0x144] sm:$0xf] }
 0x59a   : > { %7607 = vrot.lane.b32.xlu0 %v7447_v15, %s9364_s29  ;;  %v7054_v39 = vpop.permute.xlu1 %7053  ;;  %v7068_v59 = vpop.permute.xlu2 %7067  ;;  %v8003_v15 = vshll.u32 %v7895_v61, 16 }
 0x59b   : > { %7142 = vst.msk [vmem:[#allocation3 + $0x1c] sm:$0xf] %vm2916_vm1, %v7054_v39  ;;  %v7466_v39 = vshll.u32 %v7201_v52, 16 }
 0x59c   : > { %v7052_v19 = vpop.permute.xlu0 %7051  ;;  %7149 = vst.msk [vmem:[#allocation3 + $0x38] sm:$0xf] %vm2916_vm1, %v7068_v59  ;;  %v8200_v59 = vshrl.u32 %v7920_v17, 16  ;;  %v8005_v16 = vrot.slane %v8003_v15, 5 }
 0x59d   : > { %7141 = vst.msk [vmem:[#allocation3 + $0x18] sm:$0xf] %vm2916_vm1, %v7052_v19  ;;  %v7475_v19 = vshll.u32 %v7202_v8, 16  ;;  %v7717_v8 = vld [vmem:[#allocation2 + $0x140] sm:$0xf] }
 0x59e   : > { %v8202_v20 = vrot.slane %v8200_v59, 4  ;;  %v8006_v48 = vsel %vm9560_vm10, %v8001_v62, %v8005_v16 }
 0x59f   : > { %v7477_v6 = vor.u32 %v7475_v19, %v7474_v49 }
 0x5a0   : > { %8359 = vrot.lane.b32.xlu1 %v8188_v53, %s9366_s6  ;;  %7799 = vrot.lane.b32.xlu2 %v7715_v31, %s9365_s30  ;;  %v7468_v53 = vor.u32 %v7466_v39, %v7465_v22  ;;  %v7921_v31 = vld [vmem:[#allocation2 + $0x144] sm:$0xf]  ;;  %v9183_v22 = vrot.slane %v7282_v41, 11 }
 0x5a1   : > { %v7478_v1 = vsel %vm9589_vm11, %v7470_v32, %v7477_v6  ;;  %v8209_v27 = vshll.u32 %v7921_v31, 16  ;;  %v8213_v2 = vshrl.u32 %v7921_v31, 16  ;;  %v6644_v39 = vld [vmem:[#allocation2 + $0x144] sm:$0xf] }
 0x5a2   : > { %7801 = vrot.lane.b32.xlu0 %v7716_v23, %s9365_s30  ;;  %v7060_v45 = vpop.permute.xlu1 %7059  ;;  %v7074_v25 = vpop.permute.xlu2 %7073  ;;  %v8483_v23 = vld [vmem:[%s12478_s3 + $0x10] sm:$0x3]  ;;  %v6953_v62 = vshll.u32 %v6644_v39, 16  ;;  %v6957_v16 = vshrl.u32 %v6644_v39, 16 }
 0x5a3   : > { %7145 = vst.msk [vmem:[#allocation3 + $0x28] sm:$0xf] %vm2916_vm1, %v7060_v45  ;;  %v8577_v40 = vunpack.c.l.b16 %v8483_v23  ;;  %v7469_v45 = vsel %vm9589_vm11, %v9191_v14, %v7468_v53  ;;  %v8211_v33 = vrot.slane %v8209_v27, 5  ;;  %v8215_v21 = vrot.slane %v8213_v2, 4  ;;  %v6643_v14 = vld [vmem:[#allocation2 + $0x140] sm:$0xf] }
 0x5a4   : > { %v7058_v43 = vpop.permute.xlu0 %7057  ;;  %7152 = vst.msk [vmem:[#allocation3 + $0x44] sm:$0xf] %vm2916_vm1, %v7074_v25  ;;  %v7178_v25 = vld [vmem:[#allocation2 + $0x84] sm:$0xf]  ;;  %v7898_v23 = vld [vmem:[#allocation2 + $0x88] sm:$0x1] }
 0x5a5   : > { %7144 = vst.msk [vmem:[#allocation3 + $0x24] sm:$0xf] %vm2916_vm1, %v7058_v43  ;;  %v8580_v44 = vpack.c.b16 %v8577_v40, %v8577_v40  ;;  %v8206_v43 = vor.u32 %v8205_v4, %v8202_v20  ;;  %v7296_v60 = vshrl.u32 %v7178_v25, 16  ;;  %v7299_v35 = vshll.u32 %v7178_v25, 16  ;;  %v6645_v2 = vld [vmem:[#allocation2 + $0x148] sm:$0x1] }
 0x5a6   : > { %v6959_v25 = vrot.slane %v6957_v16, 4  ;;  %v7925_v16 = vld [vmem:[#allocation2 + $0x160] sm:$0x1] }
 0x5a7   : > { %v8632_v42 = vsel %vm4418_vm5, %v8580_v44, 0  ;;  %v8207_v47 = vrot.slane %v8206_v43, 4  ;;  %v7298_v52 = vrot.slane %v7296_v60, 7  ;;  %v8027_v43 = vshll.u32 %v7898_v23, 16  ;;  %v7701_v60 = vld [vmem:[#allocation2 + $0x80] sm:$0xf] }
 0x5a8   : > { %7577 = vrot.lane.b32.xlu1 %v7280_v0, %s9364_s29  ;;  %8361 = vrot.lane.b32.xlu2 %v8198_v24, %s9366_s6  ;;  %v7287_v0 = vshrl.u32 %v7177_v55, 16  ;;  %v7922_v24 = vld [vmem:[#allocation2 + $0x148] sm:$0x1] }
 0x5a9   : > { %9327 = vmatpush.bf16.msra.mxu3 %v8632_v42  ;;  %8639 = vmatpush.bf16.msra.mxu1 %v8632_v42  ;;  %v8212_v38 = vsel %vm9560_vm10, %v8207_v47, %v8211_v33  ;;  %v7301_v49 = vor.u32 %v7299_v35, %v7298_v52 }
 0x5aa   : > { %7575 = vrot.lane.b32.xlu0 %v7271_v7, %s9364_s29  ;;  %v7066_v10 = vpop.permute.xlu1 %7065  ;;  %v7080_v30 = vpop.permute.xlu2 %7079  ;;  %v7896_v7 = vld [vmem:[#allocation2 + $0x80] sm:$0xf]  ;;  %v7289_v11 = vrot.slane %v7287_v0, 7  ;;  %v7204_v0 = vld [vmem:[#allocation2 + $0x158] sm:$0xf] }
 0x5ab   : > { %7148 = vst.msk [vmem:[#allocation3 + $0x34] sm:$0xf] %vm2916_vm1, %v7066_v10  ;;  %v8216_v10 = vor.u32 %v8215_v21, %v8211_v33  ;;  %v8008_v12 = vshrl.u32 %v7896_v7, 16  ;;  %v8011_v61 = vshll.u32 %v7896_v7, 16 }
 0x5ac   : > { %v7064_v36 = vpop.permute.xlu0 %7063  ;;  %7155 = vst.msk [vmem:[#allocation3 + $0x50] sm:$0xf] %vm2916_vm1, %v7080_v30  ;;  %v8219_v30 = vshll.u32 %v7922_v24, 16  ;;  %v7294_v59 = vrot.slane %v7289_v11, 4 }
 0x5ad   : > { %7147 = vst.msk [vmem:[#allocation3 + $0x30] sm:$0xf] %vm2916_vm1, %v7064_v36  ;;  %9328 = vmatpush.bf16.msra.mxu3 %v9323_v34  ;;  %v9322_v36 = vld [vmem:[%s12478_s3] sm:$0xff]  ;;  %8640 = vmatpush.bf16.msra.mxu1 %v9323_v34  ;;  %v8217_v29 = vrot.slane %v8216_v10, 4  ;;  %v8010_v19 = vrot.slane %v8008_v12, 4  ;;  %v8013_v58 = vrot.slane %v8011_v61, 5 }
 0x5ae   : > { %v8221_v15 = vrot.slane %v8219_v30, 5  ;;  %v7702_v34 = vld [vmem:[#allocation2 + $0x84] sm:$0xf]  ;;  %v7203_v30 = vld [vmem:[#allocation2 + $0x154] sm:$0x8]  ;;  %v7488_v61 = vshll.u32 %v7204_v0, 16 }
 0x5af   : > { %v8014_v31 = vor.u32 %v8013_v58, %v8010_v19  ;;  %v7480_v12 = vshrl.u32 %v7203_v30, 16 }
 0x5b0   : > { %8327 = vrot.lane.b32.xlu1 %v7996_v26, %s9366_s6  ;;  %7767 = vrot.lane.b32.xlu2 %v7699_v18, %s9365_s30  ;;  %v7290_v26 = vshll.u32 %v7177_v55, 16  ;;  %v8222_v6 = vsel %vm9560_vm10, %v8217_v29, %v8221_v15  ;;  %v6963_v55 = vshll.u32 %v6645_v2, 16  ;;  %v7923_v29 = vld [vmem:[#allocation2 + $0x158] sm:$0xf] }
 0x5b1   : > { %9329 = vmatpush.bf16.msra.mxu3 %v9322_v36  ;;  %8641 = vmatpush.bf16.msra.mxu1 %v9322_v36  ;;  %v8015_v44 = vrot.slane %v8014_v31, 4  ;;  %v7485_v36 = vshrl.u32 %v7204_v0, 16  ;;  %v8224_v39 = vshrl.u32 %v7923_v29, 16  ;;  %v9192_v58 = vrot.slane %v7480_v12, 11  ;;  %v7720_v0 = vld [vmem:[#allocation2 + $0x15c] sm:$0xf] }
 0x5b2   : > { %7769 = vrot.lane.b32.xlu0 %v7700_v3, %s9365_s30  ;;  %v7072_v51 = vpop.permute.xlu1 %7071  ;;  %v7086_v46 = vpop.permute.xlu2 %7085  ;;  %v7897_v3 = vld [vmem:[#allocation2 + $0x84] sm:$0xf]  ;;  %v7292_v28 = vor.u32 %v7290_v26, %v7289_v11  ;;  %v6965_v56 = vrot.slane %v6963_v55, 5  ;;  %v7924_v11 = vld [vmem:[#allocation2 + $0x15c] sm:$0xf] }
 0x5b3   : > { %7151 = vst.msk [vmem:[#allocation3 + $0x40] sm:$0xf] %vm2916_vm1, %v7072_v51  ;;  %v8017_v51 = vshll.u32 %v7897_v3, 16  ;;  %v7487_v26 = vrot.slane %v7485_v36, 7 }
 0x5b4   : > { %v7070_v5 = vpop.permute.xlu0 %7069  ;;  %7158 = vst.msk [vmem:[#allocation3 + $0x5c] sm:$0xf] %vm2916_vm1, %v7086_v46  ;;  %v8021_v46 = vshrl.u32 %v7897_v3, 16  ;;  %v7293_v53 = vsel %vm9589_vm11, %v9183_v22, %v7292_v28 }
 0x5b5   : > { %7150 = vst.msk [vmem:[#allocation3 + $0x3c] sm:$0xf] %vm2916_vm1, %v7070_v5  ;;  %v7302_v5 = vsel %vm9589_vm11, %v7294_v59, %v7301_v49  ;;  %v8019_v4 = vrot.slane %v8017_v51, 5  ;;  %v8237_v49 = vshrl.u32 %v7924_v11, 16  ;;  %v8227_v59 = vshll.u32 %v7923_v29, 16 }
 0x5b6   : > { %v8023_v40 = vrot.slane %v8021_v46, 4  ;;  %v7490_v51 = vor.u32 %v7488_v61, %v7487_v26 }
 0x5b7   : > { %v8020_v33 = vsel %vm9560_vm10, %v8015_v44, %v8019_v4  ;;  %v8229_v31 = vrot.slane %v8227_v59, 5 }
 0x5b8   : > { %7613 = vrot.lane.b32.xlu1 %v7478_v1, %s9364_s29  ;;  %8329 = vrot.lane.b32.xlu2 %v8006_v48, %s9366_s6  ;;  %v6944_v1 = vshrl.u32 %v6643_v14, 16  ;;  %v6947_v48 = vshll.u32 %v6643_v14, 16  ;;  %v7492_v14 = vrot.slane %v7487_v26, 4  ;;  %v7901_v26 = vld [vmem:[#allocation2 + $0xa0] sm:$0x1] }
 0x5b9   : > { %v8051_v59 = vshll.u32 %v7901_v26, 16 }
 0x5ba   : > { %7611 = vrot.lane.b32.xlu0 %v7469_v45, %s9364_s29  ;;  %v7078_v57 = vpop.permute.xlu1 %7077  ;;  %v11979_v63 = vpop.permute.xlu2 %7791  ;;  %v6955_v45 = vrot.slane %v6953_v62, 5  ;;  %v6946_v42 = vrot.slane %v6944_v1, 4  ;;  %v7180_v1 = vld [vmem:[#allocation2 + $0x98] sm:$0xf] }
 0x5bb   : > { %7154 = vst.msk [vmem:[#allocation3 + $0x4c] sm:$0xf] %vm2916_vm1, %v7078_v57  ;;  %v8024_v57 = vor.u32 %v8023_v40, %v8019_v4  ;;  %v7491_v4 = vsel %vm9589_vm11, %v9192_v58, %v7490_v51  ;;  %v8243_v40 = vshll.u32 %v7925_v16, 16 }
 0x5bc   : > { %v7076_v50 = vpop.permute.xlu0 %7075  ;;  %v6960_v21 = vor.u32 %v6959_v25, %v6955_v45  ;;  %v7309_v25 = vshrl.u32 %v7180_v1, 16 }
 0x5bd   : > { %7153 = vst.msk [vmem:[#allocation3 + $0x48] sm:$0xf] %vm2916_vm1, %v7076_v50  ;;  %v6949_v50 = vrot.slane %v6947_v48, 5  ;;  %v8025_v7 = vrot.slane %v8024_v57, 4  ;;  %v8245_v55 = vrot.slane %v8243_v40, 5 }
 0x5be   : > { %v6961_v10 = vrot.slane %v6960_v21, 4  ;;  %v7179_v57 = vld [vmem:[#allocation2 + $0x94] sm:$0x8]  ;;  %v7899_v21 = vld [vmem:[#allocation2 + $0x98] sm:$0xf] }
 0x5bf   : > { %v8032_v30 = vshrl.u32 %v7899_v21, 16  ;;  %v8035_v36 = vshll.u32 %v7899_v21, 16 }
 0x5c0   : > { %8363 = vrot.lane.b32.xlu1 %v8212_v38, %s9366_s6  ;;  %7803 = vrot.lane.b32.xlu2 %v7717_v8, %s9365_s30  ;;  %v8029_v38 = vrot.slane %v8027_v43, 5  ;;  %v6950_v8 = vor.u32 %v6949_v50, %v6946_v42  ;;  %v7900_v50 = vld [vmem:[#allocation2 + $0x9c] sm:$0xf] }
 0x5c1   : > { %v8034_v29 = vrot.slane %v8032_v30, 4 }
 0x5c2   : > { %7805 = vrot.lane.b32.xlu0 %v7718_v54, %s9365_s30  ;;  %v7084_v13 = vpop.permute.xlu1 %7083  ;;  %v11995_v17 = vpop.permute.xlu2 %8353  ;;  %v8030_v41 = vsel %vm9560_vm10, %v8025_v7, %v8029_v38  ;;  %v6951_v35 = vrot.slane %v6950_v8, 4 }
 0x5c3   : > { %7157 = vst.msk [vmem:[#allocation3 + $0x58] sm:$0xf] %vm2916_vm1, %v7084_v13  ;;  %v6966_v13 = vsel %vm9560_vm10, %v6961_v10, %v6965_v56  ;;  %v8045_v56 = vshrl.u32 %v7900_v50, 16 }
 0x5c4   : > { %v7082_v18 = vpop.permute.xlu0 %7081 }
 0x5c5   : > { %7156 = vst.msk [vmem:[#allocation3 + $0x54] sm:$0xf] %vm2916_vm1, %v7082_v18  ;;  %v8233_v18 = vshll.u32 %v7924_v11, 16  ;;  %v8047_v12 = vrot.slane %v8045_v56, 4 }
 0x5c7   : > { %v8235_v46 = vrot.slane %v8233_v18, 5  ;;  %v6647_v18 = vld [vmem:[#allocation2 + $0x15c] sm:$0xf] }
 0x5c8   : > { %7581 = vrot.lane.b32.xlu1 %v7302_v5, %s9364_s29  ;;  %8365 = vrot.lane.b32.xlu2 %v8222_v6, %s9366_s6  ;;  %v8239_v5 = vrot.slane %v8237_v49, 4  ;;  %v6977_v58 = vshll.u32 %v6647_v18, 16  ;;  %v6981_v51 = vshrl.u32 %v6647_v18, 16 }
 0x5ca   : > { %7579 = vrot.lane.b32.xlu0 %v7293_v53, %s9364_s29  ;;  %v7602_v20 = vpop.permute.xlu1 %7601  ;;  %v12008_v32 = vpop.permute.xlu2 %7759  ;;  %v8226_v53 = vrot.slane %v8224_v39, 4  ;;  %v8240_v23 = vor.u32 %v8239_v5, %v8235_v46  ;;  %v6983_v40 = vrot.slane %v6981_v51, 4 }
 0x5cb   : > { %7680 = vst.msk [vmem:[#allocation3 + $0x44] sm:$0xf] %vm3446_vm2, %v7602_v20  ;;  %v7719_v20 = vld [vmem:[#allocation2 + $0x158] sm:$0xf] }
 0x5cc   : > { %v7600_v27 = vpop.permute.xlu0 %7599  ;;  %v8241_v43 = vrot.slane %v8240_v23, 4  ;;  %v6979_v23 = vrot.slane %v6977_v58, 5  ;;  %v7722_v58 = vld [vmem:[#allocation2 + $0x174] sm:$0xf] }
 0x5cd   : > { %7679 = vst.msk [vmem:[#allocation3 + $0x40] sm:$0xf] %vm3446_vm2, %v7600_v27 }
 0x5ce   : > { %7871 = vst.msk [vmem:[#allocation3 + $0x40] sm:$0xf] %vm3639_vm4, %v11979_v63  ;;  %v7205_v63 = vld [vmem:[#allocation2 + $0x15c] sm:$0xf] }
 0x5cf   : > { %v7494_v54 = vshrl.u32 %v7205_v63, 16  ;;  %v7497_v28 = vshll.u32 %v7205_v63, 16  ;;  %v7311_v63 = vrot.slane %v7309_v25, 7  ;;  %v7704_v25 = vld [vmem:[#allocation2 + $0x9c] sm:$0xf] }
 0x5d0   : > { %8331 = vrot.lane.b32.xlu1 %v8020_v33, %s9366_s6  ;;  %7771 = vrot.lane.b32.xlu2 %v7701_v60, %s9365_s30  ;;  %v7304_v60 = vshrl.u32 %v7179_v57, 16 }
 0x5d1   : > { %v7496_v15 = vrot.slane %v7494_v54, 7  ;;  %v7316_v49 = vrot.slane %v7311_v63, 4 }
 0x5d2   : > { %7773 = vrot.lane.b32.xlu0 %v7702_v34, %s9365_s30  ;;  %v8352_v24 = vpop.permute.xlu1 %8351  ;;  %v12019_v47 = vpop.permute.xlu2 %8321  ;;  %v8246_v34 = vsel %vm9560_vm10, %v8241_v43, %v8245_v55  ;;  %v9184_v11 = vrot.slane %v7304_v60, 11 }
 0x5d3   : > { %8431 = vst.msk [vmem:[#allocation3 + $0x40] sm:$0xf] %vm4200_vm6, %v8352_v24  ;;  %v7499_v62 = vor.u32 %v7497_v28, %v7496_v15  ;;  %v8041_v24 = vshll.u32 %v7900_v50, 16  ;;  %v6646_v15 = vld [vmem:[#allocation2 + $0x158] sm:$0xf] }
 0x5d4   : > { %v7794_v52 = vpop.permute.xlu0 %7793  ;;  %v6971_v5 = vshll.u32 %v6646_v15, 16  ;;  %v7208_v50 = vld [vmem:[#allocation2 + $0x174] sm:$0xf] }
 0x5d5   : > { %7872 = vst.msk [vmem:[#allocation3 + $0x44] sm:$0xf] %vm3639_vm4, %v7794_v52  ;;  %v7500_v48 = vsel %vm9589_vm11, %v7492_v14, %v7499_v62 }
 0x5d6   : > { %8432 = vst.msk [vmem:[#allocation3 + $0x44] sm:$0xf] %vm4200_vm6, %v11995_v17  ;;  %v6956_v17 = vsel %vm9560_vm10, %v6951_v35, %v6955_v45  ;;  %v8230_v45 = vor.u32 %v8229_v31, %v8226_v53  ;;  %v8043_v35 = vrot.slane %v8041_v24, 5  ;;  %v8053_v31 = vrot.slane %v8051_v59, 5 }
 0x5d7   : > { %v7516_v24 = vshrl.u32 %v7208_v50, 16 }
 0x5d8   : > { %7089 = vrot.lane.b32.xlu1 %v6966_v13, %s9363_s28  ;;  %8333 = vrot.lane.b32.xlu2 %v8030_v41, %s9366_s6  ;;  %v8231_v33 = vrot.slane %v8230_v45, 4  ;;  %v8048_v39 = vor.u32 %v8047_v12, %v8043_v35  ;;  %v7519_v12 = vshll.u32 %v7208_v50, 16 }
 0x5da   : > { %7087 = vrot.lane.b32.xlu0 %v6956_v17, %s9363_s28  ;;  %v7570_v3 = vpop.permute.xlu1 %7569  ;;  %v12034_v22 = vpop.permute.xlu2 %7795  ;;  %v8236_v7 = vsel %vm9560_vm10, %v8231_v33, %v8235_v46  ;;  %v8037_v17 = vrot.slane %v8035_v36, 5  ;;  %v6968_v46 = vshrl.u32 %v6646_v15, 16  ;;  %v8049_v53 = vrot.slane %v8048_v39, 4 }
 0x5db   : > { %7664 = vst.msk [vmem:[#allocation3 + $0x4] sm:$0xf] %vm3446_vm2, %v7570_v3  ;;  %v7703_v3 = vld [vmem:[#allocation2 + $0x98] sm:$0xf] }
 0x5dc   : > { %v7568_v19 = vpop.permute.xlu0 %7567  ;;  %v8038_v16 = vor.u32 %v8037_v17, %v8034_v29  ;;  %v8054_v45 = vsel %vm9560_vm10, %v8049_v53, %v8053_v31  ;;  %v7182_v17 = vld [vmem:[#allocation2 + $0xac] sm:$0x8]  ;;  %v7184_v53 = vld [vmem:[#allocation2 + $0xb4] sm:$0xf] }
 0x5dd   : > { %7663 = vst.msk [vmem:[#allocation3] sm:$0xf] %vm3446_vm2, %v7568_v19  ;;  %v9314_v6 = vld [vmem:[#allocation3 + $0x40] sm:$0xff] }
 0x5de   : > { %7855 = vst.msk [vmem:[#allocation3] sm:$0xf] %vm3639_vm4, %v12008_v32  ;;  %9276 = vmatmul.msk.bf16.vlgmr.msra.gmra.mxu3 %vm4369_vm7, %v9314_v6  ;;  %v7181_v32 = vld [vmem:[#allocation2 + $0x9c] sm:$0xf]  ;;  %v7207_v19 = vld [vmem:[#allocation2 + $0x170] sm:$0xf] }
 0x5df   : > { %v7318_v42 = vshrl.u32 %v7181_v32, 16  ;;  %v7321_v10 = vshll.u32 %v7181_v32, 16  ;;  %v6648_v32 = vld [vmem:[#allocation2 + $0x160] sm:$0x1]  ;;  %v7510_v55 = vshll.u32 %v7207_v19, 16 }
 0x5e0   : > { %7807 = vrot.lane.b32.xlu1 %v7719_v20, %s9365_s30  ;;  %7615 = vrot.lane.b32.xlu2 %v7491_v4, %s9364_s29  ;;  %v7507_v20 = vshrl.u32 %v7207_v19, 16  ;;  %v7206_v4 = vld [vmem:[#allocation2 + $0x16c] sm:$0x8]  ;;  %v7928_v19 = vld [vmem:[#allocation2 + $0x178] sm:$0x1] }
 0x5e1   : > { %v7320_v38 = vrot.slane %v7318_v42, 7  ;;  %v6984_v42 = vor.u32 %v6983_v40, %v6979_v23 }
 0x5e2   : > { %7617 = vrot.lane.b32.xlu0 %v7500_v48, %s9364_s29  ;;  %v8320_v27 = vpop.permute.xlu1 %8319  ;;  %v12048_v2 = vpop.permute.xlu2 %8357  ;;  %v6973_v48 = vrot.slane %v6971_v5, 5  ;;  %v7509_v43 = vrot.slane %v7507_v20, 7 }
 0x5e3   : > { %8415 = vst.msk [vmem:[#allocation3] sm:$0xf] %vm4200_vm6, %v8320_v27  ;;  %v7323_v13 = vor.u32 %v7321_v10, %v7320_v38  ;;  %v8039_v27 = vrot.slane %v8038_v16, 4  ;;  %v7926_v10 = vld [vmem:[#allocation2 + $0x170] sm:$0xf] }
 0x5e4   : > { %v7762_v44 = vpop.permute.xlu0 %7761 }
 0x5e5   : > { %7856 = vst.msk [vmem:[#allocation3 + $0x4] sm:$0xf] %vm3639_vm4, %v7762_v44  ;;  %v7502_v44 = vshrl.u32 %v7206_v4, 16  ;;  %v8044_v57 = vsel %vm9560_vm10, %v8039_v27, %v8043_v35  ;;  %v7903_v27 = vld [vmem:[#allocation2 + $0xb4] sm:$0xf] }
 0x5e6   : > { %8416 = vst.msk [vmem:[#allocation3 + $0x4] sm:$0xf] %vm4200_vm6, %v12019_v47  ;;  %v7312_v47 = vshll.u32 %v7180_v1, 16  ;;  %v6970_v1 = vrot.slane %v6968_v46, 4  ;;  %v7326_v46 = vshrl.u32 %v7182_v17, 16 }
 0x5e8   : > { %8369 = vrot.lane.b32.xlu1 %v8246_v34, %s9366_s6  ;;  %7809 = vrot.lane.b32.xlu2 %v7720_v0, %s9365_s30  ;;  %v7314_v41 = vor.u32 %v7312_v47, %v7311_v63  ;;  %v6974_v33 = vor.u32 %v6973_v48, %v6970_v1  ;;  %v9193_v0 = vrot.slane %v7502_v44, 11  ;;  %v7512_v63 = vor.u32 %v7510_v55, %v7509_v43  ;;  %v6649_v55 = vld [vmem:[#allocation2 + $0x170] sm:$0xf] }
 0x5e9   : > { %v9185_v1 = vrot.slane %v7326_v46, 11 }
 0x5ea   : > { %8367 = vrot.lane.b32.xlu0 %v8236_v7, %s9366_s6  ;;  %v7606_v8 = vpop.permute.xlu1 %7605  ;;  %v12061_v52 = vpop.permute.xlu2 %7763  ;;  %v7315_v28 = vsel %vm9589_vm11, %v9184_v11, %v7314_v41  ;;  %v6985_v7 = vrot.slane %v6984_v42, 4  ;;  %v6975_v47 = vrot.slane %v6974_v33, 4  ;;  %v7513_v30 = vsel %vm9589_vm11, %v9193_v0, %v7512_v63 }
 0x5eb   : > { %7682 = vst.msk [vmem:[#allocation3 + $0x4c] sm:$0xf] %vm3446_vm2, %v7606_v8  ;;  %v7927_v8 = vld [vmem:[#allocation2 + $0x174] sm:$0xf]  ;;  %v6995_v0 = vshll.u32 %v6649_v55, 16  ;;  %v8069_v63 = vshrl.u32 %v7903_v27, 16 }
 0x5ec   : > { %v7604_v54 = vpop.permute.xlu0 %7603  ;;  %v6980_v36 = vsel %vm9560_vm10, %v6975_v47, %v6979_v23  ;;  %v8257_v41 = vshll.u32 %v7927_v8, 16  ;;  %v8261_v35 = vshrl.u32 %v7927_v8, 16  ;;  %v7902_v23 = vld [vmem:[#allocation2 + $0xb0] sm:$0xf] }
 0x5ed   : > { %7681 = vst.msk [vmem:[#allocation3 + $0x48] sm:$0xf] %vm3446_vm2, %v7604_v54  ;;  %v9306_v61 = vld [vmem:[#allocation3] sm:$0xff]  ;;  %v7518_v54 = vrot.slane %v7516_v24, 7  ;;  %v8059_v42 = vshll.u32 %v7902_v23, 16  ;;  %v7343_v24 = vshll.u32 %v7184_v53, 16 }
 0x5ee   : > { %7873 = vst.msk [vmem:[#allocation3 + $0x48] sm:$0xf] %vm3639_vm4, %v12034_v22  ;;  %9268 = vmatmul.msk.bf16.vlgmr.msra.gmra.mxu1 %vm4369_vm7, %v9306_v61  ;;  %v7324_v22 = vsel %vm9589_vm11, %v7316_v49, %v7323_v13  ;;  %v8248_v61 = vshrl.u32 %v7926_v10, 16  ;;  %v8251_v13 = vshll.u32 %v7926_v10, 16  ;;  %v8263_v39 = vrot.slane %v8261_v35, 4 }
 0x5ef   : > { %v7521_v29 = vor.u32 %v7519_v12, %v7518_v54  ;;  %v8061_v47 = vrot.slane %v8059_v42, 5  ;;  %v6997_v54 = vrot.slane %v6995_v0, 5  ;;  %v7904_v35 = vld [vmem:[#allocation2 + $0xb8] sm:$0x1] }
 0x5f0   : > { %7775 = vrot.lane.b32.xlu1 %v7703_v3, %s9365_s30  ;;  %7583 = vrot.lane.b32.xlu2 %v7315_v28, %s9364_s29  ;;  %v7514_v3 = vrot.slane %v7509_v43, 4  ;;  %v8259_v28 = vrot.slane %v8257_v41, 5  ;;  %v8250_v59 = vrot.slane %v8248_v61, 4 }
 0x5f2   : > { %7585 = vrot.lane.b32.xlu0 %v7324_v22, %s9364_s29  ;;  %v8356_v6 = vpop.permute.xlu1 %8355  ;;  %v12075_v62 = vpop.permute.xlu2 %8325  ;;  %v8253_v22 = vrot.slane %v8251_v13, 5  ;;  %v7522_v51 = vsel %vm9589_vm11, %v7514_v3, %v7521_v29  ;;  %v8264_v16 = vor.u32 %v8263_v39, %v8259_v28  ;;  %v7705_v29 = vld [vmem:[#allocation2 + $0xb0] sm:$0xf]  ;;  %v8075_v3 = vshll.u32 %v7904_v35, 16 }
 0x5f3   : > { %8433 = vst.msk [vmem:[#allocation3 + $0x48] sm:$0xf] %vm4200_vm6, %v8356_v6  ;;  %v7721_v6 = vld [vmem:[#allocation2 + $0x170] sm:$0xf] }
 0x5f4   : > { %v7798_v14 = vpop.permute.xlu0 %7797  ;;  %v8254_v31 = vor.u32 %v8253_v22, %v8250_v59 }
 0x5f5   : > { %7874 = vst.msk [vmem:[#allocation3 + $0x4c] sm:$0xf] %vm3639_vm4, %v7798_v14  ;;  %v8267_v14 = vshll.u32 %v7928_v19, 16 }
 0x5f6   : > { %8434 = vst.msk [vmem:[#allocation3 + $0x4c] sm:$0xf] %vm4200_vm6, %v12048_v2  ;;  %v6987_v2 = vshll.u32 %v6648_v32, 16  ;;  %v7340_v32 = vshrl.u32 %v7184_v53, 16  ;;  %v8255_v43 = vrot.slane %v8254_v31, 4  ;;  %v8077_v31 = vrot.slane %v8075_v3, 5 }
 0x5f7   : > { %v8269_v44 = vrot.slane %v8267_v14, 5 }
 0x5f8   : > { %8337 = vrot.lane.b32.xlu1 %v8054_v45, %s9366_s6  ;;  %7777 = vrot.lane.b32.xlu2 %v7704_v25, %s9365_s30  ;;  %v6989_v38 = vrot.slane %v6987_v2, 5  ;;  %v8265_v25 = vrot.slane %v8264_v16, 4  ;;  %v8260_v50 = vsel %vm9560_vm10, %v8255_v43, %v8259_v28  ;;  %v7342_v33 = vrot.slane %v7340_v32, 7  ;;  %v7210_v28 = vld [vmem:[#allocation2 + $0x188] sm:$0xf] }
 0x5f9   : > { %v7929_v16 = vld [vmem:[#allocation2 + $0x188] sm:$0xf] }
 0x5fa   : > { %8335 = vrot.lane.b32.xlu0 %v8044_v57, %s9366_s6  ;;  %v7574_v60 = vpop.permute.xlu1 %7573  ;;  %v12088_v21 = vpop.permute.xlu2 %7799  ;;  %v6990_v11 = vsel %vm9560_vm10, %v6985_v7, %v6989_v38  ;;  %v8056_v57 = vshrl.u32 %v7902_v23, 16  ;;  %v7345_v10 = vor.u32 %v7343_v24, %v7342_v33  ;;  %v7209_v23 = vld [vmem:[#allocation2 + $0x184] sm:$0x8]  ;;  %v8272_v32 = vshrl.u32 %v7929_v16, 16 }
 0x5fb   : > { %7666 = vst.msk [vmem:[#allocation3 + $0xc] sm:$0xf] %vm3446_vm2, %v7574_v60  ;;  %v8065_v60 = vshll.u32 %v7903_v27, 16  ;;  %v7524_v43 = vshrl.u32 %v7209_v23, 16  ;;  %v7906_v23 = vld [vmem:[#allocation2 + $0xcc] sm:$0xf] }
 0x5fc   : > { %v7572_v34 = vpop.permute.xlu0 %7571  ;;  %v8058_v38 = vrot.slane %v8056_v57, 4 }
 0x5fd   : > { %7665 = vst.msk [vmem:[#allocation3 + $0x8] sm:$0xf] %vm3446_vm2, %v7572_v34  ;;  %v9315_v56 = vld [vmem:[#allocation3 + $0x48] sm:$0xff]  ;;  %v6992_v34 = vshrl.u32 %v6649_v55, 16  ;;  %v7532_v55 = vshll.u32 %v7210_v28, 16 }
 0x5fe   : > { %7857 = vst.msk [vmem:[#allocation3 + $0x8] sm:$0xf] %vm3639_vm4, %v12061_v52  ;;  %9277 = vmatmul.msk.bf16.gmra.mxu3 %vm4369_vm7, %v9315_v56  ;;  %v7183_v52 = vld [vmem:[#allocation2 + $0xb0] sm:$0xf]  ;;  %v8062_v13 = vor.u32 %v8061_v47, %v8058_v38 }
 0x5ff   : > { %v7331_v15 = vshrl.u32 %v7183_v52, 16 }
 0x600   : > { %7619 = vrot.lane.b32.xlu1 %v7513_v30, %s9364_s29  ;;  %7091 = vrot.lane.b32.xlu2 %v6980_v36, %s9363_s28  ;;  %v6650_v30 = vld [vmem:[#allocation2 + $0x174] sm:$0xf]  ;;  %v6994_v36 = vrot.slane %v6992_v34, 4  ;;  %v8063_v19 = vrot.slane %v8062_v13, 4  ;;  %v8274_v34 = vrot.slane %v8272_v32, 4 }
 0x601   : > { %v12112_v5 = vrot.slane %v7331_v15, 7  ;;  %v7001_v12 = vshll.u32 %v6650_v30, 16  ;;  %v7005_v61 = vshrl.u32 %v6650_v30, 16  ;;  %v6653_v32 = vld [vmem:[#allocation2 + $0x18c] sm:$0xf] }
 0x602   : > { %7093 = vrot.lane.b32.xlu0 %v6990_v11, %s9363_s28  ;;  %v8324_v26 = vpop.permute.xlu1 %8323  ;;  %v12104_v18 = vpop.permute.xlu2 %8361  ;;  %v8067_v11 = vrot.slane %v8065_v60, 5  ;;  %v6998_v17 = vor.u32 %v6997_v54, %v6994_v36  ;;  %v7187_v54 = vld [vmem:[#allocation2 + $0xcc] sm:$0xf] }
 0x603   : > { %8417 = vst.msk [vmem:[#allocation3 + $0x8] sm:$0xf] %vm4200_vm6, %v8324_v26  ;;  %v7338_v41 = vrot.slane %v12112_v5, 4  ;;  %v7706_v26 = vld [vmem:[#allocation2 + $0xb4] sm:$0xf]  ;;  %v7003_v22 = vrot.slane %v7001_v12, 5 }
 0x604   : > { %v7766_v49 = vpop.permute.xlu0 %7765  ;;  %v6999_v14 = vrot.slane %v6998_v17, 4  ;;  %v7185_v17 = vld [vmem:[#allocation2 + $0xc4] sm:$0x8] }
 0x605   : > { %7858 = vst.msk [vmem:[#allocation3 + $0xc] sm:$0xf] %vm3639_vm4, %v7766_v49  ;;  %v7346_v49 = vsel %vm9589_vm11, %v7338_v41, %v7345_v10 }
 0x606   : > { %8418 = vst.msk [vmem:[#allocation3 + $0xc] sm:$0xf] %vm4200_vm6, %v12075_v62  ;;  %v7334_v62 = vshll.u32 %v7183_v52, 16  ;;  %v8071_v52 = vrot.slane %v8069_v63, 4  ;;  %v9194_v63 = vrot.slane %v7524_v43, 11 }
 0x608   : > { %7813 = vrot.lane.b32.xlu1 %v7722_v58, %s9365_s30  ;;  %7621 = vrot.lane.b32.xlu2 %v7522_v51, %s9364_s29  ;;  %v7336_v48 = vor.u32 %v7334_v62, %v12112_v5  ;;  %v8072_v15 = vor.u32 %v8071_v52, %v8067_v11  ;;  %v6651_v58 = vld [vmem:[#allocation2 + $0x178] sm:$0x1]  ;;  %v7007_v51 = vrot.slane %v7005_v61, 4  ;;  %v7529_v5 = vshrl.u32 %v7210_v28, 16  ;;  %v7723_v28 = vld [vmem:[#allocation2 + $0x188] sm:$0xf] }
 0x609   : > { %v7362_v61 = vshrl.u32 %v7187_v54, 16 }
 0x60a   : > { %7811 = vrot.lane.b32.xlu0 %v7721_v6, %s9365_s30  ;;  %v7610_v20 = vpop.permute.xlu1 %7609  ;;  %v12117_v4 = vpop.permute.xlu2 %7767  ;;  %v7337_v2 = vsel %vm9589_vm11, %v9185_v1, %v7336_v48  ;;  %v8073_v62 = vrot.slane %v8072_v15, 4  ;;  %v7008_v1 = vor.u32 %v7007_v51, %v7003_v22  ;;  %v7011_v48 = vshll.u32 %v6651_v58, 16  ;;  %v7905_v15 = vld [vmem:[#allocation2 + $0xc8] sm:$0xf] }
 0x60b   : > { %7684 = vst.msk [vmem:[#allocation3 + $0x54] sm:$0xf] %vm3446_vm2, %v7610_v20  ;;  %v8068_v20 = vsel %vm9560_vm10, %v8063_v19, %v8067_v11  ;;  %v7531_v27 = vrot.slane %v7529_v5, 7  ;;  %v7724_v19 = vld [vmem:[#allocation2 + $0x18c] sm:$0xf]  ;;  %v7348_v51 = vshrl.u32 %v7185_v17, 16 }
 0x60c   : > { %v7608_v40 = vpop.permute.xlu0 %7607  ;;  %v8083_v5 = vshll.u32 %v7905_v15, 16 }
 0x60d   : > { %7683 = vst.msk [vmem:[#allocation3 + $0x50] sm:$0xf] %vm3446_vm2, %v7608_v40  ;;  %v9307_v45 = vld [vmem:[#allocation3 + $0x8] sm:$0xff]  ;;  %v7004_v40 = vsel %vm9560_vm10, %v6999_v14, %v7003_v22  ;;  %v7536_v60 = vrot.slane %v7531_v27, 4  ;;  %v7534_v24 = vor.u32 %v7532_v55, %v7531_v27 }
 0x60e   : > { %7875 = vst.msk [vmem:[#allocation3 + $0x50] sm:$0xf] %vm3639_vm4, %v12088_v21  ;;  %9269 = vmatmul.msk.bf16.gmra.mxu1 %vm4369_vm7, %v9307_v45  ;;  %v8270_v21 = vsel %vm9560_vm10, %v8265_v25, %v8269_v44  ;;  %v8275_v44 = vshll.u32 %v7929_v16, 16 }
 0x60f   : > { %v7535_v36 = vsel %vm9589_vm11, %v9194_v63, %v7534_v24  ;;  %v7907_v63 = vld [vmem:[#allocation2 + $0xd0] sm:$0x1] }
 0x610   : > { %7587 = vrot.lane.b32.xlu1 %v7337_v2, %s9364_s29  ;;  %8371 = vrot.lane.b32.xlu2 %v8260_v50, %s9366_s6  ;;  %v7009_v2 = vrot.slane %v7008_v1, 4  ;;  %v7013_v50 = vrot.slane %v7011_v48, 5  ;;  %v8277_v0 = vrot.slane %v8275_v44, 5  ;;  %v9186_v1 = vrot.slane %v7348_v51, 11 }
 0x611   : > { %v8089_v44 = vshll.u32 %v7906_v23, 16 }
 0x612   : > { %8373 = vrot.lane.b32.xlu0 %v8270_v21, %s9366_s6  ;;  %v8360_v56 = vpop.permute.xlu1 %8359  ;;  %v12134_v7 = vpop.permute.xlu2 %8329  ;;  %v7014_v38 = vsel %vm9560_vm10, %v7009_v2, %v7013_v50  ;;  %v7029_v2 = vshrl.u32 %v6653_v32, 16 }
 0x613   : > { %8435 = vst.msk [vmem:[#allocation3 + $0x50] sm:$0xf] %vm4200_vm6, %v8360_v56  ;;  %v7930_v56 = vld [vmem:[#allocation2 + $0x18c] sm:$0xf] }
 0x614   : > { %v7802_v8 = vpop.permute.xlu0 %7801  ;;  %v8281_v10 = vshll.u32 %v7930_v56, 16  ;;  %v8285_v30 = vshrl.u32 %v7930_v56, 16 }
 0x615   : > { %7876 = vst.msk [vmem:[#allocation3 + $0x54] sm:$0xf] %vm3639_vm4, %v7802_v8  ;;  %v8278_v8 = vor.u32 %v8277_v0, %v8274_v34  ;;  %v8091_v0 = vrot.slane %v8089_v44, 5 }
 0x616   : > { %8436 = vst.msk [vmem:[#allocation3 + $0x54] sm:$0xf] %vm4200_vm6, %v12104_v18  ;;  %v7211_v18 = vld [vmem:[#allocation2 + $0x18c] sm:$0xf]  ;;  %v8283_v12 = vrot.slane %v8281_v10, 5  ;;  %v8287_v13 = vrot.slane %v8285_v30, 4 }
 0x617   : > { %v7538_v6 = vshrl.u32 %v7211_v18, 16  ;;  %v7541_v25 = vshll.u32 %v7211_v18, 16  ;;  %v8279_v35 = vrot.slane %v8278_v8, 4  ;;  %v7364_v18 = vrot.slane %v7362_v61, 7 }
 0x618   : > { %7781 = vrot.lane.b32.xlu1 %v7706_v26, %s9365_s30  ;;  %7589 = vrot.lane.b32.xlu2 %v7346_v49, %s9364_s29  ;;  %v7031_v8 = vrot.slane %v7029_v2, 4 }
 0x619   : > { %v7540_v45 = vrot.slane %v7538_v6, 7  ;;  %v8284_v3 = vsel %vm9560_vm10, %v8279_v35, %v8283_v12 }
 0x61a   : > { %7779 = vrot.lane.b32.xlu0 %v7705_v29, %s9365_s30  ;;  %v7578_v39 = vpop.permute.xlu1 %7577  ;;  %v12146_v59 = vpop.permute.xlu2 %7803  ;;  %v7931_v29 = vld [vmem:[#allocation2 + $0x190] sm:$0x1] }
 0x61b   : > { %7668 = vst.msk [vmem:[#allocation3 + $0x14] sm:$0xf] %vm3446_vm2, %v7578_v39  ;;  %v7543_v21 = vor.u32 %v7541_v25, %v7540_v45  ;;  %v8288_v39 = vor.u32 %v8287_v13, %v8283_v12  ;;  %v8291_v22 = vshll.u32 %v7931_v29, 16  ;;  %v8085_v45 = vrot.slane %v8083_v5, 5  ;;  %v6652_v25 = vld [vmem:[#allocation2 + $0x188] sm:$0xf] }
 0x61c   : > { %v7576_v46 = vpop.permute.xlu0 %7575  ;;  %v7016_v50 = vshrl.u32 %v6652_v25, 16  ;;  %v7707_v12 = vld [vmem:[#allocation2 + $0xc8] sm:$0xf] }
 0x61d   : > { %7667 = vst.msk [vmem:[#allocation3 + $0x10] sm:$0xf] %vm3446_vm2, %v7576_v46  ;;  %v9316_v53 = vld [vmem:[#allocation3 + $0x50] sm:$0xff]  ;;  %v7544_v47 = vsel %vm9589_vm11, %v7536_v60, %v7543_v21  ;;  %v8080_v46 = vshrl.u32 %v7905_v15, 16 }
 0x61e   : > { %7859 = vst.msk [vmem:[#allocation3 + $0x10] sm:$0xf] %vm3639_vm4, %v12117_v4  ;;  %9278 = vmatmul.msk.bf16.gmra.mxu3 %vm4369_vm7, %v9316_v53  ;;  %v8078_v4 = vsel %vm9560_vm10, %v8073_v62, %v8077_v31  ;;  %v8289_v31 = vrot.slane %v8288_v39, 4  ;;  %v7018_v30 = vrot.slane %v7016_v50, 4 }
 0x61f   : > { %v8082_v27 = vrot.slane %v8080_v46, 4 }
 0x620   : > { %7095 = vrot.lane.b32.xlu1 %v7004_v40, %s9363_s28  ;;  %8339 = vrot.lane.b32.xlu2 %v8068_v20, %s9366_s6  ;;  %v8293_v20 = vrot.slane %v8291_v22, 5  ;;  %v7933_v22 = vld [vmem:[#allocation2 + $0x1a4] sm:$0xf] }
 0x621   : > { %v8086_v60 = vor.u32 %v8085_v45, %v8082_v27 }
 0x622   : > { %8341 = vrot.lane.b32.xlu0 %v8078_v4, %s9366_s6  ;;  %v8328_v57 = vpop.permute.xlu1 %8327  ;;  %v12162_v42 = vpop.permute.xlu2 %8365  ;;  %v8093_v4 = vshrl.u32 %v7906_v23, 16  ;;  %v8294_v55 = vsel %vm9560_vm10, %v8289_v31, %v8293_v20 }
 0x623   : > { %8419 = vst.msk [vmem:[#allocation3 + $0x10] sm:$0xf] %vm4200_vm6, %v8328_v57  ;;  %v7025_v57 = vshll.u32 %v6653_v32, 16 }
 0x624   : > { %v7770_v33 = vpop.permute.xlu0 %7769  ;;  %v8095_v24 = vrot.slane %v8093_v4, 4 }
 0x625   : > { %7860 = vst.msk [vmem:[#allocation3 + $0x14] sm:$0xf] %vm3639_vm4, %v7770_v33  ;;  %v7019_v33 = vshll.u32 %v6652_v25, 16 }
 0x626   : > { %8420 = vst.msk [vmem:[#allocation3 + $0x14] sm:$0xf] %vm4200_vm6, %v12134_v7  ;;  %v7186_v7 = vld [vmem:[#allocation2 + $0xc8] sm:$0xf] }
 0x627   : > { %v7353_v49 = vshrl.u32 %v7186_v7, 16  ;;  %v7356_v14 = vshll.u32 %v7186_v7, 16  ;;  %v8096_v7 = vor.u32 %v8095_v24, %v8091_v0 }
 0x628   : > { %7625 = vrot.lane.b32.xlu1 %v7544_v47, %s9364_s29  ;;  %7097 = vrot.lane.b32.xlu2 %v7014_v38, %s9363_s28  ;;  %v6654_v38 = vld [vmem:[#allocation2 + $0x190] sm:$0x1]  ;;  %v7027_v47 = vrot.slane %v7025_v57, 5  ;;  %v7934_v57 = vld [vmem:[#allocation2 + $0x1a8] sm:$0x1] }
 0x629   : > { %v7355_v58 = vrot.slane %v7353_v49, 7  ;;  %v7035_v13 = vshll.u32 %v6654_v38, 16  ;;  %v7708_v49 = vld [vmem:[#allocation2 + $0xcc] sm:$0xf]  ;;  %v7189_v38 = vld [vmem:[#allocation2 + $0xe0] sm:$0xf] }
 0x62a   : > { %7623 = vrot.lane.b32.xlu0 %v7535_v36, %s9364_s29  ;;  %v7614_v11 = vpop.permute.xlu1 %7613  ;;  %v12177_v52 = vpop.permute.xlu2 %7771  ;;  %v7021_v36 = vrot.slane %v7019_v33, 5  ;;  %v7032_v61 = vor.u32 %v7031_v8, %v7027_v47 }
 0x62b   : > { %7686 = vst.msk [vmem:[#allocation3 + $0x5c] sm:$0xf] %vm3446_vm2, %v7614_v11  ;;  %v7360_v40 = vrot.slane %v7355_v58, 4  ;;  %v7358_v48 = vor.u32 %v7356_v14, %v7355_v58  ;;  %v8099_v11 = vshll.u32 %v7907_v63, 16  ;;  %v7037_v51 = vrot.slane %v7035_v13, 5 }
 0x62c   : > { %v7612_v41 = vpop.permute.xlu0 %7611  ;;  %v7022_v29 = vor.u32 %v7021_v36, %v7018_v30  ;;  %v7033_v58 = vrot.slane %v7032_v61, 4  ;;  %v8315_v63 = vshll.u32 %v7934_v57, 16  ;;  %v7726_v61 = vld [vmem:[#allocation2 + $0x1a4] sm:$0xf] }
 0x62d   : > { %7685 = vst.msk [vmem:[#allocation3 + $0x58] sm:$0xf] %vm3446_vm2, %v7612_v41  ;;  %v9308_v26 = vld [vmem:[#allocation3 + $0x10] sm:$0xff] }
 0x62e   : > { %7877 = vst.msk [vmem:[#allocation3 + $0x58] sm:$0xf] %vm3639_vm4, %v12146_v59  ;;  %9270 = vmatmul.msk.bf16.gmra.mxu1 %vm4369_vm7, %v9308_v26  ;;  %v7365_v59 = vshll.u32 %v7187_v54, 16  ;;  %v8087_v54 = vrot.slane %v8086_v60, 4  ;;  %v7213_v41 = vld [vmem:[#allocation2 + $0x1a0] sm:$0xf] }
 0x62f   : > { %v7214_v26 = vld [vmem:[#allocation2 + $0x1a4] sm:$0xf]  ;;  %v7551_v17 = vshrl.u32 %v7213_v41, 16  ;;  %v7023_v46 = vrot.slane %v7022_v29, 4  ;;  %v7554_v14 = vshll.u32 %v7213_v41, 16  ;;  %v8317_v8 = vrot.slane %v8315_v63, 5 }
 0x630   : > { %8375 = vrot.lane.b32.xlu1 %v8284_v3, %s9366_s6  ;;  %7815 = vrot.lane.b32.xlu2 %v7723_v28, %s9365_s30  ;;  %v7367_v62 = vor.u32 %v7365_v59, %v7364_v18  ;;  %v8092_v35 = vsel %vm9560_vm10, %v8087_v54, %v8091_v0  ;;  %v8097_v28 = vrot.slane %v8096_v7, 4  ;;  %v8101_v18 = vrot.slane %v8099_v11, 5  ;;  %v7932_v59 = vld [vmem:[#allocation2 + $0x1a0] sm:$0xf]  ;;  %v7188_v7 = vld [vmem:[#allocation2 + $0xdc] sm:$0x8] }
 0x631   : > { %v7560_v39 = vshrl.u32 %v7214_v26, 16  ;;  %v7563_v20 = vshll.u32 %v7214_v26, 16  ;;  %v8296_v23 = vshrl.u32 %v7932_v59, 16  ;;  %v7725_v60 = vld [vmem:[#allocation2 + $0x1a0] sm:$0xf]  ;;  %v7375_v11 = vshrl.u32 %v7189_v38, 16 }
 0x632   : > { %7817 = vrot.lane.b32.xlu0 %v7724_v19, %s9365_s30  ;;  %v8364_v6 = vpop.permute.xlu1 %8363  ;;  %v12189_v16 = vpop.permute.xlu2 %8333  ;;  %v7368_v43 = vsel %vm9589_vm11, %v7360_v40, %v7367_v62  ;;  %v8309_v62 = vshrl.u32 %v7933_v22, 16  ;;  %v8299_v40 = vshll.u32 %v7932_v59, 16  ;;  %v7370_v26 = vshrl.u32 %v7188_v7, 16  ;;  %v8819_v7 = vld [vmem:[%s9417_s23] sm:$0xff] }
 0x633   : > { %8437 = vst.msk [vmem:[#allocation3 + $0x58] sm:$0xf] %vm4200_vm6, %v8364_v6  ;;  %v7553_v6 = vrot.slane %v7551_v17, 7  ;;  %v7562_v31 = vrot.slane %v7560_v39, 7  ;;  %v8298_v2 = vrot.slane %v8296_v23, 4  ;;  %v7378_v29 = vshll.u32 %v7189_v38, 16 }
 0x634   : > { %v7806_v53 = vpop.permute.xlu0 %7805  ;;  %v8311_v25 = vrot.slane %v8309_v62, 4  ;;  %v12263_v62 = vld [vmem:[%s12479_s4] ss:$0 sm:$0xff] }
 0x635   : > { %7878 = vst.msk [vmem:[#allocation3 + $0x5c] sm:$0xf] %vm3639_vm4, %v7806_v53  ;;  %v8305_v53 = vshll.u32 %v7933_v22, 16  ;;  %v7556_v27 = vor.u32 %v7554_v14, %v7553_v6  ;;  %v7910_v14 = vld [vmem:[#allocation2 + $0xe8] sm:$0x1] }
 0x636   : > { %8438 = vst.msk [vmem:[#allocation3 + $0x5c] sm:$0xf] %vm4200_vm6, %v12162_v42  ;;  %v7359_v42 = vsel %vm9589_vm11, %v9186_v1, %v7358_v48  ;;  %v7038_v1 = vsel %vm9560_vm10, %v7033_v58, %v7037_v51  ;;  %v8102_v48 = vsel %vm9560_vm10, %v8097_v28, %v8101_v18  ;;  %v9187_v51 = vrot.slane %v7370_v26, 11  ;;  %v7709_v23 = vld [vmem:[#allocation2 + $0xe0] sm:$0xf] }
 0x637   : > { %v8307_v45 = vrot.slane %v8305_v53, 5 }
 0x638   : > { %7593 = vrot.lane.b32.xlu1 %v7368_v43, %s9364_s29  ;;  %8377 = vrot.lane.b32.xlu2 %v8294_v55, %s9366_s6  ;;  %v7558_v43 = vrot.slane %v7553_v6, 4  ;;  %v7565_v55 = vor.u32 %v7563_v20, %v7562_v31 }
 0x639   : > { %v8312_v0 = vor.u32 %v8311_v25, %v8307_v45 }
 0x63a   : > { %7591 = vrot.lane.b32.xlu0 %v7359_v42, %s9364_s29  ;;  %v7582_v21 = vpop.permute.xlu1 %7581  ;;  %v12204_v34 = vpop.permute.xlu2 %7615  ;;  %v8301_v42 = vrot.slane %v8299_v40, 5  ;;  %v7566_v24 = vsel %vm9589_vm11, %v7558_v43, %v7565_v55 }
 0x63b   : > { %7670 = vst.msk [vmem:[#allocation3 + $0x1c] sm:$0xf] %vm3446_vm2, %v7582_v21 }
 0x63c   : > { %v7580_v56 = vpop.permute.xlu0 %7579 }
 0x63d   : > { %7669 = vst.msk [vmem:[#allocation3 + $0x18] sm:$0xf] %vm3446_vm2, %v7580_v56  ;;  %v9317_v10 = vld [vmem:[#allocation3 + $0x58] sm:$0xff]  ;;  %v8302_v56 = vor.u32 %v8301_v42, %v8298_v2 }
 0x63e   : > { %7861 = vst.msk [vmem:[#allocation3 + $0x18] sm:$0xf] %vm3639_vm4, %v12177_v52  ;;  %9279 = vmatmul.msk.bf16.gmra.mxu3 %vm4369_vm7, %v9317_v10  ;;  %v7212_v52 = vld [vmem:[#allocation2 + $0x19c] sm:$0x8]  ;;  %v7190_v10 = vld [vmem:[#allocation2 + $0xe4] sm:$0xf] }
 0x63f   : > { %v7546_v5 = vshrl.u32 %v7212_v52, 16  ;;  %v7384_v41 = vshrl.u32 %v7190_v10, 16  ;;  %v7387_v39 = vshll.u32 %v7190_v10, 16 }
 0x640   : > { %8343 = vrot.lane.b32.xlu1 %v8092_v35, %s9366_s6  ;;  %7783 = vrot.lane.b32.xlu2 %v7707_v12, %s9365_s30  ;;  %v7909_v35 = vld [vmem:[#allocation2 + $0xe4] sm:$0xf] }
 0x641   : > { %v9195_v32 = vrot.slane %v7546_v5, 11  ;;  %v8113_v52 = vshll.u32 %v7909_v35, 16  ;;  %v8117_v17 = vshrl.u32 %v7909_v35, 16  ;;  %v7386_v28 = vrot.slane %v7384_v41, 7 }
 0x642   : > { %7785 = vrot.lane.b32.xlu0 %v7708_v49, %s9365_s30  ;;  %v8332_v15 = vpop.permute.xlu1 %8331  ;;  %v12216_v3 = vpop.permute.xlu2 %7809  ;;  %v7377_v49 = vrot.slane %v7375_v11, 7 }
 0x643   : > { %8421 = vst.msk [vmem:[#allocation3 + $0x18] sm:$0xf] %vm4200_vm6, %v8332_v15  ;;  %v7557_v21 = vsel %vm9589_vm11, %v9195_v32, %v7556_v27  ;;  %v7908_v15 = vld [vmem:[#allocation2 + $0xe0] sm:$0xf]  ;;  %v8119_v5 = vrot.slane %v8117_v17, 4  ;;  %v7389_v6 = vor.u32 %v7387_v39, %v7386_v28  ;;  %v8820_v28 = vld [vmem:[%s9417_s23 + $0x8] sm:$0xff] }
 0x644   : > { %v7774_v19 = vpop.permute.xlu0 %7773  ;;  %v8104_v22 = vshrl.u32 %v7908_v15, 16  ;;  %v7380_v59 = vor.u32 %v7378_v29, %v7377_v49  ;;  %v7382_v53 = vrot.slane %v7377_v49, 4 }
 0x645   : > { %7862 = vst.msk [vmem:[#allocation3 + $0x1c] sm:$0xf] %vm3639_vm4, %v7774_v19  ;;  %v8107_v19 = vshll.u32 %v7908_v15, 16 }
 0x646   : > { %8422 = vst.msk [vmem:[#allocation3 + $0x1c] sm:$0xf] %vm4200_vm6, %v12189_v16  ;;  %v7028_v16 = vsel %vm9560_vm10, %v7023_v46, %v7027_v47  ;;  %v8313_v47 = vrot.slane %v8312_v0, 4  ;;  %v8115_v46 = vrot.slane %v8113_v52, 5  ;;  %v8106_v31 = vrot.slane %v8104_v22, 4 }
 0x647   : > { %v8109_v20 = vrot.slane %v8107_v19, 5  ;;  %v7381_v40 = vsel %vm9589_vm11, %v9187_v51, %v7380_v59 }
 0x648   : > { %7101 = vrot.lane.b32.xlu1 %v7038_v1, %s9363_s28  ;;  %8345 = vrot.lane.b32.xlu2 %v8102_v48, %s9366_s6  ;;  %v8318_v12 = vsel %vm9560_vm10, %v8313_v47, %v8317_v8  ;;  %v8120_v1 = vor.u32 %v8119_v5, %v8115_v46  ;;  %v8123_v48 = vshll.u32 %v7910_v14, 16 }
 0x64a   : > { %7099 = vrot.lane.b32.xlu0 %v7028_v16, %s9363_s28  ;;  %v7090_v44 = vpop.permute.xlu1 %7089  ;;  %v7584_v4 = vpop.permute.xlu2 %7583  ;;  %v7390_v16 = vsel %vm9589_vm11, %v7382_v53, %v7389_v6  ;;  %v8121_v55 = vrot.slane %v8120_v1, 4  ;;  %v8125_v57 = vrot.slane %v8123_v48, 5  ;;  %vm8915_vm11 = vcmask 31744   ;;  %v8837_v53 = vld [vmem:[%s9417_s23 + $0x90] sm:$0xff] }
 0x64b   : > { %7160 = vst.msk [vmem:[#allocation3 + $0x64] sm:$0xf] %vm2916_vm1, %v7090_v44  ;;  %v8110_v44 = vor.u32 %v8109_v20, %v8106_v31 }
 0x64c   : > { %v7088_v50 = vpop.permute.xlu0 %7087  ;;  %7671 = vst.msk [vmem:[#allocation3 + $0x20] sm:$0xf] %vm3446_vm2, %v7584_v4  ;;  %v8835_v4 = vld [vmem:[%s9417_s23 + $0x80] sm:$0xff] }
 0x64d   : > { %v9309_v33 = vld [vmem:[#allocation3 + $0x18] sm:$0xff]  ;;  %7159 = vst.msk [vmem:[#allocation3 + $0x60] sm:$0xf] %vm2916_vm1, %v7088_v50  ;;  %v8111_v50 = vrot.slane %v8110_v44, 4 }
 0x64e   : > { %7687 = vst.msk [vmem:[#allocation3 + $0x60] sm:$0xf] %vm3446_vm2, %v12204_v34  ;;  %9271 = vmatmul.msk.bf16.gmra.mxu1 %vm4369_vm7, %v9309_v33  ;;  %v8303_v34 = vrot.slane %v8302_v56, 4 }
 0x64f   : > { %v8116_v0 = vsel %vm9560_vm10, %v8111_v50, %v8115_v46 }
 0x650   : > { %7819 = vrot.lane.b32.xlu1 %v7725_v60, %s9365_s30  ;;  %7627 = vrot.lane.b32.xlu2 %v7557_v21, %s9364_s29  ;;  %v8308_v13 = vsel %vm9560_vm10, %v8303_v34, %v8307_v45  ;;  %v8126_v60 = vsel %vm9560_vm10, %v8121_v55, %v8125_v57  ;;  %v7710_v21 = vld [vmem:[#allocation2 + $0xe4] sm:$0xf]  ;;  %v8821_v57 = vld [vmem:[%s9417_s23 + $0x10] sm:$0xff] }
 0x652   : > { %7629 = vrot.lane.b32.xlu0 %v7566_v24, %s9364_s29  ;;  %v7808_v30 = vpop.permute.xlu1 %7807  ;;  %v12244_v36 = vpop.permute.xlu2 %7777 }
 0x653   : > { %7879 = vst.msk [vmem:[#allocation3 + $0x60] sm:$0xf] %vm3639_vm4, %v7808_v30 }
 0x654   : > { %v7618_v54 = vpop.permute.xlu0 %7617 }
 0x655   : > { %7688 = vst.msk [vmem:[#allocation3 + $0x64] sm:$0xf] %vm3446_vm2, %v7618_v54 }
 0x656   : > { %7880 = vst.msk [vmem:[#allocation3 + $0x64] sm:$0xf] %vm3639_vm4, %v12216_v3 }
 0x658   : > { %8381 = vrot.lane.b32.xlu1 %v8318_v12, %s9366_s6  ;;  %7821 = vrot.lane.b32.xlu2 %v7726_v61, %s9365_s30 }
 0x65a   : > { %8379 = vrot.lane.b32.xlu0 %v8308_v13, %s9366_s6  ;;  %v8370_v3 = vpop.permute.xlu1 %8369  ;;  %v7092_v18 = vpop.permute.xlu2 %7091 }
 0x65b   : > { %8440 = vst.msk [vmem:[#allocation3 + $0x64] sm:$0xf] %vm4200_vm6, %v8370_v3 }
 0x65c   : > { %v8368_v58 = vpop.permute.xlu0 %8367  ;;  %7161 = vst.msk [vmem:[#allocation3 + $0x68] sm:$0xf] %vm2916_vm1, %v7092_v18 }
 0x65d   : > { %8439 = vst.msk [vmem:[#allocation3 + $0x60] sm:$0xf] %vm4200_vm6, %v8368_v58 }
 0x660   : > { %7787 = vrot.lane.b32.xlu1 %v7709_v23, %s9365_s30  ;;  %7595 = vrot.lane.b32.xlu2 %v7381_v40, %s9364_s29 }
 0x661   : > { %v8683_v32 = vpop.f32.mrf.mxu3 }
 0x662   : > { %7597 = vrot.lane.b32.xlu0 %v7390_v16, %s9364_s29  ;;  %v7776_v27 = vpop.permute.xlu1 %7775  ;;  %v12272_v45 = vpop.permute.xlu2 %7621  ;;  %v8684_v25 = vadd.f32 %v12263_v62, %v8683_v32  ;;  %v8838_v32 = vld [vmem:[%s9417_s23 + $0x98] sm:$0xff] }
 0x663   : > { %7863 = vst.msk [vmem:[#allocation3 + $0x20] sm:$0xf] %vm3639_vm4, %v7776_v27 }
 0x664   : > { %v7586_v43 = vpop.permute.xlu0 %7585  ;;  %vm8739_vm0 = vcmp.ge.f32.partialorder %v8684_v25, 0.0  ;;  %v8771_v2 = vmul.f32 0.2, %v8684_v25  ;;  %v9318_v9 = vld [vmem:[#allocation3 + $0x60] sm:$0xff] }
 0x665   : > { %7672 = vst.msk [vmem:[#allocation3 + $0x24] sm:$0xf] %vm3446_vm2, %v7586_v43  ;;  %9280 = vmatmul.msk.bf16.gmra.mxu3 %vm4369_vm7, %v9318_v9 }
 0x666   : > { %7864 = vst.msk [vmem:[#allocation3 + $0x24] sm:$0xf] %vm3639_vm4, %v12244_v36  ;;  %v8803_v42 = vsel %vm8739_vm0, %v8684_v25, %v8771_v2 }
 0x667   : > { %v8867_v33 = vadd.f32 %v8835_v4, %v8803_v42 }
 0x668   : > { %8349 = vrot.lane.b32.xlu1 %v8126_v60, %s9366_s6  ;;  %7789 = vrot.lane.b32.xlu2 %v7710_v21, %s9365_s30 }
 0x669   : > { %v8899_v63 = vmul.f32 0.70710677, %v8867_v33  ;;  %v8685_v24 = vpop.f32.mrf.mxu3 }
 0x66a   : > { %8347 = vrot.lane.b32.xlu0 %v8116_v0, %s9366_s6  ;;  %v8338_v56 = vpop.permute.xlu1 %8337  ;;  %v8372_v38 = vpop.permute.xlu2 %8371  ;;  %v8686_v47 = vadd.f32 %v12263_v62, %v8685_v24 }
 0x66b   : > { %8932 = vst.msk [vmem:[%s12288_s8 + $0x80] sm:$0xff] %vm8915_vm11, %v8899_v63  ;;  %v8643_v10 = vpop.f32.mrf.mxu1 }
 0x66c   : > { %v8336_v8 = vpop.permute.xlu0 %8335  ;;  %8424 = vst.msk [vmem:[#allocation3 + $0x24] sm:$0xf] %vm4200_vm6, %v8338_v56  ;;  %vm8740_vm12 = vcmp.ge.f32.partialorder %v8686_v47, 0.0  ;;  %v8772_v30 = vmul.f32 0.2, %v8686_v47  ;;  %v8644_v36 = vadd.f32 %v12263_v62, %v8643_v10 }
 0x66d   : > { %8423 = vst.msk [vmem:[#allocation3 + $0x20] sm:$0xf] %vm4200_vm6, %v8336_v8 }
 0x66e   : > { %v8804_v34 = vsel %vm8740_vm12, %v8686_v47, %v8772_v30  ;;  %vm8723_vm10 = vcmp.ge.f32.partialorder %v8644_v36, 0.0  ;;  %v8755_v54 = vmul.f32 0.2, %v8644_v36 }
 0x66f   : > { %v8868_v11 = vadd.f32 %v8836_v37, %v8804_v34 }
 0x670   : > { %v8787_v41 = vsel %vm8723_vm10, %v8644_v36, %v8755_v54 }
 0x671   : > { %v8900_v35 = vmul.f32 0.70710677, %v8868_v11  ;;  %v8851_v12 = vadd.f32 %v8819_v7, %v8787_v41 }
 0x672   : > { %v7620_v61 = vpop.permute.xlu1 %7619  ;;  %v7590_v13 = vpop.permute.xlu2 %7589 }
 0x673   : > { %8933 = vst.msk [vmem:[%s12288_s8 + $0x88] sm:$0xff] %vm8915_vm11, %v8900_v35  ;;  %v8883_v26 = vmul.f32 0.70710677, %v8851_v12  ;;  %v8645_v29 = vpop.f32.mrf.mxu1 }
 0x674   : > { %v7094_v49 = vpop.permute.xlu0 %7093  ;;  %7689 = vst.msk [vmem:[#allocation3 + $0x68] sm:$0xf] %vm3446_vm2, %v7620_v61  ;;  %v8646_v52 = vadd.f32 %v12263_v62, %v8645_v29  ;;  %v9310_v17 = vld [vmem:[#allocation3 + $0x20] sm:$0xff]  ;;  %v8839_v61 = vld [vmem:[%s9417_s23 + $0xa0] sm:$0xff] }
 0x675   : > { %8916 = vst.msk [vmem:[%s12288_s8] sm:$0xff] %vm8915_vm11, %v8883_v26  ;;  %9272 = vmatmul.msk.bf16.gmra.mxu1 %vm4369_vm7, %v9310_v17 }
 0x676   : > { %7674 = vst.msk [vmem:[#allocation3 + $0x2c] sm:$0xf] %vm3446_vm2, %v7590_v13  ;;  %vm8724_vm13 = vcmp.ge.f32.partialorder %v8646_v52, 0.0  ;;  %v8756_v15 = vmul.f32 0.2, %v8646_v52 }
 0x677   : > { %7162 = vst.msk [vmem:[#allocation3 + $0x6c] sm:$0xf] %vm2916_vm1, %v7094_v49 }
 0x678   : > { %7690 = vst.msk [vmem:[#allocation3 + $0x6c] sm:$0xf] %vm3446_vm2, %v12272_v45  ;;  %v8788_v3 = vsel %vm8724_vm13, %v8646_v52, %v8756_v15 }
 0x679   : > { %v8852_v18 = vadd.f32 %v8820_v28, %v8788_v3  ;;  %v8840_v28 = vld [vmem:[%s9417_s23 + $0xa8] sm:$0xff] }
 0x67a   : > { %v7814_v39 = vpop.permute.xlu1 %7813  ;;  %v8340_v22 = vpop.permute.xlu2 %8339 }
 0x67b   : > { %v8884_v19 = vmul.f32 0.70710677, %v8852_v18  ;;  %7882 = vst.msk [vmem:[#allocation3 + $0x6c] sm:$0xf] %vm3639_vm4, %v7814_v39 }
 0x67c   : > { %v7812_v58 = vpop.permute.xlu0 %7811 }
 0x67d   : > { %7881 = vst.msk [vmem:[#allocation3 + $0x68] sm:$0xf] %vm3639_vm4, %v7812_v58 }
 0x67e   : > { %8917 = vst.msk [vmem:[%s12288_s8 + $0x8] sm:$0xff] %vm8915_vm11, %v8884_v19 }
 0x67f   : > { %8441 = vst.msk [vmem:[#allocation3 + $0x68] sm:$0xf] %vm4200_vm6, %v8372_v38  ;;  %v8822_v38 = vld [vmem:[%s9417_s23 + $0x18] sm:$0xff] }
 0x681   : > { %v8688_v51 = vpop.f32.mrf.mxu3 }
 0x682   : > { %v7588_v59 = vpop.permute.xlu1 %7587  ;;  %v7098_v46 = vpop.permute.xlu2 %7097  ;;  %v8689_v5 = vadd.f32 %v12263_v62, %v8688_v51 }
 0x683   : > { %7673 = vst.msk [vmem:[#allocation3 + $0x28] sm:$0xf] %vm3446_vm2, %v7588_v59  ;;  %v8823_v59 = vld [vmem:[%s9417_s23 + $0x20] sm:$0xff] }
 0x684   : > { %v8374_v6 = vpop.permute.xlu0 %8373  ;;  %7164 = vst.msk [vmem:[#allocation3 + $0x74] sm:$0xf] %vm2916_vm1, %v7098_v46  ;;  %vm8741_vm14 = vcmp.ge.f32.partialorder %v8689_v5, 0.0  ;;  %v8773_v14 = vmul.f32 0.2, %v8689_v5 }
 0x685   : > { %8442 = vst.msk [vmem:[#allocation3 + $0x6c] sm:$0xf] %vm4200_vm6, %v8374_v6 }
 0x686   : > { %v8805_v31 = vsel %vm8741_vm14, %v8689_v5, %v8773_v14 }
 0x687   : > { %v8869_v20 = vadd.f32 %v8837_v53, %v8805_v31 }
 0x689   : > { %v8901_v23 = vmul.f32 0.70710677, %v8869_v20  ;;  %v8690_v40 = vpop.f32.mrf.mxu3 }
 0x68a   : > { %v7782_v1 = vpop.permute.xlu1 %7781  ;;  %v7816_v48 = vpop.permute.xlu2 %7815  ;;  %v8691_v16 = vadd.f32 %v12263_v62, %v8690_v40 }
 0x68b   : > { %8934 = vst.msk [vmem:[%s12288_s8 + $0x90] sm:$0xff] %vm8915_vm11, %v8901_v23  ;;  %v8648_v45 = vpop.f32.mrf.mxu1 }
 0x68c   : > { %v7780_v27 = vpop.permute.xlu0 %7779  ;;  %7866 = vst.msk [vmem:[#allocation3 + $0x2c] sm:$0xf] %vm3639_vm4, %v7782_v1  ;;  %vm8742_vm15 = vcmp.ge.f32.partialorder %v8691_v16, 0.0  ;;  %v8774_v25 = vmul.f32 0.2, %v8691_v16  ;;  %v8649_v44 = vadd.f32 %v12263_v62, %v8648_v45  ;;  %v9319_v4 = vld [vmem:[#allocation3 + $0x68] sm:$0xff] }
 0x68d   : > { %7865 = vst.msk [vmem:[#allocation3 + $0x28] sm:$0xf] %vm3639_vm4, %v7780_v27  ;;  %9281 = vmatmul.msk.bf16.gmra.mxu3 %vm4369_vm7, %v9319_v4 }
 0x68e   : > { %v8806_v43 = vsel %vm8742_vm15, %v8691_v16, %v8774_v25  ;;  %8425 = vst.msk [vmem:[#allocation3 + $0x28] sm:$0xf] %vm4200_vm6, %v8340_v22  ;;  %vm8725_vm5 = vcmp.ge.f32.partialorder %v8649_v44, 0.0  ;;  %v8757_v55 = vmul.f32 0.2, %v8649_v44  ;;  %v8824_v16 = vld [vmem:[%s9417_s23 + $0x28] sm:$0xff] }
 0x68f   : > { %v8870_v2 = vadd.f32 %v8838_v32, %v8806_v43 }
 0x690   : > { %v8789_v9 = vsel %vm8725_vm5, %v8649_v44, %v8757_v55 }
 0x691   : > { %v8902_v42 = vmul.f32 0.70710677, %v8870_v2  ;;  %v8853_v50 = vadd.f32 %v8821_v57, %v8789_v9 }
 0x692   : > { %v7096_v33 = vpop.permute.xlu1 %7095  ;;  %v8378_v60 = vpop.permute.xlu2 %8377 }
 0x693   : > { %8935 = vst.msk [vmem:[%s12288_s8 + $0x98] sm:$0xff] %vm8915_vm11, %v8902_v42  ;;  %v8885_v21 = vmul.f32 0.70710677, %v8853_v50  ;;  %v8650_v63 = vpop.f32.mrf.mxu1  ;;  %v8841_v50 = vld [vmem:[%s9417_s23 + $0xb0] sm:$0xff] }
 0x694   : > { %v8342_v0 = vpop.permute.xlu0 %8341  ;;  %7163 = vst.msk [vmem:[#allocation3 + $0x70] sm:$0xf] %vm2916_vm1, %v7096_v33  ;;  %v8651_v24 = vadd.f32 %v12263_v62, %v8650_v63 }
 0x695   : > { %8918 = vst.msk [vmem:[%s12288_s8 + $0x10] sm:$0xff] %vm8915_vm11, %v8885_v21 }
 0x696   : > { %8426 = vst.msk [vmem:[#allocation3 + $0x2c] sm:$0xf] %vm4200_vm6, %v8342_v0  ;;  %vm8726_vm9 = vcmp.ge.f32.partialorder %v8651_v24, 0.0  ;;  %v8758_v56 = vmul.f32 0.2, %v8651_v24 }
 0x698   : > { %v8790_v47 = vsel %vm8726_vm9, %v8651_v24, %v8758_v56 }
 0x699   : > { %v8854_v8 = vadd.f32 %v8822_v38, %v8790_v47 }
 0x69a   : > { %v7626_v10 = vpop.permute.xlu1 %7625  ;;  %v7784_v30 = vpop.permute.xlu2 %7783 }
 0x69b   : > { %v8886_v37 = vmul.f32 0.70710677, %v8854_v8  ;;  %7692 = vst.msk [vmem:[#allocation3 + $0x74] sm:$0xf] %vm3446_vm2, %v7626_v10  ;;  %v8842_v8 = vld [vmem:[%s9417_s23 + $0xb8] sm:$0xff] }
 0x69c   : > { %v7624_v36 = vpop.permute.xlu0 %7623 }
 0x69d   : > { %7691 = vst.msk [vmem:[#allocation3 + $0x70] sm:$0xf] %vm3446_vm2, %v7624_v36  ;;  %v9311_v34 = vld [vmem:[#allocation3 + $0x28] sm:$0xff]  ;;  %v8825_v36 = vld [vmem:[%s9417_s23 + $0x30] sm:$0xff] }
 0x69e   : > { %8919 = vst.msk [vmem:[%s12288_s8 + $0x18] sm:$0xff] %vm8915_vm11, %v8886_v37  ;;  %9273 = vmatmul.msk.bf16.gmra.mxu1 %vm4369_vm7, %v9311_v34 }
 0x69f   : > { %7883 = vst.msk [vmem:[#allocation3 + $0x70] sm:$0xf] %vm3639_vm4, %v7816_v48 }
 0x6a1   : > { %v8693_v54 = vpop.f32.mrf.mxu3 }
 0x6a2   : > { %v8376_v7 = vpop.permute.xlu1 %8375  ;;  %v8346_v11 = vpop.permute.xlu2 %8345  ;;  %v8694_v41 = vadd.f32 %v12263_v62, %v8693_v54 }
 0x6a3   : > { %8443 = vst.msk [vmem:[#allocation3 + $0x70] sm:$0xf] %vm4200_vm6, %v8376_v7 }
 0x6a4   : > { %v7818_v35 = vpop.permute.xlu0 %7817  ;;  %vm8743_vm3 = vcmp.ge.f32.partialorder %v8694_v41, 0.0  ;;  %v8775_v12 = vmul.f32 0.2, %v8694_v41 }
 0x6a5   : > { %7884 = vst.msk [vmem:[#allocation3 + $0x74] sm:$0xf] %vm3639_vm4, %v7818_v35 }
 0x6a6   : > { %8444 = vst.msk [vmem:[#allocation3 + $0x74] sm:$0xf] %vm4200_vm6, %v8378_v60  ;;  %v8807_v13 = vsel %vm8743_vm3, %v8694_v41, %v8775_v12 }
 0x6a7   : > { %v8871_v26 = vadd.f32 %v8839_v61, %v8807_v13 }
 0x6a9   : > { %v8903_v49 = vmul.f32 0.70710677, %v8871_v26  ;;  %v8695_v29 = vpop.f32.mrf.mxu3 }
 0x6aa   : > { %v7594_v52 = vpop.permute.xlu1 %7593  ;;  %v7628_v17 = vpop.permute.xlu2 %7627  ;;  %v8696_v15 = vadd.f32 %v12263_v62, %v8695_v29 }
 0x6ab   : > { %8936 = vst.msk [vmem:[%s12288_s8 + $0xa0] sm:$0xff] %vm8915_vm11, %v8903_v49  ;;  %v8653_v18 = vpop.f32.mrf.mxu1 }
 0x6ac   : > { %v7592_v3 = vpop.permute.xlu0 %7591  ;;  %7676 = vst.msk [vmem:[#allocation3 + $0x34] sm:$0xf] %vm3446_vm2, %v7594_v52  ;;  %vm8744_vm8 = vcmp.ge.f32.partialorder %v8696_v15, 0.0  ;;  %v8776_v39 = vmul.f32 0.2, %v8696_v15  ;;  %v8654_v22 = vadd.f32 %v12263_v62, %v8653_v18  ;;  %v8826_v52 = vld [vmem:[%s9417_s23 + $0x38] sm:$0xff] }
 0x6ad   : > { %v9320_v19 = vld [vmem:[#allocation3 + $0x70] sm:$0xff]  ;;  %7675 = vst.msk [vmem:[#allocation3 + $0x30] sm:$0xf] %vm3446_vm2, %v7592_v3 }
 0x6ae   : > { %v8808_v58 = vsel %vm8744_vm8, %v8696_v15, %v8776_v39  ;;  %7867 = vst.msk [vmem:[#allocation3 + $0x30] sm:$0xf] %vm3639_vm4, %v7784_v30  ;;  %vm8727_vm0 = vcmp.ge.f32.partialorder %v8654_v22, 0.0  ;;  %v8759_v51 = vmul.f32 0.2, %v8654_v22  ;;  %9282 = vmatmul.msk.bf16.gmra.mxu3 %vm4369_vm7, %v9320_v19 }
 0x6af   : > { %v8872_v46 = vadd.f32 %v8840_v28, %v8808_v58 }
 0x6b0   : > { %v8791_v5 = vsel %vm8727_vm0, %v8654_v22, %v8759_v51  ;;  %v8843_v51 = vld [vmem:[%s9417_s23 + $0xc0] sm:$0xff] }
 0x6b1   : > { %v8904_v6 = vmul.f32 0.70710677, %v8872_v46  ;;  %v8855_v14 = vadd.f32 %v8823_v59, %v8791_v5 }
 0x6b2   : > { %v8344_v53 = vpop.permute.xlu1 %8343  ;;  %v7822_v31 = vpop.permute.xlu2 %7821 }
 0x6b3   : > { %8937 = vst.msk [vmem:[%s12288_s8 + $0xa8] sm:$0xff] %vm8915_vm11, %v8904_v6  ;;  %v8887_v20 = vmul.f32 0.70710677, %v8855_v14  ;;  %v8655_v40 = vpop.f32.mrf.mxu1 }
 0x6b4   : > { %v7786_v23 = vpop.permute.xlu0 %7785  ;;  %8427 = vst.msk [vmem:[#allocation3 + $0x30] sm:$0xf] %vm4200_vm6, %v8344_v53  ;;  %v8656_v1 = vadd.f32 %v12263_v62, %v8655_v40 }
 0x6b5   : > { %8920 = vst.msk [vmem:[%s12288_s8 + $0x20] sm:$0xff] %vm8915_vm11, %v8887_v20  ;;  %v8844_v20 = vld [vmem:[%s9417_s23 + $0xc8] sm:$0xff] }
 0x6b6   : > { %7868 = vst.msk [vmem:[#allocation3 + $0x34] sm:$0xf] %vm3639_vm4, %v7786_v23  ;;  %vm8728_vm12 = vcmp.ge.f32.partialorder %v8656_v1, 0.0  ;;  %v8760_v48 = vmul.f32 0.2, %v8656_v1 }
 0x6b7   : > { %8428 = vst.msk [vmem:[#allocation3 + $0x34] sm:$0xf] %vm4200_vm6, %v8346_v11 }
 0x6b8   : > { %v8792_v32 = vsel %vm8728_vm12, %v8656_v1, %v8760_v48  ;;  %v8827_v48 = vld [vmem:[%s9417_s23 + $0x40] sm:$0xff] }
 0x6b9   : > { %v8856_v27 = vadd.f32 %v8824_v16, %v8792_v32 }
 0x6ba   : > { %v7102_v45 = vpop.permute.xlu1 %7101  ;;  %v7596_v25 = vpop.permute.xlu2 %7595 }
 0x6bb   : > { %v8888_v44 = vmul.f32 0.70710677, %v8856_v27  ;;  %7166 = vst.msk [vmem:[#allocation3 + $0x7c] sm:$0xf] %vm2916_vm1, %v7102_v45 }
 0x6bc   : > { %v7100_v4 = vpop.permute.xlu0 %7099  ;;  %7677 = vst.msk [vmem:[#allocation3 + $0x38] sm:$0xf] %vm3446_vm2, %v7596_v25 }
 0x6bd   : > { %8921 = vst.msk [vmem:[%s12288_s8 + $0x28] sm:$0xff] %vm8915_vm11, %v8888_v44 }
 0x6be   : > { %7165 = vst.msk [vmem:[#allocation3 + $0x78] sm:$0xf] %vm2916_vm1, %v7100_v4  ;;  %v9312_v43 = vld [vmem:[#allocation3 + $0x30] sm:$0xff] }
 0x6bf   : > { %7693 = vst.msk [vmem:[#allocation3 + $0x78] sm:$0xf] %vm3446_vm2, %v7628_v17  ;;  %9274 = vmatmul.msk.bf16.gmra.mxu1 %vm4369_vm7, %v9312_v43 }
 0x6c1   : > { %v8698_v55 = vpop.f32.mrf.mxu3 }
 0x6c2   : > { %v7820_v57 = vpop.permute.xlu1 %7819  ;;  %v8699_v2 = vadd.f32 %v12263_v62, %v8698_v55  ;;  %v7790_v49 = vpop.permute.xlu2 %7789  ;;  %v8828_v55 = vld [vmem:[%s9417_s23 + $0x48] sm:$0xff] }
 0x6c3   : > { %7885 = vst.msk [vmem:[#allocation3 + $0x78] sm:$0xf] %vm3639_vm4, %v7820_v57 }
 0x6c4   : > { %v7630_v9 = vpop.permute.xlu0 %7629  ;;  %vm8745_vm10 = vcmp.ge.f32.partialorder %v8699_v2, 0.0  ;;  %v8777_v42 = vmul.f32 0.2, %v8699_v2 }
 0x6c5   : > { %7694 = vst.msk [vmem:[#allocation3 + $0x7c] sm:$0xf] %vm3446_vm2, %v7630_v9 }
 0x6c6   : > { %7886 = vst.msk [vmem:[#allocation3 + $0x7c] sm:$0xf] %vm3639_vm4, %v7822_v31  ;;  %v8809_v33 = vsel %vm8745_vm10, %v8699_v2, %v8777_v42 }
 0x6c7   : > { %v8873_v60 = vadd.f32 %v8841_v50, %v8809_v33 }
 0x6c9   : > { %v8905_v21 = vmul.f32 0.70710677, %v8873_v60  ;;  %v8700_v0 = vpop.f32.mrf.mxu3  ;;  %v8845_v60 = vld [vmem:[%s9417_s23 + $0xd0] sm:$0xff] }
 0x6ca   : > { %v8382_v63 = vpop.permute.xlu1 %8381  ;;  %v8701_v24 = vadd.f32 %v12263_v62, %v8700_v0 }
 0x6cb   : > { %8938 = vst.msk [vmem:[%s12288_s8 + $0xb0] sm:$0xff] %vm8915_vm11, %v8905_v21  ;;  %v8658_v38 = vpop.f32.mrf.mxu1 }
 0x6cc   : > { %v8380_v56 = vpop.permute.xlu0 %8379  ;;  %8446 = vst.msk [vmem:[#allocation3 + $0x7c] sm:$0xf] %vm4200_vm6, %v8382_v63  ;;  %vm8746_vm1 = vcmp.ge.f32.partialorder %v8701_v24, 0.0  ;;  %v8778_v47 = vmul.f32 0.2, %v8701_v24  ;;  %v8659_v10 = vadd.f32 %v12263_v62, %v8658_v38 }
 0x6cd   : > { %8445 = vst.msk [vmem:[#allocation3 + $0x78] sm:$0xf] %vm4200_vm6, %v8380_v56 }
 0x6ce   : > { %v8810_v30 = vsel %vm8746_vm1, %v8701_v24, %v8778_v47  ;;  %vm8729_vm13 = vcmp.ge.f32.partialorder %v8659_v10, 0.0  ;;  %v8761_v37 = vmul.f32 0.2, %v8659_v10  ;;  %v8846_v47 = vld [vmem:[%s9417_s23 + $0xd8] sm:$0xff] }
 0x6cf   : > { %v8874_v34 = vadd.f32 %v8842_v8, %v8810_v30 }
 0x6d0   : > { %v8793_v54 = vsel %vm8729_vm13, %v8659_v10, %v8761_v37 }
 0x6d1   : > { %v8906_v7 = vmul.f32 0.70710677, %v8874_v34  ;;  %v8857_v11 = vadd.f32 %v8825_v36, %v8793_v54  ;;  %v8829_v34 = vld [vmem:[%s9417_s23 + $0x50] sm:$0xff] }
 0x6d2   : > { %v7788_v41 = vpop.permute.xlu1 %7787 }
 0x6d3   : > { %8939 = vst.msk [vmem:[%s12288_s8 + $0xb8] sm:$0xff] %vm8915_vm11, %v8906_v7  ;;  %v8889_v35 = vmul.f32 0.70710677, %v8857_v11  ;;  %v8660_v61 = vpop.f32.mrf.mxu1 }
 0x6d4   : > { %v7598_v12 = vpop.permute.xlu0 %7597  ;;  %7869 = vst.msk [vmem:[#allocation3 + $0x38] sm:$0xf] %vm3639_vm4, %v7788_v41  ;;  %v8661_v13 = vadd.f32 %v12263_v62, %v8660_v61  ;;  %v9321_v26 = vld [vmem:[#allocation3 + $0x78] sm:$0xff] }
 0x6d5   : > { %8922 = vst.msk [vmem:[%s12288_s8 + $0x30] sm:$0xff] %vm8915_vm11, %v8889_v35  ;;  %9283 = vmatmul.msk.bf16.gmra.mxu3 %vm4369_vm7, %v9321_v26 }
 0x6d6   : > { %7678 = vst.msk [vmem:[#allocation3 + $0x3c] sm:$0xf] %vm3446_vm2, %v7598_v12  ;;  %vm8730_vm14 = vcmp.ge.f32.partialorder %v8661_v13, 0.0  ;;  %v8762_v29 = vmul.f32 0.2, %v8661_v13 }
 0x6d7   : > { %7870 = vst.msk [vmem:[#allocation3 + $0x3c] sm:$0xf] %vm3639_vm4, %v7790_v49 }
 0x6d8   : > { %v8794_v17 = vsel %vm8730_vm14, %v8661_v13, %v8762_v29  ;;  %v8830_v13 = vld [vmem:[%s9417_s23 + $0x58] sm:$0xff] }
 0x6d9   : > { %v8858_v15 = vadd.f32 %v8826_v52, %v8794_v17 }
 0x6da   : > { %v8350_v28 = vpop.permute.xlu1 %8349 }
 0x6db   : > { %v8890_v3 = vmul.f32 0.70710677, %v8858_v15  ;;  %8430 = vst.msk [vmem:[#allocation3 + $0x3c] sm:$0xf] %vm4200_vm6, %v8350_v28  ;;  %v8847_v28 = vld [vmem:[%s9417_s23 + $0xe0] sm:$0xff] }
 0x6dc   : > { %v8348_v18 = vpop.permute.xlu0 %8347 }
 0x6dd   : > { %8429 = vst.msk [vmem:[#allocation3 + $0x38] sm:$0xf] %vm4200_vm6, %v8348_v18 }
 0x6de   : > { %8923 = vst.msk [vmem:[%s12288_s8 + $0x38] sm:$0xff] %vm8915_vm11, %v8890_v3 }
 0x6e4   : > { %v9313_v39 = vld [vmem:[#allocation3 + $0x38] sm:$0xff] }
 0x6e5   : > { %9275 = vmatmul.msk.bf16.gmra.mxu1 %vm4369_vm7, %v9313_v39 }
 0x6e8   : > { %v8703_v22 = vpop.f32.mrf.mxu3 }
 0x6e9   : > { %v8704_v19 = vadd.f32 %v12263_v62, %v8703_v22 }
 0x6eb   : > { %vm8747_vm2 = vcmp.ge.f32.partialorder %v8704_v19, 0.0  ;;  %v8779_v58 = vmul.f32 0.2, %v8704_v19 }
 0x6ed   : > { %v8811_v59 = vsel %vm8747_vm2, %v8704_v19, %v8779_v58 }
 0x6ee   : > { %v8875_v46 = vadd.f32 %v8843_v51, %v8811_v59  ;;  %v8848_v51 = vld [vmem:[%s9417_s23 + $0xe8] sm:$0xff] }
 0x6f0   : > { %v8907_v5 = vmul.f32 0.70710677, %v8875_v46  ;;  %v8705_v6 = vpop.f32.mrf.mxu3 }
 0x6f1   : > { %v8706_v14 = vadd.f32 %v12263_v62, %v8705_v6 }
 0x6f2   : > { %8940 = vst.msk [vmem:[%s12288_s8 + $0xc0] sm:$0xff] %vm8915_vm11, %v8907_v5  ;;  %v8663_v53 = vpop.f32.mrf.mxu1 }
 0x6f3   : > { %vm8748_vm4 = vcmp.ge.f32.partialorder %v8706_v14, 0.0  ;;  %v8780_v31 = vmul.f32 0.2, %v8706_v14  ;;  %v8664_v23 = vadd.f32 %v12263_v62, %v8663_v53  ;;  %v8831_v53 = vld [vmem:[%s9417_s23 + $0x60] sm:$0xff] }
 0x6f5   : > { %v8812_v40 = vsel %vm8748_vm4, %v8706_v14, %v8780_v31  ;;  %vm8731_vm6 = vcmp.ge.f32.partialorder %v8664_v23, 0.0  ;;  %v8763_v1 = vmul.f32 0.2, %v8664_v23 }
 0x6f6   : > { %v8876_v16 = vadd.f32 %v8844_v20, %v8812_v40 }
 0x6f7   : > { %v8795_v32 = vsel %vm8731_vm6, %v8664_v23, %v8763_v1 }
 0x6f8   : > { %v8908_v27 = vmul.f32 0.70710677, %v8876_v16  ;;  %v8859_v45 = vadd.f32 %v8827_v48, %v8795_v32  ;;  %v8832_v32 = vld [vmem:[%s9417_s23 + $0x68] sm:$0xff] }
 0x6fa   : > { %8941 = vst.msk [vmem:[%s12288_s8 + $0xc8] sm:$0xff] %vm8915_vm11, %v8908_v27  ;;  %v8891_v25 = vmul.f32 0.70710677, %v8859_v45  ;;  %v8665_v44 = vpop.f32.mrf.mxu1 }
 0x6fb   : > { %v8666_v4 = vadd.f32 %v12263_v62, %v8665_v44 }
 0x6fc   : > { %8924 = vst.msk [vmem:[%s12288_s8 + $0x40] sm:$0xff] %vm8915_vm11, %v8891_v25 }
 0x6fd   : > { %vm8732_vm7 = vcmp.ge.f32.partialorder %v8666_v4, 0.0  ;;  %v8764_v43 = vmul.f32 0.2, %v8666_v4 }
 0x6ff   : > { %v8796_v57 = vsel %vm8732_vm7, %v8666_v4, %v8764_v43 }
 0x700   : > { %v8860_v2 = vadd.f32 %v8828_v55, %v8796_v57  ;;  %v8849_v55 = vld [vmem:[%s9417_s23 + $0xf0] sm:$0xff] }
 0x702   : > { %v8892_v9 = vmul.f32 0.70710677, %v8860_v2 }
 0x704   : > { %8925 = vst.msk [vmem:[%s12288_s8 + $0x48] sm:$0xff] %vm8915_vm11, %v8892_v9 }
 0x710   : > { %v8708_v42 = vpop.f32.mrf.mxu3 }
 0x711   : > { %v8709_v50 = vadd.f32 %v12263_v62, %v8708_v42 }
 0x713   : > { %vm8749_vm15 = vcmp.ge.f32.partialorder %v8709_v50, 0.0  ;;  %v8781_v33 = vmul.f32 0.2, %v8709_v50 }
 0x715   : > { %v8813_v21 = vsel %vm8749_vm15, %v8709_v50, %v8781_v33 }
 0x716   : > { %v8877_v0 = vadd.f32 %v8845_v60, %v8813_v21 }
 0x718   : > { %v8909_v63 = vmul.f32 0.70710677, %v8877_v0  ;;  %v8710_v24 = vpop.f32.mrf.mxu3  ;;  %v8850_v0 = vld [vmem:[%s9417_s23 + $0xf8] sm:$0xff] }
 0x719   : > { %v8711_v56 = vadd.f32 %v12263_v62, %v8710_v24  ;;  %v8833_v24 = vld [vmem:[%s9417_s23 + $0x70] sm:$0xff] }
 0x71a   : > { %8942 = vst.msk [vmem:[%s12288_s8 + $0xd0] sm:$0xff] %vm8915_vm11, %v8909_v63 }
 0x71b   : > { %vm8750_vm5 = vcmp.ge.f32.partialorder %v8711_v56, 0.0  ;;  %v8782_v38 = vmul.f32 0.2, %v8711_v56  ;;  %v8668_v8 = vpop.f32.mrf.mxu1 }
 0x71c   : > { %v8669_v10 = vadd.f32 %v12263_v62, %v8668_v8 }
 0x71d   : > { %v8814_v30 = vsel %vm8750_vm5, %v8711_v56, %v8782_v38 }
 0x71e   : > { %v8878_v37 = vadd.f32 %v8846_v47, %v8814_v30  ;;  %vm8733_vm9 = vcmp.ge.f32.partialorder %v8669_v10, 0.0  ;;  %v8765_v36 = vmul.f32 0.2, %v8669_v10 }
 0x720   : > { %v8910_v54 = vmul.f32 0.70710677, %v8878_v37  ;;  %v8797_v7 = vsel %vm8733_vm9, %v8669_v10, %v8765_v36 }
 0x721   : > { %v8861_v11 = vadd.f32 %v8829_v34, %v8797_v7 }
 0x722   : > { %8943 = vst.msk [vmem:[%s12288_s8 + $0xd8] sm:$0xff] %vm8915_vm11, %v8910_v54  ;;  %v8834_v54 = vld [vmem:[%s9417_s23 + $0x78] sm:$0xff] }
 0x723   : > { %v8893_v41 = vmul.f32 0.70710677, %v8861_v11  ;;  %v8670_v35 = vpop.f32.mrf.mxu1 }
 0x724   : > { %v8671_v12 = vadd.f32 %v12263_v62, %v8670_v35 }
 0x725   : > { %8926 = vst.msk [vmem:[%s12288_s8 + $0x50] sm:$0xff] %vm8915_vm11, %v8893_v41 }
 0x726   : > { %vm8734_vm3 = vcmp.ge.f32.partialorder %v8671_v12, 0.0  ;;  %v8766_v61 = vmul.f32 0.2, %v8671_v12 }
 0x728   : > { %v8798_v26 = vsel %vm8734_vm3, %v8671_v12, %v8766_v61 }
 0x729   : > { %v8862_v49 = vadd.f32 %v8830_v13, %v8798_v26 }
 0x72b   : > { %v8894_v29 = vmul.f32 0.70710677, %v8862_v49 }
 0x72d   : > { %8927 = vst.msk [vmem:[%s12288_s8 + $0x58] sm:$0xff] %vm8915_vm11, %v8894_v29 }
 0x731   : > { %v8713_v52 = vpop.f32.mrf.mxu3 }
 0x732   : > { %v8714_v17 = vadd.f32 %v12263_v62, %v8713_v52 }
 0x734   : > { %vm8751_vm8 = vcmp.ge.f32.partialorder %v8714_v17, 0.0  ;;  %v8783_v15 = vmul.f32 0.2, %v8714_v17 }
 0x736   : > { %v8815_v3 = vsel %vm8751_vm8, %v8714_v17, %v8783_v15 }
 0x737   : > { %v8879_v18 = vadd.f32 %v8847_v28, %v8815_v3 }
 0x739   : > { %v8911_v39 = vmul.f32 0.70710677, %v8879_v18  ;;  %v8715_v22 = vpop.f32.mrf.mxu3 }
 0x73a   : > { %v8716_v19 = vadd.f32 %v12263_v62, %v8715_v22 }
 0x73b   : > { %8944 = vst.msk [vmem:[%s12288_s8 + $0xe0] sm:$0xff] %vm8915_vm11, %v8911_v39 }
 0x73c   : > { %vm8752_vm0 = vcmp.ge.f32.partialorder %v8716_v19, 0.0  ;;  %v8784_v58 = vmul.f32 0.2, %v8716_v19  ;;  %v8673_v59 = vpop.f32.mrf.mxu1 }
 0x73d   : > { %v8674_v5 = vadd.f32 %v12263_v62, %v8673_v59 }
 0x73e   : > { %v8816_v46 = vsel %vm8752_vm0, %v8716_v19, %v8784_v58 }
 0x73f   : > { %v8880_v6 = vadd.f32 %v8848_v51, %v8816_v46  ;;  %vm8735_vm12 = vcmp.ge.f32.partialorder %v8674_v5, 0.0  ;;  %v8767_v14 = vmul.f32 0.2, %v8674_v5 }
 0x741   : > { %v8912_v31 = vmul.f32 0.70710677, %v8880_v6  ;;  %v8799_v20 = vsel %vm8735_vm12, %v8674_v5, %v8767_v14 }
 0x742   : > { %v8863_v23 = vadd.f32 %v8831_v53, %v8799_v20 }
 0x743   : > { %8945 = vst.msk [vmem:[%s12288_s8 + $0xe8] sm:$0xff] %vm8915_vm11, %v8912_v31 }
 0x744   : > { %v8895_v40 = vmul.f32 0.70710677, %v8863_v23  ;;  %v8675_v1 = vpop.f32.mrf.mxu1 }
 0x745   : > { %v8676_v48 = vadd.f32 %v12263_v62, %v8675_v1 }
 0x746   : > { %8928 = vst.msk [vmem:[%s12288_s8 + $0x60] sm:$0xff] %vm8915_vm11, %v8895_v40 }
 0x747   : > { %vm8736_vm10 = vcmp.ge.f32.partialorder %v8676_v48, 0.0  ;;  %v8768_v16 = vmul.f32 0.2, %v8676_v48 }
 0x749   : > { %v8800_v27 = vsel %vm8736_vm10, %v8676_v48, %v8768_v16 }
 0x74a   : > { %v8864_v45 = vadd.f32 %v8832_v32, %v8800_v27 }
 0x74c   : > { %v8896_v25 = vmul.f32 0.70710677, %v8864_v45 }
 0x74e   : > { %8929 = vst.msk [vmem:[%s12288_s8 + $0x68] sm:$0xff] %vm8915_vm11, %v8896_v25 }
 0x758   : > { %v8718_v44 = vpop.f32.mrf.mxu3 }
 0x759   : > { %v8719_v4 = vadd.f32 %v12263_v62, %v8718_v44 }
 0x75b   : > { %vm8753_vm1 = vcmp.ge.f32.partialorder %v8719_v4, 0.0  ;;  %v8785_v43 = vmul.f32 0.2, %v8719_v4 }
 0x75d   : > { %v8817_v57 = vsel %vm8753_vm1, %v8719_v4, %v8785_v43 }
 0x75e   : > { %v8881_v2 = vadd.f32 %v8849_v55, %v8817_v57 }
 0x760   : > { %v8913_v9 = vmul.f32 0.70710677, %v8881_v2  ;;  %v8720_v42 = vpop.f32.mrf.mxu3 }
 0x761   : > { %v8721_v50 = vadd.f32 %v12263_v62, %v8720_v42 }
 0x762   : > { %v8678_v33 = vpop.f32.mrf.mxu1  ;;  %8946 = vst.msk [vmem:[%s12288_s8 + $0xf0] sm:$0xff] %vm8915_vm11, %v8913_v9 }
 0x763   : > { %v8679_v60 = vadd.f32 %v12263_v62, %v8678_v33  ;;  %vm8754_vm13 = vcmp.ge.f32.partialorder %v8721_v50, 0.0  ;;  %v8786_v21 = vmul.f32 0.2, %v8721_v50 }
 0x765   : > { %vm8737_vm14 = vcmp.ge.f32.partialorder %v8679_v60, 0.0  ;;  %v8769_v63 = vmul.f32 0.2, %v8679_v60  ;;  %v8818_v56 = vsel %vm8754_vm13, %v8721_v50, %v8786_v21 }
 0x766   : > { %v8882_v38 = vadd.f32 %v8850_v0, %v8818_v56 }
 0x767   : > { %v8801_v47 = vsel %vm8737_vm14, %v8679_v60, %v8769_v63 }
 0x768   : > { %v8865_v8 = vadd.f32 %v8833_v24, %v8801_v47  ;;  %v8914_v10 = vmul.f32 0.70710677, %v8882_v38 }
 0x76a   : > { %v8897_v30 = vmul.f32 0.70710677, %v8865_v8  ;;  %v8680_v37 = vpop.f32.mrf.mxu1  ;;  %8947 = vst.msk [vmem:[%s12288_s8 + $0xf8] sm:$0xff] %vm8915_vm11, %v8914_v10 }
 0x76b   : > { %v8681_v36 = vadd.f32 %v12263_v62, %v8680_v37 }
 0x76c   : > { %8930 = vst.msk [vmem:[%s12288_s8 + $0x70] sm:$0xff] %vm8915_vm11, %v8897_v30 }
 0x76d   : > { %vm8738_vm2 = vcmp.ge.f32.partialorder %v8681_v36, 0.0  ;;  %v8770_v34 = vmul.f32 0.2, %v8681_v36 }
 0x76f   : > { %v8802_v7 = vsel %vm8738_vm2, %v8681_v36, %v8770_v34 }
 0x770   : > { %v8866_v11 = vadd.f32 %v8834_v54, %v8802_v7 }
 0x772   : > { %v8898_v41 = vmul.f32 0.70710677, %v8866_v11 }
 0x774   : > { %8931 = vst.msk [vmem:[%s12288_s8 + $0x78] sm:$0xff] %vm8915_vm11, %v8898_v41 }
 0x775 PF: > { %s15_s18 = sadd.s32 1, %s9356_s18  }
 0x776   : > { %p12_p4 = scmp.ge.s32.totalorder %s15_s18, 4  }
 0x778   :  { %14 = sbr.rel (!%p12_p4) target bundleno = 1 (0x1), region = 73 }

</bundles_post_ra>
